<compile_context>
chip_gen: v7x
topology: tpu7x:2x2x1
jax: 0.10.0
libtpu: 0.0.40
codegen_flags: <defaults>
</compile_context>

<pallas_src>
import functools

import jax
import jax.numpy as jnp
from jax.experimental import pallas as pl
from jax.experimental.pallas import tpu as pltpu


# ----------------------------------------------------------------------------
# Fused cell gate math (pure jnp) -- shared by the Pallas kernel body and the
# pure-JAX fused reference so both paths execute identical math.
#
# Packed per-layer parameterization (all weights stored (in, out)):
#   pre  : (B, 7H) pre-activations, columns = [gt | it | ft | g_t | i_t | f_t | ot]
#   Wp   : (2H, 2H)  rows 0:H act on c_t, rows H:2H act on m_t;
#                    cols 0:H  = [Wco ; Wmo]  (output-gate add)
#                    cols H:2H = W11 rows     (W11(cat([c_t, m_t])))
#   bp   : (1, 2H) = [bco + bmo | b11]
# ----------------------------------------------------------------------------
def _fused_gates(pre, c_prev, m_prev, Wp, bp, H, compute_dtype):
    gt = jnp.tanh(pre[:, 0 * H:1 * H])
    it = jax.nn.sigmoid(pre[:, 1 * H:2 * H])
    ft = jax.nn.sigmoid(pre[:, 2 * H:3 * H])
    c_t = ft * c_prev + it * gt

    g_t = jnp.tanh(pre[:, 3 * H:4 * H])
    i_t = jax.nn.sigmoid(pre[:, 4 * H:5 * H])
    f_t = jax.nn.sigmoid(pre[:, 5 * H:6 * H])
    m_t = f_t * m_prev + i_t * g_t

    # Two accumulated K=H dots instead of concat([c_t, m_t]) @ Wp.
    post = (jnp.dot(c_t.astype(compute_dtype), Wp[:H, :],
                    preferred_element_type=jnp.float32)
            + jnp.dot(m_t.astype(compute_dtype), Wp[H:, :],
                      preferred_element_type=jnp.float32)
            + bp)
    ot = jax.nn.sigmoid(pre[:, 6 * H:7 * H] + post[:, :H])
    h_t = ot * jnp.tanh(post[:, H:])
    return h_t, c_t, m_t


# ----------------------------------------------------------------------------
# Pallas kernel: grid = (batch_blocks ["parallel"], T // TT ["arbitrary"]).
# Per-layer recurrent state (h, c, m) is resident in VMEM scratch across the
# time-chunk axis; the inner loop over TT timesteps is fully unrolled.
# ----------------------------------------------------------------------------
def predrnn_kernel(*refs, hidden_dim, num_layers, time_chunk, compute_dtype):
    H = hidden_dim
    n_in = 1 + 3 + 4 * (num_layers - 1)
    xw0_ref = refs[0]                       # (TT, Bc, 7H) hoisted layer-0 preact
    w_refs = refs[1:n_in]
    out_ref = refs[n_in]                    # (TT, Bc, H) top-layer hidden
    h_scr, c_scr, m_scr = refs[n_in + 1:n_in + 4]

    tc = pl.program_id(1)                   # time-chunk index

    @pl.when(tc == 0)
    def _init():
        h_scr[...] = jnp.zeros_like(h_scr)
        c_scr[...] = jnp.zeros_like(c_scr)
        m_scr[...] = jnp.zeros_like(m_scr)

    cd = compute_dtype
    # Layer 0 in-kernel weights: recurrent path only (input path was hoisted).
    w_rec0 = w_refs[0][...]                 # (2H, 7H), already in compute dtype
    wp0 = w_refs[1][...]                    # (2H, 2H)
    bp0 = w_refs[2][...]                    # (1, 2H) f32
    upper = []
    for i in range(num_layers - 1):
        wf_ref, b_ref, wp_ref, bp_ref = w_refs[3 + 4 * i:3 + 4 * (i + 1)]
        upper.append((wf_ref[...], b_ref[...], wp_ref[...], bp_ref[...]))

    for tt in range(time_chunk):            # unrolled inner time loop
        # ---- layer 0: pre = xw0_t + [h0, m0] @ W_rec0 ----
        h0 = h_scr[0]
        c0 = c_scr[0]
        m0 = m_scr[0]
        hm = jnp.concatenate([h0, m0], axis=1).astype(cd)
        pre = xw0_ref[tt] + jnp.dot(hm, w_rec0,
                                    preferred_element_type=jnp.float32)
        h_t, c_t, m_t = _fused_gates(pre, c0, m0, wp0, bp0, H, cd)
        h_scr[0] = h_t
        c_scr[0] = c_t
        m_scr[0] = m_t
        inp = h_t

        # ---- layers 1..L-1: pre = [x, h, m] @ W_full + b (single deep-K dot) ----
        for li, (wf, b, wp, bp) in enumerate(upper, start=1):
            hl = h_scr[li]
            cl = c_scr[li]
            ml = m_scr[li]
            xhm = jnp.concatenate([inp, hl, ml], axis=1).astype(cd)
            pre = jnp.dot(xhm, wf, preferred_element_type=jnp.float32) + b
            h_t, c_t, m_t = _fused_gates(pre, cl, ml, wp, bp, H, cd)
            h_scr[li] = h_t
            c_scr[li] = c_t
            m_scr[li] = m_t
            inp = h_t

        out_ref[tt] = inp                   # lane-dense (Bc, H) store


# ----------------------------------------------------------------------------
# Wrapper: hoisted layer-0 projection + Pallas recurrence + hoisted fc.
# ----------------------------------------------------------------------------
def predrnn_forward(x, packed, *, hidden_dim, num_layers, output_dim,
                    time_chunk=4, batch_blocks=1,
                    compute_dtype=jnp.float32):
    """x: (B, T, Din) f32 -> (B, T, output_dim) f32."""
    layers, (Wfc, bfc) = packed
    B, T, Din = x.shape
    H = hidden_dim
    assert H % 128 == 0, "hidden_dim must be lane-aligned (multiple of 128)"
    assert T % time_chunk == 0
    assert B % batch_blocks == 0
    Bc = B // batch_blocks
    assert Bc % 8 == 0, "per-core batch block must be a multiple of 8 sublanes"
    n_chunks = T // time_chunk
    cd = compute_dtype

    # --- hoisted layer-0 input projection: one big (T*B, Din) matmul ---
    W_in0, b0, W_rec0, Wp0, bp0 = layers[0]
    x_tm = jnp.transpose(x, (1, 0, 2))                      # (T, B, Din)
    xw0 = (jnp.dot(x_tm.reshape(T * B, Din).astype(cd), W_in0.astype(cd),
                   preferred_element_type=jnp.float32)
           + b0).reshape(T, B, 7 * H)                       # f32 pre-activations

    # --- kernel weights (matmul weights pre-cast to compute dtype) ---
    flat_w = [W_rec0.astype(cd), Wp0.astype(cd), bp0]
    for l in range(1, num_layers):
        W_in, b, W_rec, Wp, bp = layers[l]
        W_full = jnp.concatenate([W_in, W_rec], axis=0)     # (3H, 7H)
        flat_w.extend([W_full.astype(cd), b, Wp.astype(cd), bp])

    in_specs = [pl.BlockSpec((time_chunk, Bc, 7 * H), lambda cb, tc: (tc, cb, 0))]
    for w in flat_w:
        in_specs.append(pl.BlockSpec(w.shape, lambda cb, tc: (0, 0)))

    fn = pl.pallas_call(
        functools.partial(predrnn_kernel, hidden_dim=H, num_layers=num_layers,
                          time_chunk=time_chunk, compute_dtype=cd),
        out_shape=jax.ShapeDtypeStruct((T, B, H), jnp.float32),
        grid_spec=pltpu.PrefetchScalarGridSpec(
            num_scalar_prefetch=0,
            grid=(batch_blocks, n_chunks),
            in_specs=in_specs,
            out_specs=pl.BlockSpec((time_chunk, Bc, H), lambda cb, tc: (tc, cb, 0)),
            scratch_shapes=[pltpu.VMEM((num_layers, Bc, H), jnp.float32)
                            for _ in range(3)],
        ),
        compiler_params=pltpu.CompilerParams(
            dimension_semantics=("parallel", "arbitrary"),
            vmem_limit_bytes=48 * 1024 * 1024),
    )
    h_top = fn(xw0, *flat_w)                                # (T, B, H)

    # --- hoisted fc: one (T*B, H) @ (H, out) matmul ---
    out = (jnp.dot(h_top.reshape(T * B, H).astype(cd), Wfc.astype(cd),
                   preferred_element_type=jnp.float32)
           + bfc).reshape(T, B, output_dim)
    return jnp.transpose(out, (1, 0, 2))                    # (B, T, output_dim)


# ----------------------------------------------------------------------------
# Pure-JAX fused reference (identical packed math as the kernel path).
# ----------------------------------------------------------------------------
def predrnn_fused_reference(x, packed, *, hidden_dim, num_layers, output_dim,
                            compute_dtype=jnp.float32):
    layers, (Wfc, bfc) = packed
    B, T, Din = x.shape
    H = hidden_dim
    cd = compute_dtype
    W_in0, b0, W_rec0, Wp0, bp0 = layers[0]

    x_tm = jnp.transpose(x, (1, 0, 2))
    xw0 = (jnp.dot(x_tm.reshape(T * B, Din).astype(cd), W_in0.astype(cd),
                   preferred_element_type=jnp.float32)
           + b0).reshape(T, B, 7 * H)

    h = [jnp.zeros((B, H), jnp.float32) for _ in range(num_layers)]
    c = [jnp.zeros((B, H), jnp.float32) for _ in range(num_layers)]
    m = [jnp.zeros((B, H), jnp.float32) for _ in range(num_layers)]
    outs = []
    for t in range(T):
        hm = jnp.concatenate([h[0], m[0]], axis=1).astype(cd)
        pre = xw0[t] + jnp.dot(hm, W_rec0.astype(cd),
                               preferred_element_type=jnp.float32)
        h[0], c[0], m[0] = _fused_gates(pre, c[0], m[0], Wp0.astype(cd), bp0, H, cd)
        inp = h[0]
        for l in range(1, num_layers):
            W_in, b, W_rec, Wp, bp = layers[l]
            W_full = jnp.concatenate([W_in, W_rec], axis=0).astype(cd)
            xhm = jnp.concatenate([inp, h[l], m[l]], axis=1).astype(cd)
            pre = jnp.dot(xhm, W_full, preferred_element_type=jnp.float32) + b
            h[l], c[l], m[l] = _fused_gates(pre, c[l], m[l], Wp.astype(cd), bp, H, cd)
            inp = h[l]
        outs.append(inp)
    h_top = jnp.stack(outs, axis=0)                         # (T, B, H)
    out = (jnp.dot(h_top.reshape(T * B, H).astype(cd), Wfc.astype(cd),
                   preferred_element_type=jnp.float32)
           + bfc).reshape(T, B, output_dim)
    return jnp.transpose(out, (1, 0, 2))


# ----------------------------------------------------------------------------
# Unfused pure-JAX reference mirroring the PyTorch module structure exactly
# (separate nn.Linear per gate, deterministic epsilon -> 0 path).
# ----------------------------------------------------------------------------
def predrnn_reference_unfused(x, cells, fc, *, hidden_dim, num_layers):
    B, T, _ = x.shape
    H = hidden_dim

    def lin(p, v):
        W, b = p                                            # torch layout (out, in)
        return jnp.dot(v, W.T, preferred_element_type=jnp.float32) + b

    h = [jnp.zeros((B, H), jnp.float32) for _ in range(num_layers)]
    c = [jnp.zeros((B, H), jnp.float32) for _ in range(num_layers)]
    m = [jnp.zeros((B, H), jnp.float32) for _ in range(num_layers)]
    outs = []
    for t in range(T):
        x_t = x[:, t, :]
        for l in range(num_layers):
            cell = cells[l]
            inp = x_t if l == 0 else h[l - 1]
            gt = jnp.tanh(lin(cell["Wxg"], inp) + lin(cell["Whg"], h[l]))
            it = jax.nn.sigmoid(lin(cell["Wxi"], inp) + lin(cell["Whi"], h[l]))
            ft = jax.nn.sigmoid(lin(cell["Wxf"], inp) + lin(cell["Whf"], h[l]))
            c[l] = ft * c[l] + it * gt
            g_t = jnp.tanh(lin(cell["W_xg"], inp) + lin(cell["Wmg"], m[l]))
            i_t = jax.nn.sigmoid(lin(cell["W_xi"], inp) + lin(cell["Wmi"], m[l]))
            f_t = jax.nn.sigmoid(lin(cell["W_xf"], inp) + lin(cell["Wmf"], m[l]))
            m[l] = f_t * m[l] + i_t * g_t
            ot = jax.nn.sigmoid(lin(cell["Wxo"], inp) + lin(cell["Who"], h[l])
                                + lin(cell["Wco"], c[l]) + lin(cell["Wmo"], m[l]))
            h[l] = ot * jnp.tanh(
                lin(cell["W11"], jnp.concatenate([c[l], m[l]], axis=1)))
        outs.append(h[-1])
    out = jnp.stack(outs, axis=1)                           # (B, T, H)
    Wfc, bfc = fc
    return jnp.dot(out, Wfc.T, preferred_element_type=jnp.float32) + bfc


# ----------------------------------------------------------------------------
# Parameter construction: torch-like per-gate Linear params + host-side packing.
# ----------------------------------------------------------------------------
def _linear_params(key, fan_in, fan_out):
    k_w, k_b = jax.random.split(key)
    bound = 1.0 / (fan_in ** 0.5)
    W = jax.random.uniform(k_w, (fan_out, fan_in), jnp.float32, -bound, bound)
    b = jax.random.uniform(k_b, (fan_out,), jnp.float32, -bound, bound)
    return W, b


def init_torch_like_params(key, *, input_dim, hidden_dim, num_layers, output_dim):
    H = hidden_dim
    gate_names = ["Wxg", "Whg", "Wxi", "Whi", "Wxf", "Whf", "W_xg", "Wmg",
                  "W_xi", "Wmi", "W_xf", "Wmf", "Wxo", "Who", "Wco", "Wmo", "W11"]
    cells = []
    for l in range(num_layers):
        din = input_dim if l == 0 else H
        cell = {}
        for name in gate_names:
            key, sub = jax.random.split(key)
            if name.startswith("Wx") or name.startswith("W_x"):
                fan_in = din
            elif name == "W11":
                fan_in = 2 * H
            else:
                fan_in = H
            cell[name] = _linear_params(sub, fan_in, H)
        cells.append(cell)
    key, sub = jax.random.split(key)
    fc = _linear_params(sub, H, output_dim)
    return cells, fc


def pack_params(cells, fc, *, input_dim, hidden_dim, num_layers):
    """Pack per-gate Linear params into the fused kernel layout."""
    H = hidden_dim

    def wT(p):
        return p[0].T                                       # (in, out)

    def bias(p):
        return p[1][None, :]                                # (1, out)

    packed_layers = []
    for l in range(num_layers):
        cell = cells[l]
        # Input-path weight, gate order [gt | it | ft | g_t | i_t | f_t | ot].
        W_in = jnp.concatenate(
            [wT(cell["Wxg"]), wT(cell["Wxi"]), wT(cell["Wxf"]),
             wT(cell["W_xg"]), wT(cell["W_xi"]), wT(cell["W_xf"]),
             wT(cell["Wxo"])], axis=1)                      # (din, 7H)
        b_all = jnp.concatenate(
            [bias(cell["Wxg"]) + bias(cell["Whg"]),
             bias(cell["Wxi"]) + bias(cell["Whi"]),
             bias(cell["Wxf"]) + bias(cell["Whf"]),
             bias(cell["W_xg"]) + bias(cell["Wmg"]),
             bias(cell["W_xi"]) + bias(cell["Wmi"]),
             bias(cell["W_xf"]) + bias(cell["Wmf"]),
             bias(cell["Wxo"]) + bias(cell["Who"])], axis=1)  # (1, 7H)
        z3 = jnp.zeros((H, 3 * H), jnp.float32)
        z1 = jnp.zeros((H, H), jnp.float32)
        W_rec_h = jnp.concatenate(
            [wT(cell["Whg"]), wT(cell["Whi"]), wT(cell["Whf"]), z3,
             wT(cell["Who"])], axis=1)                      # (H, 7H)
        W_rec_m = jnp.concatenate(
            [z3, wT(cell["Wmg"]), wT(cell["Wmi"]), wT(cell["Wmf"]), z1],
            axis=1)                                         # (H, 7H)
        W_rec = jnp.concatenate([W_rec_h, W_rec_m], axis=0)  # (2H, 7H)

        W11T = wT(cell["W11"])                              # (2H, H)
        Wp = jnp.concatenate(
            [jnp.concatenate([wT(cell["Wco"]), W11T[:H]], axis=1),
             jnp.concatenate([wT(cell["Wmo"]), W11T[H:]], axis=1)],
            axis=0)                                         # (2H, 2H)
        bp = jnp.concatenate(
            [bias(cell["Wco"]) + bias(cell["Wmo"]), bias(cell["W11"])],
            axis=1)                                         # (1, 2H)
        packed_layers.append((W_in, b_all, W_rec, Wp, bp))

    Wfc, bfc = wT(fc), bias(fc)
    return packed_layers, (Wfc, bfc)


if __name__ == "__main__":
    # Small TPU-friendly stand-ins for (input_dim=64*64*3, hidden=256, B=32).
    B, T, DIN, H, NL, OUT = 16, 8, 192, 128, 2, 8

    key = jax.random.PRNGKey(0)
    kx, kp = jax.random.split(key)
    x = jax.random.normal(kx, (B, T, DIN), jnp.float32)
    cells, fc = init_torch_like_params(kp, input_dim=DIN, hidden_dim=H,
                                       num_layers=NL, output_dim=OUT)
    packed = pack_params(cells, fc, input_dim=DIN, hidden_dim=H, num_layers=NL)

    # f32 path, validated against the unfused (PyTorch-structured) reference.
    out_f32 = predrnn_forward(x, packed, hidden_dim=H, num_layers=NL,
                              output_dim=OUT, time_chunk=4, batch_blocks=2,
                              compute_dtype=jnp.float32)
    out_f32 = jax.block_until_ready(out_f32)
    ref = predrnn_reference_unfused(x, cells, fc, hidden_dim=H, num_layers=NL)
    assert out_f32.shape == (B, T, OUT), out_f32.shape
    assert jnp.allclose(out_f32, ref, rtol=1e-3, atol=1e-3), (
        float(jnp.max(jnp.abs(out_f32 - ref))))

    # bf16-operand path (MXU bf16 on v6e/v7x), validated against a fused
    # reference that uses the identical packed math and dtype.
    out_bf16 = predrnn_forward(x, packed, hidden_dim=H, num_layers=NL,
                               output_dim=OUT, time_chunk=4, batch_blocks=2,
                               compute_dtype=jnp.bfloat16)
    out_bf16 = jax.block_until_ready(out_bf16)
    ref_bf16 = predrnn_fused_reference(x, packed, hidden_dim=H, num_layers=NL,
                                       output_dim=OUT,
                                       compute_dtype=jnp.bfloat16)
    assert jnp.allclose(out_bf16, ref_bf16, rtol=2e-2, atol=2e-2), (
        float(jnp.max(jnp.abs(out_bf16 - ref_bf16))))

    print("KERNEL_OK")
</pallas_src>

<mosaic_0001>
module attributes {stable_mosaic.version = 11 : i64} {
  func.func @predrnn_kernel(%arg0: i32, %arg1: i32, %arg2: memref<4x8x896xf32, #tpu.memory_space<vmem>>, %arg3: memref<256x896xf32, #tpu.memory_space<vmem>>, %arg4: memref<256x256xf32, #tpu.memory_space<vmem>>, %arg5: memref<1x256xf32, #tpu.memory_space<vmem>>, %arg6: memref<384x896xf32, #tpu.memory_space<vmem>>, %arg7: memref<1x896xf32, #tpu.memory_space<vmem>>, %arg8: memref<256x256xf32, #tpu.memory_space<vmem>>, %arg9: memref<1x256xf32, #tpu.memory_space<vmem>>, %arg10: memref<4x8x128xf32, #tpu.memory_space<vmem>>, %arg11: memref<2x8x128xf32, #tpu.memory_space<vmem>>, %arg12: memref<2x8x128xf32, #tpu.memory_space<vmem>>, %arg13: memref<2x8x128xf32, #tpu.memory_space<vmem>>) attributes {dimension_semantics = [#tpu.dimension_semantics<parallel>, #tpu.dimension_semantics<arbitrary>], iteration_bounds = array<i64: 2, 2>, scalar_prefetch = 0 : i64, scratch_operands = 3 : i64, tpu.core_type = #tpu.core_type<tc>, window_params = [{transform_indices = @transform_0, window_bounds = array<i64: 4, 8, 896>}, {pipeline_mode = #tpu.pipeline_mode<synchronous>, transform_indices = @transform_1, window_bounds = array<i64: 256, 896>}, {pipeline_mode = #tpu.pipeline_mode<synchronous>, transform_indices = @transform_2, window_bounds = array<i64: 256, 256>}, {pipeline_mode = #tpu.pipeline_mode<synchronous>, transform_indices = @transform_3, window_bounds = array<i64: 1, 256>}, {pipeline_mode = #tpu.pipeline_mode<synchronous>, transform_indices = @transform_4, window_bounds = array<i64: 384, 896>}, {pipeline_mode = #tpu.pipeline_mode<synchronous>, transform_indices = @transform_5, window_bounds = array<i64: 1, 896>}, {pipeline_mode = #tpu.pipeline_mode<synchronous>, transform_indices = @transform_6, window_bounds = array<i64: 256, 256>}, {pipeline_mode = #tpu.pipeline_mode<synchronous>, transform_indices = @transform_7, window_bounds = array<i64: 1, 256>}, {transform_indices = @transform_8, window_bounds = array<i64: 4, 8, 128>}]} {
    %c0_i32 = arith.constant 0 : i32
    %0 = arith.cmpi eq, %arg1, %c0_i32 : i32
    %1 = arith.extui %0 : i1 to i32
    %c0_i32_0 = arith.constant 0 : i32
    %2 = arith.cmpi ne, %1, %c0_i32_0 : i32
    scf.if %2 {
      %cst_242 = arith.constant 0.000000e+00 : f32
      %594 = vector.broadcast %cst_242 : f32 to vector<2x8x128xf32>
      %c0_243 = arith.constant 0 : index
      %c0_244 = arith.constant 0 : index
      %c0_245 = arith.constant 0 : index
      %595 = vector.load %arg11[%c0_243, %c0_244, %c0_245] : memref<2x8x128xf32, #tpu.memory_space<vmem>>, vector<2x8x128xf32>
      tpu.vector_store %arg11[%c0_243, %c0_244, %c0_245], %594 {strides = array<i32>} : memref<2x8x128xf32, #tpu.memory_space<vmem>>, vector<2x8x128xf32>,
      %cst_246 = arith.constant 0.000000e+00 : f32
      %596 = vector.broadcast %cst_246 : f32 to vector<2x8x128xf32>
      %c0_247 = arith.constant 0 : index
      %c0_248 = arith.constant 0 : index
      %c0_249 = arith.constant 0 : index
      %597 = vector.load %arg12[%c0_247, %c0_248, %c0_249] : memref<2x8x128xf32, #tpu.memory_space<vmem>>, vector<2x8x128xf32>
      tpu.vector_store %arg12[%c0_247, %c0_248, %c0_249], %596 {strides = array<i32>} : memref<2x8x128xf32, #tpu.memory_space<vmem>>, vector<2x8x128xf32>,
      %cst_250 = arith.constant 0.000000e+00 : f32
      %598 = vector.broadcast %cst_250 : f32 to vector<2x8x128xf32>
      %c0_251 = arith.constant 0 : index
      %c0_252 = arith.constant 0 : index
      %c0_253 = arith.constant 0 : index
      %599 = vector.load %arg13[%c0_251, %c0_252, %c0_253] : memref<2x8x128xf32, #tpu.memory_space<vmem>>, vector<2x8x128xf32>
      tpu.vector_store %arg13[%c0_251, %c0_252, %c0_253], %598 {strides = array<i32>} : memref<2x8x128xf32, #tpu.memory_space<vmem>>, vector<2x8x128xf32>,
    } else {
    }
    %c0 = arith.constant 0 : index
    %c0_1 = arith.constant 0 : index
    %3 = vector.load %arg3[%c0, %c0_1] : memref<256x896xf32, #tpu.memory_space<vmem>>, vector<256x896xf32>
    %c0_2 = arith.constant 0 : index
    %c0_3 = arith.constant 0 : index
    %4 = vector.load %arg4[%c0_2, %c0_3] : memref<256x256xf32, #tpu.memory_space<vmem>>, vector<256x256xf32>
    %c0_4 = arith.constant 0 : index
    %c0_5 = arith.constant 0 : index
    %5 = vector.load %arg5[%c0_4, %c0_5] : memref<1x256xf32, #tpu.memory_space<vmem>>, vector<1x256xf32>
    %c0_6 = arith.constant 0 : index
    %c0_7 = arith.constant 0 : index
    %6 = vector.load %arg6[%c0_6, %c0_7] : memref<384x896xf32, #tpu.memory_space<vmem>>, vector<384x896xf32>
    %c0_8 = arith.constant 0 : index
    %c0_9 = arith.constant 0 : index
    %7 = vector.load %arg7[%c0_8, %c0_9] : memref<1x896xf32, #tpu.memory_space<vmem>>, vector<1x896xf32>
    %c0_10 = arith.constant 0 : index
    %c0_11 = arith.constant 0 : index
    %8 = vector.load %arg8[%c0_10, %c0_11] : memref<256x256xf32, #tpu.memory_space<vmem>>, vector<256x256xf32>
    %c0_12 = arith.constant 0 : index
    %c0_13 = arith.constant 0 : index
    %9 = vector.load %arg9[%c0_12, %c0_13] : memref<1x256xf32, #tpu.memory_space<vmem>>, vector<1x256xf32>
    %c0_14 = arith.constant 0 : index
    %c0_15 = arith.constant 0 : index
    %c0_16 = arith.constant 0 : index
    %10 = vector.load %arg11[%c0_14, %c0_15, %c0_16] : memref<2x8x128xf32, #tpu.memory_space<vmem>>, vector<1x8x128xf32>
    %11 = vector.shape_cast %10 : vector<1x8x128xf32> to vector<8x128xf32>
    %c0_17 = arith.constant 0 : index
    %c0_18 = arith.constant 0 : index
    %c0_19 = arith.constant 0 : index
    %12 = vector.load %arg12[%c0_17, %c0_18, %c0_19] : memref<2x8x128xf32, #tpu.memory_space<vmem>>, vector<1x8x128xf32>
    %13 = vector.shape_cast %12 : vector<1x8x128xf32> to vector<8x128xf32>
    %c0_20 = arith.constant 0 : index
    %c0_21 = arith.constant 0 : index
    %c0_22 = arith.constant 0 : index
    %14 = vector.load %arg13[%c0_20, %c0_21, %c0_22] : memref<2x8x128xf32, #tpu.memory_space<vmem>>, vector<1x8x128xf32>
    %15 = vector.shape_cast %14 : vector<1x8x128xf32> to vector<8x128xf32>
    %16 = tpu.concatenate %11, %15 in 1 : vector<8x128xf32>, vector<8x128xf32> -> vector<8x256xf32>
    %c0_23 = arith.constant 0 : index
    %c0_24 = arith.constant 0 : index
    %c0_25 = arith.constant 0 : index
    %17 = vector.load %arg2[%c0_23, %c0_24, %c0_25] : memref<4x8x896xf32, #tpu.memory_space<vmem>>, vector<1x8x896xf32>
    %18 = vector.shape_cast %17 : vector<1x8x896xf32> to vector<8x896xf32>
    %cst = arith.constant dense<0.000000e+00> : vector<8x896xf32>
    %19 = tpu.matmul %16, %3, %cst {dimension_numbers = #tpu.dot_dimension_numbers<[1], [0], [0], [1], [0, 0, 1, 1], [], []>} : vector<8x256xf32>, vector<256x896xf32>, vector<8x896xf32> -> vector<8x896xf32>
    %20 = arith.addf %18, %19 : vector<8x896xf32>
    %21 = vector.extract_strided_slice %20 {offsets = [0, 0], sizes = [8, 128], strides = [1, 1]} : vector<8x896xf32> to vector<8x128xf32>
    %22 = math.tanh %21 : vector<8x128xf32>
    %23 = vector.extract_strided_slice %20 {offsets = [0, 128], sizes = [8, 128], strides = [1, 1]} : vector<8x896xf32> to vector<8x128xf32>
    %24 = arith.negf %23 : vector<8x128xf32>
    %25 = math.exp %24 : vector<8x128xf32>
    %cst_26 = arith.constant 1.000000e+00 : f32
    %26 = vector.broadcast %cst_26 : f32 to vector<8x128xf32>
    %27 = arith.addf %26, %25 : vector<8x128xf32>
    %28 = arith.divf %26, %27 : vector<8x128xf32>
    %29 = vector.extract_strided_slice %20 {offsets = [0, 256], sizes = [8, 128], strides = [1, 1]} : vector<8x896xf32> to vector<8x128xf32>
    %30 = arith.negf %29 : vector<8x128xf32>
    %31 = math.exp %30 : vector<8x128xf32>
    %cst_27 = arith.constant 1.000000e+00 : f32
    %32 = vector.broadcast %cst_27 : f32 to vector<8x128xf32>
    %33 = arith.addf %32, %31 : vector<8x128xf32>
    %34 = arith.divf %32, %33 : vector<8x128xf32>
    %35 = arith.mulf %34, %13 : vector<8x128xf32>
    %36 = arith.mulf %28, %22 : vector<8x128xf32>
    %37 = arith.addf %35, %36 : vector<8x128xf32>
    %38 = vector.extract_strided_slice %20 {offsets = [0, 384], sizes = [8, 128], strides = [1, 1]} : vector<8x896xf32> to vector<8x128xf32>
    %39 = math.tanh %38 : vector<8x128xf32>
    %40 = vector.extract_strided_slice %20 {offsets = [0, 512], sizes = [8, 128], strides = [1, 1]} : vector<8x896xf32> to vector<8x128xf32>
    %41 = arith.negf %40 : vector<8x128xf32>
    %42 = math.exp %41 : vector<8x128xf32>
    %cst_28 = arith.constant 1.000000e+00 : f32
    %43 = vector.broadcast %cst_28 : f32 to vector<8x128xf32>
    %44 = arith.addf %43, %42 : vector<8x128xf32>
    %45 = arith.divf %43, %44 : vector<8x128xf32>
    %46 = vector.extract_strided_slice %20 {offsets = [0, 640], sizes = [8, 128], strides = [1, 1]} : vector<8x896xf32> to vector<8x128xf32>
    %47 = arith.negf %46 : vector<8x128xf32>
    %48 = math.exp %47 : vector<8x128xf32>
    %cst_29 = arith.constant 1.000000e+00 : f32
    %49 = vector.broadcast %cst_29 : f32 to vector<8x128xf32>
    %50 = arith.addf %49, %48 : vector<8x128xf32>
    %51 = arith.divf %49, %50 : vector<8x128xf32>
    %52 = arith.mulf %51, %15 : vector<8x128xf32>
    %53 = arith.mulf %45, %39 : vector<8x128xf32>
    %54 = arith.addf %52, %53 : vector<8x128xf32>
    %55 = vector.extract_strided_slice %4 {offsets = [0, 0], sizes = [128, 256], strides = [1, 1]} : vector<256x256xf32> to vector<128x256xf32>
    %cst_30 = arith.constant dense<0.000000e+00> : vector<8x256xf32>
    %56 = tpu.matmul %37, %55, %cst_30 {dimension_numbers = #tpu.dot_dimension_numbers<[1], [0], [0], [1], [0, 0, 1, 1], [], []>} : vector<8x128xf32>, vector<128x256xf32>, vector<8x256xf32> -> vector<8x256xf32>
    %57 = vector.extract_strided_slice %4 {offsets = [128, 0], sizes = [128, 256], strides = [1, 1]} : vector<256x256xf32> to vector<128x256xf32>
    %cst_31 = arith.constant dense<0.000000e+00> : vector<8x256xf32>
    %58 = tpu.matmul %54, %57, %cst_31 {dimension_numbers = #tpu.dot_dimension_numbers<[1], [0], [0], [1], [0, 0, 1, 1], [], []>} : vector<8x128xf32>, vector<128x256xf32>, vector<8x256xf32> -> vector<8x256xf32>
    %59 = arith.addf %56, %58 : vector<8x256xf32>
    %60 = vector.broadcast %5 : vector<1x256xf32> to vector<8x256xf32>
    %61 = arith.addf %59, %60 : vector<8x256xf32>
    %62 = vector.extract_strided_slice %20 {offsets = [0, 768], sizes = [8, 128], strides = [1, 1]} : vector<8x896xf32> to vector<8x128xf32>
    %63 = vector.extract_strided_slice %61 {offsets = [0, 0], sizes = [8, 128], strides = [1, 1]} : vector<8x256xf32> to vector<8x128xf32>
    %64 = arith.addf %62, %63 : vector<8x128xf32>
    %65 = arith.negf %64 : vector<8x128xf32>
    %66 = math.exp %65 : vector<8x128xf32>
    %cst_32 = arith.constant 1.000000e+00 : f32
    %67 = vector.broadcast %cst_32 : f32 to vector<8x128xf32>
    %68 = arith.addf %67, %66 : vector<8x128xf32>
    %69 = arith.divf %67, %68 : vector<8x128xf32>
    %70 = vector.extract_strided_slice %61 {offsets = [0, 128], sizes = [8, 128], strides = [1, 1]} : vector<8x256xf32> to vector<8x128xf32>
    %71 = math.tanh %70 : vector<8x128xf32>
    %72 = arith.mulf %69, %71 : vector<8x128xf32>
    %c0_33 = arith.constant 0 : index
    %c0_34 = arith.constant 0 : index
    %c0_35 = arith.constant 0 : index
    %73 = vector.load %arg11[%c0_33, %c0_34, %c0_35] : memref<2x8x128xf32, #tpu.memory_space<vmem>>, vector<1x8x128xf32>
    %74 = vector.shape_cast %73 : vector<1x8x128xf32> to vector<8x128xf32>
    %75 = vector.shape_cast %72 : vector<8x128xf32> to vector<1x8x128xf32>
    tpu.vector_store %arg11[%c0_33, %c0_34, %c0_35], %75 {strides = array<i32>} : memref<2x8x128xf32, #tpu.memory_space<vmem>>, vector<1x8x128xf32>,
    %c0_36 = arith.constant 0 : index
    %c0_37 = arith.constant 0 : index
    %c0_38 = arith.constant 0 : index
    %76 = vector.load %arg12[%c0_36, %c0_37, %c0_38] : memref<2x8x128xf32, #tpu.memory_space<vmem>>, vector<1x8x128xf32>
    %77 = vector.shape_cast %76 : vector<1x8x128xf32> to vector<8x128xf32>
    %78 = vector.shape_cast %37 : vector<8x128xf32> to vector<1x8x128xf32>
    tpu.vector_store %arg12[%c0_36, %c0_37, %c0_38], %78 {strides = array<i32>} : memref<2x8x128xf32, #tpu.memory_space<vmem>>, vector<1x8x128xf32>,
    %c0_39 = arith.constant 0 : index
    %c0_40 = arith.constant 0 : index
    %c0_41 = arith.constant 0 : index
    %79 = vector.load %arg13[%c0_39, %c0_40, %c0_41] : memref<2x8x128xf32, #tpu.memory_space<vmem>>, vector<1x8x128xf32>
    %80 = vector.shape_cast %79 : vector<1x8x128xf32> to vector<8x128xf32>
    %81 = vector.shape_cast %54 : vector<8x128xf32> to vector<1x8x128xf32>
    tpu.vector_store %arg13[%c0_39, %c0_40, %c0_41], %81 {strides = array<i32>} : memref<2x8x128xf32, #tpu.memory_space<vmem>>, vector<1x8x128xf32>,
    %c1 = arith.constant 1 : index
    %c0_42 = arith.constant 0 : index
    %c0_43 = arith.constant 0 : index
    %82 = vector.load %arg11[%c1, %c0_42, %c0_43] : memref<2x8x128xf32, #tpu.memory_space<vmem>>, vector<1x8x128xf32>
    %83 = vector.shape_cast %82 : vector<1x8x128xf32> to vector<8x128xf32>
    %c1_44 = arith.constant 1 : index
    %c0_45 = arith.constant 0 : index
    %c0_46 = arith.constant 0 : index
    %84 = vector.load %arg12[%c1_44, %c0_45, %c0_46] : memref<2x8x128xf32, #tpu.memory_space<vmem>>, vector<1x8x128xf32>
    %85 = vector.shape_cast %84 : vector<1x8x128xf32> to vector<8x128xf32>
    %c1_47 = arith.constant 1 : index
    %c0_48 = arith.constant 0 : index
    %c0_49 = arith.constant 0 : index
    %86 = vector.load %arg13[%c1_47, %c0_48, %c0_49] : memref<2x8x128xf32, #tpu.memory_space<vmem>>, vector<1x8x128xf32>
    %87 = vector.shape_cast %86 : vector<1x8x128xf32> to vector<8x128xf32>
    %88 = tpu.concatenate %72, %83, %87 in 1 : vector<8x128xf32>, vector<8x128xf32>, vector<8x128xf32> -> vector<8x384xf32>
    %cst_50 = arith.constant dense<0.000000e+00> : vector<8x896xf32>
    %89 = tpu.matmul %88, %6, %cst_50 {dimension_numbers = #tpu.dot_dimension_numbers<[1], [0], [0], [1], [0, 0, 1, 1], [], []>} : vector<8x384xf32>, vector<384x896xf32>, vector<8x896xf32> -> vector<8x896xf32>
    %90 = vector.broadcast %7 : vector<1x896xf32> to vector<8x896xf32>
    %91 = arith.addf %89, %90 : vector<8x896xf32>
    %92 = vector.extract_strided_slice %91 {offsets = [0, 0], sizes = [8, 128], strides = [1, 1]} : vector<8x896xf32> to vector<8x128xf32>
    %93 = math.tanh %92 : vector<8x128xf32>
    %94 = vector.extract_strided_slice %91 {offsets = [0, 128], sizes = [8, 128], strides = [1, 1]} : vector<8x896xf32> to vector<8x128xf32>
    %95 = arith.negf %94 : vector<8x128xf32>
    %96 = math.exp %95 : vector<8x128xf32>
    %cst_51 = arith.constant 1.000000e+00 : f32
    %97 = vector.broadcast %cst_51 : f32 to vector<8x128xf32>
    %98 = arith.addf %97, %96 : vector<8x128xf32>
    %99 = arith.divf %97, %98 : vector<8x128xf32>
    %100 = vector.extract_strided_slice %91 {offsets = [0, 256], sizes = [8, 128], strides = [1, 1]} : vector<8x896xf32> to vector<8x128xf32>
    %101 = arith.negf %100 : vector<8x128xf32>
    %102 = math.exp %101 : vector<8x128xf32>
    %cst_52 = arith.constant 1.000000e+00 : f32
    %103 = vector.broadcast %cst_52 : f32 to vector<8x128xf32>
    %104 = arith.addf %103, %102 : vector<8x128xf32>
    %105 = arith.divf %103, %104 : vector<8x128xf32>
    %106 = arith.mulf %105, %85 : vector<8x128xf32>
    %107 = arith.mulf %99, %93 : vector<8x128xf32>
    %108 = arith.addf %106, %107 : vector<8x128xf32>
    %109 = vector.extract_strided_slice %91 {offsets = [0, 384], sizes = [8, 128], strides = [1, 1]} : vector<8x896xf32> to vector<8x128xf32>
    %110 = math.tanh %109 : vector<8x128xf32>
    %111 = vector.extract_strided_slice %91 {offsets = [0, 512], sizes = [8, 128], strides = [1, 1]} : vector<8x896xf32> to vector<8x128xf32>
    %112 = arith.negf %111 : vector<8x128xf32>
    %113 = math.exp %112 : vector<8x128xf32>
    %cst_53 = arith.constant 1.000000e+00 : f32
    %114 = vector.broadcast %cst_53 : f32 to vector<8x128xf32>
    %115 = arith.addf %114, %113 : vector<8x128xf32>
    %116 = arith.divf %114, %115 : vector<8x128xf32>
    %117 = vector.extract_strided_slice %91 {offsets = [0, 640], sizes = [8, 128], strides = [1, 1]} : vector<8x896xf32> to vector<8x128xf32>
    %118 = arith.negf %117 : vector<8x128xf32>
    %119 = math.exp %118 : vector<8x128xf32>
    %cst_54 = arith.constant 1.000000e+00 : f32
    %120 = vector.broadcast %cst_54 : f32 to vector<8x128xf32>
    %121 = arith.addf %120, %119 : vector<8x128xf32>
    %122 = arith.divf %120, %121 : vector<8x128xf32>
    %123 = arith.mulf %122, %87 : vector<8x128xf32>
    %124 = arith.mulf %116, %110 : vector<8x128xf32>
    %125 = arith.addf %123, %124 : vector<8x128xf32>
    %126 = vector.extract_strided_slice %8 {offsets = [0, 0], sizes = [128, 256], strides = [1, 1]} : vector<256x256xf32> to vector<128x256xf32>
    %cst_55 = arith.constant dense<0.000000e+00> : vector<8x256xf32>
    %127 = tpu.matmul %108, %126, %cst_55 {dimension_numbers = #tpu.dot_dimension_numbers<[1], [0], [0], [1], [0, 0, 1, 1], [], []>} : vector<8x128xf32>, vector<128x256xf32>, vector<8x256xf32> -> vector<8x256xf32>
    %128 = vector.extract_strided_slice %8 {offsets = [128, 0], sizes = [128, 256], strides = [1, 1]} : vector<256x256xf32> to vector<128x256xf32>
    %cst_56 = arith.constant dense<0.000000e+00> : vector<8x256xf32>
    %129 = tpu.matmul %125, %128, %cst_56 {dimension_numbers = #tpu.dot_dimension_numbers<[1], [0], [0], [1], [0, 0, 1, 1], [], []>} : vector<8x128xf32>, vector<128x256xf32>, vector<8x256xf32> -> vector<8x256xf32>
    %130 = arith.addf %127, %129 : vector<8x256xf32>
    %131 = vector.broadcast %9 : vector<1x256xf32> to vector<8x256xf32>
    %132 = arith.addf %130, %131 : vector<8x256xf32>
    %133 = vector.extract_strided_slice %91 {offsets = [0, 768], sizes = [8, 128], strides = [1, 1]} : vector<8x896xf32> to vector<8x128xf32>
    %134 = vector.extract_strided_slice %132 {offsets = [0, 0], sizes = [8, 128], strides = [1, 1]} : vector<8x256xf32> to vector<8x128xf32>
    %135 = arith.addf %133, %134 : vector<8x128xf32>
    %136 = arith.negf %135 : vector<8x128xf32>
    %137 = math.exp %136 : vector<8x128xf32>
    %cst_57 = arith.constant 1.000000e+00 : f32
    %138 = vector.broadcast %cst_57 : f32 to vector<8x128xf32>
    %139 = arith.addf %138, %137 : vector<8x128xf32>
    %140 = arith.divf %138, %139 : vector<8x128xf32>
    %141 = vector.extract_strided_slice %132 {offsets = [0, 128], sizes = [8, 128], strides = [1, 1]} : vector<8x256xf32> to vector<8x128xf32>
    %142 = math.tanh %141 : vector<8x128xf32>
    %143 = arith.mulf %140, %142 : vector<8x128xf32>
    %c1_58 = arith.constant 1 : index
    %c0_59 = arith.constant 0 : index
    %c0_60 = arith.constant 0 : index
    %144 = vector.load %arg11[%c1_58, %c0_59, %c0_60] : memref<2x8x128xf32, #tpu.memory_space<vmem>>, vector<1x8x128xf32>
    %145 = vector.shape_cast %144 : vector<1x8x128xf32> to vector<8x128xf32>
    %146 = vector.shape_cast %143 : vector<8x128xf32> to vector<1x8x128xf32>
    tpu.vector_store %arg11[%c1_58, %c0_59, %c0_60], %146 {strides = array<i32>} : memref<2x8x128xf32, #tpu.memory_space<vmem>>, vector<1x8x128xf32>,
    %c1_61 = arith.constant 1 : index
    %c0_62 = arith.constant 0 : index
    %c0_63 = arith.constant 0 : index
    %147 = vector.load %arg12[%c1_61, %c0_62, %c0_63] : memref<2x8x128xf32, #tpu.memory_space<vmem>>, vector<1x8x128xf32>
    %148 = vector.shape_cast %147 : vector<1x8x128xf32> to vector<8x128xf32>
    %149 = vector.shape_cast %108 : vector<8x128xf32> to vector<1x8x128xf32>
    tpu.vector_store %arg12[%c1_61, %c0_62, %c0_63], %149 {strides = array<i32>} : memref<2x8x128xf32, #tpu.memory_space<vmem>>, vector<1x8x128xf32>,
    %c1_64 = arith.constant 1 : index
    %c0_65 = arith.constant 0 : index
    %c0_66 = arith.constant 0 : index
    %150 = vector.load %arg13[%c1_64, %c0_65, %c0_66] : memref<2x8x128xf32, #tpu.memory_space<vmem>>, vector<1x8x128xf32>
    %151 = vector.shape_cast %150 : vector<1x8x128xf32> to vector<8x128xf32>
    %152 = vector.shape_cast %125 : vector<8x128xf32> to vector<1x8x128xf32>
    tpu.vector_store %arg13[%c1_64, %c0_65, %c0_66], %152 {strides = array<i32>} : memref<2x8x128xf32, #tpu.memory_space<vmem>>, vector<1x8x128xf32>,
    %c0_67 = arith.constant 0 : index
    %c0_68 = arith.constant 0 : index
    %c0_69 = arith.constant 0 : index
    %153 = vector.load %arg10[%c0_67, %c0_68, %c0_69] : memref<4x8x128xf32, #tpu.memory_space<vmem>>, vector<1x8x128xf32>
    %154 = vector.shape_cast %153 : vector<1x8x128xf32> to vector<8x128xf32>
    %155 = vector.shape_cast %143 : vector<8x128xf32> to vector<1x8x128xf32>
    tpu.vector_store %arg10[%c0_67, %c0_68, %c0_69], %155 {strides = array<i32>} : memref<4x8x128xf32, #tpu.memory_space<vmem>>, vector<1x8x128xf32>,
    %c0_70 = arith.constant 0 : index
    %c0_71 = arith.constant 0 : index
    %c0_72 = arith.constant 0 : index
    %156 = vector.load %arg11[%c0_70, %c0_71, %c0_72] : memref<2x8x128xf32, #tpu.memory_space<vmem>>, vector<1x8x128xf32>
    %157 = vector.shape_cast %156 : vector<1x8x128xf32> to vector<8x128xf32>
    %c0_73 = arith.constant 0 : index
    %c0_74 = arith.constant 0 : index
    %c0_75 = arith.constant 0 : index
    %158 = vector.load %arg12[%c0_73, %c0_74, %c0_75] : memref<2x8x128xf32, #tpu.memory_space<vmem>>, vector<1x8x128xf32>
    %159 = vector.shape_cast %158 : vector<1x8x128xf32> to vector<8x128xf32>
    %c0_76 = arith.constant 0 : index
    %c0_77 = arith.constant 0 : index
    %c0_78 = arith.constant 0 : index
    %160 = vector.load %arg13[%c0_76, %c0_77, %c0_78] : memref<2x8x128xf32, #tpu.memory_space<vmem>>, vector<1x8x128xf32>
    %161 = vector.shape_cast %160 : vector<1x8x128xf32> to vector<8x128xf32>
    %162 = tpu.concatenate %157, %161 in 1 : vector<8x128xf32>, vector<8x128xf32> -> vector<8x256xf32>
    %c1_79 = arith.constant 1 : index
    %c0_80 = arith.constant 0 : index
    %c0_81 = arith.constant 0 : index
    %163 = vector.load %arg2[%c1_79, %c0_80, %c0_81] : memref<4x8x896xf32, #tpu.memory_space<vmem>>, vector<1x8x896xf32>
    %164 = vector.shape_cast %163 : vector<1x8x896xf32> to vector<8x896xf32>
    %cst_82 = arith.constant dense<0.000000e+00> : vector<8x896xf32>
    %165 = tpu.matmul %162, %3, %cst_82 {dimension_numbers = #tpu.dot_dimension_numbers<[1], [0], [0], [1], [0, 0, 1, 1], [], []>} : vector<8x256xf32>, vector<256x896xf32>, vector<8x896xf32> -> vector<8x896xf32>
    %166 = arith.addf %164, %165 : vector<8x896xf32>
    %167 = vector.extract_strided_slice %166 {offsets = [0, 0], sizes = [8, 128], strides = [1, 1]} : vector<8x896xf32> to vector<8x128xf32>
    %168 = math.tanh %167 : vector<8x128xf32>
    %169 = vector.extract_strided_slice %166 {offsets = [0, 128], sizes = [8, 128], strides = [1, 1]} : vector<8x896xf32> to vector<8x128xf32>
    %170 = arith.negf %169 : vector<8x128xf32>
    %171 = math.exp %170 : vector<8x128xf32>
    %cst_83 = arith.constant 1.000000e+00 : f32
    %172 = vector.broadcast %cst_83 : f32 to vector<8x128xf32>
    %173 = arith.addf %172, %171 : vector<8x128xf32>
    %174 = arith.divf %172, %173 : vector<8x128xf32>
    %175 = vector.extract_strided_slice %166 {offsets = [0, 256], sizes = [8, 128], strides = [1, 1]} : vector<8x896xf32> to vector<8x128xf32>
    %176 = arith.negf %175 : vector<8x128xf32>
    %177 = math.exp %176 : vector<8x128xf32>
    %cst_84 = arith.constant 1.000000e+00 : f32
    %178 = vector.broadcast %cst_84 : f32 to vector<8x128xf32>
    %179 = arith.addf %178, %177 : vector<8x128xf32>
    %180 = arith.divf %178, %179 : vector<8x128xf32>
    %181 = arith.mulf %180, %159 : vector<8x128xf32>
    %182 = arith.mulf %174, %168 : vector<8x128xf32>
    %183 = arith.addf %181, %182 : vector<8x128xf32>
    %184 = vector.extract_strided_slice %166 {offsets = [0, 384], sizes = [8, 128], strides = [1, 1]} : vector<8x896xf32> to vector<8x128xf32>
    %185 = math.tanh %184 : vector<8x128xf32>
    %186 = vector.extract_strided_slice %166 {offsets = [0, 512], sizes = [8, 128], strides = [1, 1]} : vector<8x896xf32> to vector<8x128xf32>
    %187 = arith.negf %186 : vector<8x128xf32>
    %188 = math.exp %187 : vector<8x128xf32>
    %cst_85 = arith.constant 1.000000e+00 : f32
    %189 = vector.broadcast %cst_85 : f32 to vector<8x128xf32>
    %190 = arith.addf %189, %188 : vector<8x128xf32>
    %191 = arith.divf %189, %190 : vector<8x128xf32>
    %192 = vector.extract_strided_slice %166 {offsets = [0, 640], sizes = [8, 128], strides = [1, 1]} : vector<8x896xf32> to vector<8x128xf32>
    %193 = arith.negf %192 : vector<8x128xf32>
    %194 = math.exp %193 : vector<8x128xf32>
    %cst_86 = arith.constant 1.000000e+00 : f32
    %195 = vector.broadcast %cst_86 : f32 to vector<8x128xf32>
    %196 = arith.addf %195, %194 : vector<8x128xf32>
    %197 = arith.divf %195, %196 : vector<8x128xf32>
    %198 = arith.mulf %197, %161 : vector<8x128xf32>
    %199 = arith.mulf %191, %185 : vector<8x128xf32>
    %200 = arith.addf %198, %199 : vector<8x128xf32>
    %201 = vector.extract_strided_slice %4 {offsets = [0, 0], sizes = [128, 256], strides = [1, 1]} : vector<256x256xf32> to vector<128x256xf32>
    %cst_87 = arith.constant dense<0.000000e+00> : vector<8x256xf32>
    %202 = tpu.matmul %183, %201, %cst_87 {dimension_numbers = #tpu.dot_dimension_numbers<[1], [0], [0], [1], [0, 0, 1, 1], [], []>} : vector<8x128xf32>, vector<128x256xf32>, vector<8x256xf32> -> vector<8x256xf32>
    %203 = vector.extract_strided_slice %4 {offsets = [128, 0], sizes = [128, 256], strides = [1, 1]} : vector<256x256xf32> to vector<128x256xf32>
    %cst_88 = arith.constant dense<0.000000e+00> : vector<8x256xf32>
    %204 = tpu.matmul %200, %203, %cst_88 {dimension_numbers = #tpu.dot_dimension_numbers<[1], [0], [0], [1], [0, 0, 1, 1], [], []>} : vector<8x128xf32>, vector<128x256xf32>, vector<8x256xf32> -> vector<8x256xf32>
    %205 = arith.addf %202, %204 : vector<8x256xf32>
    %206 = vector.broadcast %5 : vector<1x256xf32> to vector<8x256xf32>
    %207 = arith.addf %205, %206 : vector<8x256xf32>
    %208 = vector.extract_strided_slice %166 {offsets = [0, 768], sizes = [8, 128], strides = [1, 1]} : vector<8x896xf32> to vector<8x128xf32>
    %209 = vector.extract_strided_slice %207 {offsets = [0, 0], sizes = [8, 128], strides = [1, 1]} : vector<8x256xf32> to vector<8x128xf32>
    %210 = arith.addf %208, %209 : vector<8x128xf32>
    %211 = arith.negf %210 : vector<8x128xf32>
    %212 = math.exp %211 : vector<8x128xf32>
    %cst_89 = arith.constant 1.000000e+00 : f32
    %213 = vector.broadcast %cst_89 : f32 to vector<8x128xf32>
    %214 = arith.addf %213, %212 : vector<8x128xf32>
    %215 = arith.divf %213, %214 : vector<8x128xf32>
    %216 = vector.extract_strided_slice %207 {offsets = [0, 128], sizes = [8, 128], strides = [1, 1]} : vector<8x256xf32> to vector<8x128xf32>
    %217 = math.tanh %216 : vector<8x128xf32>
    %218 = arith.mulf %215, %217 : vector<8x128xf32>
    %c0_90 = arith.constant 0 : index
    %c0_91 = arith.constant 0 : index
    %c0_92 = arith.constant 0 : index
    %219 = vector.load %arg11[%c0_90, %c0_91, %c0_92] : memref<2x8x128xf32, #tpu.memory_space<vmem>>, vector<1x8x128xf32>
    %220 = vector.shape_cast %219 : vector<1x8x128xf32> to vector<8x128xf32>
    %221 = vector.shape_cast %218 : vector<8x128xf32> to vector<1x8x128xf32>
    tpu.vector_store %arg11[%c0_90, %c0_91, %c0_92], %221 {strides = array<i32>} : memref<2x8x128xf32, #tpu.memory_space<vmem>>, vector<1x8x128xf32>,
    %c0_93 = arith.constant 0 : index
    %c0_94 = arith.constant 0 : index
    %c0_95 = arith.constant 0 : index
    %222 = vector.load %arg12[%c0_93, %c0_94, %c0_95] : memref<2x8x128xf32, #tpu.memory_space<vmem>>, vector<1x8x128xf32>
    %223 = vector.shape_cast %222 : vector<1x8x128xf32> to vector<8x128xf32>
    %224 = vector.shape_cast %183 : vector<8x128xf32> to vector<1x8x128xf32>
    tpu.vector_store %arg12[%c0_93, %c0_94, %c0_95], %224 {strides = array<i32>} : memref<2x8x128xf32, #tpu.memory_space<vmem>>, vector<1x8x128xf32>,
    %c0_96 = arith.constant 0 : index
    %c0_97 = arith.constant 0 : index
    %c0_98 = arith.constant 0 : index
    %225 = vector.load %arg13[%c0_96, %c0_97, %c0_98] : memref<2x8x128xf32, #tpu.memory_space<vmem>>, vector<1x8x128xf32>
    %226 = vector.shape_cast %225 : vector<1x8x128xf32> to vector<8x128xf32>
    %227 = vector.shape_cast %200 : vector<8x128xf32> to vector<1x8x128xf32>
    tpu.vector_store %arg13[%c0_96, %c0_97, %c0_98], %227 {strides = array<i32>} : memref<2x8x128xf32, #tpu.memory_space<vmem>>, vector<1x8x128xf32>,
    %c1_99 = arith.constant 1 : index
    %c0_100 = arith.constant 0 : index
    %c0_101 = arith.constant 0 : index
    %228 = vector.load %arg11[%c1_99, %c0_100, %c0_101] : memref<2x8x128xf32, #tpu.memory_space<vmem>>, vector<1x8x128xf32>
    %229 = vector.shape_cast %228 : vector<1x8x128xf32> to vector<8x128xf32>
    %c1_102 = arith.constant 1 : index
    %c0_103 = arith.constant 0 : index
    %c0_104 = arith.constant 0 : index
    %230 = vector.load %arg12[%c1_102, %c0_103, %c0_104] : memref<2x8x128xf32, #tpu.memory_space<vmem>>, vector<1x8x128xf32>
    %231 = vector.shape_cast %230 : vector<1x8x128xf32> to vector<8x128xf32>
    %c1_105 = arith.constant 1 : index
    %c0_106 = arith.constant 0 : index
    %c0_107 = arith.constant 0 : index
    %232 = vector.load %arg13[%c1_105, %c0_106, %c0_107] : memref<2x8x128xf32, #tpu.memory_space<vmem>>, vector<1x8x128xf32>
    %233 = vector.shape_cast %232 : vector<1x8x128xf32> to vector<8x128xf32>
    %234 = tpu.concatenate %218, %229, %233 in 1 : vector<8x128xf32>, vector<8x128xf32>, vector<8x128xf32> -> vector<8x384xf32>
    %cst_108 = arith.constant dense<0.000000e+00> : vector<8x896xf32>
    %235 = tpu.matmul %234, %6, %cst_108 {dimension_numbers = #tpu.dot_dimension_numbers<[1], [0], [0], [1], [0, 0, 1, 1], [], []>} : vector<8x384xf32>, vector<384x896xf32>, vector<8x896xf32> -> vector<8x896xf32>
    %236 = vector.broadcast %7 : vector<1x896xf32> to vector<8x896xf32>
    %237 = arith.addf %235, %236 : vector<8x896xf32>
    %238 = vector.extract_strided_slice %237 {offsets = [0, 0], sizes = [8, 128], strides = [1, 1]} : vector<8x896xf32> to vector<8x128xf32>
    %239 = math.tanh %238 : vector<8x128xf32>
    %240 = vector.extract_strided_slice %237 {offsets = [0, 128], sizes = [8, 128], strides = [1, 1]} : vector<8x896xf32> to vector<8x128xf32>
    %241 = arith.negf %240 : vector<8x128xf32>
    %242 = math.exp %241 : vector<8x128xf32>
    %cst_109 = arith.constant 1.000000e+00 : f32
    %243 = vector.broadcast %cst_109 : f32 to vector<8x128xf32>
    %244 = arith.addf %243, %242 : vector<8x128xf32>
    %245 = arith.divf %243, %244 : vector<8x128xf32>
    %246 = vector.extract_strided_slice %237 {offsets = [0, 256], sizes = [8, 128], strides = [1, 1]} : vector<8x896xf32> to vector<8x128xf32>
    %247 = arith.negf %246 : vector<8x128xf32>
    %248 = math.exp %247 : vector<8x128xf32>
    %cst_110 = arith.constant 1.000000e+00 : f32
    %249 = vector.broadcast %cst_110 : f32 to vector<8x128xf32>
    %250 = arith.addf %249, %248 : vector<8x128xf32>
    %251 = arith.divf %249, %250 : vector<8x128xf32>
    %252 = arith.mulf %251, %231 : vector<8x128xf32>
    %253 = arith.mulf %245, %239 : vector<8x128xf32>
    %254 = arith.addf %252, %253 : vector<8x128xf32>
    %255 = vector.extract_strided_slice %237 {offsets = [0, 384], sizes = [8, 128], strides = [1, 1]} : vector<8x896xf32> to vector<8x128xf32>
    %256 = math.tanh %255 : vector<8x128xf32>
    %257 = vector.extract_strided_slice %237 {offsets = [0, 512], sizes = [8, 128], strides = [1, 1]} : vector<8x896xf32> to vector<8x128xf32>
    %258 = arith.negf %257 : vector<8x128xf32>
    %259 = math.exp %258 : vector<8x128xf32>
    %cst_111 = arith.constant 1.000000e+00 : f32
    %260 = vector.broadcast %cst_111 : f32 to vector<8x128xf32>
    %261 = arith.addf %260, %259 : vector<8x128xf32>
    %262 = arith.divf %260, %261 : vector<8x128xf32>
    %263 = vector.extract_strided_slice %237 {offsets = [0, 640], sizes = [8, 128], strides = [1, 1]} : vector<8x896xf32> to vector<8x128xf32>
    %264 = arith.negf %263 : vector<8x128xf32>
    %265 = math.exp %264 : vector<8x128xf32>
    %cst_112 = arith.constant 1.000000e+00 : f32
    %266 = vector.broadcast %cst_112 : f32 to vector<8x128xf32>
    %267 = arith.addf %266, %265 : vector<8x128xf32>
    %268 = arith.divf %266, %267 : vector<8x128xf32>
    %269 = arith.mulf %268, %233 : vector<8x128xf32>
    %270 = arith.mulf %262, %256 : vector<8x128xf32>
    %271 = arith.addf %269, %270 : vector<8x128xf32>
    %272 = vector.extract_strided_slice %8 {offsets = [0, 0], sizes = [128, 256], strides = [1, 1]} : vector<256x256xf32> to vector<128x256xf32>
    %cst_113 = arith.constant dense<0.000000e+00> : vector<8x256xf32>
    %273 = tpu.matmul %254, %272, %cst_113 {dimension_numbers = #tpu.dot_dimension_numbers<[1], [0], [0], [1], [0, 0, 1, 1], [], []>} : vector<8x128xf32>, vector<128x256xf32>, vector<8x256xf32> -> vector<8x256xf32>
    %274 = vector.extract_strided_slice %8 {offsets = [128, 0], sizes = [128, 256], strides = [1, 1]} : vector<256x256xf32> to vector<128x256xf32>
    %cst_114 = arith.constant dense<0.000000e+00> : vector<8x256xf32>
    %275 = tpu.matmul %271, %274, %cst_114 {dimension_numbers = #tpu.dot_dimension_numbers<[1], [0], [0], [1], [0, 0, 1, 1], [], []>} : vector<8x128xf32>, vector<128x256xf32>, vector<8x256xf32> -> vector<8x256xf32>
    %276 = arith.addf %273, %275 : vector<8x256xf32>
    %277 = vector.broadcast %9 : vector<1x256xf32> to vector<8x256xf32>
    %278 = arith.addf %276, %277 : vector<8x256xf32>
    %279 = vector.extract_strided_slice %237 {offsets = [0, 768], sizes = [8, 128], strides = [1, 1]} : vector<8x896xf32> to vector<8x128xf32>
    %280 = vector.extract_strided_slice %278 {offsets = [0, 0], sizes = [8, 128], strides = [1, 1]} : vector<8x256xf32> to vector<8x128xf32>
    %281 = arith.addf %279, %280 : vector<8x128xf32>
    %282 = arith.negf %281 : vector<8x128xf32>
    %283 = math.exp %282 : vector<8x128xf32>
    %cst_115 = arith.constant 1.000000e+00 : f32
    %284 = vector.broadcast %cst_115 : f32 to vector<8x128xf32>
    %285 = arith.addf %284, %283 : vector<8x128xf32>
    %286 = arith.divf %284, %285 : vector<8x128xf32>
    %287 = vector.extract_strided_slice %278 {offsets = [0, 128], sizes = [8, 128], strides = [1, 1]} : vector<8x256xf32> to vector<8x128xf32>
    %288 = math.tanh %287 : vector<8x128xf32>
    %289 = arith.mulf %286, %288 : vector<8x128xf32>
    %c1_116 = arith.constant 1 : index
    %c0_117 = arith.constant 0 : index
    %c0_118 = arith.constant 0 : index
    %290 = vector.load %arg11[%c1_116, %c0_117, %c0_118] : memref<2x8x128xf32, #tpu.memory_space<vmem>>, vector<1x8x128xf32>
    %291 = vector.shape_cast %290 : vector<1x8x128xf32> to vector<8x128xf32>
    %292 = vector.shape_cast %289 : vector<8x128xf32> to vector<1x8x128xf32>
    tpu.vector_store %arg11[%c1_116, %c0_117, %c0_118], %292 {strides = array<i32>} : memref<2x8x128xf32, #tpu.memory_space<vmem>>, vector<1x8x128xf32>,
    %c1_119 = arith.constant 1 : index
    %c0_120 = arith.constant 0 : index
    %c0_121 = arith.constant 0 : index
    %293 = vector.load %arg12[%c1_119, %c0_120, %c0_121] : memref<2x8x128xf32, #tpu.memory_space<vmem>>, vector<1x8x128xf32>
    %294 = vector.shape_cast %293 : vector<1x8x128xf32> to vector<8x128xf32>
    %295 = vector.shape_cast %254 : vector<8x128xf32> to vector<1x8x128xf32>
    tpu.vector_store %arg12[%c1_119, %c0_120, %c0_121], %295 {strides = array<i32>} : memref<2x8x128xf32, #tpu.memory_space<vmem>>, vector<1x8x128xf32>,
    %c1_122 = arith.constant 1 : index
    %c0_123 = arith.constant 0 : index
    %c0_124 = arith.constant 0 : index
    %296 = vector.load %arg13[%c1_122, %c0_123, %c0_124] : memref<2x8x128xf32, #tpu.memory_space<vmem>>, vector<1x8x128xf32>
    %297 = vector.shape_cast %296 : vector<1x8x128xf32> to vector<8x128xf32>
    %298 = vector.shape_cast %271 : vector<8x128xf32> to vector<1x8x128xf32>
    tpu.vector_store %arg13[%c1_122, %c0_123, %c0_124], %298 {strides = array<i32>} : memref<2x8x128xf32, #tpu.memory_space<vmem>>, vector<1x8x128xf32>,
    %c1_125 = arith.constant 1 : index
    %c0_126 = arith.constant 0 : index
    %c0_127 = arith.constant 0 : index
    %299 = vector.load %arg10[%c1_125, %c0_126, %c0_127] : memref<4x8x128xf32, #tpu.memory_space<vmem>>, vector<1x8x128xf32>
    %300 = vector.shape_cast %299 : vector<1x8x128xf32> to vector<8x128xf32>
    %301 = vector.shape_cast %289 : vector<8x128xf32> to vector<1x8x128xf32>
    tpu.vector_store %arg10[%c1_125, %c0_126, %c0_127], %301 {strides = array<i32>} : memref<4x8x128xf32, #tpu.memory_space<vmem>>, vector<1x8x128xf32>,
    %c0_128 = arith.constant 0 : index
    %c0_129 = arith.constant 0 : index
    %c0_130 = arith.constant 0 : index
    %302 = vector.load %arg11[%c0_128, %c0_129, %c0_130] : memref<2x8x128xf32, #tpu.memory_space<vmem>>, vector<1x8x128xf32>
    %303 = vector.shape_cast %302 : vector<1x8x128xf32> to vector<8x128xf32>
    %c0_131 = arith.constant 0 : index
    %c0_132 = arith.constant 0 : index
    %c0_133 = arith.constant 0 : index
    %304 = vector.load %arg12[%c0_131, %c0_132, %c0_133] : memref<2x8x128xf32, #tpu.memory_space<vmem>>, vector<1x8x128xf32>
    %305 = vector.shape_cast %304 : vector<1x8x128xf32> to vector<8x128xf32>
    %c0_134 = arith.constant 0 : index
    %c0_135 = arith.constant 0 : index
    %c0_136 = arith.constant 0 : index
    %306 = vector.load %arg13[%c0_134, %c0_135, %c0_136] : memref<2x8x128xf32, #tpu.memory_space<vmem>>, vector<1x8x128xf32>
    %307 = vector.shape_cast %306 : vector<1x8x128xf32> to vector<8x128xf32>
    %308 = tpu.concatenate %303, %307 in 1 : vector<8x128xf32>, vector<8x128xf32> -> vector<8x256xf32>
    %c2 = arith.constant 2 : index
    %c0_137 = arith.constant 0 : index
    %c0_138 = arith.constant 0 : index
    %309 = vector.load %arg2[%c2, %c0_137, %c0_138] : memref<4x8x896xf32, #tpu.memory_space<vmem>>, vector<1x8x896xf32>
    %310 = vector.shape_cast %309 : vector<1x8x896xf32> to vector<8x896xf32>
    %cst_139 = arith.constant dense<0.000000e+00> : vector<8x896xf32>
    %311 = tpu.matmul %308, %3, %cst_139 {dimension_numbers = #tpu.dot_dimension_numbers<[1], [0], [0], [1], [0, 0, 1, 1], [], []>} : vector<8x256xf32>, vector<256x896xf32>, vector<8x896xf32> -> vector<8x896xf32>
    %312 = arith.addf %310, %311 : vector<8x896xf32>
    %313 = vector.extract_strided_slice %312 {offsets = [0, 0], sizes = [8, 128], strides = [1, 1]} : vector<8x896xf32> to vector<8x128xf32>
    %314 = math.tanh %313 : vector<8x128xf32>
    %315 = vector.extract_strided_slice %312 {offsets = [0, 128], sizes = [8, 128], strides = [1, 1]} : vector<8x896xf32> to vector<8x128xf32>
    %316 = arith.negf %315 : vector<8x128xf32>
    %317 = math.exp %316 : vector<8x128xf32>
    %cst_140 = arith.constant 1.000000e+00 : f32
    %318 = vector.broadcast %cst_140 : f32 to vector<8x128xf32>
    %319 = arith.addf %318, %317 : vector<8x128xf32>
    %320 = arith.divf %318, %319 : vector<8x128xf32>
    %321 = vector.extract_strided_slice %312 {offsets = [0, 256], sizes = [8, 128], strides = [1, 1]} : vector<8x896xf32> to vector<8x128xf32>
    %322 = arith.negf %321 : vector<8x128xf32>
    %323 = math.exp %322 : vector<8x128xf32>
    %cst_141 = arith.constant 1.000000e+00 : f32
    %324 = vector.broadcast %cst_141 : f32 to vector<8x128xf32>
    %325 = arith.addf %324, %323 : vector<8x128xf32>
    %326 = arith.divf %324, %325 : vector<8x128xf32>
    %327 = arith.mulf %326, %305 : vector<8x128xf32>
    %328 = arith.mulf %320, %314 : vector<8x128xf32>
    %329 = arith.addf %327, %328 : vector<8x128xf32>
    %330 = vector.extract_strided_slice %312 {offsets = [0, 384], sizes = [8, 128], strides = [1, 1]} : vector<8x896xf32> to vector<8x128xf32>
    %331 = math.tanh %330 : vector<8x128xf32>
    %332 = vector.extract_strided_slice %312 {offsets = [0, 512], sizes = [8, 128], strides = [1, 1]} : vector<8x896xf32> to vector<8x128xf32>
    %333 = arith.negf %332 : vector<8x128xf32>
    %334 = math.exp %333 : vector<8x128xf32>
    %cst_142 = arith.constant 1.000000e+00 : f32
    %335 = vector.broadcast %cst_142 : f32 to vector<8x128xf32>
    %336 = arith.addf %335, %334 : vector<8x128xf32>
    %337 = arith.divf %335, %336 : vector<8x128xf32>
    %338 = vector.extract_strided_slice %312 {offsets = [0, 640], sizes = [8, 128], strides = [1, 1]} : vector<8x896xf32> to vector<8x128xf32>
    %339 = arith.negf %338 : vector<8x128xf32>
    %340 = math.exp %339 : vector<8x128xf32>
    %cst_143 = arith.constant 1.000000e+00 : f32
    %341 = vector.broadcast %cst_143 : f32 to vector<8x128xf32>
    %342 = arith.addf %341, %340 : vector<8x128xf32>
    %343 = arith.divf %341, %342 : vector<8x128xf32>
    %344 = arith.mulf %343, %307 : vector<8x128xf32>
    %345 = arith.mulf %337, %331 : vector<8x128xf32>
    %346 = arith.addf %344, %345 : vector<8x128xf32>
    %347 = vector.extract_strided_slice %4 {offsets = [0, 0], sizes = [128, 256], strides = [1, 1]} : vector<256x256xf32> to vector<128x256xf32>
    %cst_144 = arith.constant dense<0.000000e+00> : vector<8x256xf32>
    %348 = tpu.matmul %329, %347, %cst_144 {dimension_numbers = #tpu.dot_dimension_numbers<[1], [0], [0], [1], [0, 0, 1, 1], [], []>} : vector<8x128xf32>, vector<128x256xf32>, vector<8x256xf32> -> vector<8x256xf32>
    %349 = vector.extract_strided_slice %4 {offsets = [128, 0], sizes = [128, 256], strides = [1, 1]} : vector<256x256xf32> to vector<128x256xf32>
    %cst_145 = arith.constant dense<0.000000e+00> : vector<8x256xf32>
    %350 = tpu.matmul %346, %349, %cst_145 {dimension_numbers = #tpu.dot_dimension_numbers<[1], [0], [0], [1], [0, 0, 1, 1], [], []>} : vector<8x128xf32>, vector<128x256xf32>, vector<8x256xf32> -> vector<8x256xf32>
    %351 = arith.addf %348, %350 : vector<8x256xf32>
    %352 = vector.broadcast %5 : vector<1x256xf32> to vector<8x256xf32>
    %353 = arith.addf %351, %352 : vector<8x256xf32>
    %354 = vector.extract_strided_slice %312 {offsets = [0, 768], sizes = [8, 128], strides = [1, 1]} : vector<8x896xf32> to vector<8x128xf32>
    %355 = vector.extract_strided_slice %353 {offsets = [0, 0], sizes = [8, 128], strides = [1, 1]} : vector<8x256xf32> to vector<8x128xf32>
    %356 = arith.addf %354, %355 : vector<8x128xf32>
    %357 = arith.negf %356 : vector<8x128xf32>
    %358 = math.exp %357 : vector<8x128xf32>
    %cst_146 = arith.constant 1.000000e+00 : f32
    %359 = vector.broadcast %cst_146 : f32 to vector<8x128xf32>
    %360 = arith.addf %359, %358 : vector<8x128xf32>
    %361 = arith.divf %359, %360 : vector<8x128xf32>
    %362 = vector.extract_strided_slice %353 {offsets = [0, 128], sizes = [8, 128], strides = [1, 1]} : vector<8x256xf32> to vector<8x128xf32>
    %363 = math.tanh %362 : vector<8x128xf32>
    %364 = arith.mulf %361, %363 : vector<8x128xf32>
    %c0_147 = arith.constant 0 : index
    %c0_148 = arith.constant 0 : index
    %c0_149 = arith.constant 0 : index
    %365 = vector.load %arg11[%c0_147, %c0_148, %c0_149] : memref<2x8x128xf32, #tpu.memory_space<vmem>>, vector<1x8x128xf32>
    %366 = vector.shape_cast %365 : vector<1x8x128xf32> to vector<8x128xf32>
    %367 = vector.shape_cast %364 : vector<8x128xf32> to vector<1x8x128xf32>
    tpu.vector_store %arg11[%c0_147, %c0_148, %c0_149], %367 {strides = array<i32>} : memref<2x8x128xf32, #tpu.memory_space<vmem>>, vector<1x8x128xf32>,
    %c0_150 = arith.constant 0 : index
    %c0_151 = arith.constant 0 : index
    %c0_152 = arith.constant 0 : index
    %368 = vector.load %arg12[%c0_150, %c0_151, %c0_152] : memref<2x8x128xf32, #tpu.memory_space<vmem>>, vector<1x8x128xf32>
    %369 = vector.shape_cast %368 : vector<1x8x128xf32> to vector<8x128xf32>
    %370 = vector.shape_cast %329 : vector<8x128xf32> to vector<1x8x128xf32>
    tpu.vector_store %arg12[%c0_150, %c0_151, %c0_152], %370 {strides = array<i32>} : memref<2x8x128xf32, #tpu.memory_space<vmem>>, vector<1x8x128xf32>,
    %c0_153 = arith.constant 0 : index
    %c0_154 = arith.constant 0 : index
    %c0_155 = arith.constant 0 : index
    %371 = vector.load %arg13[%c0_153, %c0_154, %c0_155] : memref<2x8x128xf32, #tpu.memory_space<vmem>>, vector<1x8x128xf32>
    %372 = vector.shape_cast %371 : vector<1x8x128xf32> to vector<8x128xf32>
    %373 = vector.shape_cast %346 : vector<8x128xf32> to vector<1x8x128xf32>
    tpu.vector_store %arg13[%c0_153, %c0_154, %c0_155], %373 {strides = array<i32>} : memref<2x8x128xf32, #tpu.memory_space<vmem>>, vector<1x8x128xf32>,
    %c1_156 = arith.constant 1 : index
    %c0_157 = arith.constant 0 : index
    %c0_158 = arith.constant 0 : index
    %374 = vector.load %arg11[%c1_156, %c0_157, %c0_158] : memref<2x8x128xf32, #tpu.memory_space<vmem>>, vector<1x8x128xf32>
    %375 = vector.shape_cast %374 : vector<1x8x128xf32> to vector<8x128xf32>
    %c1_159 = arith.constant 1 : index
    %c0_160 = arith.constant 0 : index
    %c0_161 = arith.constant 0 : index
    %376 = vector.load %arg12[%c1_159, %c0_160, %c0_161] : memref<2x8x128xf32, #tpu.memory_space<vmem>>, vector<1x8x128xf32>
    %377 = vector.shape_cast %376 : vector<1x8x128xf32> to vector<8x128xf32>
    %c1_162 = arith.constant 1 : index
    %c0_163 = arith.constant 0 : index
    %c0_164 = arith.constant 0 : index
    %378 = vector.load %arg13[%c1_162, %c0_163, %c0_164] : memref<2x8x128xf32, #tpu.memory_space<vmem>>, vector<1x8x128xf32>
    %379 = vector.shape_cast %378 : vector<1x8x128xf32> to vector<8x128xf32>
    %380 = tpu.concatenate %364, %375, %379 in 1 : vector<8x128xf32>, vector<8x128xf32>, vector<8x128xf32> -> vector<8x384xf32>
    %cst_165 = arith.constant dense<0.000000e+00> : vector<8x896xf32>
    %381 = tpu.matmul %380, %6, %cst_165 {dimension_numbers = #tpu.dot_dimension_numbers<[1], [0], [0], [1], [0, 0, 1, 1], [], []>} : vector<8x384xf32>, vector<384x896xf32>, vector<8x896xf32> -> vector<8x896xf32>
    %382 = vector.broadcast %7 : vector<1x896xf32> to vector<8x896xf32>
    %383 = arith.addf %381, %382 : vector<8x896xf32>
    %384 = vector.extract_strided_slice %383 {offsets = [0, 0], sizes = [8, 128], strides = [1, 1]} : vector<8x896xf32> to vector<8x128xf32>
    %385 = math.tanh %384 : vector<8x128xf32>
    %386 = vector.extract_strided_slice %383 {offsets = [0, 128], sizes = [8, 128], strides = [1, 1]} : vector<8x896xf32> to vector<8x128xf32>
    %387 = arith.negf %386 : vector<8x128xf32>
    %388 = math.exp %387 : vector<8x128xf32>
    %cst_166 = arith.constant 1.000000e+00 : f32
    %389 = vector.broadcast %cst_166 : f32 to vector<8x128xf32>
    %390 = arith.addf %389, %388 : vector<8x128xf32>
    %391 = arith.divf %389, %390 : vector<8x128xf32>
    %392 = vector.extract_strided_slice %383 {offsets = [0, 256], sizes = [8, 128], strides = [1, 1]} : vector<8x896xf32> to vector<8x128xf32>
    %393 = arith.negf %392 : vector<8x128xf32>
    %394 = math.exp %393 : vector<8x128xf32>
    %cst_167 = arith.constant 1.000000e+00 : f32
    %395 = vector.broadcast %cst_167 : f32 to vector<8x128xf32>
    %396 = arith.addf %395, %394 : vector<8x128xf32>
    %397 = arith.divf %395, %396 : vector<8x128xf32>
    %398 = arith.mulf %397, %377 : vector<8x128xf32>
    %399 = arith.mulf %391, %385 : vector<8x128xf32>
    %400 = arith.addf %398, %399 : vector<8x128xf32>
    %401 = vector.extract_strided_slice %383 {offsets = [0, 384], sizes = [8, 128], strides = [1, 1]} : vector<8x896xf32> to vector<8x128xf32>
    %402 = math.tanh %401 : vector<8x128xf32>
    %403 = vector.extract_strided_slice %383 {offsets = [0, 512], sizes = [8, 128], strides = [1, 1]} : vector<8x896xf32> to vector<8x128xf32>
    %404 = arith.negf %403 : vector<8x128xf32>
    %405 = math.exp %404 : vector<8x128xf32>
    %cst_168 = arith.constant 1.000000e+00 : f32
    %406 = vector.broadcast %cst_168 : f32 to vector<8x128xf32>
    %407 = arith.addf %406, %405 : vector<8x128xf32>
    %408 = arith.divf %406, %407 : vector<8x128xf32>
    %409 = vector.extract_strided_slice %383 {offsets = [0, 640], sizes = [8, 128], strides = [1, 1]} : vector<8x896xf32> to vector<8x128xf32>
    %410 = arith.negf %409 : vector<8x128xf32>
    %411 = math.exp %410 : vector<8x128xf32>
    %cst_169 = arith.constant 1.000000e+00 : f32
    %412 = vector.broadcast %cst_169 : f32 to vector<8x128xf32>
    %413 = arith.addf %412, %411 : vector<8x128xf32>
    %414 = arith.divf %412, %413 : vector<8x128xf32>
    %415 = arith.mulf %414, %379 : vector<8x128xf32>
    %416 = arith.mulf %408, %402 : vector<8x128xf32>
    %417 = arith.addf %415, %416 : vector<8x128xf32>
    %418 = vector.extract_strided_slice %8 {offsets = [0, 0], sizes = [128, 256], strides = [1, 1]} : vector<256x256xf32> to vector<128x256xf32>
    %cst_170 = arith.constant dense<0.000000e+00> : vector<8x256xf32>
    %419 = tpu.matmul %400, %418, %cst_170 {dimension_numbers = #tpu.dot_dimension_numbers<[1], [0], [0], [1], [0, 0, 1, 1], [], []>} : vector<8x128xf32>, vector<128x256xf32>, vector<8x256xf32> -> vector<8x256xf32>
    %420 = vector.extract_strided_slice %8 {offsets = [128, 0], sizes = [128, 256], strides = [1, 1]} : vector<256x256xf32> to vector<128x256xf32>
    %cst_171 = arith.constant dense<0.000000e+00> : vector<8x256xf32>
    %421 = tpu.matmul %417, %420, %cst_171 {dimension_numbers = #tpu.dot_dimension_numbers<[1], [0], [0], [1], [0, 0, 1, 1], [], []>} : vector<8x128xf32>, vector<128x256xf32>, vector<8x256xf32> -> vector<8x256xf32>
    %422 = arith.addf %419, %421 : vector<8x256xf32>
    %423 = vector.broadcast %9 : vector<1x256xf32> to vector<8x256xf32>
    %424 = arith.addf %422, %423 : vector<8x256xf32>
    %425 = vector.extract_strided_slice %383 {offsets = [0, 768], sizes = [8, 128], strides = [1, 1]} : vector<8x896xf32> to vector<8x128xf32>
    %426 = vector.extract_strided_slice %424 {offsets = [0, 0], sizes = [8, 128], strides = [1, 1]} : vector<8x256xf32> to vector<8x128xf32>
    %427 = arith.addf %425, %426 : vector<8x128xf32>
    %428 = arith.negf %427 : vector<8x128xf32>
    %429 = math.exp %428 : vector<8x128xf32>
    %cst_172 = arith.constant 1.000000e+00 : f32
    %430 = vector.broadcast %cst_172 : f32 to vector<8x128xf32>
    %431 = arith.addf %430, %429 : vector<8x128xf32>
    %432 = arith.divf %430, %431 : vector<8x128xf32>
    %433 = vector.extract_strided_slice %424 {offsets = [0, 128], sizes = [8, 128], strides = [1, 1]} : vector<8x256xf32> to vector<8x128xf32>
    %434 = math.tanh %433 : vector<8x128xf32>
    %435 = arith.mulf %432, %434 : vector<8x128xf32>
    %c1_173 = arith.constant 1 : index
    %c0_174 = arith.constant 0 : index
    %c0_175 = arith.constant 0 : index
    %436 = vector.load %arg11[%c1_173, %c0_174, %c0_175] : memref<2x8x128xf32, #tpu.memory_space<vmem>>, vector<1x8x128xf32>
    %437 = vector.shape_cast %436 : vector<1x8x128xf32> to vector<8x128xf32>
    %438 = vector.shape_cast %435 : vector<8x128xf32> to vector<1x8x128xf32>
    tpu.vector_store %arg11[%c1_173, %c0_174, %c0_175], %438 {strides = array<i32>} : memref<2x8x128xf32, #tpu.memory_space<vmem>>, vector<1x8x128xf32>,
    %c1_176 = arith.constant 1 : index
    %c0_177 = arith.constant 0 : index
    %c0_178 = arith.constant 0 : index
    %439 = vector.load %arg12[%c1_176, %c0_177, %c0_178] : memref<2x8x128xf32, #tpu.memory_space<vmem>>, vector<1x8x128xf32>
    %440 = vector.shape_cast %439 : vector<1x8x128xf32> to vector<8x128xf32>
    %441 = vector.shape_cast %400 : vector<8x128xf32> to vector<1x8x128xf32>
    tpu.vector_store %arg12[%c1_176, %c0_177, %c0_178], %441 {strides = array<i32>} : memref<2x8x128xf32, #tpu.memory_space<vmem>>, vector<1x8x128xf32>,
    %c1_179 = arith.constant 1 : index
    %c0_180 = arith.constant 0 : index
    %c0_181 = arith.constant 0 : index
    %442 = vector.load %arg13[%c1_179, %c0_180, %c0_181] : memref<2x8x128xf32, #tpu.memory_space<vmem>>, vector<1x8x128xf32>
    %443 = vector.shape_cast %442 : vector<1x8x128xf32> to vector<8x128xf32>
    %444 = vector.shape_cast %417 : vector<8x128xf32> to vector<1x8x128xf32>
    tpu.vector_store %arg13[%c1_179, %c0_180, %c0_181], %444 {strides = array<i32>} : memref<2x8x128xf32, #tpu.memory_space<vmem>>, vector<1x8x128xf32>,
    %c2_182 = arith.constant 2 : index
    %c0_183 = arith.constant 0 : index
    %c0_184 = arith.constant 0 : index
    %445 = vector.load %arg10[%c2_182, %c0_183, %c0_184] : memref<4x8x128xf32, #tpu.memory_space<vmem>>, vector<1x8x128xf32>
    %446 = vector.shape_cast %445 : vector<1x8x128xf32> to vector<8x128xf32>
    %447 = vector.shape_cast %435 : vector<8x128xf32> to vector<1x8x128xf32>
    tpu.vector_store %arg10[%c2_182, %c0_183, %c0_184], %447 {strides = array<i32>} : memref<4x8x128xf32, #tpu.memory_space<vmem>>, vector<1x8x128xf32>,
    %c0_185 = arith.constant 0 : index
    %c0_186 = arith.constant 0 : index
    %c0_187 = arith.constant 0 : index
    %448 = vector.load %arg11[%c0_185, %c0_186, %c0_187] : memref<2x8x128xf32, #tpu.memory_space<vmem>>, vector<1x8x128xf32>
    %449 = vector.shape_cast %448 : vector<1x8x128xf32> to vector<8x128xf32>
    %c0_188 = arith.constant 0 : index
    %c0_189 = arith.constant 0 : index
    %c0_190 = arith.constant 0 : index
    %450 = vector.load %arg12[%c0_188, %c0_189, %c0_190] : memref<2x8x128xf32, #tpu.memory_space<vmem>>, vector<1x8x128xf32>
    %451 = vector.shape_cast %450 : vector<1x8x128xf32> to vector<8x128xf32>
    %c0_191 = arith.constant 0 : index
    %c0_192 = arith.constant 0 : index
    %c0_193 = arith.constant 0 : index
    %452 = vector.load %arg13[%c0_191, %c0_192, %c0_193] : memref<2x8x128xf32, #tpu.memory_space<vmem>>, vector<1x8x128xf32>
    %453 = vector.shape_cast %452 : vector<1x8x128xf32> to vector<8x128xf32>
    %454 = tpu.concatenate %449, %453 in 1 : vector<8x128xf32>, vector<8x128xf32> -> vector<8x256xf32>
    %c3 = arith.constant 3 : index
    %c0_194 = arith.constant 0 : index
    %c0_195 = arith.constant 0 : index
    %455 = vector.load %arg2[%c3, %c0_194, %c0_195] : memref<4x8x896xf32, #tpu.memory_space<vmem>>, vector<1x8x896xf32>
    %456 = vector.shape_cast %455 : vector<1x8x896xf32> to vector<8x896xf32>
    %cst_196 = arith.constant dense<0.000000e+00> : vector<8x896xf32>
    %457 = tpu.matmul %454, %3, %cst_196 {dimension_numbers = #tpu.dot_dimension_numbers<[1], [0], [0], [1], [0, 0, 1, 1], [], []>} : vector<8x256xf32>, vector<256x896xf32>, vector<8x896xf32> -> vector<8x896xf32>
    %458 = arith.addf %456, %457 : vector<8x896xf32>
    %459 = vector.extract_strided_slice %458 {offsets = [0, 0], sizes = [8, 128], strides = [1, 1]} : vector<8x896xf32> to vector<8x128xf32>
    %460 = math.tanh %459 : vector<8x128xf32>
    %461 = vector.extract_strided_slice %458 {offsets = [0, 128], sizes = [8, 128], strides = [1, 1]} : vector<8x896xf32> to vector<8x128xf32>
    %462 = arith.negf %461 : vector<8x128xf32>
    %463 = math.exp %462 : vector<8x128xf32>
    %cst_197 = arith.constant 1.000000e+00 : f32
    %464 = vector.broadcast %cst_197 : f32 to vector<8x128xf32>
    %465 = arith.addf %464, %463 : vector<8x128xf32>
    %466 = arith.divf %464, %465 : vector<8x128xf32>
    %467 = vector.extract_strided_slice %458 {offsets = [0, 256], sizes = [8, 128], strides = [1, 1]} : vector<8x896xf32> to vector<8x128xf32>
    %468 = arith.negf %467 : vector<8x128xf32>
    %469 = math.exp %468 : vector<8x128xf32>
    %cst_198 = arith.constant 1.000000e+00 : f32
    %470 = vector.broadcast %cst_198 : f32 to vector<8x128xf32>
    %471 = arith.addf %470, %469 : vector<8x128xf32>
    %472 = arith.divf %470, %471 : vector<8x128xf32>
    %473 = arith.mulf %472, %451 : vector<8x128xf32>
    %474 = arith.mulf %466, %460 : vector<8x128xf32>
    %475 = arith.addf %473, %474 : vector<8x128xf32>
    %476 = vector.extract_strided_slice %458 {offsets = [0, 384], sizes = [8, 128], strides = [1, 1]} : vector<8x896xf32> to vector<8x128xf32>
    %477 = math.tanh %476 : vector<8x128xf32>
    %478 = vector.extract_strided_slice %458 {offsets = [0, 512], sizes = [8, 128], strides = [1, 1]} : vector<8x896xf32> to vector<8x128xf32>
    %479 = arith.negf %478 : vector<8x128xf32>
    %480 = math.exp %479 : vector<8x128xf32>
    %cst_199 = arith.constant 1.000000e+00 : f32
    %481 = vector.broadcast %cst_199 : f32 to vector<8x128xf32>
    %482 = arith.addf %481, %480 : vector<8x128xf32>
    %483 = arith.divf %481, %482 : vector<8x128xf32>
    %484 = vector.extract_strided_slice %458 {offsets = [0, 640], sizes = [8, 128], strides = [1, 1]} : vector<8x896xf32> to vector<8x128xf32>
    %485 = arith.negf %484 : vector<8x128xf32>
    %486 = math.exp %485 : vector<8x128xf32>
    %cst_200 = arith.constant 1.000000e+00 : f32
    %487 = vector.broadcast %cst_200 : f32 to vector<8x128xf32>
    %488 = arith.addf %487, %486 : vector<8x128xf32>
    %489 = arith.divf %487, %488 : vector<8x128xf32>
    %490 = arith.mulf %489, %453 : vector<8x128xf32>
    %491 = arith.mulf %483, %477 : vector<8x128xf32>
    %492 = arith.addf %490, %491 : vector<8x128xf32>
    %493 = vector.extract_strided_slice %4 {offsets = [0, 0], sizes = [128, 256], strides = [1, 1]} : vector<256x256xf32> to vector<128x256xf32>
    %cst_201 = arith.constant dense<0.000000e+00> : vector<8x256xf32>
    %494 = tpu.matmul %475, %493, %cst_201 {dimension_numbers = #tpu.dot_dimension_numbers<[1], [0], [0], [1], [0, 0, 1, 1], [], []>} : vector<8x128xf32>, vector<128x256xf32>, vector<8x256xf32> -> vector<8x256xf32>
    %495 = vector.extract_strided_slice %4 {offsets = [128, 0], sizes = [128, 256], strides = [1, 1]} : vector<256x256xf32> to vector<128x256xf32>
    %cst_202 = arith.constant dense<0.000000e+00> : vector<8x256xf32>
    %496 = tpu.matmul %492, %495, %cst_202 {dimension_numbers = #tpu.dot_dimension_numbers<[1], [0], [0], [1], [0, 0, 1, 1], [], []>} : vector<8x128xf32>, vector<128x256xf32>, vector<8x256xf32> -> vector<8x256xf32>
    %497 = arith.addf %494, %496 : vector<8x256xf32>
    %498 = vector.broadcast %5 : vector<1x256xf32> to vector<8x256xf32>
    %499 = arith.addf %497, %498 : vector<8x256xf32>
    %500 = vector.extract_strided_slice %458 {offsets = [0, 768], sizes = [8, 128], strides = [1, 1]} : vector<8x896xf32> to vector<8x128xf32>
    %501 = vector.extract_strided_slice %499 {offsets = [0, 0], sizes = [8, 128], strides = [1, 1]} : vector<8x256xf32> to vector<8x128xf32>
    %502 = arith.addf %500, %501 : vector<8x128xf32>
    %503 = arith.negf %502 : vector<8x128xf32>
    %504 = math.exp %503 : vector<8x128xf32>
    %cst_203 = arith.constant 1.000000e+00 : f32
    %505 = vector.broadcast %cst_203 : f32 to vector<8x128xf32>
    %506 = arith.addf %505, %504 : vector<8x128xf32>
    %507 = arith.divf %505, %506 : vector<8x128xf32>
    %508 = vector.extract_strided_slice %499 {offsets = [0, 128], sizes = [8, 128], strides = [1, 1]} : vector<8x256xf32> to vector<8x128xf32>
    %509 = math.tanh %508 : vector<8x128xf32>
    %510 = arith.mulf %507, %509 : vector<8x128xf32>
    %c0_204 = arith.constant 0 : index
    %c0_205 = arith.constant 0 : index
    %c0_206 = arith.constant 0 : index
    %511 = vector.load %arg11[%c0_204, %c0_205, %c0_206] : memref<2x8x128xf32, #tpu.memory_space<vmem>>, vector<1x8x128xf32>
    %512 = vector.shape_cast %511 : vector<1x8x128xf32> to vector<8x128xf32>
    %513 = vector.shape_cast %510 : vector<8x128xf32> to vector<1x8x128xf32>
    tpu.vector_store %arg11[%c0_204, %c0_205, %c0_206], %513 {strides = array<i32>} : memref<2x8x128xf32, #tpu.memory_space<vmem>>, vector<1x8x128xf32>,
    %c0_207 = arith.constant 0 : index
    %c0_208 = arith.constant 0 : index
    %c0_209 = arith.constant 0 : index
    %514 = vector.load %arg12[%c0_207, %c0_208, %c0_209] : memref<2x8x128xf32, #tpu.memory_space<vmem>>, vector<1x8x128xf32>
    %515 = vector.shape_cast %514 : vector<1x8x128xf32> to vector<8x128xf32>
    %516 = vector.shape_cast %475 : vector<8x128xf32> to vector<1x8x128xf32>
    tpu.vector_store %arg12[%c0_207, %c0_208, %c0_209], %516 {strides = array<i32>} : memref<2x8x128xf32, #tpu.memory_space<vmem>>, vector<1x8x128xf32>,
    %c0_210 = arith.constant 0 : index
    %c0_211 = arith.constant 0 : index
    %c0_212 = arith.constant 0 : index
    %517 = vector.load %arg13[%c0_210, %c0_211, %c0_212] : memref<2x8x128xf32, #tpu.memory_space<vmem>>, vector<1x8x128xf32>
    %518 = vector.shape_cast %517 : vector<1x8x128xf32> to vector<8x128xf32>
    %519 = vector.shape_cast %492 : vector<8x128xf32> to vector<1x8x128xf32>
    tpu.vector_store %arg13[%c0_210, %c0_211, %c0_212], %519 {strides = array<i32>} : memref<2x8x128xf32, #tpu.memory_space<vmem>>, vector<1x8x128xf32>,
    %c1_213 = arith.constant 1 : index
    %c0_214 = arith.constant 0 : index
    %c0_215 = arith.constant 0 : index
    %520 = vector.load %arg11[%c1_213, %c0_214, %c0_215] : memref<2x8x128xf32, #tpu.memory_space<vmem>>, vector<1x8x128xf32>
    %521 = vector.shape_cast %520 : vector<1x8x128xf32> to vector<8x128xf32>
    %c1_216 = arith.constant 1 : index
    %c0_217 = arith.constant 0 : index
    %c0_218 = arith.constant 0 : index
    %522 = vector.load %arg12[%c1_216, %c0_217, %c0_218] : memref<2x8x128xf32, #tpu.memory_space<vmem>>, vector<1x8x128xf32>
    %523 = vector.shape_cast %522 : vector<1x8x128xf32> to vector<8x128xf32>
    %c1_219 = arith.constant 1 : index
    %c0_220 = arith.constant 0 : index
    %c0_221 = arith.constant 0 : index
    %524 = vector.load %arg13[%c1_219, %c0_220, %c0_221] : memref<2x8x128xf32, #tpu.memory_space<vmem>>, vector<1x8x128xf32>
    %525 = vector.shape_cast %524 : vector<1x8x128xf32> to vector<8x128xf32>
    %526 = tpu.concatenate %510, %521, %525 in 1 : vector<8x128xf32>, vector<8x128xf32>, vector<8x128xf32> -> vector<8x384xf32>
    %cst_222 = arith.constant dense<0.000000e+00> : vector<8x896xf32>
    %527 = tpu.matmul %526, %6, %cst_222 {dimension_numbers = #tpu.dot_dimension_numbers<[1], [0], [0], [1], [0, 0, 1, 1], [], []>} : vector<8x384xf32>, vector<384x896xf32>, vector<8x896xf32> -> vector<8x896xf32>
    %528 = vector.broadcast %7 : vector<1x896xf32> to vector<8x896xf32>
    %529 = arith.addf %527, %528 : vector<8x896xf32>
    %530 = vector.extract_strided_slice %529 {offsets = [0, 0], sizes = [8, 128], strides = [1, 1]} : vector<8x896xf32> to vector<8x128xf32>
    %531 = math.tanh %530 : vector<8x128xf32>
    %532 = vector.extract_strided_slice %529 {offsets = [0, 128], sizes = [8, 128], strides = [1, 1]} : vector<8x896xf32> to vector<8x128xf32>
    %533 = arith.negf %532 : vector<8x128xf32>
    %534 = math.exp %533 : vector<8x128xf32>
    %cst_223 = arith.constant 1.000000e+00 : f32
    %535 = vector.broadcast %cst_223 : f32 to vector<8x128xf32>
    %536 = arith.addf %535, %534 : vector<8x128xf32>
    %537 = arith.divf %535, %536 : vector<8x128xf32>
    %538 = vector.extract_strided_slice %529 {offsets = [0, 256], sizes = [8, 128], strides = [1, 1]} : vector<8x896xf32> to vector<8x128xf32>
    %539 = arith.negf %538 : vector<8x128xf32>
    %540 = math.exp %539 : vector<8x128xf32>
    %cst_224 = arith.constant 1.000000e+00 : f32
    %541 = vector.broadcast %cst_224 : f32 to vector<8x128xf32>
    %542 = arith.addf %541, %540 : vector<8x128xf32>
    %543 = arith.divf %541, %542 : vector<8x128xf32>
    %544 = arith.mulf %543, %523 : vector<8x128xf32>
    %545 = arith.mulf %537, %531 : vector<8x128xf32>
    %546 = arith.addf %544, %545 : vector<8x128xf32>
    %547 = vector.extract_strided_slice %529 {offsets = [0, 384], sizes = [8, 128], strides = [1, 1]} : vector<8x896xf32> to vector<8x128xf32>
    %548 = math.tanh %547 : vector<8x128xf32>
    %549 = vector.extract_strided_slice %529 {offsets = [0, 512], sizes = [8, 128], strides = [1, 1]} : vector<8x896xf32> to vector<8x128xf32>
    %550 = arith.negf %549 : vector<8x128xf32>
    %551 = math.exp %550 : vector<8x128xf32>
    %cst_225 = arith.constant 1.000000e+00 : f32
    %552 = vector.broadcast %cst_225 : f32 to vector<8x128xf32>
    %553 = arith.addf %552, %551 : vector<8x128xf32>
    %554 = arith.divf %552, %553 : vector<8x128xf32>
    %555 = vector.extract_strided_slice %529 {offsets = [0, 640], sizes = [8, 128], strides = [1, 1]} : vector<8x896xf32> to vector<8x128xf32>
    %556 = arith.negf %555 : vector<8x128xf32>
    %557 = math.exp %556 : vector<8x128xf32>
    %cst_226 = arith.constant 1.000000e+00 : f32
    %558 = vector.broadcast %cst_226 : f32 to vector<8x128xf32>
    %559 = arith.addf %558, %557 : vector<8x128xf32>
    %560 = arith.divf %558, %559 : vector<8x128xf32>
    %561 = arith.mulf %560, %525 : vector<8x128xf32>
    %562 = arith.mulf %554, %548 : vector<8x128xf32>
    %563 = arith.addf %561, %562 : vector<8x128xf32>
    %564 = vector.extract_strided_slice %8 {offsets = [0, 0], sizes = [128, 256], strides = [1, 1]} : vector<256x256xf32> to vector<128x256xf32>
    %cst_227 = arith.constant dense<0.000000e+00> : vector<8x256xf32>
    %565 = tpu.matmul %546, %564, %cst_227 {dimension_numbers = #tpu.dot_dimension_numbers<[1], [0], [0], [1], [0, 0, 1, 1], [], []>} : vector<8x128xf32>, vector<128x256xf32>, vector<8x256xf32> -> vector<8x256xf32>
    %566 = vector.extract_strided_slice %8 {offsets = [128, 0], sizes = [128, 256], strides = [1, 1]} : vector<256x256xf32> to vector<128x256xf32>
    %cst_228 = arith.constant dense<0.000000e+00> : vector<8x256xf32>
    %567 = tpu.matmul %563, %566, %cst_228 {dimension_numbers = #tpu.dot_dimension_numbers<[1], [0], [0], [1], [0, 0, 1, 1], [], []>} : vector<8x128xf32>, vector<128x256xf32>, vector<8x256xf32> -> vector<8x256xf32>
    %568 = arith.addf %565, %567 : vector<8x256xf32>
    %569 = vector.broadcast %9 : vector<1x256xf32> to vector<8x256xf32>
    %570 = arith.addf %568, %569 : vector<8x256xf32>
    %571 = vector.extract_strided_slice %529 {offsets = [0, 768], sizes = [8, 128], strides = [1, 1]} : vector<8x896xf32> to vector<8x128xf32>
    %572 = vector.extract_strided_slice %570 {offsets = [0, 0], sizes = [8, 128], strides = [1, 1]} : vector<8x256xf32> to vector<8x128xf32>
    %573 = arith.addf %571, %572 : vector<8x128xf32>
    %574 = arith.negf %573 : vector<8x128xf32>
    %575 = math.exp %574 : vector<8x128xf32>
    %cst_229 = arith.constant 1.000000e+00 : f32
    %576 = vector.broadcast %cst_229 : f32 to vector<8x128xf32>
    %577 = arith.addf %576, %575 : vector<8x128xf32>
    %578 = arith.divf %576, %577 : vector<8x128xf32>
    %579 = vector.extract_strided_slice %570 {offsets = [0, 128], sizes = [8, 128], strides = [1, 1]} : vector<8x256xf32> to vector<8x128xf32>
    %580 = math.tanh %579 : vector<8x128xf32>
    %581 = arith.mulf %578, %580 : vector<8x128xf32>
    %c1_230 = arith.constant 1 : index
    %c0_231 = arith.constant 0 : index
    %c0_232 = arith.constant 0 : index
    %582 = vector.load %arg11[%c1_230, %c0_231, %c0_232] : memref<2x8x128xf32, #tpu.memory_space<vmem>>, vector<1x8x128xf32>
    %583 = vector.shape_cast %582 : vector<1x8x128xf32> to vector<8x128xf32>
    %584 = vector.shape_cast %581 : vector<8x128xf32> to vector<1x8x128xf32>
    tpu.vector_store %arg11[%c1_230, %c0_231, %c0_232], %584 {strides = array<i32>} : memref<2x8x128xf32, #tpu.memory_space<vmem>>, vector<1x8x128xf32>,
    %c1_233 = arith.constant 1 : index
    %c0_234 = arith.constant 0 : index
    %c0_235 = arith.constant 0 : index
    %585 = vector.load %arg12[%c1_233, %c0_234, %c0_235] : memref<2x8x128xf32, #tpu.memory_space<vmem>>, vector<1x8x128xf32>
    %586 = vector.shape_cast %585 : vector<1x8x128xf32> to vector<8x128xf32>
    %587 = vector.shape_cast %546 : vector<8x128xf32> to vector<1x8x128xf32>
    tpu.vector_store %arg12[%c1_233, %c0_234, %c0_235], %587 {strides = array<i32>} : memref<2x8x128xf32, #tpu.memory_space<vmem>>, vector<1x8x128xf32>,
    %c1_236 = arith.constant 1 : index
    %c0_237 = arith.constant 0 : index
    %c0_238 = arith.constant 0 : index
    %588 = vector.load %arg13[%c1_236, %c0_237, %c0_238] : memref<2x8x128xf32, #tpu.memory_space<vmem>>, vector<1x8x128xf32>
    %589 = vector.shape_cast %588 : vector<1x8x128xf32> to vector<8x128xf32>
    %590 = vector.shape_cast %563 : vector<8x128xf32> to vector<1x8x128xf32>
    tpu.vector_store %arg13[%c1_236, %c0_237, %c0_238], %590 {strides = array<i32>} : memref<2x8x128xf32, #tpu.memory_space<vmem>>, vector<1x8x128xf32>,
    %c3_239 = arith.constant 3 : index
    %c0_240 = arith.constant 0 : index
    %c0_241 = arith.constant 0 : index
    %591 = vector.load %arg10[%c3_239, %c0_240, %c0_241] : memref<4x8x128xf32, #tpu.memory_space<vmem>>, vector<1x8x128xf32>
    %592 = vector.shape_cast %591 : vector<1x8x128xf32> to vector<8x128xf32>
    %593 = vector.shape_cast %581 : vector<8x128xf32> to vector<1x8x128xf32>
    tpu.vector_store %arg10[%c3_239, %c0_240, %c0_241], %593 {strides = array<i32>} : memref<4x8x128xf32, #tpu.memory_space<vmem>>, vector<1x8x128xf32>,
    return
  }
  func.func @transform_0(%arg0: i32, %arg1: i32) -> (i32, i32, i32) {
    %c0_i32 = arith.constant 0 : i32
    %c0_i32_0 = arith.constant 0 : i32
    return %arg1, %arg0, %c0_i32 : i32, i32, i32
  }
  func.func @transform_1(%arg0: i32, %arg1: i32) -> (i32, i32) {
    %c0_i32 = arith.constant 0 : i32
    %c0_i32_0 = arith.constant 0 : i32
    %c0_i32_1 = arith.constant 0 : i32
    return %c0_i32, %c0_i32_0 : i32, i32
  }
  func.func @transform_2(%arg0: i32, %arg1: i32) -> (i32, i32) {
    %c0_i32 = arith.constant 0 : i32
    %c0_i32_0 = arith.constant 0 : i32
    %c0_i32_1 = arith.constant 0 : i32
    return %c0_i32, %c0_i32_0 : i32, i32
  }
  func.func @transform_3(%arg0: i32, %arg1: i32) -> (i32, i32) {
    %c0_i32 = arith.constant 0 : i32
    %c0_i32_0 = arith.constant 0 : i32
    %c0_i32_1 = arith.constant 0 : i32
    return %c0_i32, %c0_i32_0 : i32, i32
  }
  func.func @transform_4(%arg0: i32, %arg1: i32) -> (i32, i32) {
    %c0_i32 = arith.constant 0 : i32
    %c0_i32_0 = arith.constant 0 : i32
    %c0_i32_1 = arith.constant 0 : i32
    return %c0_i32, %c0_i32_0 : i32, i32
  }
  func.func @transform_5(%arg0: i32, %arg1: i32) -> (i32, i32) {
    %c0_i32 = arith.constant 0 : i32
    %c0_i32_0 = arith.constant 0 : i32
    %c0_i32_1 = arith.constant 0 : i32
    return %c0_i32, %c0_i32_0 : i32, i32
  }
  func.func @transform_6(%arg0: i32, %arg1: i32) -> (i32, i32) {
    %c0_i32 = arith.constant 0 : i32
    %c0_i32_0 = arith.constant 0 : i32
    %c0_i32_1 = arith.constant 0 : i32
    return %c0_i32, %c0_i32_0 : i32, i32
  }
  func.func @transform_7(%arg0: i32, %arg1: i32) -> (i32, i32) {
    %c0_i32 = arith.constant 0 : i32
    %c0_i32_0 = arith.constant 0 : i32
    %c0_i32_1 = arith.constant 0 : i32
    return %c0_i32, %c0_i32_0 : i32, i32
  }
  func.func @transform_8(%arg0: i32, %arg1: i32) -> (i32, i32, i32) {
    %c0_i32 = arith.constant 0 : i32
    %c0_i32_0 = arith.constant 0 : i32
    return %arg1, %arg0, %c0_i32 : i32, i32, i32
  }
}

</mosaic_0001>

<bundles_post_ra>
// kernel: tpu_custom_call.1
= control target key start
LH: loop header
LB: loop body
LE: loop exit
PB: predicated region body
PF: predicated region fallthrough
CT: control target
= control target key end

     0   :  { %s13453_s0 = inlined_call_operand.hbm [shape: f32[8,16,896], index: 0, kind: input, shape index: {}]   ;;  %s13454_s1 = inlined_call_operand.hbm [shape: f32[256,896], index: 1, kind: input, shape index: {}]   ;;  %s13455_s2 = inlined_call_operand.hbm [shape: f32[256,256], index: 2, kind: input, shape index: {}]   ;;  %s13456_s3 = inlined_call_operand.hbm [shape: f32[1,256], index: 3, kind: input, shape index: {}]   ;;  %s13457_s4 = inlined_call_operand.hbm [shape: f32[384,896], index: 4, kind: input, shape index: {}]   ;;  %s13458_s5 = inlined_call_operand.hbm [shape: f32[1,896], index: 5, kind: input, shape index: {}]   ;;  %s13459_s6 = inlined_call_operand.hbm [shape: f32[256,256], index: 6, kind: input, shape index: {}]   ;;  %s13460_s7 = inlined_call_operand.hbm [shape: f32[1,256], index: 7, kind: input, shape index: {}]   ;;  %s13461_s8 = inlined_call_operand.hbm [shape: f32[8,16,128], index: 8, kind: output, shape index: {}]  }
   0x1   :  { %14177 = sst [smem:[#allocation377_spill]] %s13454_s1 }
   0x2   :  { %14178 = sst [smem:[#allocation378_spill]] %s13455_s2 }
   0x3   :  { %14179 = sst [smem:[#allocation379_spill]] %s13456_s3 }
   0x4   :  { %14180 = sst [smem:[#allocation380_spill]] %s13457_s4 }
   0x5   :  { %14181 = sst [smem:[#allocation381_spill]] %s13458_s5 }
   0x6   :  { %14182 = sst [smem:[#allocation382_spill]] %s13461_s8 }
   0x7   :  { %13 = vsyncpa [#allocation6], 0 }
   0x8   :  { %15 = vsyncpa [#allocation6 + $0x1], 0 }
   0x9   :  { %16 = vsyncpa [#allocation9], 0 }
   0xa   :  { %17 = vsyncpa [#allocation12], 0 }
   0xb   :  { %18 = vsyncpa [#allocation15], 0 }
   0xc   :  { %19 = vsyncpa [#allocation18], 0 }
   0xd   :  { %20 = vsyncpa [#allocation7], 0 }
   0xe   :  { %22 = vsyncpa [#allocation7 + $0x1], 0  ;;  %s10578_s27 = smov 0   ;;  %s10580_s28 = smov 0  }
   0xf   :  { %s10582_s29 = smov 0   ;;  %s10584_s30 = smov 0  }
  0x10   :  { %s10586_s9 = smov 0   ;;  %s10588_s10 = smov 0  }
  0x11   :  { %s10590_s11 = smov 0   ;;  %s10592_s12 = smov 0  }
  0x12 LB: > { %14183 = sst [smem:[#allocation26_spill]] %s10494_s30  ;;  %s13462_s13 = sadd.s32 4294967295, %s10510_s12   ;;  %s10510_s12 = sphi %s10592_s12, %s28_s12   ;;  %s10506_s11 = sphi %s10590_s11, %s15490_s11   ;;  %s10502_s10 = sphi %s10588_s10, %s15489_s10   ;;  %s10498_s9 = sphi %s10586_s9, %s15488_s9   ;;  %s10494_s30 = sphi %s10584_s30, %s15487_s30   ;;  %s10490_s29 = sphi %s10582_s29, %s15486_s29   ;;  %s10486_s28 = sphi %s10580_s28, %s15485_s28   ;;  %s10482_s27 = sphi %s10578_s27, %s15484_s27  }
  0x13   : > { %14184 = sst [smem:[#allocation27_spill]] %s10498_s9  ;;  %p6367_p0 = scmp.ge.s32.totalorder %s10510_s12, 1 }
  0x14   : > { %p10622_p1 = scmp.eq.s32.totalorder %s13462_s13, 0  ;;  %p248_p2 = scmp.lt.s32.totalorder %s10510_s12, 5 }
  0x15   : > { %s10512_s16 = smov [#allocation8]   ;;  %s10513_s19 = smov [#allocation11]  }
  0x16   : > { %s14185_s14 = scalar_select %p10622_p1, 1, 0 }
  0x17   : > { %p10627_p3 = pnand %p6367_p0, %p248_p2  ;;  %s260_s17 = sshll.u32 %s10512_s16, 4  ;;  %s10631_s17 = int_to_ptr.vmem [resolvable:$true] %s260_s17 }
  0x18   : > { %s287_s20 = sshll.u32 %s10513_s19, 4  ;;  %s10514_s21 = smov [#allocation14]   ;;  %s10641_s20 = int_to_ptr.vmem [resolvable:$true] %s287_s20 }
  0x19   : > { %s14186_s15 = scalar_select %p10627_p3, 1, 0 }
  0x1a   : > { %p9832_p4 = pneg %p10627_p3  ;;  %s10643_s22 = sshll.u32 %s10514_s21, 4  ;;  %s312_s22 = int_to_ptr.vmem [resolvable:$true] %s10643_s22 }
  0x1b   : > { %14187 = sst [smem:[#allocation28_spill]] %s14186_s15 }
  0x1c   : > { %p10637_p5 = pnand %p9832_p4, %p10622_p1  ;;  %s14189_s1 = sld [smem:[#allocation377_spill]] }
  0x1e   : > { %p10653_p7 = pneg %p10637_p5 }
  0x22   : > { %s10170_s25 = scalar_lea.hbm %s14189_s1, 28672 }
  0x23   : > { %p10171_p6 = scmp.ne.s32.totalorder %s14189_s1, %s10170_s25  ;;  %p10177_p10 = scmp.lt.u32.totalorder %s10170_s25, %s14189_s1 }
  0x25   : > { %p10173_p8 = pnand %p10653_p7, %p10171_p6 }
  0x27   : > { %p10174_p9 = pneg %p10173_p8 }
  0x29   : > { %p10179_p11 = pnand %p10177_p10, %p10174_p9 }
  0x2b   : > { %10182 = shalt.err (!%p10179_p11)
}
  0x2c   : > { %s10183_s23 = scalar_lea.vmem %s10631_s17, 28672  ;;  %p10191_p2 = scmp.lt.s32.totalorder %s10631_s17, %s10631_s17 }
  0x2d   : > { %p10184_p12 = scmp.ne.s32.totalorder %s10631_s17, %s10183_s23  ;;  %p10192_p4 = scmp.lt.s32.totalorder %s10183_s23, %s10183_s23 }
  0x2f   : > { %p10186_p13 = pnand %p10184_p12, %p10653_p7  ;;  %p10193_p6 = por %p10192_p4, %p10191_p2 }
  0x31   : > { %p10187_p0 = pneg %p10186_p13 }
  0x33   : > { %p10194_p8 = pnand %p10193_p6, %p10187_p0 }
  0x35   : > { %10197 = shalt.err (!%p10194_p8)
}
  0x36   : > { %s13468_s24 = smov 896   ;;  %s13470_s25 = smov 56  }
  0x37   : > { %9835 = dma.hbm_to_vmem [thread:$0]  (!%p10637_p5), %s14189_s1, 28672, %s10631_s17, [#allocation9], %s13468_s24, %s13468_s24, %s13470_s25  }
  0x38   : > { %s14191_s3 = sld [smem:[#allocation379_spill]] }
  0x3e   : > { %s10198_s23 = scalar_lea.hbm %s14191_s3, 32 }
  0x3f   : > { %p10199_p9 = scmp.ne.s32.totalorder %s14191_s3, %s10198_s23  ;;  %p10205_p12 = scmp.lt.u32.totalorder %s10198_s23, %s14191_s3 }
  0x41   : > { %p10201_p10 = pnand %p10199_p9, %p10653_p7 }
  0x43   : > { %p10202_p11 = pneg %p10201_p10 }
  0x45   : > { %p10207_p13 = pnand %p10205_p12, %p10202_p11 }
  0x47   : > { %10210 = shalt.err (!%p10207_p13)
}
  0x48   : > { %s10211_s17 = scalar_lea.vmem %s10641_s20, 32  ;;  %p10219_p6 = scmp.lt.s32.totalorder %s10641_s20, %s10641_s20 }
  0x49   : > { %p10212_p0 = scmp.ne.s32.totalorder %s10641_s20, %s10211_s17  ;;  %p10220_p8 = scmp.lt.s32.totalorder %s10211_s17, %s10211_s17 }
  0x4b   : > { %p10214_p2 = pnand %p10212_p0, %p10653_p7  ;;  %p10221_p9 = por %p10220_p8, %p10219_p6 }
  0x4d   : > { %p10215_p4 = pneg %p10214_p2 }
  0x4f   : > { %p10222_p10 = pnand %p10221_p9, %p10215_p4 }
  0x51   : > { %10225 = shalt.err (!%p10222_p10)
}
  0x52   : > { %9841 = dma.hbm_to_vmem [thread:$0]  (!%p10637_p5), %s14191_s3, 32, %s10641_s20, [#allocation12]  }
  0x53   : > { %s14192_s5 = sld [smem:[#allocation381_spill]] }
  0x59   : > { %s10226_s26 = scalar_lea.hbm %s14192_s5, 112 }
  0x5a   : > { %p10227_p11 = scmp.ne.s32.totalorder %s14192_s5, %s10226_s26  ;;  %p10233_p0 = scmp.lt.u32.totalorder %s10226_s26, %s14192_s5 }
  0x5c   : > { %p10229_p12 = pnand %p10227_p11, %p10653_p7 }
  0x5e   : > { %p10230_p13 = pneg %p10229_p12 }
  0x60   : > { %p10235_p2 = pnand %p10233_p0, %p10230_p13 }
  0x62   : > { %10238 = shalt.err (!%p10235_p2)
}
  0x63   : > { %s10239_s17 = scalar_lea.vmem %s312_s22, 112  ;;  %s10246_s20 = scalar_lea.vmem %s312_s22, 128 }
  0x64   : > { %p10240_p4 = scmp.ne.s32.totalorder %s312_s22, %s10239_s17  ;;  %p10247_p9 = scmp.lt.s32.totalorder %s312_s22, %s312_s22 }
  0x65   : > { %p10248_p10 = scmp.lt.s32.totalorder %s10246_s20, %s10239_s17 }
  0x66   : > { %p10242_p6 = pnand %p10240_p4, %p10653_p7 }
  0x67   : > { %p10249_p3 = por %p10248_p10, %p10247_p9 }
  0x68   : > { %p10243_p8 = pneg %p10242_p6 }
  0x6a   : > { %p10250_p1 = pnand %p10249_p3, %p10243_p8 }
  0x6c   : > { %10253 = shalt.err (!%p10250_p1)
}
  0x6d   : > { %9847 = dma.hbm_to_vmem [thread:$0]  (!%p10637_p5), %s14192_s5, 112, %s312_s22, [#allocation15]  }
  0x6e   : > { %s10517_s9 = smov [#allocation10]   ;;  %s14193_s2 = sld [smem:[#allocation378_spill]] }
  0x6f   : > { %s273_s15 = sshll.u32 %s10517_s9, 4  ;;  %s274_s15 = int_to_ptr.vmem [resolvable:$true] %s273_s15 }
  0x74   : > { %s10254_s19 = scalar_lea.hbm %s14193_s2, 8192 }
  0x75   : > { %p10255_p11 = scmp.ne.s32.totalorder %s14193_s2, %s10254_s19  ;;  %p10261_p12 = scmp.lt.u32.totalorder %s10254_s19, %s14193_s2 }
  0x77   : > { %p10257_p1 = pnand %p10255_p11, %p10653_p7 }
  0x79   : > { %p10258_p3 = pneg %p10257_p1 }
  0x7b   : > { %p10263_p13 = pnand %p10261_p12, %p10258_p3 }
  0x7d   : > { %10266 = shalt.err (!%p10263_p13)
}
  0x7e   : > { %s10267_s22 = scalar_lea.vmem %s274_s15, 8192  ;;  %p10275_p6 = scmp.lt.s32.totalorder %s274_s15, %s274_s15 }
  0x7f   : > { %p10268_p0 = scmp.ne.s32.totalorder %s274_s15, %s10267_s22  ;;  %p10276_p8 = scmp.lt.s32.totalorder %s10267_s22, %s10267_s22 }
  0x81   : > { %p10270_p2 = pnand %p10268_p0, %p10653_p7  ;;  %p10277_p9 = por %p10276_p8, %p10275_p6 }
  0x83   : > { %p10271_p4 = pneg %p10270_p2 }
  0x85   : > { %p10278_p10 = pnand %p10277_p9, %p10271_p4 }
  0x87   : > { %10281 = shalt.err (!%p10278_p10)
}
  0x88   : > { %s13472_s8 = smov 256   ;;  %s10519_s30 = smov 16  }
  0x89   : > { %9838 = dma.hbm_to_vmem [thread:$0]  (!%p10637_p5), %s14193_s2, 8192, %s274_s15, [#allocation9], %s13472_s8, %s13472_s8, %s10519_s30  }
  0x8a   : > { %s10520_s16 = smov [#allocation13]   ;;  %s10521_s21 = smov [#allocation16]  }
  0x8b   : > { %s297_s19 = sshll.u32 %s10520_s16, 4  ;;  %s321_s23 = sshll.u32 %s10521_s21, 4  ;;  %s298_s19 = int_to_ptr.vmem [resolvable:$true] %s297_s19  ;;  %s10740_s23 = int_to_ptr.vmem [resolvable:$true] %s321_s23 }
  0x8c   : > { %s14194_s4 = sld [smem:[#allocation380_spill]] }
  0x92   : > { %s10282_s22 = scalar_lea.hbm %s14194_s4, 43008 }
  0x93   : > { %p10283_p11 = scmp.ne.s32.totalorder %s14194_s4, %s10282_s22  ;;  %p10289_p12 = scmp.lt.u32.totalorder %s10282_s22, %s14194_s4 }
  0x95   : > { %p10285_p1 = pnand %p10283_p11, %p10653_p7 }
  0x97   : > { %p10286_p3 = pneg %p10285_p1 }
  0x99   : > { %p10291_p13 = pnand %p10289_p12, %p10286_p3 }
  0x9b   : > { %10294 = shalt.err (!%p10291_p13)
}
  0x9c   : > { %s10295_s26 = scalar_lea.vmem %s298_s19, 43008  ;;  %p10303_p6 = scmp.lt.s32.totalorder %s298_s19, %s298_s19 }
  0x9d   : > { %p10296_p0 = scmp.ne.s32.totalorder %s298_s19, %s10295_s26  ;;  %p10304_p8 = scmp.lt.s32.totalorder %s10295_s26, %s10295_s26 }
  0x9f   : > { %p10298_p2 = pnand %p10296_p0, %p10653_p7  ;;  %p10305_p9 = por %p10304_p8, %p10303_p6 }
  0xa1   : > { %p10299_p4 = pneg %p10298_p2 }
  0xa3   : > { %p10306_p10 = pnand %p10305_p9, %p10299_p4 }
  0xa5   : > { %10309 = shalt.err (!%p10306_p10)
}
  0xa6   : > { %s14195_s24 = smov 56   ;;  %s14196_s25 = smov 896  }
  0xa7   : > { %9844 = dma.hbm_to_vmem [thread:$0]  (!%p10637_p5), %s14194_s4, 43008, %s298_s19, [#allocation12], %s14196_s25, %s14196_s25, %s14195_s24  }
  0xa8   : > { %s10310_s22 = scalar_lea.hbm %s13459_s6, 8192 }
  0xa9   : > { %p10311_p11 = scmp.ne.s32.totalorder %s13459_s6, %s10310_s22  ;;  %p10317_p12 = scmp.lt.u32.totalorder %s10310_s22, %s13459_s6 }
  0xab   : > { %p10313_p1 = pnand %p10311_p11, %p10653_p7 }
  0xad   : > { %p10314_p3 = pneg %p10313_p1 }
  0xaf   : > { %p10319_p13 = pnand %p10317_p12, %p10314_p3 }
  0xb1   : > { %10322 = shalt.err (!%p10319_p13)
}
  0xb2   : > { %s10323_s19 = scalar_lea.vmem %s10740_s23, 8192  ;;  %p10331_p6 = scmp.lt.s32.totalorder %s10740_s23, %s10740_s23 }
  0xb3   : > { %p10324_p0 = scmp.ne.s32.totalorder %s10740_s23, %s10323_s19  ;;  %p10332_p8 = scmp.lt.s32.totalorder %s10323_s19, %s10323_s19 }
  0xb5   : > { %p10326_p2 = pnand %p10324_p0, %p10653_p7  ;;  %p10333_p9 = por %p10332_p8, %p10331_p6 }
  0xb7   : > { %p10327_p4 = pneg %p10326_p2 }
  0xb9   : > { %p10334_p10 = pnand %p10333_p9, %p10327_p4 }
  0xbb   : > { %10337 = shalt.err (!%p10334_p10)
}
  0xbc   : > { %s14197_s8 = smov 256   ;;  %s10522_s17 = smov [#allocation17]  }
  0xbd   : > { %9850 = dma.hbm_to_vmem [thread:$0]  (!%p10637_p5), %s13459_s6, 8192, %s10740_s23, [#allocation15], %s14197_s8, %s14197_s8, %s10519_s30  }
  0xbe   : > { %s335_s20 = sshll.u32 %s10522_s17, 4  ;;  %s10338_s15 = scalar_lea.hbm %s13460_s7, 32  ;;  %s336_s20 = int_to_ptr.vmem [resolvable:$true] %s335_s20 }
  0xbf   : > { %p10339_p11 = scmp.ne.s32.totalorder %s13460_s7, %s10338_s15  ;;  %p10345_p12 = scmp.lt.u32.totalorder %s10338_s15, %s13460_s7 }
  0xc1   : > { %p10341_p1 = pnand %p10339_p11, %p10653_p7 }
  0xc3   : > { %p10342_p3 = pneg %p10341_p1 }
  0xc5   : > { %p10347_p13 = pnand %p10345_p12, %p10342_p3 }
  0xc7   : > { %10350 = shalt.err (!%p10347_p13)
}
  0xc8   : > { %s10351_s30 = scalar_lea.vmem %s336_s20, 32  ;;  %p10359_p6 = scmp.lt.s32.totalorder %s336_s20, %s336_s20 }
  0xc9   : > { %p10352_p0 = scmp.ne.s32.totalorder %s336_s20, %s10351_s30  ;;  %p10360_p8 = scmp.lt.s32.totalorder %s10351_s30, %s10351_s30 }
  0xcb   : > { %p10354_p2 = pnand %p10352_p0, %p10653_p7  ;;  %p10361_p9 = por %p10360_p8, %p10359_p6 }
  0xcd   : > { %p10355_p4 = pneg %p10354_p2 }
  0xcf   : > { %p10362_p10 = pnand %p10361_p9, %p10355_p4 }
  0xd1   : > { %10365 = shalt.err (!%p10362_p10)
}
  0xd2   : > { %9853 = dma.hbm_to_vmem [thread:$0]  (!%p10637_p5), %s13460_s7, 32, %s336_s20, [#allocation18]  }
  0xd3   : > { %s6366_s1 = sadd.s32 4294967294, %s10510_s12   ;;  %s37_s2 = sadd.s32 1, %s10502_s10 }
  0xd4   : > { %s40_s13 = sadd.s32 1, %s10506_s11  ;;  %p38_p7 = scmp.ge.s32.totalorder %s37_s2, 2 }
  0xd5   : > { %s49_s18 = sadd.s32 1, %s10490_s29  ;;  %p56_p11 = scmp.ne.s32.totalorder %s10490_s29, %s10486_s28 }
  0xd6   : > { %p57_p1 = scmp.eq.s32.totalorder %s10510_s12, 0  ;;  %s15492_s2 = smov (%p38_p7, %s37_s2), 0 }
  0xd7   : > { %s15494_s13 = smov (!%p38_p7, %s40_s13), %s10506_s11  ;;  %s44_s16 = ssub.s32 %s10502_s10, %s15492_s2 }
  0xd8   : > { %p10819_p3 = por %p57_p1, %p56_p11  ;;  %p42_p5 = scmp.ge.s32.totalorder %s15494_s13, 2 }
  0xd9   : > { %p62_p12 = scmp.ne.s32.totalorder %s10486_s28, %s10482_s27  ;;  %s14199_s17 = sadd.s32 4294967295, %s10510_s12  }
  0xda   : > { %p235_p13 = scmp.eq.s32.totalorder %s14199_s17, 3  ;;  %p241_p0 = scmp.eq.s32.totalorder %s6366_s1, 3 }
  0xdb   : > { %s15496_s13 = smov (%p42_p5, %s15494_s13), 0  ;;  %p14200_p2 = scmp.ne.s32.totalorder %s14185_s14, 0 }
  0xdc   : > { %p10835_p6 = por %p235_p13, %p56_p11  ;;  %s45_s9 = ssub.s32 %s10506_s11, %s15496_s13 }
  0xdd   : > { %p10831_p4 = por %p14200_p2, %p62_p12  ;;  %p10841_p8 = por %p241_p0, %p62_p12 }
  0xde   : > { %s14202_s22 = scalar_select %p10835_p6, 1, 0 }
  0xdf   : > { %s14203_s15 = scalar_select %p10841_p8, 1, 0 }
  0xe0   : > { %s46_s26 = sor.u32 %s45_s9, %s44_s16  ;;  %p9869_p9 = scmp.lt.s32.totalorder %s10510_s12, 4 }
  0xe1   : > { %p47_p10 = scmp.eq.s32.totalorder %s46_s26, 0  ;;  %s346_s19 = sand.u32 1, %s10490_s29  }
  0xe2   : > { %s9796_s30 = smul.u32 224, %s346_s19  ;;  %p10856_p7 = pnand %p9869_p9, %p10819_p3 }
  0xe3   : > { %s10848_s23 = scalar_select %p47_p10, %s10490_s29, %s49_s18  }
  0xe4   : > { %s9797_s8 = smul.u32 7, %s10506_s11  ;;  %s350_s17 = scalar_lea.vmem [#allocation5], %s9796_s30 }
  0xe5   : > { %s9798_s1 = smul.u32 56, %s10502_s10  ;;  %s360_s3 = sshll.u32 %s350_s17, 4  ;;  %s10852_s3 = int_to_ptr.vmem [resolvable:$true] %s360_s3 }
  0xe6   : > { %s10865_s30 = scalar_lea.sflag [#allocation6], %s346_s19  ;;  %p10368_p1 = pneg %p10856_p7 }
  0xe7   : > { %s357_s16 = sadd.s32 %s9798_s1, %s9797_s8  ;;  %s10371_s5 = scalar_lea.hbm %s13453_s0, 14336 }
  0xe8   : > { %s6378_s9 = sshll.u32 %s357_s16, 7 }
  0xe9   : > { %s10863_s18 = scalar_lea.hbm %s13453_s0, %s6378_s9 }
  0xea   : > { %s10366_s21 = scalar_lea.hbm %s10863_s18, 3584  ;;  %p10372_p12 = scmp.lt.u32.totalorder %s10863_s18, %s13453_s0 }
  0xeb   : > { %p10367_p11 = scmp.ne.s32.totalorder %s10863_s18, %s10366_s21  ;;  %p10373_p13 = scmp.lt.u32.totalorder %s10371_s5, %s10366_s21 }
  0xec   : > { %p10375_p2 = scmp.lt.u32.totalorder %s10366_s21, %s10863_s18 }
  0xed   : > { %p10369_p3 = pnand %p10368_p1, %p10367_p11  ;;  %p10374_p0 = por %p10373_p13, %p10372_p12 }
  0xef   : > { %p10370_p5 = pneg %p10369_p3  ;;  %p10376_p9 = por %p10375_p2, %p10374_p0 }
  0xf1   : > { %p10377_p10 = pnand %p10376_p9, %p10370_p5 }
  0xf3   : > { %10380 = shalt.err (!%p10377_p10)
}
  0xf4   : > { %s10381_s19 = scalar_lea.vmem %s10852_s3, 3584  ;;  %s10523_s9 = smov [#allocation5]  }
  0xf5   : > { %p10382_p11 = scmp.ne.s32.totalorder %s10852_s3, %s10381_s19  ;;  %s10386_s26 = sshll.u32 %s10523_s9, 4  ;;  %s10387_s26 = int_to_ptr.vmem [resolvable:$false] %s10386_s26 }
  0xf6   : > { %s10388_s8 = scalar_lea.vmem %s10387_s26, 7168  ;;  %p10389_p6 = scmp.lt.s32.totalorder %s10852_s3, %s10387_s26 }
  0xf7   : > { %p10384_p3 = pnand %p10382_p11, %p10368_p1  ;;  %p10390_p12 = scmp.lt.s32.totalorder %s10388_s8, %s10381_s19 }
  0xf9   : > { %p10385_p8 = pneg %p10384_p3  ;;  %p10391_p13 = por %p10390_p12, %p10389_p6 }
  0xfb   : > { %p10392_p0 = pnand %p10391_p13, %p10385_p8 }
  0xfd   : > { %10395 = shalt.err (!%p10392_p0)
}
  0xfe   : > { %s10524_s21 = smov 1792   ;;  %s14205_s1 = sld [smem:[#allocation28_spill]] }
  0xff   : > { %9857 = dma.hbm_to_vmem [thread:$0]  (!%p10856_p7), %s10863_s18, 3584, %s10852_s3, %s10865_s30, %s10524_s21, %s14196_s25, %s14195_s24  }
 0x104   : > { %p14206_p1 = scmp.ne.s32.totalorder %s14205_s1, 0 }
 0x106   : > { %372 = sbr.rel (%p14206_p1) target bundleno = 4508 (0x119c), region = 52 }
 0x10d   : > { %s10898_s5 = sand.u32 1, %s10486_s28  }
 0x10e   : > { %s9799_s17 = smul.u32 224, %s10898_s5  ;;  %s375_s16 = scalar_lea.sflag [#allocation6], %s10898_s5 }
 0x110   : > { %s10902_s19 = scalar_lea.vmem [#allocation5], %s9799_s17 }
 0x111   : > { %10457 = dma.done.wait (%p10831_p4), %s375_s16, 3584  }
 0x112   : > { %10459 = vsyncadd (%p10831_p4), %s375_s16, 4294963712  ;;  %p14207_p6 = scmp.ne.s32.totalorder %s14185_s14, 0 }
 0x114   : > { %10461 = dma.done.wait (%p14207_p6), [#allocation9], 36864  }
 0x115   : > { %10463 = vsyncadd (%p14207_p6), [#allocation9], 4294930432 }
 0x116   : > { %10465 = dma.done.wait (%p14207_p6), [#allocation12], 43040  }
 0x117   : > { %10467 = vsyncadd (%p14207_p6), [#allocation12], 4294924256 }
 0x118   : > { %10469 = dma.done.wait (%p14207_p6), [#allocation15], 8304  }
 0x119   : > { %10471 = vsyncadd (%p14207_p6), [#allocation15], 4294958992 }
 0x11a   : > { %10473 = dma.done.wait (%p14207_p6), [#allocation18], 32  }
 0x11b   : > { %10475 = vsyncadd (%p14207_p6), [#allocation18], 4294967264  ;;  %s6387_s3 = sshll.u32 %s10898_s5, 5  ;;  %s14208_s24 = sld [smem:[#allocation26_spill]] }
 0x11c   : > { %s10925_s4 = scalar_lea.vmem [#allocation19], %s6387_s3 }
 0x121   : > { %p6388_p4 = scmp.ne.s32.totalorder %s14208_s24, 0 }
 0x122   : > { %v10525_v0 = vmov (!%p6388_p4), 0.0  }
 0x123   : > { %444 = sbr.rel (%p6388_p4) target bundleno = 298 (0x12a), region = 88  ;;  %445 = vst [vmem:[#allocation2] sm:$0xff] (!%p6388_p4), %v10525_v0  ;;  %446 = vst [vmem:[#allocation2 + $0x8] sm:$0xff] (!%p6388_p4), %v10525_v0 }
 0x124   : > { %447 = vst [vmem:[#allocation3] sm:$0xff] (!%p6388_p4), %v10525_v0  ;;  %448 = vst [vmem:[#allocation3 + $0x8] sm:$0xff] (!%p6388_p4), %v10525_v0 }
 0x125   : > { %449 = vst [vmem:[#allocation4] sm:$0xff] (!%p6388_p4), %v10525_v0  ;;  %450 = vst [vmem:[#allocation4 + $0x8] sm:$0xff] (!%p6388_p4), %v10525_v0 }
 0x12a PF: > { %v452_v1 = vld [vmem:[#allocation8 + $0x8] sm:$0xff]  ;;  %v459_v2 = vld [vmem:[#allocation8 + $0x40] sm:$0xff]  ;;  %v458_v5 = vld [vmem:[#allocation8 + $0x38] sm:$0xff]  ;;  %vm10528_vm0 = vmmov 0   ;;  %s15475_s14 = sld [smem:[#allocation26_spill]]  ;;  %s15477_s25 = sld [smem:[#allocation27_spill]] }
 0x12b   : > { %v451_v3 = vld [vmem:[#allocation8] sm:$0xff]  ;;  %v10928_v4 = vpack.c.bf16 %v459_v2, %v452_v1  ;;  %v454_v6 = vld [vmem:[#allocation8 + $0x18] sm:$0xff]  ;;  %v461_v7 = vld [vmem:[#allocation8 + $0x50] sm:$0xff]  ;;  %s6209_s9 = sshll.u32 %s10925_s4, 4  ;;  %s15481_s21 = sld [smem:[#allocation382_spill]]  ;;  %s13398_s9 = int_to_ptr.vmem [resolvable:$true] %s6209_s9 }
 0x12c   : > { %v10930_v8 = vpack.c.bf16 %v458_v5, %v451_v3  ;;  %v10932_v9 = vpack.c.bf16 %v461_v7, %v454_v6  ;;  %v453_v10 = vld [vmem:[#allocation8 + $0x10] sm:$0xff]  ;;  %v460_v11 = vld [vmem:[#allocation8 + $0x48] sm:$0xff]  ;;  %v466_v12 = vld [vmem:[#allocation8 + $0x78] sm:$0xff]  ;;  %s6194_s17 = scalar_lea.sflag [#allocation7], %s10898_s5  ;;  %s10396_s16 = scalar_lea.vmem %s13398_s9, 512 }
 0x12d   : > { %14209 = vst [vmem:[#allocation29_spill] sm:$0xff] %v10928_v4  ;;  %6949 = vmatprep.subr.bf16.mxu0 %v10928_v4  ;;  %v10935_v13 = vpack.c.bf16 %v460_v11, %v453_v10  ;;  %v473_v14 = vld [vmem:[#allocation8 + $0xb0] sm:$0xff]  ;;  %v472_v16 = vld [vmem:[#allocation8 + $0xa8] sm:$0xff]  ;;  %v475_v20 = vld [vmem:[#allocation8 + $0xc0] sm:$0xff]  ;;  %p10397_p8 = scmp.ne.s32.totalorder %s13398_s9, %s10396_s16  ;;  %p15482_p7 = scmp.ne.s32.totalorder %s14202_s22, 0 }
 0x12e   : > { %14210 = vst [vmem:[#allocation30_spill] sm:$0xff] %v10930_v8  ;;  %14211 = vst [vmem:[#allocation31_spill] sm:$0xff] %v10932_v9  ;;  %v465_v15 = vld [vmem:[#allocation8 + $0x70] sm:$0xff]  ;;  %6951 = vmatpush1.bf16.msra.mxu0 %v10930_v8  ;;  %7013 = vmatprep.subr.bf16.mxu1 %v10932_v9  ;;  %v10939_v17 = vpack.c.bf16 %v473_v14, %v466_v12  ;;  %v468_v19 = vld [vmem:[#allocation8 + $0x88] sm:$0xff] }
 0x12f   : > { %14212 = vst [vmem:[#allocation32_spill] sm:$0xff] %v10935_v13  ;;  %v10941_v18 = vpack.c.bf16 %v472_v16, %v465_v15  ;;  %v467_v21 = vld [vmem:[#allocation8 + $0x80] sm:$0xff]  ;;  %7015 = vmatpush1.bf16.msra.mxu1 %v10935_v13  ;;  %v10944_v22 = vpack.c.bf16 %v475_v20, %v468_v19  ;;  %v474_v23 = vld [vmem:[#allocation8 + $0xb8] sm:$0xff]  ;;  %v480_v24 = vld [vmem:[#allocation8 + $0xe8] sm:$0xff]  ;;  %p10398_p5 = pnand %p10397_p8, %p15482_p7 }
 0x130   : > { %14213 = vst [vmem:[#allocation33_spill] sm:$0xff] %v10939_v17  ;;  %v487_v25 = vld [vmem:[#allocation8 + $0x120] sm:$0xff]  ;;  %6953 = vmatprep.subr.bf16.mxu0 %v10939_v17  ;;  %v10947_v26 = vpack.c.bf16 %v474_v23, %v467_v21  ;;  %v486_v29 = vld [vmem:[#allocation8 + $0x118] sm:$0xff]  ;;  %v489_v31 = vld [vmem:[#allocation8 + $0x130] sm:$0xff]  ;;  %s6459_s20 = sshll.u32 %s15475_s14, 3 }
 0x131   : > { %14214 = vst [vmem:[#allocation34_spill] sm:$0xff] %v10941_v18  ;;  %14215 = vst [vmem:[#allocation35_spill] sm:$0xff] %v10944_v22  ;;  %v10949_v27 = vpack.c.bf16 %v487_v25, %v480_v24  ;;  %v479_v28 = vld [vmem:[#allocation8 + $0xe0] sm:$0xff]  ;;  %v482_v30 = vld [vmem:[#allocation8 + $0xf8] sm:$0xff]  ;;  %7017 = vmatprep.subr.bf16.mxu1 %v10944_v22  ;;  %s6206_s18 = sadd.s32 %s15477_s25, %s6459_s20  ;;  %p10399_p2 = pneg %p10398_p5 }
 0x132   : > { %14216 = vst [vmem:[#allocation36_spill] sm:$0xff] %v10947_v26  ;;  %v481_v32 = vld [vmem:[#allocation8 + $0xf0] sm:$0xff]  ;;  %v488_v33 = vld [vmem:[#allocation8 + $0x128] sm:$0xff]  ;;  %6955 = vmatpush1.bf16.msra.mxu0 %v10941_v18  ;;  %v10953_v34 = vpack.c.bf16 %v486_v29, %v479_v28  ;;  %v10955_v35 = vpack.c.bf16 %v489_v31, %v482_v30  ;;  %v494_v36 = vld [vmem:[#allocation8 + $0x158] sm:$0xff]  ;;  %s6456_s30 = sshll.u32 %s6206_s18, 7 }
 0x133   : > { %14217 = vst [vmem:[#allocation37_spill] sm:$0xff] %v10949_v27  ;;  %v501_v37 = vld [vmem:[#allocation8 + $0x190] sm:$0xff]  ;;  %7019 = vmatpush1.bf16.msra.mxu1 %v10947_v26  ;;  %6957 = vmatprep.subr.bf16.mxu0 %v10949_v27  ;;  %v10959_v39 = vpack.c.bf16 %v488_v33, %v481_v32  ;;  %v500_v41 = vld [vmem:[#allocation8 + $0x188] sm:$0xff]  ;;  %v503_v43 = vld [vmem:[#allocation8 + $0x1a0] sm:$0xff]  ;;  %s13396_s1 = scalar_lea.hbm %s15481_s21, %s6456_s30 }
 0x134   : > { %14218 = vst [vmem:[#allocation38_spill] sm:$0xff] %v10955_v35  ;;  %v493_v38 = vld [vmem:[#allocation8 + $0x150] sm:$0xff]  ;;  %v10961_v40 = vpack.c.bf16 %v501_v37, %v494_v36  ;;  %v496_v42 = vld [vmem:[#allocation8 + $0x168] sm:$0xff]  ;;  %7021 = vmatprep.subr.bf16.mxu1 %v10955_v35  ;;  %v495_v45 = vld [vmem:[#allocation8 + $0x160] sm:$0xff] }
 0x135   : > { %14219 = vst [vmem:[#allocation39_spill] sm:$0xff] %v10959_v39  ;;  %v10964_v44 = vpack.c.bf16 %v503_v43, %v496_v42  ;;  %v502_v46 = vld [vmem:[#allocation8 + $0x198] sm:$0xff]  ;;  %v508_v47 = vld [vmem:[#allocation8 + $0x1c8] sm:$0xff]  ;;  %v515_v48 = vld [vmem:[#allocation8 + $0x200] sm:$0xff]  ;;  %v10967_v49 = vpack.c.bf16 %v500_v41, %v493_v38 }
 0x136   : > { %6959 = vmatpush1.bf16.msra.mxu0 %v10953_v34  ;;  %v510_v50 = vld [vmem:[#allocation8 + $0x1d8] sm:$0xff]  ;;  %v517_v51 = vld [vmem:[#allocation8 + $0x210] sm:$0xff]  ;;  %v10971_v52 = vpack.c.bf16 %v502_v46, %v495_v45  ;;  %v10973_v53 = vpack.c.bf16 %v515_v48, %v508_v47  ;;  %v507_v54 = vld [vmem:[#allocation8 + $0x1c0] sm:$0xff] }
 0x137   : > { %14220 = vst [vmem:[#allocation40_spill] sm:$0xff] %v10964_v44  ;;  %7023 = vmatpush1.bf16.msra.mxu1 %v10959_v39  ;;  %6961 = vmatprep.subr.bf16.mxu0 %v10961_v40  ;;  %v514_v55 = vld [vmem:[#allocation8 + $0x1f8] sm:$0xff]  ;;  %v509_v56 = vld [vmem:[#allocation8 + $0x1d0] sm:$0xff]  ;;  %v10976_v57 = vpack.c.bf16 %v517_v51, %v510_v50  ;;  %v516_v58 = vld [vmem:[#allocation8 + $0x208] sm:$0xff] }
 0x138   : > { %14221 = vst [vmem:[#allocation41_spill] sm:$0xff] %v10971_v52  ;;  %7025 = vmatprep.subr.bf16.mxu1 %v10964_v44  ;;  %v522_v59 = vld [vmem:[#allocation8 + $0x238] sm:$0xff]  ;;  %v529_v60 = vld [vmem:[#allocation8 + $0x270] sm:$0xff]  ;;  %v524_v61 = vld [vmem:[#allocation8 + $0x248] sm:$0xff]  ;;  %v10979_v63 = vpack.c.bf16 %v514_v55, %v507_v54  ;;  %v10983_v0 = vpack.c.bf16 %v516_v58, %v509_v56 }
 0x139   : > { %14222 = vst [vmem:[#allocation42_spill] sm:$0xff] %v10976_v57  ;;  %v531_v62 = vld [vmem:[#allocation8 + $0x280] sm:$0xff]  ;;  %v10985_v1 = vpack.c.bf16 %v529_v60, %v522_v59  ;;  %v521_v2 = vld [vmem:[#allocation8 + $0x230] sm:$0xff]  ;;  %v528_v3 = vld [vmem:[#allocation8 + $0x268] sm:$0xff] }
 0x13a   : > { %6963 = vmatpush1.bf16.msra.mxu0 %v10967_v49  ;;  %14223 = vst [vmem:[#allocation43_spill] sm:$0xff] %v10979_v63  ;;  %14224 = vst [vmem:[#allocation44_spill] sm:$0xff] %v10983_v0  ;;  %v523_v5 = vld [vmem:[#allocation8 + $0x240] sm:$0xff]  ;;  %v10988_v6 = vpack.c.bf16 %v531_v62, %v524_v61  ;;  %v530_v7 = vld [vmem:[#allocation8 + $0x278] sm:$0xff]  ;;  %v10991_v15 = vpack.c.bf16 %v528_v3, %v521_v2 }
 0x13b   : > { %7027 = vmatpush1.bf16.msra.mxu1 %v10971_v52  ;;  %6965 = vmatprep.subr.bf16.mxu0 %v10973_v53  ;;  %14225 = vst [vmem:[#allocation45_spill] sm:$0xff] %v10985_v1  ;;  %v536_v10 = vld [vmem:[#allocation8 + $0x2a8] sm:$0xff]  ;;  %v543_v11 = vld [vmem:[#allocation8 + $0x2e0] sm:$0xff]  ;;  %v538_v12 = vld [vmem:[#allocation8 + $0x2b8] sm:$0xff]  ;;  %v10995_v16 = vpack.c.bf16 %v530_v7, %v523_v5 }
 0x13c   : > { %7029 = vmatprep.subr.bf16.mxu1 %v10976_v57  ;;  %14226 = vst [vmem:[#allocation46_spill] sm:$0xff] %v10988_v6  ;;  %v545_v14 = vld [vmem:[#allocation8 + $0x2f0] sm:$0xff]  ;;  %14227 = vst [vmem:[#allocation47_spill] sm:$0xff] %v10991_v15  ;;  %v10997_v19 = vpack.c.bf16 %v543_v11, %v536_v10  ;;  %v535_v20 = vld [vmem:[#allocation8 + $0x2a0] sm:$0xff] }
 0x13d   : > { %14228 = vst [vmem:[#allocation48_spill] sm:$0xff] %v10995_v16  ;;  %v542_v21 = vld [vmem:[#allocation8 + $0x2d8] sm:$0xff]  ;;  %v537_v23 = vld [vmem:[#allocation8 + $0x2b0] sm:$0xff]  ;;  %v11000_v24 = vpack.c.bf16 %v545_v14, %v538_v12  ;;  %v544_v25 = vld [vmem:[#allocation8 + $0x2e8] sm:$0xff] }
 0x13e   : > { %6967 = vmatpush1.bf16.msra.mxu0 %v10979_v63  ;;  %14229 = vst [vmem:[#allocation49_spill] sm:$0xff] %v10997_v19  ;;  %v550_v28 = vld [vmem:[#allocation8 + $0x318] sm:$0xff]  ;;  %v557_v29 = vld [vmem:[#allocation8 + $0x350] sm:$0xff]  ;;  %v552_v30 = vld [vmem:[#allocation8 + $0x328] sm:$0xff]  ;;  %v11003_v32 = vpack.c.bf16 %v542_v21, %v535_v20  ;;  %v11007_v33 = vpack.c.bf16 %v544_v25, %v537_v23 }
 0x13f   : > { %7031 = vmatpush1.bf16.msra.mxu1 %v10983_v0  ;;  %6969 = vmatprep.subr.bf16.mxu0 %v10985_v1  ;;  %14230 = vst [vmem:[#allocation50_spill] sm:$0xff] %v11000_v24  ;;  %v559_v31 = vld [vmem:[#allocation8 + $0x360] sm:$0xff]  ;;  %v11009_v36 = vpack.c.bf16 %v557_v29, %v550_v28  ;;  %v549_v37 = vld [vmem:[#allocation8 + $0x310] sm:$0xff]  ;;  %v556_v38 = vld [vmem:[#allocation8 + $0x348] sm:$0xff] }
 0x140   : > { %7033 = vmatprep.subr.bf16.mxu1 %v10988_v6  ;;  %14231 = vst [vmem:[#allocation51_spill] sm:$0xff] %v11003_v32  ;;  %14232 = vst [vmem:[#allocation52_spill] sm:$0xff] %v11007_v33  ;;  %v551_v41 = vld [vmem:[#allocation8 + $0x320] sm:$0xff]  ;;  %v11012_v42 = vpack.c.bf16 %v559_v31, %v552_v30  ;;  %v558_v43 = vld [vmem:[#allocation8 + $0x358] sm:$0xff]  ;;  %v11015_v50 = vpack.c.bf16 %v556_v38, %v549_v37 }
 0x141   : > { %14233 = vst [vmem:[#allocation53_spill] sm:$0xff] %v11009_v36  ;;  %v564_v45 = vld [vmem:[#allocation8 + $0x388] sm:$0xff]  ;;  %v571_v46 = vld [vmem:[#allocation8 + $0x3c0] sm:$0xff]  ;;  %v566_v47 = vld [vmem:[#allocation8 + $0x398] sm:$0xff]  ;;  %v11019_v51 = vpack.c.bf16 %v558_v43, %v551_v41 }
 0x142   : > { %6971 = vmatpush1.bf16.msra.mxu0 %v10991_v15  ;;  %14234 = vst [vmem:[#allocation54_spill] sm:$0xff] %v11012_v42  ;;  %v573_v48 = vld [vmem:[#allocation8 + $0x3d0] sm:$0xff]  ;;  %14235 = vst [vmem:[#allocation55_spill] sm:$0xff] %v11015_v50  ;;  %v11021_v54 = vpack.c.bf16 %v571_v46, %v564_v45  ;;  %v563_v55 = vld [vmem:[#allocation8 + $0x380] sm:$0xff] }
 0x143   : > { %7035 = vmatpush1.bf16.msra.mxu1 %v10995_v16  ;;  %6973 = vmatprep.subr.bf16.mxu0 %v10997_v19  ;;  %14236 = vst [vmem:[#allocation56_spill] sm:$0xff] %v11019_v51  ;;  %v570_v56 = vld [vmem:[#allocation8 + $0x3b8] sm:$0xff]  ;;  %v565_v58 = vld [vmem:[#allocation8 + $0x390] sm:$0xff]  ;;  %v11024_v59 = vpack.c.bf16 %v573_v48, %v566_v47  ;;  %v572_v60 = vld [vmem:[#allocation8 + $0x3c8] sm:$0xff] }
 0x144   : > { %7037 = vmatprep.subr.bf16.mxu1 %v11000_v24  ;;  %14237 = vst [vmem:[#allocation57_spill] sm:$0xff] %v11021_v54  ;;  %v578_v61 = vld [vmem:[#allocation8 + $0x3f8] sm:$0xff]  ;;  %v585_v62 = vld [vmem:[#allocation8 + $0x430] sm:$0xff]  ;;  %v580_v2 = vld [vmem:[#allocation8 + $0x408] sm:$0xff]  ;;  %v11027_v5 = vpack.c.bf16 %v570_v56, %v563_v55  ;;  %v11031_v7 = vpack.c.bf16 %v572_v60, %v565_v58 }
 0x145   : > { %14238 = vst [vmem:[#allocation58_spill] sm:$0xff] %v11024_v59  ;;  %v587_v3 = vld [vmem:[#allocation8 + $0x440] sm:$0xff]  ;;  %v11033_v10 = vpack.c.bf16 %v585_v62, %v578_v61  ;;  %v577_v11 = vld [vmem:[#allocation8 + $0x3f0] sm:$0xff]  ;;  %v584_v12 = vld [vmem:[#allocation8 + $0x428] sm:$0xff] }
 0x146   : > { %6975 = vmatpush1.bf16.msra.mxu0 %v11003_v32  ;;  %14239 = vst [vmem:[#allocation59_spill] sm:$0xff] %v11027_v5  ;;  %14240 = vst [vmem:[#allocation60_spill] sm:$0xff] %v11031_v7  ;;  %v579_v14 = vld [vmem:[#allocation8 + $0x400] sm:$0xff]  ;;  %v11036_v20 = vpack.c.bf16 %v587_v3, %v580_v2  ;;  %v586_v21 = vld [vmem:[#allocation8 + $0x438] sm:$0xff]  ;;  %v11039_v30 = vpack.c.bf16 %v584_v12, %v577_v11 }
 0x147   : > { %7039 = vmatpush1.bf16.msra.mxu1 %v11007_v33  ;;  %6977 = vmatprep.subr.bf16.mxu0 %v11009_v36  ;;  %14241 = vst [vmem:[#allocation61_spill] sm:$0xff] %v11033_v10  ;;  %v592_v23 = vld [vmem:[#allocation8 + $0x468] sm:$0xff]  ;;  %v599_v25 = vld [vmem:[#allocation8 + $0x4a0] sm:$0xff]  ;;  %v594_v28 = vld [vmem:[#allocation8 + $0x478] sm:$0xff]  ;;  %v11043_v31 = vpack.c.bf16 %v586_v21, %v579_v14 }
 0x148   : > { %7041 = vmatprep.subr.bf16.mxu1 %v11012_v42  ;;  %14242 = vst [vmem:[#allocation62_spill] sm:$0xff] %v11036_v20  ;;  %v601_v29 = vld [vmem:[#allocation8 + $0x4b0] sm:$0xff]  ;;  %14243 = vst [vmem:[#allocation63_spill] sm:$0xff] %v11039_v30  ;;  %v11045_v37 = vpack.c.bf16 %v599_v25, %v592_v23  ;;  %v591_v38 = vld [vmem:[#allocation8 + $0x460] sm:$0xff] }
 0x149   : > { %14244 = vst [vmem:[#allocation64_spill] sm:$0xff] %v11043_v31  ;;  %v598_v41 = vld [vmem:[#allocation8 + $0x498] sm:$0xff]  ;;  %v593_v43 = vld [vmem:[#allocation8 + $0x470] sm:$0xff]  ;;  %v11048_v45 = vpack.c.bf16 %v601_v29, %v594_v28  ;;  %v600_v46 = vld [vmem:[#allocation8 + $0x4a8] sm:$0xff] }
 0x14a   : > { %6979 = vmatpush1.bf16.msra.mxu0 %v11015_v50  ;;  %14245 = vst [vmem:[#allocation65_spill] sm:$0xff] %v11045_v37  ;;  %v606_v47 = vld [vmem:[#allocation8 + $0x4d8] sm:$0xff]  ;;  %v613_v48 = vld [vmem:[#allocation8 + $0x510] sm:$0xff]  ;;  %v608_v55 = vld [vmem:[#allocation8 + $0x4e8] sm:$0xff]  ;;  %v11051_v58 = vpack.c.bf16 %v598_v41, %v591_v38  ;;  %v11055_v61 = vpack.c.bf16 %v600_v46, %v593_v43 }
 0x14b   : > { %7043 = vmatpush1.bf16.msra.mxu1 %v11019_v51  ;;  %6981 = vmatprep.subr.bf16.mxu0 %v11021_v54  ;;  %14246 = vst [vmem:[#allocation66_spill] sm:$0xff] %v11048_v45  ;;  %v615_v56 = vld [vmem:[#allocation8 + $0x520] sm:$0xff]  ;;  %v605_v60 = vld [vmem:[#allocation8 + $0x4d0] sm:$0xff]  ;;  %v11057_v62 = vpack.c.bf16 %v613_v48, %v606_v47  ;;  %v612_v2 = vld [vmem:[#allocation8 + $0x508] sm:$0xff] }
 0x14c   : > { %7045 = vmatprep.subr.bf16.mxu1 %v11024_v59  ;;  %14247 = vst [vmem:[#allocation67_spill] sm:$0xff] %v11051_v58  ;;  %14248 = vst [vmem:[#allocation68_spill] sm:$0xff] %v11055_v61  ;;  %v607_v3 = vld [vmem:[#allocation8 + $0x4e0] sm:$0xff]  ;;  %v614_v11 = vld [vmem:[#allocation8 + $0x518] sm:$0xff]  ;;  %v11060_v12 = vpack.c.bf16 %v615_v56, %v608_v55  ;;  %v11067_v29 = vpack.c.bf16 %v612_v2, %v605_v60 }
 0x14d   : > { %14249 = vst [vmem:[#allocation69_spill] sm:$0xff] %v11057_v62  ;;  %v620_v14 = vld [vmem:[#allocation8 + $0x548] sm:$0xff]  ;;  %v627_v21 = vld [vmem:[#allocation8 + $0x580] sm:$0xff]  ;;  %v11062_v23 = vld [vmem:[#allocation4] sm:$0xff]  ;;  %v11071_v38 = vpack.c.bf16 %v614_v11, %v607_v3 }
 0x14e   : > { %6983 = vmatpush1.bf16.msra.mxu0 %v11027_v5  ;;  %14250 = vst [vmem:[#allocation70_spill] sm:$0xff] %v11060_v12  ;;  %v622_v25 = vld [vmem:[#allocation8 + $0x558] sm:$0xff]  ;;  %v629_v28 = vld [vmem:[#allocation8 + $0x590] sm:$0xff]  ;;  %1216 = vmatprep.mubr.f32.mxu0 %v11062_v23  ;;  %14251 = vst [vmem:[#allocation71_spill] sm:$0xff] %v11067_v29  ;;  %v11073_v41 = vpack.c.bf16 %v627_v21, %v620_v14 }
 0x14f   : > { %7047 = vmatpush1.bf16.msra.mxu1 %v11031_v7  ;;  %6985 = vmatprep.subr.bf16.mxu0 %v11033_v10  ;;  %14252 = vst [vmem:[#allocation72_spill] sm:$0xff] %v11071_v38  ;;  %v619_v43 = vld [vmem:[#allocation8 + $0x540] sm:$0xff]  ;;  %v626_v46 = vld [vmem:[#allocation8 + $0x578] sm:$0xff]  ;;  %v621_v47 = vld [vmem:[#allocation8 + $0x550] sm:$0xff]  ;;  %v11076_v48 = vpack.c.bf16 %v629_v28, %v622_v25 }
 0x150   : > { %7049 = vmatprep.subr.bf16.mxu1 %v11036_v20  ;;  %1287 = vmatprep.mubr.f32.mxu1 %v11062_v23  ;;  %14253 = vst [vmem:[#allocation73_spill] sm:$0xff] %v11073_v41  ;;  %v628_v55 = vld [vmem:[#allocation8 + $0x588] sm:$0xff]  ;;  %v634_v56 = vld [vmem:[#allocation8 + $0x5b8] sm:$0xff]  ;;  %v643_v2 = vld [vmem:[#allocation8 + $0x600] sm:$0xff] }
 0x151   : > { %14254 = vst [vmem:[#allocation74_spill] sm:$0xff] %v11076_v48  ;;  %v636_v60 = vld [vmem:[#allocation8 + $0x5c8] sm:$0xff]  ;;  %v11083_v3 = vpack.c.bf16 %v628_v55, %v621_v47  ;;  %v633_v14 = vld [vmem:[#allocation8 + $0x5b0] sm:$0xff]  ;;  %v635_v25 = vld [vmem:[#allocation8 + $0x5c0] sm:$0xff] }
 0x152   : > { %6987 = vmatpush1.bf16.msra.mxu0 %v11039_v30  ;;  %v640_v21 = vld [vmem:[#allocation8 + $0x5e8] sm:$0xff]  ;;  %v11088_v28 = vpack.c.bf16 %v643_v2, %v636_v60  ;;  %v655_v20 = vld [vmem:[#allocation8 + $0x660] sm:$0xff]  ;;  %v649_v60 = vld [vmem:[#allocation8 + $0x630] sm:$0xff] }
 0x153   : > { %7051 = vmatpush1.bf16.msra.mxu1 %v11043_v31  ;;  %6989 = vmatprep.subr.bf16.mxu0 %v11045_v37  ;;  %14256 = vst [vmem:[#allocation76_spill] sm:$0xff] %v11083_v3  ;;  %v648_v31 = vld [vmem:[#allocation8 + $0x628] sm:$0xff]  ;;  %v647_v55 = vld [vmem:[#allocation8 + $0x620] sm:$0xff]  ;;  %v662_v7 = vld [vmem:[#allocation8 + $0x698] sm:$0xff] }
 0x154   : > { %7053 = vmatprep.subr.bf16.mxu1 %v11048_v45  ;;  %v641_v45 = vld [vmem:[#allocation8 + $0x5f0] sm:$0xff]  ;;  %14258 = vst [vmem:[#allocation78_spill] sm:$0xff] %v11088_v28  ;;  %v11097_v47 = vpack.c.bf16 %v655_v20, %v648_v31  ;;  %v456_v51 = vld [vmem:[#allocation8 + $0x28] sm:$0xff]  ;;  %v463_v42 = vld [vmem:[#allocation8 + $0x60] sm:$0xff] }
 0x155   : > { %v11085_v11 = vpack.c.bf16 %v641_v45, %v634_v56  ;;  %v654_v56 = vld [vmem:[#allocation8 + $0x658] sm:$0xff]  ;;  %v669_v59 = vld [vmem:[#allocation8 + $0x6d0] sm:$0xff]  ;;  %v511_v24 = vld [vmem:[#allocation8 + $0x1e0] sm:$0xff] }
 0x156   : > { %6991 = vmatpush1.bf16.msra.mxu0 %v11051_v58  ;;  %14261 = vst [vmem:[#allocation81_spill] sm:$0xff] %v11097_v47  ;;  %v11109_v31 = vpack.c.bf16 %v669_v59, %v662_v7  ;;  %v11121_v7 = vpack.c.bf16 %v463_v42, %v456_v51  ;;  %v469_v42 = vld [vmem:[#allocation8 + $0x90] sm:$0xff]  ;;  %v476_v51 = vld [vmem:[#allocation8 + $0xc8] sm:$0xff]  ;;  %v518_v16 = vld [vmem:[#allocation8 + $0x218] sm:$0xff] }
 0x157   : > { %7055 = vmatpush1.bf16.msra.mxu1 %v11055_v61  ;;  %6993 = vmatprep.subr.bf16.mxu0 %v11057_v62  ;;  %v11079_v61 = vpack.c.bf16 %v626_v46, %v619_v43  ;;  %14257 = vst [vmem:[#allocation77_spill] sm:$0xff] %v11085_v11  ;;  %v650_v43 = vld [vmem:[#allocation8 + $0x638] sm:$0xff]  ;;  %v657_v46 = vld [vmem:[#allocation8 + $0x670] sm:$0xff]  ;;  %v532_v0 = vld [vmem:[#allocation8 + $0x288] sm:$0xff] }
 0x158   : > { %7057 = vmatprep.subr.bf16.mxu1 %v11060_v12  ;;  %v642_v12 = vld [vmem:[#allocation8 + $0x5f8] sm:$0xff]  ;;  %v11100_v2 = vpack.c.bf16 %v657_v46, %v650_v43  ;;  %14265 = vst [vmem:[#allocation85_spill] sm:$0xff] %v11109_v31  ;;  %v663_v43 = vld [vmem:[#allocation8 + $0x6a0] sm:$0xff]  ;;  %14269 = vst [vmem:[#allocation89_spill] sm:$0xff] %v11121_v7 }
 0x159   : > { %14255 = vst [vmem:[#allocation75_spill] sm:$0xff] %v11079_v61  ;;  %v11095_v45 = vpack.c.bf16 %v642_v12, %v635_v25  ;;  %v661_v12 = vld [vmem:[#allocation8 + $0x690] sm:$0xff]  ;;  %v668_v25 = vld [vmem:[#allocation8 + $0x6c8] sm:$0xff]  ;;  %v539_v57 = vld [vmem:[#allocation8 + $0x2c0] sm:$0xff] }
 0x15a   : > { %6995 = vmatpush1.bf16.msra.mxu0 %v11067_v29  ;;  %14262 = vst [vmem:[#allocation82_spill] sm:$0xff] %v11100_v2  ;;  %v525_v6 = vld [vmem:[#allocation8 + $0x250] sm:$0xff]  ;;  %v546_v52 = vld [vmem:[#allocation8 + $0x2f8] sm:$0xff]  ;;  %v560_v39 = vld [vmem:[#allocation8 + $0x368] sm:$0xff] }
 0x15b   : > { %7059 = vmatpush1.bf16.msra.mxu1 %v11071_v38  ;;  %6997 = vmatprep.subr.bf16.mxu0 %v11073_v41  ;;  %v11091_v38 = vpack.c.bf16 %v640_v21, %v633_v14  ;;  %14260 = vst [vmem:[#allocation80_spill] sm:$0xff] %v11095_v45  ;;  %v664_v14 = vld [vmem:[#allocation8 + $0x6a8] sm:$0xff]  ;;  %v671_v21 = vld [vmem:[#allocation8 + $0x6e0] sm:$0xff]  ;;  %v553_v44 = vld [vmem:[#allocation8 + $0x330] sm:$0xff] }
 0x15c   : > { %7061 = vmatprep.subr.bf16.mxu1 %v11076_v48  ;;  %v656_v48 = vld [vmem:[#allocation8 + $0x668] sm:$0xff]  ;;  %v11112_v46 = vpack.c.bf16 %v671_v21, %v664_v14  ;;  %v477_v14 = vld [vmem:[#allocation8 + $0xd0] sm:$0xff]  ;;  %v567_v35 = vld [vmem:[#allocation8 + $0x3a0] sm:$0xff] }
 0x15d   : > { %14259 = vst [vmem:[#allocation79_spill] sm:$0xff] %v11091_v38  ;;  %v11107_v20 = vpack.c.bf16 %v656_v48, %v649_v60  ;;  %v455_v48 = vld [vmem:[#allocation8 + $0x20] sm:$0xff]  ;;  %v470_v60 = vld [vmem:[#allocation8 + $0x98] sm:$0xff]  ;;  %v11125_v21 = vld [vmem:[#allocation2] sm:$0xff] }
 0x15e   : > { %6999 = vmatpush1.bf16.msra.mxu0 %v11079_v61  ;;  %14266 = vst [vmem:[#allocation86_spill] sm:$0xff] %v11112_v46  ;;  %v574_v26 = vld [vmem:[#allocation8 + $0x3d8] sm:$0xff]  ;;  %v581_v22 = vld [vmem:[#allocation8 + $0x410] sm:$0xff]  ;;  %v588_v13 = vld [vmem:[#allocation8 + $0x448] sm:$0xff] }
 0x15f   : > { %7063 = vmatpush1.bf16.msra.mxu1 %v11083_v3  ;;  %7001 = vmatprep.subr.bf16.mxu0 %v11085_v11  ;;  %v11103_v3 = vpack.c.bf16 %v654_v56, %v647_v55  ;;  %14264 = vst [vmem:[#allocation84_spill] sm:$0xff] %v11107_v20  ;;  %v11115_v55 = vpack.c.bf16 %v668_v25, %v661_v12  ;;  %v462_v56 = vld [vmem:[#allocation8 + $0x58] sm:$0xff]  ;;  %v484_v25 = vld [vmem:[#allocation8 + $0x108] sm:$0xff]  ;;  %v595_v9 = vld [vmem:[#allocation8 + $0x480] sm:$0xff] }
 0x160   : > { %7065 = vmatprep.subr.bf16.mxu1 %v11088_v28  ;;  %v670_v28 = vld [vmem:[#allocation8 + $0x6d8] sm:$0xff]  ;;  %v11127_v12 = vpack.c.bf16 %v462_v56, %v455_v48  ;;  %v483_v56 = vld [vmem:[#allocation8 + $0x100] sm:$0xff] }
 0x161   : > { %14263 = vst [vmem:[#allocation83_spill] sm:$0xff] %v11103_v3  ;;  %14267 = vst [vmem:[#allocation87_spill] sm:$0xff] %v11115_v55  ;;  %v11119_v59 = vpack.c.bf16 %v670_v28, %v663_v43  ;;  %v11131_v28 = vpack.c.bf16 %v477_v14, %v470_v60  ;;  %v491_v43 = vld [vmem:[#allocation8 + $0x140] sm:$0xff]  ;;  %v498_v60 = vld [vmem:[#allocation8 + $0x178] sm:$0xff] }
 0x162   : > { %7003 = vmatpush1.bf16.msra.mxu0 %v11091_v38  ;;  %14270 = vst [vmem:[#allocation90_spill] sm:$0xff] %v11127_v12  ;;  %v11139_v48 = vpack.c.bf16 %v491_v43, %v484_v25  ;;  %v505_v14 = vld [vmem:[#allocation8 + $0x1b0] sm:$0xff]  ;;  %v512_v25 = vld [vmem:[#allocation8 + $0x1e8] sm:$0xff]  ;;  %v519_v43 = vld [vmem:[#allocation8 + $0x220] sm:$0xff] }
 0x163   : > { %7067 = vmatpush1.bf16.msra.mxu1 %v11095_v45  ;;  %7005 = vmatprep.subr.bf16.mxu0 %v11097_v47  ;;  %14268 = vst [vmem:[#allocation88_spill] sm:$0xff] %v11119_v59  ;;  %14271 = vst [vmem:[#allocation91_spill] sm:$0xff] %v11131_v28  ;;  %v11153_v33 = vpack.c.bf16 %v519_v43, %v512_v25  ;;  %v11162_v25 = vpack.c.bf16 %v532_v0, %v525_v6  ;;  %v568_v0 = vld [vmem:[#allocation8 + $0x3a8] sm:$0xff]  ;;  %v575_v6 = vld [vmem:[#allocation8 + $0x3e0] sm:$0xff] }
 0x164   : > { %7069 = vmatprep.subr.bf16.mxu1 %v11100_v2  ;;  %14273 = vst [vmem:[#allocation93_spill] sm:$0xff] %v11139_v48  ;;  %v504_v2 = vld [vmem:[#allocation8 + $0x1a8] sm:$0xff] }
 0x165   : > { %14277 = vst [vmem:[#allocation97_spill] sm:$0xff] %v11153_v33  ;;  %14280 = vst [vmem:[#allocation100_spill] sm:$0xff] %v11162_v25 }
 0x166   : > { %7007 = vmatpush1.bf16.msra.mxu0 %v11103_v3 }
 0x167   : > { %7071 = vmatpush1.bf16.msra.mxu1 %v11107_v20  ;;  %7009 = vmatprep.subr.bf16.mxu0 %v11109_v31 }
 0x168   : > { %7073 = vmatprep.subr.bf16.mxu1 %v11112_v46  ;;  %v11136_v46 = vpack.c.bf16 %v476_v51, %v469_v42  ;;  %v11147_v42 = vpack.c.bf16 %v505_v14, %v498_v60  ;;  %v497_v51 = vld [vmem:[#allocation8 + $0x170] sm:$0xff]  ;;  %v11156_v60 = vpack.c.bf16 %v518_v16, %v511_v24  ;;  %v554_v16 = vld [vmem:[#allocation8 + $0x338] sm:$0xff] }
 0x169   : > { %v11150_v45 = vpack.c.bf16 %v504_v2, %v497_v51  ;;  %v540_v2 = vld [vmem:[#allocation8 + $0x2c8] sm:$0xff]  ;;  %v547_v51 = vld [vmem:[#allocation8 + $0x300] sm:$0xff]  ;;  %v561_v24 = vld [vmem:[#allocation8 + $0x370] sm:$0xff] }
 0x16a   : > { %7011 = vmatpush1.bf16.msra.mxu0 %v11115_v55  ;;  %14272 = vst [vmem:[#allocation92_spill] sm:$0xff] %v11136_v46  ;;  %14275 = vst [vmem:[#allocation95_spill] sm:$0xff] %v11147_v42  ;;  %v11165_v43 = vpack.c.bf16 %v547_v51, %v540_v2  ;;  %v11174_v2 = vpack.c.bf16 %v560_v39, %v553_v44  ;;  %v11177_v51 = vpack.c.bf16 %v575_v6, %v568_v0  ;;  %v596_v39 = vld [vmem:[#allocation8 + $0x488] sm:$0xff]  ;;  %v603_v44 = vld [vmem:[#allocation8 + $0x4c0] sm:$0xff] }
 0x16b   : > { %7075 = vmatpush1.bf16.msra.mxu1 %v11119_v59  ;;  %7077 = vmatprep.subr.bf16.mxu0 %v11121_v7  ;;  %v490_v59 = vld [vmem:[#allocation8 + $0x138] sm:$0xff]  ;;  %14276 = vst [vmem:[#allocation96_spill] sm:$0xff] %v11150_v45  ;;  %14278 = vst [vmem:[#allocation98_spill] sm:$0xff] %v11156_v60  ;;  %v11186_v0 = vpack.c.bf16 %v588_v13, %v581_v22  ;;  %v11189_v6 = vpack.c.bf16 %v603_v44, %v596_v39  ;;  %v624_v13 = vld [vmem:[#allocation8 + $0x568] sm:$0xff] }
 0x16c   : > { %v11144_v20 = vpack.c.bf16 %v490_v59, %v483_v56  ;;  %v526_v59 = vld [vmem:[#allocation8 + $0x258] sm:$0xff]  ;;  %v533_v56 = vld [vmem:[#allocation8 + $0x290] sm:$0xff]  ;;  %14281 = vst [vmem:[#allocation101_spill] sm:$0xff] %v11165_v43  ;;  %14284 = vst [vmem:[#allocation104_spill] sm:$0xff] %v11174_v2 }
 0x16d   : > { %1217 = vmatmul.mubr.f32.vlgmr.msra.gmra.mrb[0].mxu0 %v11125_v21  ;;  %v11159_v14 = vpack.c.bf16 %v533_v56, %v526_v59  ;;  %v11168_v59 = vpack.c.bf16 %v546_v52, %v539_v57  ;;  %v11171_v56 = vpack.c.bf16 %v561_v24, %v554_v16  ;;  %14285 = vst [vmem:[#allocation105_spill] sm:$0xff] %v11177_v51  ;;  %v582_v52 = vld [vmem:[#allocation8 + $0x418] sm:$0xff]  ;;  %v589_v57 = vld [vmem:[#allocation8 + $0x450] sm:$0xff]  ;;  %14288 = vst [vmem:[#allocation108_spill] sm:$0xff] %v11186_v0 }
 0x16e   : > { %1288 = vmatmul.mubr.f32.vlgmr.msra.gmra.mrb[0].mxu1 %v11125_v21  ;;  %7079 = vmatpush1.bf16.msra.mxu0 %v11127_v12  ;;  %14274 = vst [vmem:[#allocation94_spill] sm:$0xff] %v11144_v20  ;;  %v11180_v16 = vpack.c.bf16 %v574_v26, %v567_v35  ;;  %v11183_v24 = vpack.c.bf16 %v589_v57, %v582_v52  ;;  %14289 = vst [vmem:[#allocation109_spill] sm:$0xff] %v11189_v6  ;;  %v610_v26 = vld [vmem:[#allocation8 + $0x4f8] sm:$0xff]  ;;  %v617_v35 = vld [vmem:[#allocation8 + $0x530] sm:$0xff] }
 0x16f   : > { %7081 = vmatprep.subr.bf16.mxu0 %v11131_v28  ;;  %1358 = vmatprep.mubr.f32.mxu0 %v11062_v23  ;;  %14279 = vst [vmem:[#allocation99_spill] sm:$0xff] %v11159_v14  ;;  %14282 = vst [vmem:[#allocation102_spill] sm:$0xff] %v11168_v59  ;;  %v11195_v57 = vpack.c.bf16 %v617_v35, %v610_v26  ;;  %v631_v22 = vld [vmem:[#allocation8 + $0x5a0] sm:$0xff] }
 0x170   : > { %1429 = vmatprep.mubr.f32.mxu1 %v11062_v23  ;;  %14283 = vst [vmem:[#allocation103_spill] sm:$0xff] %v11171_v56  ;;  %14286 = vst [vmem:[#allocation106_spill] sm:$0xff] %v11180_v16  ;;  %v11201_v44 = vpack.c.bf16 %v631_v22, %v624_v13 }
 0x171   : > { %14287 = vst [vmem:[#allocation107_spill] sm:$0xff] %v11183_v24  ;;  %14291 = vst [vmem:[#allocation111_spill] sm:$0xff] %v11195_v57 }
 0x172   : > { %7083 = vmatpush1.bf16.msra.mxu0 %v11136_v46  ;;  %14293 = vst [vmem:[#allocation113_spill] sm:$0xff] %v11201_v44 }
 0x173   : > { %7085 = vmatprep.subr.bf16.mxu0 %v11139_v48 }
 0x176   : > { %7087 = vmatpush1.bf16.msra.mxu0 %v11144_v20 }
 0x177   : > { %7089 = vmatprep.subr.bf16.mxu0 %v11147_v42  ;;  %v780_v42 = vld [vmem:[#allocation13 + $0x140] sm:$0xff] }
 0x17a   : > { %7091 = vmatpush1.bf16.msra.mxu0 %v11150_v45  ;;  %v773_v45 = vld [vmem:[#allocation13 + $0x108] sm:$0xff] }
 0x17b   : > { %7093 = vmatprep.subr.bf16.mxu0 %v11153_v33  ;;  %v1002_v33 = vld [vmem:[#allocation13 + $0x830] sm:$0xff] }
 0x17e   : > { %7095 = vmatpush1.bf16.msra.mxu0 %v11156_v60  ;;  %v995_v60 = vld [vmem:[#allocation13 + $0x7f8] sm:$0xff] }
 0x17f   : > { %7097 = vmatprep.subr.bf16.mxu0 %v11159_v14  ;;  %v765_v14 = vld [vmem:[#allocation13 + $0xc8] sm:$0xff] }
 0x182   : > { %7099 = vmatpush1.bf16.msra.mxu0 %v11162_v25 }
 0x183   : > { %7101 = vmatprep.subr.bf16.mxu0 %v11165_v43 }
 0x186   : > { %7103 = vmatpush1.bf16.msra.mxu0 %v11168_v59  ;;  %v1143_v59 = vld [vmem:[#allocation3] sm:$0xff] }
 0x187   : > { %7105 = vmatprep.subr.bf16.mxu0 %v11171_v56 }
 0x18a   : > { %7107 = vmatpush1.bf16.msra.mxu0 %v11174_v2  ;;  %v602_v2 = vld [vmem:[#allocation8 + $0x4b8] sm:$0xff] }
 0x18b   : > { %7109 = vmatprep.subr.bf16.mxu0 %v11177_v51  ;;  %v11192_v52 = vpack.c.bf16 %v602_v2, %v595_v9  ;;  %v609_v51 = vld [vmem:[#allocation8 + $0x4f0] sm:$0xff]  ;;  %v638_v9 = vld [vmem:[#allocation8 + $0x5d8] sm:$0xff] }
 0x18c   : > { %v645_v2 = vld [vmem:[#allocation8 + $0x610] sm:$0xff] }
 0x18d   : > { %14290 = vst [vmem:[#allocation110_spill] sm:$0xff] %v11192_v52  ;;  %v11207_v35 = vpack.c.bf16 %v645_v2, %v638_v9 }
 0x18e   : > { %7111 = vmatpush1.bf16.msra.mxu0 %v11180_v16  ;;  %v616_v16 = vld [vmem:[#allocation8 + $0x528] sm:$0xff] }
 0x18f   : > { %7113 = vmatprep.subr.bf16.mxu0 %v11183_v24  ;;  %v11198_v39 = vpack.c.bf16 %v616_v16, %v609_v51  ;;  %v623_v24 = vld [vmem:[#allocation8 + $0x560] sm:$0xff]  ;;  %14295 = vst [vmem:[#allocation115_spill] sm:$0xff] %v11207_v35  ;;  %v652_v51 = vld [vmem:[#allocation8 + $0x648] sm:$0xff] }
 0x190   : > { %v659_v16 = vld [vmem:[#allocation8 + $0x680] sm:$0xff] }
 0x191   : > { %14292 = vst [vmem:[#allocation112_spill] sm:$0xff] %v11198_v39  ;;  %v11213_v22 = vpack.c.bf16 %v659_v16, %v652_v51  ;;  %v576_v51 = vld [vmem:[#allocation8 + $0x3e8] sm:$0xff] }
 0x192   : > { %7115 = vmatpush1.bf16.msra.mxu0 %v11186_v0  ;;  %v630_v0 = vld [vmem:[#allocation8 + $0x598] sm:$0xff]  ;;  %v464_v16 = vld [vmem:[#allocation8 + $0x68] sm:$0xff] }
 0x193   : > { %7117 = vmatprep.subr.bf16.mxu0 %v11189_v6  ;;  %v11204_v26 = vpack.c.bf16 %v630_v0, %v623_v24  ;;  %v637_v6 = vld [vmem:[#allocation8 + $0x5d0] sm:$0xff]  ;;  %14297 = vst [vmem:[#allocation117_spill] sm:$0xff] %v11213_v22  ;;  %v666_v24 = vld [vmem:[#allocation8 + $0x6b8] sm:$0xff] }
 0x194   : > { %v673_v0 = vld [vmem:[#allocation8 + $0x6f0] sm:$0xff] }
 0x195   : > { %14294 = vst [vmem:[#allocation114_spill] sm:$0xff] %v11204_v26  ;;  %v11219_v2 = vpack.c.bf16 %v673_v0, %v666_v24  ;;  %v583_v24 = vld [vmem:[#allocation8 + $0x420] sm:$0xff]  ;;  %v590_v0 = vld [vmem:[#allocation8 + $0x458] sm:$0xff] }
 0x196   : > { %7119 = vmatpush1.bf16.msra.mxu0 %v11192_v52  ;;  %v644_v52 = vld [vmem:[#allocation8 + $0x608] sm:$0xff] }
 0x197   : > { %7121 = vmatprep.subr.bf16.mxu0 %v11195_v57  ;;  %v11210_v13 = vpack.c.bf16 %v644_v52, %v637_v6  ;;  %v651_v57 = vld [vmem:[#allocation8 + $0x640] sm:$0xff]  ;;  %14299 = vst [vmem:[#allocation119_spill] sm:$0xff] %v11219_v2  ;;  %v569_v52 = vld [vmem:[#allocation8 + $0x3b0] sm:$0xff] }
 0x199   : > { %14296 = vst [vmem:[#allocation116_spill] sm:$0xff] %v11210_v13 }
 0x19a   : > { %7123 = vmatpush1.bf16.msra.mxu0 %v11198_v39  ;;  %v658_v39 = vld [vmem:[#allocation8 + $0x678] sm:$0xff] }
 0x19b   : > { %7125 = vmatprep.subr.bf16.mxu0 %v11201_v44  ;;  %v11216_v9 = vpack.c.bf16 %v658_v39, %v651_v57  ;;  %v665_v44 = vld [vmem:[#allocation8 + $0x6b0] sm:$0xff]  ;;  %v11227_v39 = vpack.c.bf16 %v576_v51, %v569_v52 }
 0x19c   : > { %v457_v57 = vld [vmem:[#allocation8 + $0x30] sm:$0xff] }
 0x19d   : > { %14298 = vst [vmem:[#allocation118_spill] sm:$0xff] %v11216_v9  ;;  %14301 = vst [vmem:[#allocation121_spill] sm:$0xff] %v11227_v39  ;;  %7141 = vmatprep.subr.bf16.mxu1 %v11227_v39  ;;  %v485_v51 = vld [vmem:[#allocation8 + $0x110] sm:$0xff]  ;;  %v499_v39 = vld [vmem:[#allocation8 + $0x180] sm:$0xff] }
 0x19e   : > { %7127 = vmatpush1.bf16.msra.mxu0 %v11204_v26  ;;  %v672_v26 = vld [vmem:[#allocation8 + $0x6e8] sm:$0xff] }
 0x19f   : > { %7129 = vmatprep.subr.bf16.mxu0 %v11207_v35  ;;  %v11222_v6 = vpack.c.bf16 %v672_v26, %v665_v44  ;;  %v471_v44 = vld [vmem:[#allocation8 + $0xa0] sm:$0xff]  ;;  %v478_v26 = vld [vmem:[#allocation8 + $0xd8] sm:$0xff]  ;;  %v492_v35 = vld [vmem:[#allocation8 + $0x148] sm:$0xff] }
 0x1a1   : > { %14300 = vst [vmem:[#allocation120_spill] sm:$0xff] %v11222_v6 }
 0x1a2   : > { %7131 = vmatpush1.bf16.msra.mxu0 %v11210_v13  ;;  %v11231_v13 = vpack.c.bf16 %v590_v0, %v583_v24  ;;  %v11241_v24 = vpack.c.bf16 %v492_v35, %v485_v51  ;;  %v639_v35 = vld [vmem:[#allocation8 + $0x5e0] sm:$0xff]  ;;  %v646_v51 = vld [vmem:[#allocation8 + $0x618] sm:$0xff] }
 0x1a3   : > { %7133 = vmatprep.subr.bf16.mxu0 %v11213_v22  ;;  %v11229_v22 = vpack.c.bf16 %v464_v16, %v457_v57  ;;  %v611_v57 = vld [vmem:[#allocation8 + $0x500] sm:$0xff]  ;;  %v618_v16 = vld [vmem:[#allocation8 + $0x538] sm:$0xff] }
 0x1a4   : > { %14303 = vst [vmem:[#allocation123_spill] sm:$0xff] %v11231_v13  ;;  %14306 = vst [vmem:[#allocation126_spill] sm:$0xff] %v11241_v24  ;;  %v11244_v0 = vpack.c.bf16 %v618_v16, %v611_v57  ;;  %v11256_v16 = vpack.c.bf16 %v646_v51, %v639_v35 }
 0x1a5   : > { %14302 = vst [vmem:[#allocation122_spill] sm:$0xff] %v11229_v22  ;;  %7143 = vmatpush3.bf16.msra.mxu1 %v11229_v22  ;;  %v506_v22 = vld [vmem:[#allocation8 + $0x1b8] sm:$0xff] }
 0x1a6   : > { %7135 = vmatpush1.bf16.msra.mxu0 %v11216_v9  ;;  %v597_v9 = vld [vmem:[#allocation8 + $0x490] sm:$0xff]  ;;  %7145 = vmatprep.subr.bf16.mxu1 %v11231_v13  ;;  %14307 = vst [vmem:[#allocation127_spill] sm:$0xff] %v11244_v0  ;;  %14311 = vst [vmem:[#allocation131_spill] sm:$0xff] %v11256_v16 }
 0x1a7   : > { %7137 = vmatprep.subr.bf16.mxu0 %v11219_v2  ;;  %v11235_v2 = vpack.c.bf16 %v478_v26, %v471_v44  ;;  %v625_v44 = vld [vmem:[#allocation8 + $0x570] sm:$0xff]  ;;  %v632_v26 = vld [vmem:[#allocation8 + $0x5a8] sm:$0xff] }
 0x1a8   : > { %v513_v13 = vld [vmem:[#allocation8 + $0x1f0] sm:$0xff] }
 0x1a9   : > { %14304 = vst [vmem:[#allocation124_spill] sm:$0xff] %v11235_v2  ;;  %7147 = vmatpush3.bf16.msra.mxu1 %v11235_v2  ;;  %v520_v2 = vld [vmem:[#allocation8 + $0x228] sm:$0xff] }
 0x1aa   : > { %7139 = vmatpush1.bf16.msra.mxu0 %v11222_v6  ;;  %v604_v6 = vld [vmem:[#allocation8 + $0x4c8] sm:$0xff]  ;;  %v11253_v57 = vpack.c.bf16 %v520_v2, %v513_v13  ;;  %v667_v13 = vld [vmem:[#allocation8 + $0x6c0] sm:$0xff]  ;;  %v674_v2 = vld [vmem:[#allocation8 + $0x6f8] sm:$0xff] }
 0x1ab   : > { %v11238_v52 = vpack.c.bf16 %v604_v6, %v597_v9  ;;  %v11247_v9 = vpack.c.bf16 %v506_v22, %v499_v39  ;;  %v11250_v6 = vpack.c.bf16 %v632_v26, %v625_v44  ;;  %v653_v22 = vld [vmem:[#allocation8 + $0x650] sm:$0xff]  ;;  %v660_v39 = vld [vmem:[#allocation8 + $0x688] sm:$0xff]  ;;  %v11268_v51 = vpack.c.bf16 %v674_v2, %v667_v13 }
 0x1ac   : > { %14310 = vst [vmem:[#allocation130_spill] sm:$0xff] %v11253_v57  ;;  %v11262_v26 = vpack.c.bf16 %v660_v39, %v653_v22  ;;  %v710_v22 = vld [vmem:[#allocation10 + $0x118] sm:$0xff]  ;;  %v709_v39 = vld [vmem:[#allocation10 + $0x110] sm:$0xff] }
 0x1ad   : > { %1359 = vmatmul.mubr.f32.vlgmr.msra.gmra.mrb[2].mxu0 %v11125_v21  ;;  %14305 = vst [vmem:[#allocation125_spill] sm:$0xff] %v11238_v52  ;;  %7149 = vmatprep.subr.bf16.mxu1 %v11238_v52  ;;  %14308 = vst [vmem:[#allocation128_spill] sm:$0xff] %v11247_v9  ;;  %v527_v52 = vld [vmem:[#allocation8 + $0x260] sm:$0xff] }
 0x1ae   : > { %7151 = vmatpush3.bf16.msra.mxu1 %v11241_v24  ;;  %14309 = vst [vmem:[#allocation129_spill] sm:$0xff] %v11250_v6  ;;  %v534_v24 = vld [vmem:[#allocation8 + $0x298] sm:$0xff]  ;;  %14313 = vst [vmem:[#allocation133_spill] sm:$0xff] %v11262_v26 }
 0x1af   : > { %7153 = vmatprep.subr.bf16.mxu1 %v11244_v0  ;;  %v11259_v44 = vpack.c.bf16 %v534_v24, %v527_v52  ;;  %v541_v0 = vld [vmem:[#allocation8 + $0x2d0] sm:$0xff]  ;;  %14315 = vst [vmem:[#allocation135_spill] sm:$0xff] %v11268_v51  ;;  %v708_v24 = vld [vmem:[#allocation10 + $0x108] sm:$0xff] }
 0x1b1   : > { %14312 = vst [vmem:[#allocation132_spill] sm:$0xff] %v11259_v44 }
 0x1b2   : > { %7155 = vmatpush3.bf16.msra.mxu1 %v11247_v9  ;;  %v548_v9 = vld [vmem:[#allocation8 + $0x308] sm:$0xff] }
 0x1b3   : > { %7157 = vmatprep.subr.bf16.mxu1 %v11250_v6  ;;  %v11265_v35 = vpack.c.bf16 %v548_v9, %v541_v0  ;;  %v555_v6 = vld [vmem:[#allocation8 + $0x340] sm:$0xff]  ;;  %v11276_v0 = vpack.c.bf16 %v710_v22, %v708_v24  ;;  %v718_v24 = vld [vmem:[#allocation10 + $0x158] sm:$0xff] }
 0x1b4   : > { %v707_v9 = vld [vmem:[#allocation10 + $0x100] sm:$0xff] }
 0x1b5   : > { %14314 = vst [vmem:[#allocation134_spill] sm:$0xff] %v11265_v35  ;;  %14317 = vst [vmem:[#allocation137_spill] sm:$0xff] %v11276_v0  ;;  %v11278_v13 = vpack.c.bf16 %v709_v39, %v707_v9  ;;  %v715_v9 = vld [vmem:[#allocation10 + $0x140] sm:$0xff]  ;;  %v717_v39 = vld [vmem:[#allocation10 + $0x150] sm:$0xff] }
 0x1b6   : > { %7159 = vmatpush3.bf16.msra.mxu1 %v11253_v57  ;;  %v562_v57 = vld [vmem:[#allocation8 + $0x378] sm:$0xff] }
 0x1b7   : > { %7161 = vmatprep.subr.bf16.mxu1 %v11256_v16  ;;  %v11271_v52 = vpack.c.bf16 %v562_v57, %v555_v6  ;;  %14318 = vst [vmem:[#allocation138_spill] sm:$0xff] %v11278_v13  ;;  %v712_v6 = vld [vmem:[#allocation10 + $0x128] sm:$0xff]  ;;  %v714_v57 = vld [vmem:[#allocation10 + $0x138] sm:$0xff] }
 0x1b8   : > { %v11282_v2 = vpack.c.bf16 %v714_v57, %v712_v6  ;;  %v720_v6 = vld [vmem:[#allocation10 + $0x168] sm:$0xff]  ;;  %v722_v57 = vld [vmem:[#allocation10 + $0x178] sm:$0xff] }
 0x1b9   : > { %14316 = vst [vmem:[#allocation136_spill] sm:$0xff] %v11271_v52 }
 0x1ba   : > { %7163 = vmatpush3.bf16.msra.mxu1 %v11259_v44  ;;  %14319 = vst [vmem:[#allocation139_spill] sm:$0xff] %v11282_v2  ;;  %v721_v44 = vld [vmem:[#allocation10 + $0x170] sm:$0xff] }
 0x1bb   : > { %7165 = vmatprep.subr.bf16.mxu1 %v11262_v26  ;;  %v11290_v26 = vpack.c.bf16 %v717_v39, %v715_v9  ;;  %v723_v39 = vld [vmem:[#allocation10 + $0x180] sm:$0xff] }
 0x1bd   : > { %14322 = vst [vmem:[#allocation142_spill] sm:$0xff] %v11290_v26 }
 0x1be   : > { %7167 = vmatpush3.bf16.msra.mxu1 %v11265_v35 }
 0x1bf   : > { %7169 = vmatprep.subr.bf16.mxu1 %v11268_v51  ;;  %v711_v51 = vld [vmem:[#allocation10 + $0x120] sm:$0xff] }
 0x1c2   : > { %7171 = vmatpush3.bf16.msra.mxu1 %v11271_v52  ;;  %v713_v52 = vld [vmem:[#allocation10 + $0x130] sm:$0xff] }
 0x1c3   : > { %7173 = vmatprep.subr.bf16.mxu1 %v11276_v0  ;;  %v11284_v35 = vpack.c.bf16 %v713_v52, %v711_v51  ;;  %v11294_v51 = vpack.c.bf16 %v722_v57, %v720_v6  ;;  %v719_v52 = vld [vmem:[#allocation10 + $0x160] sm:$0xff]  ;;  %v728_v6 = vld [vmem:[#allocation10 + $0x1a8] sm:$0xff]  ;;  %v730_v57 = vld [vmem:[#allocation10 + $0x1b8] sm:$0xff] }
 0x1c4   : > { %v11296_v16 = vpack.c.bf16 %v721_v44, %v719_v52  ;;  %v727_v44 = vld [vmem:[#allocation10 + $0x1a0] sm:$0xff]  ;;  %v11306_v52 = vpack.c.bf16 %v730_v57, %v728_v6 }
 0x1c5   : > { %1430 = vmatmul.mubr.f32.vlgmr.msra.gmra.mrb[2].mxu1 %v11125_v21  ;;  %14320 = vst [vmem:[#allocation140_spill] sm:$0xff] %v11284_v35  ;;  %v716_v21 = vld [vmem:[#allocation10 + $0x148] sm:$0xff]  ;;  %14323 = vst [vmem:[#allocation143_spill] sm:$0xff] %v11294_v51 }
 0x1c6   : > { %7175 = vmatpush1.bf16.msra.mxu1 %v11278_v13  ;;  %v11288_v22 = vpack.c.bf16 %v718_v24, %v716_v21  ;;  %14324 = vst [vmem:[#allocation144_spill] sm:$0xff] %v11296_v16  ;;  %v724_v21 = vld [vmem:[#allocation10 + $0x188] sm:$0xff]  ;;  %v726_v24 = vld [vmem:[#allocation10 + $0x198] sm:$0xff]  ;;  %14327 = vst [vmem:[#allocation147_spill] sm:$0xff] %v11306_v52 }
 0x1c7   : > { %7177 = vmatprep.subr.bf16.mxu1 %v11282_v2  ;;  %v11300_v9 = vpack.c.bf16 %v726_v24, %v724_v21  ;;  %v13620_v2 = vmov 0.0  }
 0x1c8   : > { %14321 = vst [vmem:[#allocation141_spill] sm:$0xff] %v11288_v22  ;;  %1538 = vmatprep.mubr.f32.mxu1 %v13620_v2 }
 0x1c9   : > { %14325 = vst [vmem:[#allocation145_spill] sm:$0xff] %v11300_v9 }
 0x1ca   : > { %7179 = vmatpush1.bf16.msra.mxu1 %v11284_v35 }
 0x1cb   : > { %7181 = vmatprep.subr.bf16.mxu1 %v11288_v22  ;;  %v725_v22 = vld [vmem:[#allocation10 + $0x190] sm:$0xff] }
 0x1cc   : > { %v11302_v35 = vpack.c.bf16 %v725_v22, %v723_v39  ;;  %v731_v22 = vld [vmem:[#allocation10 + $0x1c0] sm:$0xff]  ;;  %v733_v39 = vld [vmem:[#allocation10 + $0x1d0] sm:$0xff] }
 0x1cd   : > { %v11315_v6 = vpack.c.bf16 %v733_v39, %v731_v22  ;;  %v1146_v22 = vld [vmem:[%s10902_s19 + $0x8] sm:$0xff] }
 0x1ce   : > { %7183 = vmatpush1.bf16.msra.mxu1 %v11290_v26  ;;  %14326 = vst [vmem:[#allocation146_spill] sm:$0xff] %v11302_v35  ;;  %v732_v26 = vld [vmem:[#allocation10 + $0x1c8] sm:$0xff] }
 0x1cf   : > { %7185 = vmatprep.subr.bf16.mxu1 %v11294_v51  ;;  %v729_v51 = vld [vmem:[#allocation10 + $0x1b0] sm:$0xff]  ;;  %14330 = vst [vmem:[#allocation150_spill] sm:$0xff] %v11315_v6 }
 0x1d0   : > { %v11309_v21 = vpack.c.bf16 %v729_v51, %v727_v44  ;;  %v735_v51 = vld [vmem:[#allocation10 + $0x1e0] sm:$0xff]  ;;  %v737_v44 = vld [vmem:[#allocation10 + $0x1f0] sm:$0xff] }
 0x1d1   : > { %v11321_v2 = vpack.c.bf16 %v737_v44, %v735_v51 }
 0x1d2   : > { %7187 = vmatpush1.bf16.msra.mxu1 %v11296_v16  ;;  %v734_v16 = vld [vmem:[#allocation10 + $0x1d8] sm:$0xff]  ;;  %14328 = vst [vmem:[#allocation148_spill] sm:$0xff] %v11309_v21 }
 0x1d3   : > { %7189 = vmatprep.subr.bf16.mxu1 %v11300_v9  ;;  %v11311_v24 = vpack.c.bf16 %v734_v16, %v732_v26  ;;  %v736_v9 = vld [vmem:[#allocation10 + $0x1e8] sm:$0xff]  ;;  %v678_v26 = vld [vmem:[#allocation10 + $0x18] sm:$0xff]  ;;  %14332 = vst [vmem:[#allocation152_spill] sm:$0xff] %v11321_v2 }
 0x1d4   : > { %v676_v16 = vld [vmem:[#allocation10 + $0x8] sm:$0xff] }
 0x1d5   : > { %14329 = vst [vmem:[#allocation149_spill] sm:$0xff] %v11311_v24 }
 0x1d6   : > { %7191 = vmatpush1.bf16.msra.mxu1 %v11302_v35  ;;  %v738_v35 = vld [vmem:[#allocation10 + $0x1f8] sm:$0xff] }
 0x1d7   : > { %7193 = vmatprep.subr.bf16.mxu1 %v11306_v52  ;;  %v11318_v57 = vpack.c.bf16 %v738_v35, %v736_v9  ;;  %v11324_v52 = vpack.c.bf16 %v678_v26, %v676_v16  ;;  %v1147_v35 = vld [vmem:[%s10902_s19 + $0x10] sm:$0xff] }
 0x1d9   : > { %14331 = vst [vmem:[#allocation151_spill] sm:$0xff] %v11318_v57  ;;  %14333 = vst [vmem:[#allocation153_spill] sm:$0xff] %v11324_v52 }
 0x1da   : > { %7195 = vmatpush1.bf16.msra.mxu1 %v11309_v21 }
 0x1db   : > { %7197 = vmatprep.subr.bf16.mxu1 %v11311_v24 }
 0x1de   : > { %7199 = vmatpush1.bf16.msra.mxu1 %v11315_v6 }
 0x1df   : > { %7201 = vmatprep.subr.bf16.mxu1 %v11318_v57  ;;  %v1145_v57 = vld [vmem:[%s10902_s19] sm:$0xff] }
 0x1e2   : > { %7203 = vmatpush1.bf16.msra.mxu1 %v11321_v2 }
 0x1e3   : > { %7205 = vmatprep.subr.bf16.mxu1 %v11324_v52 }
 0x240   : > { %v1218_v9 = vpop.f32.mrb[0].mxu0 }
 0x241   : > { %v1220_v39 = vpop.f32.mrb[1].mxu0  ;;  %v1289_v24 = vpop.f32.mrb[0].mxu1  ;;  %v1435_v16 = vadd.f32 %v1218_v9, %v1145_v57 }
 0x242   : > { %v1436_v21 = vadd.f32 %v1220_v39, %v1146_v22  ;;  %v1437_v13 = vadd.f32 %v1289_v24, %v1147_v35  ;;  %v11330_v0 = vpop.f32.mrb[1].mxu1  ;;  %v741_v39 = vld [vmem:[#allocation13 + $0x8] sm:$0xff] }
 0x244   : > { %v6389_v51 = vmul.f32 -1.442695, %v1436_v21  ;;  %v6390_v44 = vmul.f32 -1.442695, %v1437_v13  ;;  %v748_v21 = vld [vmem:[#allocation13 + $0x40] sm:$0xff] }
 0x245   : > { %v11333_v13 = vpack.c.bf16 %v748_v21, %v741_v39  ;;  %v783_v21 = vld [vmem:[#allocation13 + $0x158] sm:$0xff] }
 0x246   : > { %9961 = vpow2.f32 %v6389_v51  ;;  %v740_v51 = vld [vmem:[#allocation13] sm:$0xff] }
 0x247   : > { %9963 = vpow2.f32 %v6390_v44  ;;  %14334 = vst [vmem:[#allocation154_spill] sm:$0xff] %v11333_v13  ;;  %v747_v44 = vld [vmem:[#allocation13 + $0x38] sm:$0xff]  ;;  %7237 = vmatprep.subr.bf16.mxu0 %v11333_v13 }
 0x248   : > { %9965 = vtanh.f32 %v1435_v16  ;;  %v11337_v9 = vpack.c.bf16 %v747_v44, %v740_v51  ;;  %v769_v16 = vld [vmem:[#allocation13 + $0xe8] sm:$0xff]  ;;  %v790_v51 = vld [vmem:[#allocation13 + $0x190] sm:$0xff]  ;;  %v675_v13 = vld [vmem:[#allocation10] sm:$0xff] }
 0x249   : > { %v11354_v44 = vpack.c.bf16 %v790_v51, %v783_v21  ;;  %v811_v21 = vld [vmem:[#allocation13 + $0x238] sm:$0xff]  ;;  %v818_v51 = vld [vmem:[#allocation13 + $0x270] sm:$0xff] }
 0x24a   : > { %14335 = vst [vmem:[#allocation155_spill] sm:$0xff] %v11337_v9  ;;  %7239 = vmatpush1.bf16.msra.mxu0 %v11337_v9 }
 0x24b   : > { %14340 = vst [vmem:[#allocation160_spill] sm:$0xff] %v11354_v44 }
 0x250   : > { %v9962_v26 = vpop.eup %9961 }
 0x251   : > { %v9964_v6 = vpop.eup %9963  ;;  %v1446_v2 = vadd.f32 1.0, %v9962_v26  ;;  %v776_v26 = vld [vmem:[#allocation13 + $0x120] sm:$0xff] }
 0x252   : > { %v1452_v52 = vadd.f32 1.0, %v9964_v6  ;;  %v9966_v56 = vpop.eup %9965 }
 0x253   : > { %9967 = vrcp.f32 %v1446_v2  ;;  %v755_v2 = vld [vmem:[#allocation13 + $0x78] sm:$0xff] }
 0x254   : > { %9969 = vrcp.f32 %v1452_v52  ;;  %v762_v52 = vld [vmem:[#allocation13 + $0xb0] sm:$0xff] }
 0x25d   : > { %v9968_v43 = vpop.eup %9967 }
 0x25e   : > { %v9970_v22 = vpop.eup %9969  ;;  %v1456_v24 = vmul.f32 %v9968_v43, %v9966_v56  ;;  %v11342_v43 = vpack.c.bf16 %v762_v52, %v755_v2  ;;  %v761_v56 = vld [vmem:[#allocation13 + $0xa8] sm:$0xff]  ;;  %v782_v2 = vld [vmem:[#allocation13 + $0x150] sm:$0xff] }
 0x25f   : > { %v1455_v35 = vmul.f32 %v9970_v22, %v1143_v59  ;;  %v754_v59 = vld [vmem:[#allocation13 + $0x70] sm:$0xff]  ;;  %v11348_v22 = vpack.c.bf16 %v776_v26, %v769_v16  ;;  %v789_v52 = vld [vmem:[#allocation13 + $0x188] sm:$0xff]  ;;  %v804_v16 = vld [vmem:[#allocation13 + $0x200] sm:$0xff] }
 0x260   : > { %14336 = vst [vmem:[#allocation156_spill] sm:$0xff] %v11342_v43  ;;  %v11344_v6 = vpack.c.bf16 %v761_v56, %v754_v59  ;;  %7241 = vmatprep.subr.bf16.mxu0 %v11342_v43  ;;  %v11356_v59 = vpack.c.bf16 %v789_v52, %v782_v2  ;;  %v797_v56 = vld [vmem:[#allocation13 + $0x1c8] sm:$0xff]  ;;  %v11366_v2 = vpack.c.bf16 %v818_v51, %v811_v21  ;;  %v810_v52 = vld [vmem:[#allocation13 + $0x230] sm:$0xff] }
 0x261   : > { %v11335_v57 = vadd.f32 %v1456_v24, %v1455_v35  ;;  %14338 = vst [vmem:[#allocation158_spill] sm:$0xff] %v11348_v22  ;;  %v768_v24 = vld [vmem:[#allocation13 + $0xe0] sm:$0xff]  ;;  %v775_v35 = vld [vmem:[#allocation13 + $0x118] sm:$0xff]  ;;  %v11360_v26 = vpack.c.bf16 %v804_v16, %v797_v56  ;;  %v825_v56 = vld [vmem:[#allocation13 + $0x2a8] sm:$0xff] }
 0x262   : > { %14337 = vst [vmem:[#allocation157_spill] sm:$0xff] %v11344_v6  ;;  %7243 = vmatpush1.bf16.msra.mxu0 %v11344_v6  ;;  %v11350_v39 = vpack.c.bf16 %v775_v35, %v768_v24  ;;  %14341 = vst [vmem:[#allocation161_spill] sm:$0xff] %v11356_v59  ;;  %v796_v24 = vld [vmem:[#allocation13 + $0x1c0] sm:$0xff]  ;;  %v803_v35 = vld [vmem:[#allocation13 + $0x1f8] sm:$0xff] }
 0x263   : > { %1639 = vst [vmem:[#allocation3] sm:$0xff] %v11335_v57  ;;  %7245 = vmatprep.subr.bf16.mxu0 %v11348_v22  ;;  %14342 = vst [vmem:[#allocation162_spill] sm:$0xff] %v11360_v26  ;;  %v11362_v22 = vpack.c.bf16 %v803_v35, %v796_v24  ;;  %v832_v16 = vld [vmem:[#allocation13 + $0x2e0] sm:$0xff]  ;;  %v846_v21 = vld [vmem:[#allocation13 + $0x350] sm:$0xff] }
 0x264   : > { %14339 = vst [vmem:[#allocation159_spill] sm:$0xff] %v11350_v39  ;;  %14344 = vst [vmem:[#allocation164_spill] sm:$0xff] %v11366_v2  ;;  %v11372_v24 = vpack.c.bf16 %v832_v16, %v825_v56  ;;  %v824_v35 = vld [vmem:[#allocation13 + $0x2a0] sm:$0xff] }
 0x265   : > { %14343 = vst [vmem:[#allocation163_spill] sm:$0xff] %v11362_v22  ;;  %v1150_v56 = vld [vmem:[%s10902_s19 + $0x28] sm:$0xff] }
 0x266   : > { %7247 = vmatpush1.bf16.msra.mxu0 %v11350_v39  ;;  %14346 = vst [vmem:[#allocation166_spill] sm:$0xff] %v11372_v24 }
 0x267   : > { %7249 = vmatprep.subr.bf16.mxu0 %v11354_v44  ;;  %v817_v44 = vld [vmem:[#allocation13 + $0x268] sm:$0xff] }
 0x268   : > { %v11368_v39 = vpack.c.bf16 %v817_v44, %v810_v52  ;;  %v839_v44 = vld [vmem:[#allocation13 + $0x318] sm:$0xff]  ;;  %v838_v52 = vld [vmem:[#allocation13 + $0x310] sm:$0xff] }
 0x269   : > { %v11378_v51 = vpack.c.bf16 %v846_v21, %v839_v44  ;;  %v1148_v44 = vld [vmem:[%s10902_s19 + $0x18] sm:$0xff] }
 0x26a   : > { %7251 = vmatpush1.bf16.msra.mxu0 %v11356_v59  ;;  %14345 = vst [vmem:[#allocation165_spill] sm:$0xff] %v11368_v39  ;;  %v1149_v59 = vld [vmem:[%s10902_s19 + $0x20] sm:$0xff]  ;;  %v1438_v21 = vadd.f32 %v11330_v0, %v1148_v44  ;;  %v681_v44 = vld [vmem:[#allocation10 + $0x30] sm:$0xff] }
 0x26b   : > { %7253 = vmatprep.subr.bf16.mxu0 %v11360_v26  ;;  %14348 = vst [vmem:[#allocation168_spill] sm:$0xff] %v11378_v51 }
 0x26e   : > { %7255 = vmatpush1.bf16.msra.mxu0 %v11362_v22  ;;  %v831_v22 = vld [vmem:[#allocation13 + $0x2d8] sm:$0xff] }
 0x26f   : > { %7257 = vmatprep.subr.bf16.mxu0 %v11366_v2  ;;  %v11374_v26 = vpack.c.bf16 %v831_v22, %v824_v35 }
 0x271   : > { %14347 = vst [vmem:[#allocation167_spill] sm:$0xff] %v11374_v26 }
 0x272   : > { %7259 = vmatpush1.bf16.msra.mxu0 %v11368_v39  ;;  %v845_v39 = vld [vmem:[#allocation13 + $0x348] sm:$0xff] }
 0x273   : > { %7261 = vmatprep.subr.bf16.mxu0 %v11372_v24  ;;  %v11380_v2 = vpack.c.bf16 %v845_v39, %v838_v52 }
 0x275   : > { %14349 = vst [vmem:[#allocation169_spill] sm:$0xff] %v11380_v2 }
 0x276   : > { %7263 = vmatpush1.bf16.msra.mxu0 %v11374_v26 }
 0x277   : > { %7265 = vmatprep.subr.bf16.mxu0 %v11378_v51 }
 0x27a   : > { %7267 = vmatpush1.bf16.msra.mxu0 %v11380_v2 }
 0x280   : > { %v1360_v22 = vpop.f32.mrb[2].mxu0 }
 0x281   : > { %v1439_v16 = vadd.f32 %v1360_v22, %v1149_v59  ;;  %v1362_v35 = vpop.f32.mrb[3].mxu0  ;;  %v677_v59 = vld [vmem:[#allocation10 + $0x10] sm:$0xff] }
 0x282   : > { %v1440_v24 = vadd.f32 %v1362_v35, %v1150_v56 }
 0x283   : > { %v6391_v26 = vmul.f32 -1.442695, %v1439_v16  ;;  %v680_v16 = vld [vmem:[#allocation10 + $0x28] sm:$0xff] }
 0x284   : > { %v6392_v6 = vmul.f32 -1.442695, %v1440_v24  ;;  %v682_v24 = vld [vmem:[#allocation10 + $0x38] sm:$0xff] }
 0x285   : > { %9971 = vpow2.f32 %v6391_v26  ;;  %v11389_v26 = vpack.c.bf16 %v677_v59, %v675_v13  ;;  %v11391_v35 = vpack.c.bf16 %v682_v24, %v680_v16  ;;  %v683_v13 = vld [vmem:[#allocation10 + $0x40] sm:$0xff]  ;;  %v690_v59 = vld [vmem:[#allocation10 + $0x78] sm:$0xff]  ;;  %v689_v24 = vld [vmem:[#allocation10 + $0x70] sm:$0xff] }
 0x286   : > { %9973 = vpow2.f32 %v6392_v6  ;;  %v687_v16 = vld [vmem:[#allocation10 + $0x60] sm:$0xff] }
 0x287   : > { %9975 = vtanh.f32 %v1438_v21  ;;  %14350 = vst [vmem:[#allocation170_spill] sm:$0xff] %v11389_v26  ;;  %14351 = vst [vmem:[#allocation171_spill] sm:$0xff] %v11391_v35  ;;  %v684_v21 = vld [vmem:[#allocation10 + $0x48] sm:$0xff] }
 0x28f   : > { %v9972_v43 = vpop.eup %9971 }
 0x290   : > { %v9974_v39 = vpop.eup %9973  ;;  %v1462_v52 = vadd.f32 1.0, %v9972_v43  ;;  %v679_v43 = vld [vmem:[#allocation10 + $0x20] sm:$0xff] }
 0x291   : > { %v1468_v9 = vadd.f32 1.0, %v9974_v39  ;;  %v9976_v51 = vpop.eup %9975  ;;  %v686_v39 = vld [vmem:[#allocation10 + $0x58] sm:$0xff] }
 0x292   : > { %9977 = vrcp.f32 %v1462_v52  ;;  %v688_v52 = vld [vmem:[#allocation10 + $0x68] sm:$0xff] }
 0x293   : > { %9979 = vrcp.f32 %v1468_v9  ;;  %v11394_v9 = vpack.c.bf16 %v681_v44, %v679_v43  ;;  %v11407_v43 = vpack.c.bf16 %v689_v24, %v687_v16  ;;  %v700_v16 = vld [vmem:[#allocation10 + $0xc8] sm:$0xff]  ;;  %v702_v24 = vld [vmem:[#allocation10 + $0xd8] sm:$0xff] }
 0x295   : > { %14352 = vst [vmem:[#allocation172_spill] sm:$0xff] %v11394_v9  ;;  %14357 = vst [vmem:[#allocation176_spill] sm:$0xff] %v11407_v43 }
 0x29c   : > { %v9978_v2 = vpop.eup %9977 }
 0x29d   : > { %v9980_v22 = vpop.eup %9979  ;;  %v1472_v56 = vmul.f32 %v9978_v2, %v9976_v51  ;;  %v14353_v2 = vmov 0.0   ;;  %v685_v51 = vld [vmem:[#allocation10 + $0x50] sm:$0xff] }
 0x29e   : > { %v1471_v6 = vmul.f32 %v9980_v22, %v11062_v23  ;;  %v11398_v23 = vpack.c.bf16 %v686_v39, %v684_v21  ;;  %v11401_v22 = vpack.c.bf16 %v685_v51, %v683_v13  ;;  %v691_v21 = vld [vmem:[#allocation10 + $0x80] sm:$0xff]  ;;  %v693_v39 = vld [vmem:[#allocation10 + $0x90] sm:$0xff]  ;;  %v696_v13 = vld [vmem:[#allocation10 + $0xa8] sm:$0xff] }
 0x29f   : > { %v698_v51 = vld [vmem:[#allocation10 + $0xb8] sm:$0xff] }
 0x2a0   : > { %v1473_v0 = vadd.f32 %v1472_v56, %v1471_v6  ;;  %14354 = vst [vmem:[#allocation173_spill] sm:$0xff] %v11398_v23  ;;  %14355 = vst [vmem:[#allocation174_spill] sm:$0xff] %v11401_v22  ;;  %v11404_v56 = vpack.c.bf16 %v690_v59, %v688_v52  ;;  %v692_v6 = vld [vmem:[#allocation10 + $0x88] sm:$0xff]  ;;  %v11413_v52 = vpack.c.bf16 %v693_v39, %v691_v21  ;;  %v706_v39 = vld [vmem:[#allocation10 + $0xf8] sm:$0xff] }
 0x2a1   : > { %v11416_v59 = vpack.c.bf16 %v698_v51, %v696_v13  ;;  %v704_v21 = vld [vmem:[#allocation10 + $0xe8] sm:$0xff] }
 0x2a2   : > { %1539 = vmatmul.mubr.f32.vlgmr.msra.gmra.mrb[4].mxu1 %v1473_v0  ;;  %1640 = vst [vmem:[#allocation4] sm:$0xff] %v1473_v0  ;;  %14356 = vst [vmem:[#allocation175_spill] sm:$0xff] %v11404_v56  ;;  %v694_v0 = vld [vmem:[#allocation10 + $0x98] sm:$0xff]  ;;  %v11428_v51 = vpack.c.bf16 %v706_v39, %v704_v21 }
 0x2a3   : > { %7207 = vmatpush1.bf16.msra.mxu1 %v11389_v26  ;;  %1609 = vmatprep.mubr.f32.mxu1 %v14353_v2  ;;  %v11410_v44 = vpack.c.bf16 %v694_v0, %v692_v6  ;;  %14359 = vst [vmem:[#allocation178_spill] sm:$0xff] %v11413_v52  ;;  %14360 = vst [vmem:[#allocation179_spill] sm:$0xff] %v11416_v59  ;;  %v11422_v0 = vpack.c.bf16 %v702_v24, %v700_v16 }
 0x2a4   : > { %7209 = vmatprep.subr.bf16.mxu1 %v11391_v35  ;;  %14364 = vst [vmem:[#allocation183_spill] sm:$0xff] %v11428_v51 }
 0x2a5   : > { %14358 = vst [vmem:[#allocation177_spill] sm:$0xff] %v11410_v44  ;;  %14362 = vst [vmem:[#allocation181_spill] sm:$0xff] %v11422_v0 }
 0x2a7   : > { %7211 = vmatpush1.bf16.msra.mxu1 %v11394_v9  ;;  %v6492_v9 = vpop.f32.mrb[2].mxu1 }
 0x2a8   : > { %7213 = vmatprep.subr.bf16.mxu1 %v11398_v23  ;;  %v695_v23 = vld [vmem:[#allocation10 + $0xa0] sm:$0xff] }
 0x2ab   : > { %7215 = vmatpush1.bf16.msra.mxu1 %v11401_v22  ;;  %v697_v22 = vld [vmem:[#allocation10 + $0xb0] sm:$0xff] }
 0x2ac   : > { %7217 = vmatprep.subr.bf16.mxu1 %v11404_v56  ;;  %v11419_v6 = vpack.c.bf16 %v697_v22, %v695_v23  ;;  %v699_v56 = vld [vmem:[#allocation10 + $0xc0] sm:$0xff]  ;;  %v965_v23 = vld [vmem:[#allocation13 + $0x708] sm:$0xff] }
 0x2ad   : > { %v972_v22 = vld [vmem:[#allocation13 + $0x740] sm:$0xff] }
 0x2ae   : > { %14361 = vst [vmem:[#allocation180_spill] sm:$0xff] %v11419_v6  ;;  %v11434_v24 = vpack.c.bf16 %v972_v22, %v965_v23  ;;  %v999_v22 = vld [vmem:[#allocation13 + $0x818] sm:$0xff] }
 0x2af   : > { %7219 = vmatpush1.bf16.msra.mxu1 %v11407_v43  ;;  %v701_v43 = vld [vmem:[#allocation10 + $0xd0] sm:$0xff] }
 0x2b0   : > { %7221 = vmatprep.subr.bf16.mxu1 %v11410_v44  ;;  %v11425_v13 = vpack.c.bf16 %v701_v43, %v699_v56  ;;  %v703_v44 = vld [vmem:[#allocation10 + $0xe0] sm:$0xff]  ;;  %14366 = vst [vmem:[#allocation185_spill] sm:$0xff] %v11434_v24  ;;  %v986_v43 = vld [vmem:[#allocation13 + $0x7b0] sm:$0xff] }
 0x2b1   : > { %v979_v56 = vld [vmem:[#allocation13 + $0x778] sm:$0xff] }
 0x2b2   : > { %14363 = vst [vmem:[#allocation182_spill] sm:$0xff] %v11425_v13  ;;  %v11440_v39 = vpack.c.bf16 %v986_v43, %v979_v56  ;;  %v1007_v56 = vld [vmem:[#allocation13 + $0x858] sm:$0xff]  ;;  %v1014_v43 = vld [vmem:[#allocation13 + $0x890] sm:$0xff] }
 0x2b3   : > { %7223 = vmatpush1.bf16.msra.mxu1 %v11413_v52  ;;  %v705_v52 = vld [vmem:[#allocation10 + $0xf0] sm:$0xff] }
 0x2b4   : > { %7225 = vmatprep.subr.bf16.mxu1 %v11416_v59  ;;  %v11431_v16 = vpack.c.bf16 %v705_v52, %v703_v44  ;;  %v964_v59 = vld [vmem:[#allocation13 + $0x700] sm:$0xff]  ;;  %14368 = vst [vmem:[#allocation187_spill] sm:$0xff] %v11440_v39  ;;  %v993_v44 = vld [vmem:[#allocation13 + $0x7e8] sm:$0xff] }
 0x2b5   : > { %v1000_v52 = vld [vmem:[#allocation13 + $0x820] sm:$0xff] }
 0x2b6   : > { %14365 = vst [vmem:[#allocation184_spill] sm:$0xff] %v11431_v16 }
 0x2b7   : > { %7227 = vmatpush1.bf16.msra.mxu1 %v11419_v6  ;;  %v971_v6 = vld [vmem:[#allocation13 + $0x738] sm:$0xff] }
 0x2b8   : > { %7229 = vmatprep.subr.bf16.mxu1 %v11422_v0  ;;  %v11437_v21 = vpack.c.bf16 %v971_v6, %v964_v59  ;;  %v978_v0 = vld [vmem:[#allocation13 + $0x770] sm:$0xff]  ;;  %v11448_v59 = vpack.c.bf16 %v1000_v52, %v993_v44  ;;  %v992_v6 = vld [vmem:[#allocation13 + $0x7e0] sm:$0xff] }
 0x2ba   : > { %14367 = vst [vmem:[#allocation186_spill] sm:$0xff] %v11437_v21  ;;  %14370 = vst [vmem:[#allocation189_spill] sm:$0xff] %v11448_v59 }
 0x2bb   : > { %7231 = vmatpush1.bf16.msra.mxu1 %v11425_v13  ;;  %v985_v13 = vld [vmem:[#allocation13 + $0x7a8] sm:$0xff] }
 0x2bc   : > { %7233 = vmatprep.subr.bf16.mxu1 %v11428_v51  ;;  %v11444_v23 = vpack.c.bf16 %v985_v13, %v978_v0  ;;  %v1006_v0 = vld [vmem:[#allocation13 + $0x850] sm:$0xff]  ;;  %v1013_v13 = vld [vmem:[#allocation13 + $0x888] sm:$0xff]  ;;  %v1028_v51 = vld [vmem:[#allocation13 + $0x900] sm:$0xff] }
 0x2bd   : > { %v11457_v44 = vpack.c.bf16 %v1013_v13, %v1006_v0  ;;  %v1034_v0 = vld [vmem:[#allocation13 + $0x930] sm:$0xff]  ;;  %v1041_v13 = vld [vmem:[#allocation13 + $0x968] sm:$0xff] }
 0x2be   : > { %14369 = vst [vmem:[#allocation188_spill] sm:$0xff] %v11444_v23 }
 0x2bf   : > { %7235 = vmatpush1.bf16.msra.mxu1 %v11431_v16  ;;  %v11451_v16 = vpack.c.bf16 %v999_v22, %v992_v6  ;;  %14373 = vst [vmem:[#allocation192_spill] sm:$0xff] %v11457_v44  ;;  %v1020_v22 = vld [vmem:[#allocation13 + $0x8c0] sm:$0xff] }
 0x2c0   : > { %7301 = vmatprep.subr.bf16.mxu1 %v11434_v24 }
 0x2c1   : > { %14371 = vst [vmem:[#allocation190_spill] sm:$0xff] %v11451_v16 }
 0x2c2   : > { %1610 = vmatmul.mubr.f32.vlgmr.msra.gmra.mrb[4].mxu1 %v11335_v57  ;;  %v11454_v57 = vpack.c.bf16 %v1014_v43, %v1007_v56  ;;  %v1035_v56 = vld [vmem:[#allocation13 + $0x938] sm:$0xff]  ;;  %v1042_v43 = vld [vmem:[#allocation13 + $0x970] sm:$0xff] }
 0x2c3   : > { %7303 = vmatpush1.bf16.msra.mxu1 %v11437_v21  ;;  %1818 = vmatprep.mubr.f32.mxu1 %v14353_v2  ;;  %v1021_v21 = vld [vmem:[#allocation13 + $0x8c8] sm:$0xff]  ;;  %v11468_v35 = vpack.c.bf16 %v1042_v43, %v1035_v56 }
 0x2c4   : > { %7305 = vmatprep.subr.bf16.mxu1 %v11440_v39  ;;  %14372 = vst [vmem:[#allocation191_spill] sm:$0xff] %v11454_v57  ;;  %v6493_v39 = vpop.f32.mrb[3].mxu1  ;;  %v11462_v6 = vpack.c.bf16 %v1028_v51, %v1021_v21  ;;  %v11471_v51 = vpack.c.bf16 %v1041_v13, %v1034_v0  ;;  %v743_v0 = vld [vmem:[#allocation13 + $0x18] sm:$0xff]  ;;  %v750_v13 = vld [vmem:[#allocation13 + $0x50] sm:$0xff] }
 0x2c5   : > { %v11459_v52 = vadd.f32 %v6493_v39, %v6492_v9  ;;  %14376 = vst [vmem:[#allocation195_spill] sm:$0xff] %v11468_v35  ;;  %v1049_v9 = vld [vmem:[#allocation13 + $0x9a8] sm:$0xff]  ;;  %v1056_v39 = vld [vmem:[#allocation13 + $0x9e0] sm:$0xff] }
 0x2c6   : > { %14374 = vst [vmem:[#allocation193_spill] sm:$0xff] %v11462_v6  ;;  %14377 = vst [vmem:[#allocation196_spill] sm:$0xff] %v11471_v51  ;;  %v11474_v21 = vpack.c.bf16 %v1056_v39, %v1049_v9  ;;  %v11486_v39 = vpack.c.bf16 %v750_v13, %v743_v0 }
 0x2c7   : > { %7307 = vmatpush1.bf16.msra.mxu1 %v11444_v23 }
 0x2c8   : > { %7309 = vmatprep.subr.bf16.mxu1 %v11448_v59  ;;  %v1027_v59 = vld [vmem:[#allocation13 + $0x8f8] sm:$0xff]  ;;  %14378 = vst [vmem:[#allocation197_spill] sm:$0xff] %v11474_v21  ;;  %14382 = vst [vmem:[#allocation201_spill] sm:$0xff] %v11486_v39 }
 0x2c9   : > { %v11465_v23 = vpack.c.bf16 %v1027_v59, %v1020_v22  ;;  %v1063_v59 = vld [vmem:[#allocation13 + $0xa18] sm:$0xff]  ;;  %v1070_v22 = vld [vmem:[#allocation13 + $0xa50] sm:$0xff] }
 0x2ca   : > { %v11480_v43 = vpack.c.bf16 %v1070_v22, %v1063_v59  ;;  %v11489_v59 = vld [vmem:[#allocation4 + $0x8] sm:$0xff] }
 0x2cb   : > { %7311 = vmatpush1.bf16.msra.mxu1 %v11451_v16  ;;  %14375 = vst [vmem:[#allocation194_spill] sm:$0xff] %v11465_v23  ;;  %v792_v16 = vld [vmem:[#allocation13 + $0x1a0] sm:$0xff] }
 0x2cc   : > { %7313 = vmatprep.subr.bf16.mxu1 %v11454_v57  ;;  %v1048_v57 = vld [vmem:[#allocation13 + $0x9a0] sm:$0xff]  ;;  %14380 = vst [vmem:[#allocation199_spill] sm:$0xff] %v11480_v43 }
 0x2cf   : > { %7315 = vmatpush1.bf16.msra.mxu1 %v11457_v44  ;;  %v1055_v44 = vld [vmem:[#allocation13 + $0x9d8] sm:$0xff] }
 0x2d0   : > { %7317 = vmatprep.subr.bf16.mxu1 %v11462_v6  ;;  %v11477_v56 = vpack.c.bf16 %v1055_v44, %v1048_v57  ;;  %v1062_v6 = vld [vmem:[#allocation13 + $0xa10] sm:$0xff]  ;;  %v757_v57 = vld [vmem:[#allocation13 + $0x88] sm:$0xff]  ;;  %v764_v44 = vld [vmem:[#allocation13 + $0xc0] sm:$0xff] }
 0x2d2   : > { %14379 = vst [vmem:[#allocation198_spill] sm:$0xff] %v11477_v56 }
 0x2d3   : > { %7319 = vmatpush1.bf16.msra.mxu1 %v11465_v23  ;;  %v1069_v23 = vld [vmem:[#allocation13 + $0xa48] sm:$0xff] }
 0x2d4   : > { %7321 = vmatprep.subr.bf16.mxu1 %v11468_v35  ;;  %v11483_v9 = vpack.c.bf16 %v1069_v23, %v1062_v6  ;;  %v742_v35 = vld [vmem:[#allocation13 + $0x10] sm:$0xff]  ;;  %v756_v23 = vld [vmem:[#allocation13 + $0x80] sm:$0xff]  ;;  %v763_v6 = vld [vmem:[#allocation13 + $0xb8] sm:$0xff] }
 0x2d5   : > { %v11498_v0 = vpack.c.bf16 %v763_v6, %v756_v23  ;;  %v799_v23 = vld [vmem:[#allocation13 + $0x1d8] sm:$0xff]  ;;  %v806_v6 = vld [vmem:[#allocation13 + $0x210] sm:$0xff] }
 0x2d6   : > { %14381 = vst [vmem:[#allocation200_spill] sm:$0xff] %v11483_v9 }
 0x2d7   : > { %7323 = vmatpush1.bf16.msra.mxu1 %v11471_v51  ;;  %v749_v51 = vld [vmem:[#allocation13 + $0x48] sm:$0xff]  ;;  %14385 = vst [vmem:[#allocation204_spill] sm:$0xff] %v11498_v0 }
 0x2d8   : > { %7325 = vmatprep.subr.bf16.mxu1 %v11474_v21  ;;  %v11491_v22 = vpack.c.bf16 %v749_v51, %v742_v35  ;;  %v11494_v21 = vpack.c.bf16 %v764_v44, %v757_v57  ;;  %v770_v35 = vld [vmem:[#allocation13 + $0xf0] sm:$0xff]  ;;  %v777_v51 = vld [vmem:[#allocation13 + $0x128] sm:$0xff] }
 0x2d9   : > { %v11504_v57 = vpack.c.bf16 %v777_v51, %v770_v35  ;;  %v813_v35 = vld [vmem:[#allocation13 + $0x248] sm:$0xff]  ;;  %v820_v51 = vld [vmem:[#allocation13 + $0x280] sm:$0xff] }
 0x2da   : > { %14383 = vst [vmem:[#allocation202_spill] sm:$0xff] %v11491_v22  ;;  %14384 = vst [vmem:[#allocation203_spill] sm:$0xff] %v11494_v21 }
 0x2db   : > { %7327 = vmatpush1.bf16.msra.mxu1 %v11477_v56  ;;  %v771_v56 = vld [vmem:[#allocation13 + $0xf8] sm:$0xff]  ;;  %14387 = vst [vmem:[#allocation206_spill] sm:$0xff] %v11504_v57 }
 0x2dc   : > { %7329 = vmatprep.subr.bf16.mxu1 %v11480_v43  ;;  %v778_v43 = vld [vmem:[#allocation13 + $0x130] sm:$0xff] }
 0x2dd   : > { %v11501_v13 = vpack.c.bf16 %v778_v43, %v771_v56  ;;  %v11513_v43 = vpack.c.bf16 %v806_v6, %v799_v23 }
 0x2df   : > { %7331 = vmatpush1.bf16.msra.mxu1 %v11483_v9  ;;  %14386 = vst [vmem:[#allocation205_spill] sm:$0xff] %v11501_v13  ;;  %v785_v9 = vld [vmem:[#allocation13 + $0x168] sm:$0xff]  ;;  %14390 = vst [vmem:[#allocation209_spill] sm:$0xff] %v11513_v43 }
 0x2e0   : > { %7333 = vmatprep.subr.bf16.mxu1 %v11486_v39  ;;  %v11507_v44 = vpack.c.bf16 %v792_v16, %v785_v9  ;;  %v784_v39 = vld [vmem:[#allocation13 + $0x160] sm:$0xff]  ;;  %v11519_v9 = vpack.c.bf16 %v820_v51, %v813_v35 }
 0x2e2   : > { %1819 = vmatmul.mubr.f32.vlgmr.msra.gmra.mrb[6].mxu1 %v11489_v59  ;;  %14388 = vst [vmem:[#allocation207_spill] sm:$0xff] %v11507_v44  ;;  %14392 = vst [vmem:[#allocation211_spill] sm:$0xff] %v11519_v9 }
 0x2e3   : > { %7335 = vmatpush1.bf16.msra.mxu1 %v11491_v22  ;;  %v791_v22 = vld [vmem:[#allocation13 + $0x198] sm:$0xff] }
 0x2e4   : > { %7337 = vmatprep.subr.bf16.mxu1 %v11494_v21  ;;  %v11510_v56 = vpack.c.bf16 %v791_v22, %v784_v39  ;;  %v798_v21 = vld [vmem:[#allocation13 + $0x1d0] sm:$0xff]  ;;  %v827_v39 = vld [vmem:[#allocation13 + $0x2b8] sm:$0xff] }
 0x2e5   : > { %v834_v22 = vld [vmem:[#allocation13 + $0x2f0] sm:$0xff] }
 0x2e6   : > { %14389 = vst [vmem:[#allocation208_spill] sm:$0xff] %v11510_v56  ;;  %v11525_v6 = vpack.c.bf16 %v834_v22, %v827_v39  ;;  %v860_v39 = vld [vmem:[#allocation13 + $0x3c0] sm:$0xff]  ;;  %v855_v22 = vld [vmem:[#allocation13 + $0x398] sm:$0xff] }
 0x2e7   : > { %7339 = vmatpush1.bf16.msra.mxu1 %v11498_v0  ;;  %v805_v0 = vld [vmem:[#allocation13 + $0x208] sm:$0xff] }
 0x2e8   : > { %7341 = vmatprep.subr.bf16.mxu1 %v11501_v13  ;;  %v11516_v16 = vpack.c.bf16 %v805_v0, %v798_v21  ;;  %v812_v13 = vld [vmem:[#allocation13 + $0x240] sm:$0xff]  ;;  %14394 = vst [vmem:[#allocation213_spill] sm:$0xff] %v11525_v6  ;;  %v841_v21 = vld [vmem:[#allocation13 + $0x328] sm:$0xff] }
 0x2e9   : > { %v848_v0 = vld [vmem:[#allocation13 + $0x360] sm:$0xff] }
 0x2ea   : > { %14391 = vst [vmem:[#allocation210_spill] sm:$0xff] %v11516_v16  ;;  %v11531_v51 = vpack.c.bf16 %v848_v0, %v841_v21 }
 0x2eb   : > { %7343 = vmatpush1.bf16.msra.mxu1 %v11504_v57  ;;  %v819_v57 = vld [vmem:[#allocation13 + $0x278] sm:$0xff] }
 0x2ec   : > { %7345 = vmatprep.subr.bf16.mxu1 %v11507_v44  ;;  %v11522_v23 = vpack.c.bf16 %v819_v57, %v812_v13  ;;  %v826_v44 = vld [vmem:[#allocation13 + $0x2b0] sm:$0xff]  ;;  %14396 = vst [vmem:[#allocation215_spill] sm:$0xff] %v11531_v51  ;;  %v853_v57 = vld [vmem:[#allocation13 + $0x388] sm:$0xff] }
 0x2ee   : > { %14393 = vst [vmem:[#allocation212_spill] sm:$0xff] %v11522_v23 }
 0x2ef   : > { %7347 = vmatpush1.bf16.msra.mxu1 %v11510_v56  ;;  %v833_v56 = vld [vmem:[#allocation13 + $0x2e8] sm:$0xff] }
 0x2f0   : > { %7349 = vmatprep.subr.bf16.mxu1 %v11513_v43  ;;  %v11528_v35 = vpack.c.bf16 %v833_v56, %v826_v44  ;;  %v840_v43 = vld [vmem:[#allocation13 + $0x320] sm:$0xff]  ;;  %v862_v44 = vld [vmem:[#allocation13 + $0x3d0] sm:$0xff] }
 0x2f1   : > { %v852_v56 = vld [vmem:[#allocation13 + $0x380] sm:$0xff]  ;;  %v11540_v21 = vpack.c.bf16 %v862_v44, %v855_v22  ;;  %v873_v44 = vld [vmem:[#allocation13 + $0x428] sm:$0xff] }
 0x2f2   : > { %14395 = vst [vmem:[#allocation214_spill] sm:$0xff] %v11528_v35  ;;  %v876_v22 = vld [vmem:[#allocation13 + $0x440] sm:$0xff] }
 0x2f3   : > { %7351 = vmatpush1.bf16.msra.mxu1 %v11516_v16  ;;  %v847_v16 = vld [vmem:[#allocation13 + $0x358] sm:$0xff]  ;;  %14399 = vst [vmem:[#allocation218_spill] sm:$0xff] %v11540_v21 }
 0x2f4   : > { %7353 = vmatprep.subr.bf16.mxu1 %v11519_v9  ;;  %v11534_v13 = vpack.c.bf16 %v847_v16, %v840_v43  ;;  %v854_v9 = vld [vmem:[#allocation13 + $0x390] sm:$0xff]  ;;  %v867_v16 = vld [vmem:[#allocation13 + $0x3f8] sm:$0xff] }
 0x2f6   : > { %14397 = vst [vmem:[#allocation216_spill] sm:$0xff] %v11534_v13 }
 0x2f7   : > { %7355 = vmatpush1.bf16.msra.mxu1 %v11522_v23  ;;  %v11538_v23 = vpack.c.bf16 %v860_v39, %v853_v57  ;;  %v874_v57 = vld [vmem:[#allocation13 + $0x430] sm:$0xff]  ;;  %v869_v39 = vld [vmem:[#allocation13 + $0x408] sm:$0xff] }
 0x2f8   : > { %7357 = vmatprep.subr.bf16.mxu1 %v11525_v6  ;;  %v859_v6 = vld [vmem:[#allocation13 + $0x3b8] sm:$0xff] }
 0x2f9   : > { %14398 = vst [vmem:[#allocation217_spill] sm:$0xff] %v11538_v23  ;;  %v11542_v0 = vpack.c.bf16 %v859_v6, %v852_v56  ;;  %7269 = vmatprep.subr.bf16.mxu0 %v11538_v23  ;;  %v866_v6 = vld [vmem:[#allocation13 + $0x3f0] sm:$0xff]  ;;  %v11552_v56 = vpack.c.bf16 %v876_v22, %v869_v39  ;;  %v880_v22 = vld [vmem:[#allocation13 + $0x460] sm:$0xff] }
 0x2fa   : > { %v890_v39 = vld [vmem:[#allocation13 + $0x4b0] sm:$0xff] }
 0x2fb   : > { %7359 = vmatpush1.bf16.msra.mxu1 %v11528_v35  ;;  %14400 = vst [vmem:[#allocation219_spill] sm:$0xff] %v11542_v0  ;;  %v861_v35 = vld [vmem:[#allocation13 + $0x3c8] sm:$0xff]  ;;  %7271 = vmatpush1.bf16.msra.mxu0 %v11542_v0  ;;  %14403 = vst [vmem:[#allocation222_spill] sm:$0xff] %v11552_v56  ;;  %v939_v0 = vld [vmem:[#allocation13 + $0x638] sm:$0xff] }
 0x2fc   : > { %7361 = vmatprep.subr.bf16.mxu1 %v11531_v51  ;;  %v11545_v43 = vpack.c.bf16 %v861_v35, %v854_v9  ;;  %v11554_v51 = vpack.c.bf16 %v873_v44, %v866_v6  ;;  %v868_v9 = vld [vmem:[#allocation13 + $0x400] sm:$0xff]  ;;  %v875_v35 = vld [vmem:[#allocation13 + $0x438] sm:$0xff] }
 0x2fd   : > { %v887_v6 = vld [vmem:[#allocation13 + $0x498] sm:$0xff] }
 0x2fe   : > { %14401 = vst [vmem:[#allocation220_spill] sm:$0xff] %v11545_v43  ;;  %14404 = vst [vmem:[#allocation223_spill] sm:$0xff] %v11554_v51  ;;  %v11566_v24 = vpack.c.bf16 %v887_v6, %v880_v22  ;;  %v901_v22 = vld [vmem:[#allocation13 + $0x508] sm:$0xff] }
 0x2ff   : > { %7363 = vmatpush1.bf16.msra.mxu1 %v11534_v13  ;;  %v11550_v13 = vpack.c.bf16 %v874_v57, %v867_v16  ;;  %v888_v16 = vld [vmem:[#allocation13 + $0x4a0] sm:$0xff]  ;;  %v883_v57 = vld [vmem:[#allocation13 + $0x478] sm:$0xff] }
 0x300   : > { %7365 = vmatprep.subr.bf16.mxu1 %v11540_v21  ;;  %v11557_v21 = vpack.c.bf16 %v875_v35, %v868_v9  ;;  %v11564_v44 = vpack.c.bf16 %v890_v39, %v883_v57  ;;  %14408 = vst [vmem:[#allocation227_spill] sm:$0xff] %v11566_v24  ;;  %v882_v9 = vld [vmem:[#allocation13 + $0x470] sm:$0xff]  ;;  %v889_v35 = vld [vmem:[#allocation13 + $0x4a8] sm:$0xff]  ;;  %v904_v57 = vld [vmem:[#allocation13 + $0x520] sm:$0xff] }
 0x301   : > { %14402 = vst [vmem:[#allocation221_spill] sm:$0xff] %v11550_v13  ;;  %7273 = vmatprep.subr.bf16.mxu0 %v11550_v13  ;;  %v894_v39 = vld [vmem:[#allocation13 + $0x4d0] sm:$0xff] }
 0x302   : > { %14405 = vst [vmem:[#allocation224_spill] sm:$0xff] %v11557_v21  ;;  %7275 = vmatpush1.bf16.msra.mxu0 %v11554_v51  ;;  %14407 = vst [vmem:[#allocation226_spill] sm:$0xff] %v11564_v44  ;;  %v11578_v13 = vpack.c.bf16 %v901_v22, %v894_v39  ;;  %v915_v39 = vld [vmem:[#allocation13 + $0x578] sm:$0xff] }
 0x303   : > { %7367 = vmatpush1.bf16.msra.mxu1 %v11545_v43  ;;  %v881_v43 = vld [vmem:[#allocation13 + $0x468] sm:$0xff] }
 0x304   : > { %7369 = vmatprep.subr.bf16.mxu1 %v11552_v56  ;;  %v11562_v26 = vpack.c.bf16 %v888_v16, %v881_v43  ;;  %v11569_v56 = vpack.c.bf16 %v889_v35, %v882_v9  ;;  %v902_v43 = vld [vmem:[#allocation13 + $0x510] sm:$0xff]  ;;  %v897_v16 = vld [vmem:[#allocation13 + $0x4e8] sm:$0xff]  ;;  %14412 = vst [vmem:[#allocation231_spill] sm:$0xff] %v11578_v13  ;;  %v896_v9 = vld [vmem:[#allocation13 + $0x4e0] sm:$0xff] }
 0x305   : > { %v11576_v6 = vpack.c.bf16 %v904_v57, %v897_v16  ;;  %v903_v35 = vld [vmem:[#allocation13 + $0x518] sm:$0xff]  ;;  %v918_v16 = vld [vmem:[#allocation13 + $0x590] sm:$0xff]  ;;  %v908_v57 = vld [vmem:[#allocation13 + $0x540] sm:$0xff] }
 0x306   : > { %14406 = vst [vmem:[#allocation225_spill] sm:$0xff] %v11562_v26  ;;  %7277 = vmatprep.subr.bf16.mxu0 %v11562_v26  ;;  %14409 = vst [vmem:[#allocation228_spill] sm:$0xff] %v11569_v56  ;;  %v11590_v26 = vpack.c.bf16 %v915_v39, %v908_v57  ;;  %v929_v57 = vld [vmem:[#allocation13 + $0x5e8] sm:$0xff] }
 0x307   : > { %7371 = vmatpush1.bf16.msra.mxu1 %v11557_v21  ;;  %7279 = vmatpush1.bf16.msra.mxu0 %v11566_v24  ;;  %v895_v21 = vld [vmem:[#allocation13 + $0x4d8] sm:$0xff]  ;;  %14411 = vst [vmem:[#allocation230_spill] sm:$0xff] %v11576_v6 }
 0x308   : > { %7373 = vmatprep.subr.bf16.mxu1 %v11564_v44  ;;  %v11574_v51 = vpack.c.bf16 %v902_v43, %v895_v21  ;;  %v11581_v44 = vpack.c.bf16 %v903_v35, %v896_v9  ;;  %v916_v21 = vld [vmem:[#allocation13 + $0x580] sm:$0xff]  ;;  %v911_v43 = vld [vmem:[#allocation13 + $0x558] sm:$0xff]  ;;  %14416 = vst [vmem:[#allocation235_spill] sm:$0xff] %v11590_v26  ;;  %v910_v9 = vld [vmem:[#allocation13 + $0x550] sm:$0xff] }
 0x309   : > { %v11588_v22 = vpack.c.bf16 %v918_v16, %v911_v43  ;;  %v917_v35 = vld [vmem:[#allocation13 + $0x588] sm:$0xff]  ;;  %v932_v43 = vld [vmem:[#allocation13 + $0x600] sm:$0xff]  ;;  %v922_v16 = vld [vmem:[#allocation13 + $0x5b0] sm:$0xff] }
 0x30a   : > { %14410 = vst [vmem:[#allocation229_spill] sm:$0xff] %v11574_v51  ;;  %7281 = vmatprep.subr.bf16.mxu0 %v11574_v51  ;;  %14413 = vst [vmem:[#allocation232_spill] sm:$0xff] %v11581_v44  ;;  %v11602_v51 = vpack.c.bf16 %v929_v57, %v922_v16 }
 0x30b   : > { %7375 = vmatpush1.bf16.msra.mxu1 %v11569_v56  ;;  %7283 = vmatpush1.bf16.msra.mxu0 %v11578_v13  ;;  %v909_v56 = vld [vmem:[#allocation13 + $0x548] sm:$0xff]  ;;  %14415 = vst [vmem:[#allocation234_spill] sm:$0xff] %v11588_v22 }
 0x30c   : > { %7377 = vmatprep.subr.bf16.mxu1 %v11576_v6  ;;  %v11586_v24 = vpack.c.bf16 %v916_v21, %v909_v56  ;;  %v11593_v6 = vpack.c.bf16 %v917_v35, %v910_v9  ;;  %v930_v56 = vld [vmem:[#allocation13 + $0x5f0] sm:$0xff]  ;;  %v925_v21 = vld [vmem:[#allocation13 + $0x5c8] sm:$0xff]  ;;  %14420 = vst [vmem:[#allocation239_spill] sm:$0xff] %v11602_v51  ;;  %v924_v9 = vld [vmem:[#allocation13 + $0x5c0] sm:$0xff] }
 0x30d   : > { %v11600_v39 = vpack.c.bf16 %v932_v43, %v925_v21  ;;  %v931_v35 = vld [vmem:[#allocation13 + $0x5f8] sm:$0xff]  ;;  %v936_v21 = vld [vmem:[#allocation13 + $0x620] sm:$0xff] }
 0x30e   : > { %14414 = vst [vmem:[#allocation233_spill] sm:$0xff] %v11586_v24  ;;  %7285 = vmatprep.subr.bf16.mxu0 %v11586_v24  ;;  %14417 = vst [vmem:[#allocation236_spill] sm:$0xff] %v11593_v6  ;;  %v944_v24 = vld [vmem:[#allocation13 + $0x660] sm:$0xff]  ;;  %v943_v43 = vld [vmem:[#allocation13 + $0x658] sm:$0xff] }
 0x30f   : > { %7379 = vmatpush1.bf16.msra.mxu1 %v11581_v44  ;;  %7287 = vmatpush1.bf16.msra.mxu0 %v11590_v26  ;;  %v923_v44 = vld [vmem:[#allocation13 + $0x5b8] sm:$0xff]  ;;  %14419 = vst [vmem:[#allocation238_spill] sm:$0xff] %v11600_v39  ;;  %v937_v26 = vld [vmem:[#allocation13 + $0x628] sm:$0xff]  ;;  %v11614_v57 = vpack.c.bf16 %v943_v43, %v936_v21  ;;  %v952_v21 = vld [vmem:[#allocation13 + $0x6a0] sm:$0xff] }
 0x310   : > { %7381 = vmatprep.subr.bf16.mxu1 %v11588_v22  ;;  %v11598_v13 = vpack.c.bf16 %v930_v56, %v923_v44  ;;  %v11605_v22 = vpack.c.bf16 %v931_v35, %v924_v9  ;;  %v11609_v44 = vpack.c.bf16 %v944_v24, %v937_v26  ;;  %v946_v56 = vld [vmem:[#allocation13 + $0x670] sm:$0xff]  ;;  %v945_v35 = vld [vmem:[#allocation13 + $0x668] sm:$0xff]  ;;  %v960_v26 = vld [vmem:[#allocation13 + $0x6e0] sm:$0xff] }
 0x311   : > { %v11612_v16 = vpack.c.bf16 %v946_v56, %v939_v0  ;;  %14424 = vst [vmem:[#allocation243_spill] sm:$0xff] %v11614_v57  ;;  %v938_v9 = vld [vmem:[#allocation13 + $0x630] sm:$0xff]  ;;  %v957_v56 = vld [vmem:[#allocation13 + $0x6c8] sm:$0xff] }
 0x312   : > { %14418 = vst [vmem:[#allocation237_spill] sm:$0xff] %v11598_v13  ;;  %7289 = vmatprep.subr.bf16.mxu0 %v11598_v13  ;;  %14421 = vst [vmem:[#allocation240_spill] sm:$0xff] %v11605_v22  ;;  %v11617_v13 = vpack.c.bf16 %v945_v35, %v938_v9  ;;  %v950_v0 = vld [vmem:[#allocation13 + $0x690] sm:$0xff]  ;;  %v967_v9 = vld [vmem:[#allocation13 + $0x718] sm:$0xff] }
 0x313   : > { %7383 = vmatpush1.bf16.msra.mxu1 %v11593_v6  ;;  %7291 = vmatpush1.bf16.msra.mxu0 %v11602_v51  ;;  %14422 = vst [vmem:[#allocation241_spill] sm:$0xff] %v11609_v44  ;;  %14423 = vst [vmem:[#allocation242_spill] sm:$0xff] %v11612_v16  ;;  %v951_v6 = vld [vmem:[#allocation13 + $0x698] sm:$0xff]  ;;  %v953_v51 = vld [vmem:[#allocation13 + $0x6a8] sm:$0xff]  ;;  %v11625_v43 = vpack.c.bf16 %v957_v56, %v950_v0 }
 0x314   : > { %7385 = vmatprep.subr.bf16.mxu1 %v11600_v39  ;;  %7293 = vmatprep.subr.bf16.mxu0 %v11609_v44  ;;  %14425 = vst [vmem:[#allocation244_spill] sm:$0xff] %v11617_v13  ;;  %v958_v39 = vld [vmem:[#allocation13 + $0x6d0] sm:$0xff]  ;;  %v11622_v23 = vpack.c.bf16 %v960_v26, %v953_v51  ;;  %v745_v51 = vld [vmem:[#allocation13 + $0x28] sm:$0xff] }
 0x315   : > { %v11620_v24 = vpack.c.bf16 %v958_v39, %v951_v6  ;;  %14428 = vst [vmem:[#allocation247_spill] sm:$0xff] %v11625_v43  ;;  %v11627_v44 = vld [vmem:[#allocation2 + $0x8] sm:$0xff]  ;;  %v752_v39 = vld [vmem:[#allocation13 + $0x60] sm:$0xff] }
 0x316   : > { %14427 = vst [vmem:[#allocation246_spill] sm:$0xff] %v11622_v23  ;;  %v974_v6 = vld [vmem:[#allocation13 + $0x750] sm:$0xff]  ;;  %1747 = vmatprep.mubr.f32.mxu0 %v11627_v44  ;;  %v11637_v0 = vpack.c.bf16 %v752_v39, %v745_v51  ;;  %1889 = vmatprep.mubr.f32.mxu1 %v11627_v44 }
 0x317   : > { %7387 = vmatpush1.bf16.msra.mxu1 %v11605_v22  ;;  %14426 = vst [vmem:[#allocation245_spill] sm:$0xff] %v11620_v24  ;;  %7295 = vmatpush1.bf16.msra.mxu0 %v11614_v57  ;;  %v959_v22 = vld [vmem:[#allocation13 + $0x6d8] sm:$0xff]  ;;  %v11635_v26 = vpack.c.bf16 %v974_v6, %v967_v9  ;;  %v1151_v51 = vld [vmem:[%s10902_s19 + $0x30] sm:$0xff] }
 0x318   : > { %7389 = vmatprep.subr.bf16.mxu1 %v11612_v16  ;;  %7297 = vmatprep.subr.bf16.mxu0 %v11620_v24  ;;  %v11631_v35 = vpack.c.bf16 %v959_v22, %v952_v21  ;;  %14431 = vst [vmem:[#allocation250_spill] sm:$0xff] %v11637_v0  ;;  %v1617_v22 = vlaneseq  ;;  %v739_v9 = vld [vmem:[#allocation11] sm:$0x3] }
 0x319   : > { %14430 = vst [vmem:[#allocation249_spill] sm:$0xff] %v11635_v26 }
 0x31a   : > { %14429 = vst [vmem:[#allocation248_spill] sm:$0xff] %v11631_v35  ;;  %v11644_v56 = vshrl.u32 %v1617_v22, 7 }
 0x31b   : > { %7391 = vmatpush1.bf16.msra.mxu1 %v11617_v13  ;;  %7299 = vmatpush1.bf16.msra.mxu0 %v11625_v43 }
 0x31c   : > { %7393 = vmatprep.subr.bf16.mxu1 %v11622_v23  ;;  %7429 = vmatprep.subr.bf16.mxu0 %v11637_v0  ;;  %14432 = vst [vmem:[#allocation251_spill] sm:$0xff] %v11644_v56  ;;  %v11647_v21 = vsub.s32 0, %v11644_v56  ;;  %v1441_v23 = vadd.f32 %v11459_v52, %v1151_v51  ;;  %v11656_v22 = vsub.s32 1, %v11644_v56  ;;  %v973_v52 = vld [vmem:[#allocation13 + $0x748] sm:$0xff]  ;;  %v744_v51 = vld [vmem:[#allocation13 + $0x20] sm:$0xff] }
 0x31e   : > { %14433 = vst [vmem:[#allocation252_spill] sm:$0xff] %v11647_v21  ;;  %v11650_v6 = vrot.slane %v739_v9, %v11647_v21  ;;  %14435 = vst [vmem:[#allocation254_spill] sm:$0xff] %v11656_v22  ;;  %v966_v21 = vld [vmem:[#allocation13 + $0x710] sm:$0xff] }
 0x31f   : > { %7395 = vmatpush1.bf16.msra.mxu1 %v11631_v35  ;;  %v11662_v25 = vpack.c.bf16 %v973_v52, %v966_v21  ;;  %v1001_v52 = vld [vmem:[#allocation13 + $0x828] sm:$0xff] }
 0x320   : > { %7397 = vmatprep.subr.bf16.mxu1 %v11635_v26  ;;  %14434 = vst [vmem:[#allocation253_spill] sm:$0xff] %v11650_v6  ;;  %v11659_v26 = vrot.slane %v739_v9, %v11656_v22  ;;  %v980_v22 = vld [vmem:[#allocation13 + $0x780] sm:$0xff] }
 0x321   : > { %14437 = vst [vmem:[#allocation256_spill] sm:$0xff] %v11662_v25 }
 0x322   : > { %14436 = vst [vmem:[#allocation255_spill] sm:$0xff] %v11659_v26 }
 0x395   : > { %v1611_v39 = vpop.f32.mrb[4].mxu1 }
 0x396   : > { %v1627_v35 = vadd.f32 %v11650_v6, %v1611_v39  ;;  %v1613_v13 = vpop.f32.mrb[5].mxu1  ;;  %v751_v39 = vld [vmem:[#allocation13 + $0x58] sm:$0xff]  ;;  %v981_v6 = vld [vmem:[#allocation13 + $0x788] sm:$0xff] }
 0x397   : > { %v1628_v43 = vadd.f32 %v11659_v26, %v1613_v13  ;;  %v11664_v9 = vpack.c.bf16 %v751_v39, %v744_v51  ;;  %v987_v13 = vld [vmem:[#allocation13 + $0x7b8] sm:$0xff]  ;;  %v11682_v51 = vpack.c.bf16 %v1002_v33, %v995_v60  ;;  %v11684_v39 = vpack.c.bf16 %v780_v42, %v773_v45  ;;  %v1008_v45 = vld [vmem:[#allocation13 + $0x860] sm:$0xff] }
 0x398   : > { %v1629_v0 = vadd.f32 %v1627_v35, %v1441_v23  ;;  %v988_v23 = vld [vmem:[#allocation13 + $0x7c0] sm:$0xff]  ;;  %v759_v35 = vld [vmem:[#allocation13 + $0x98] sm:$0xff] }
 0x399   : > { %14438 = vst [vmem:[#allocation257_spill] sm:$0xff] %v11664_v9  ;;  %14443 = vst [vmem:[#allocation262_spill] sm:$0xff] %v11682_v51  ;;  %v1015_v42 = vld [vmem:[#allocation13 + $0x898] sm:$0xff] }
 0x39a   : > { %v6393_v16 = vmul.f32 -1.442695, %v1629_v0  ;;  %14444 = vst [vmem:[#allocation263_spill] sm:$0xff] %v11684_v39 }
 0x39c   : > { %9981 = vpow2.f32 %v6393_v16  ;;  %v766_v16 = vld [vmem:[#allocation13 + $0xd0] sm:$0xff] }
 0x39d   : > { %9983 = vtanh.f32 %v1628_v43  ;;  %v758_v43 = vld [vmem:[#allocation13 + $0x90] sm:$0xff] }
 0x39e   : > { %v11678_v21 = vpack.c.bf16 %v765_v14, %v758_v43  ;;  %v793_v43 = vld [vmem:[#allocation13 + $0x1a8] sm:$0xff] }
 0x3a0   : > { %14442 = vst [vmem:[#allocation261_spill] sm:$0xff] %v11678_v21 }
 0x3a6   : > { %v9982_v24 = vpop.eup %9981 }
 0x3a7   : > { %v1633_v57 = vadd.f32 1.0, %v9982_v24  ;;  %v9984_v0 = vpop.eup %9983  ;;  %v11668_v24 = vpack.c.bf16 %v988_v23, %v981_v6  ;;  %v994_v6 = vld [vmem:[#allocation13 + $0x7f0] sm:$0xff]  ;;  %v772_v23 = vld [vmem:[#allocation13 + $0x100] sm:$0xff] }
 0x3a8   : > { %v11690_v14 = vpack.c.bf16 %v1001_v52, %v994_v6  ;;  %v11702_v6 = vpack.c.bf16 %v1015_v42, %v1008_v45 }
 0x3a9   : > { %9985 = vrcp.f32 %v1633_v57  ;;  %14439 = vst [vmem:[#allocation258_spill] sm:$0xff] %v11668_v24  ;;  %v11670_v57 = vpack.c.bf16 %v766_v16, %v759_v35  ;;  %v779_v35 = vld [vmem:[#allocation13 + $0x138] sm:$0xff]  ;;  %v1009_v16 = vld [vmem:[#allocation13 + $0x868] sm:$0xff] }
 0x3aa   : > { %14445 = vst [vmem:[#allocation264_spill] sm:$0xff] %v11690_v14  ;;  %v11692_v33 = vpack.c.bf16 %v779_v35, %v772_v23  ;;  %14449 = vst [vmem:[#allocation268_spill] sm:$0xff] %v11702_v6  ;;  %v1022_v23 = vld [vmem:[#allocation13 + $0x8d0] sm:$0xff]  ;;  %v1029_v35 = vld [vmem:[#allocation13 + $0x908] sm:$0xff] }
 0x3ab   : > { %14440 = vst [vmem:[#allocation259_spill] sm:$0xff] %v11670_v57  ;;  %v11714_v45 = vpack.c.bf16 %v1029_v35, %v1022_v23 }
 0x3ac   : > { %14446 = vst [vmem:[#allocation265_spill] sm:$0xff] %v11692_v33 }
 0x3ad   : > { %14453 = vst [vmem:[#allocation272_spill] sm:$0xff] %v11714_v45 }
 0x3b3   : > { %v9986_v56 = vpop.eup %9985 }
 0x3b4   : > { %v11666_v26 = vmul.f32 %v9986_v56, %v9984_v0  ;;  %v11676_v56 = vpack.c.bf16 %v987_v13, %v980_v22  ;;  %v1016_v0 = vld [vmem:[#allocation13 + $0x8a0] sm:$0xff]  ;;  %v786_v13 = vld [vmem:[#allocation13 + $0x170] sm:$0xff] }
 0x3b5   : > { %v11696_v60 = vpack.c.bf16 %v1016_v0, %v1009_v16  ;;  %v11704_v52 = vpack.c.bf16 %v793_v43, %v786_v13  ;;  %v800_v16 = vld [vmem:[#allocation13 + $0x1e0] sm:$0xff]  ;;  %v807_v0 = vld [vmem:[#allocation13 + $0x218] sm:$0xff] }
 0x3b6   : > { %1748 = vmatmul.mubr.f32.vlgmr.msra.gmra.mrb[4].mxu0 %v11666_v26  ;;  %1890 = vmatmul.mubr.f32.vlgmr.msra.gmra.mrb[8].mxu1 %v11666_v26  ;;  %14441 = vst [vmem:[#allocation260_spill] sm:$0xff] %v11676_v56  ;;  %v11716_v42 = vpack.c.bf16 %v807_v0, %v800_v16  ;;  %v1036_v13 = vld [vmem:[#allocation13 + $0x940] sm:$0xff]  ;;  %v1043_v43 = vld [vmem:[#allocation13 + $0x978] sm:$0xff]  ;;  %v1050_v16 = vld [vmem:[#allocation13 + $0x9b0] sm:$0xff] }
 0x3b7   : > { %7399 = vmatpush1.bf16.msra.mxu1 %v11662_v25  ;;  %7431 = vmatpush1.bf16.msra.mxu0 %v11664_v9  ;;  %v787_v25 = vld [vmem:[#allocation13 + $0x178] sm:$0xff]  ;;  %v794_v9 = vld [vmem:[#allocation13 + $0x1b0] sm:$0xff]  ;;  %14447 = vst [vmem:[#allocation266_spill] sm:$0xff] %v11696_v60  ;;  %14450 = vst [vmem:[#allocation269_spill] sm:$0xff] %v11704_v52  ;;  %v11726_v23 = vpack.c.bf16 %v1043_v43, %v1036_v13 }
 0x3b8   : > { %7401 = vmatprep.subr.bf16.mxu1 %v11668_v24  ;;  %7433 = vmatprep.subr.bf16.mxu0 %v11670_v57  ;;  %v11698_v22 = vpack.c.bf16 %v794_v9, %v787_v25  ;;  %v1023_v57 = vld [vmem:[#allocation13 + $0x8d8] sm:$0xff]  ;;  %v801_v24 = vld [vmem:[#allocation13 + $0x1e8] sm:$0xff]  ;;  %14454 = vst [vmem:[#allocation273_spill] sm:$0xff] %v11716_v42 }
 0x3b9   : > { %1960 = vmatprep.mubr.f32.mxu1 %v14353_v2  ;;  %2031 = vmatprep.mubr.f32.mxu0 %v11627_v44  ;;  %14457 = vst [vmem:[#allocation276_spill] sm:$0xff] %v11726_v23  ;;  %v1057_v0 = vld [vmem:[#allocation13 + $0x9e8] sm:$0xff] }
 0x3ba   : > { %14448 = vst [vmem:[#allocation267_spill] sm:$0xff] %v11698_v22  ;;  %v11738_v13 = vpack.c.bf16 %v1057_v0, %v1050_v16 }
 0x3bb   : > { %7403 = vmatpush1.bf16.msra.mxu1 %v11676_v56  ;;  %7435 = vmatpush1.bf16.msra.mxu0 %v11678_v21  ;;  %v1030_v56 = vld [vmem:[#allocation13 + $0x910] sm:$0xff]  ;;  %v808_v21 = vld [vmem:[#allocation13 + $0x220] sm:$0xff] }
 0x3bc   : > { %7405 = vmatprep.subr.bf16.mxu1 %v11682_v51  ;;  %7437 = vmatprep.subr.bf16.mxu0 %v11684_v39  ;;  %v11708_v25 = vpack.c.bf16 %v1030_v56, %v1023_v57  ;;  %v11710_v9 = vpack.c.bf16 %v808_v21, %v801_v24  ;;  %v1037_v39 = vld [vmem:[#allocation13 + $0x948] sm:$0xff]  ;;  %v815_v51 = vld [vmem:[#allocation13 + $0x258] sm:$0xff]  ;;  %v814_v56 = vld [vmem:[#allocation13 + $0x250] sm:$0xff]  ;;  %14461 = vst [vmem:[#allocation280_spill] sm:$0xff] %v11738_v13 }
 0x3bd   : > { %v821_v21 = vld [vmem:[#allocation13 + $0x288] sm:$0xff] }
 0x3be   : > { %14451 = vst [vmem:[#allocation270_spill] sm:$0xff] %v11708_v25  ;;  %14452 = vst [vmem:[#allocation271_spill] sm:$0xff] %v11710_v9  ;;  %v11728_v35 = vpack.c.bf16 %v821_v21, %v814_v56  ;;  %v1064_v56 = vld [vmem:[#allocation13 + $0xa20] sm:$0xff]  ;;  %v1071_v21 = vld [vmem:[#allocation13 + $0xa58] sm:$0xff] }
 0x3bf   : > { %7407 = vmatpush1.bf16.msra.mxu1 %v11690_v14  ;;  %7439 = vmatpush1.bf16.msra.mxu0 %v11692_v33  ;;  %v1044_v14 = vld [vmem:[#allocation13 + $0x980] sm:$0xff]  ;;  %v822_v33 = vld [vmem:[#allocation13 + $0x290] sm:$0xff]  ;;  %v11750_v16 = vpack.c.bf16 %v1071_v21, %v1064_v56 }
 0x3c0   : > { %7409 = vmatprep.subr.bf16.mxu1 %v11696_v60  ;;  %7441 = vmatprep.subr.bf16.mxu0 %v11698_v22  ;;  %v11720_v24 = vpack.c.bf16 %v1044_v14, %v1037_v39  ;;  %v11722_v57 = vpack.c.bf16 %v822_v33, %v815_v51  ;;  %v1051_v22 = vld [vmem:[#allocation13 + $0x9b8] sm:$0xff]  ;;  %v829_v60 = vld [vmem:[#allocation13 + $0x2c8] sm:$0xff]  ;;  %14458 = vst [vmem:[#allocation277_spill] sm:$0xff] %v11728_v35  ;;  %v828_v14 = vld [vmem:[#allocation13 + $0x2c0] sm:$0xff] }
 0x3c1   : > { %v835_v33 = vld [vmem:[#allocation13 + $0x2f8] sm:$0xff]  ;;  %14465 = vst [vmem:[#allocation284_spill] sm:$0xff] %v11750_v16 }
 0x3c2   : > { %14455 = vst [vmem:[#allocation274_spill] sm:$0xff] %v11720_v24  ;;  %14456 = vst [vmem:[#allocation275_spill] sm:$0xff] %v11722_v57  ;;  %v11740_v43 = vpack.c.bf16 %v835_v33, %v828_v14  ;;  %v856_v14 = vld [vmem:[#allocation13 + $0x3a0] sm:$0xff]  ;;  %v863_v33 = vld [vmem:[#allocation13 + $0x3d8] sm:$0xff] }
 0x3c3   : > { %7411 = vmatpush1.bf16.msra.mxu1 %v11702_v6  ;;  %7443 = vmatpush1.bf16.msra.mxu0 %v11704_v52  ;;  %v1058_v6 = vld [vmem:[#allocation13 + $0x9f0] sm:$0xff]  ;;  %v836_v52 = vld [vmem:[#allocation13 + $0x300] sm:$0xff]  ;;  %v11762_v56 = vpack.c.bf16 %v863_v33, %v856_v14 }
 0x3c4   : > { %7413 = vmatprep.subr.bf16.mxu1 %v11708_v25  ;;  %7445 = vmatprep.subr.bf16.mxu0 %v11710_v9  ;;  %v11732_v51 = vpack.c.bf16 %v1058_v6, %v1051_v22  ;;  %v11734_v39 = vpack.c.bf16 %v836_v52, %v829_v60  ;;  %v1065_v9 = vld [vmem:[#allocation13 + $0xa28] sm:$0xff]  ;;  %v843_v25 = vld [vmem:[#allocation13 + $0x338] sm:$0xff]  ;;  %14462 = vst [vmem:[#allocation281_spill] sm:$0xff] %v11740_v43  ;;  %v842_v6 = vld [vmem:[#allocation13 + $0x330] sm:$0xff] }
 0x3c5   : > { %v849_v52 = vld [vmem:[#allocation13 + $0x368] sm:$0xff]  ;;  %14469 = vst [vmem:[#allocation288_spill] sm:$0xff] %v11762_v56 }
 0x3c6   : > { %14459 = vst [vmem:[#allocation278_spill] sm:$0xff] %v11732_v51  ;;  %14460 = vst [vmem:[#allocation279_spill] sm:$0xff] %v11734_v39  ;;  %v11752_v0 = vpack.c.bf16 %v849_v52, %v842_v6  ;;  %v870_v6 = vld [vmem:[#allocation13 + $0x410] sm:$0xff]  ;;  %v877_v52 = vld [vmem:[#allocation13 + $0x448] sm:$0xff] }
 0x3c7   : > { %7415 = vmatpush1.bf16.msra.mxu1 %v11714_v45  ;;  %7447 = vmatpush1.bf16.msra.mxu0 %v11716_v42  ;;  %v1072_v45 = vld [vmem:[#allocation13 + $0xa60] sm:$0xff]  ;;  %v850_v42 = vld [vmem:[#allocation13 + $0x370] sm:$0xff]  ;;  %v11775_v14 = vpack.c.bf16 %v877_v52, %v870_v6 }
 0x3c8   : > { %7417 = vmatprep.subr.bf16.mxu1 %v11720_v24  ;;  %7449 = vmatprep.subr.bf16.mxu0 %v11722_v57  ;;  %v11744_v60 = vpack.c.bf16 %v1072_v45, %v1065_v9  ;;  %v11746_v22 = vpack.c.bf16 %v850_v42, %v843_v25  ;;  %v857_v57 = vld [vmem:[#allocation13 + $0x3a8] sm:$0xff]  ;;  %v858_v24 = vld [vmem:[#allocation13 + $0x3b0] sm:$0xff]  ;;  %14466 = vst [vmem:[#allocation285_spill] sm:$0xff] %v11752_v0 }
 0x3c9   : > { %v746_v45 = vld [vmem:[#allocation13 + $0x30] sm:$0xff]  ;;  %v753_v42 = vld [vmem:[#allocation13 + $0x68] sm:$0xff]  ;;  %14473 = vst [vmem:[#allocation292_spill] sm:$0xff] %v11775_v14 }
 0x3ca   : > { %14463 = vst [vmem:[#allocation282_spill] sm:$0xff] %v11744_v60  ;;  %14464 = vst [vmem:[#allocation283_spill] sm:$0xff] %v11746_v22  ;;  %v11764_v21 = vpack.c.bf16 %v753_v42, %v746_v45  ;;  %v774_v45 = vld [vmem:[#allocation13 + $0x110] sm:$0xff]  ;;  %v899_v42 = vld [vmem:[#allocation13 + $0x4f8] sm:$0xff] }
 0x3cb   : > { %7419 = vmatpush1.bf16.msra.mxu1 %v11726_v23  ;;  %7451 = vmatpush1.bf16.msra.mxu0 %v11728_v35  ;;  %v864_v23 = vld [vmem:[#allocation13 + $0x3e0] sm:$0xff]  ;;  %v865_v35 = vld [vmem:[#allocation13 + $0x3e8] sm:$0xff] }
 0x3cc   : > { %7421 = vmatprep.subr.bf16.mxu1 %v11732_v51  ;;  %7453 = vmatprep.subr.bf16.mxu0 %v11734_v39  ;;  %v11756_v25 = vpack.c.bf16 %v864_v23, %v857_v57  ;;  %v11758_v9 = vpack.c.bf16 %v865_v35, %v858_v24  ;;  %v871_v39 = vld [vmem:[#allocation13 + $0x418] sm:$0xff]  ;;  %v872_v51 = vld [vmem:[#allocation13 + $0x420] sm:$0xff]  ;;  %14470 = vst [vmem:[#allocation289_spill] sm:$0xff] %v11764_v21 }
 0x3cd   : > { %v760_v23 = vld [vmem:[#allocation13 + $0xa0] sm:$0xff]  ;;  %v767_v35 = vld [vmem:[#allocation13 + $0xd8] sm:$0xff] }
 0x3ce   : > { %14467 = vst [vmem:[#allocation286_spill] sm:$0xff] %v11756_v25  ;;  %14468 = vst [vmem:[#allocation287_spill] sm:$0xff] %v11758_v9  ;;  %v11777_v33 = vpack.c.bf16 %v767_v35, %v760_v23  ;;  %v788_v23 = vld [vmem:[#allocation13 + $0x180] sm:$0xff]  ;;  %v913_v35 = vld [vmem:[#allocation13 + $0x568] sm:$0xff] }
 0x3cf   : > { %7423 = vmatpush1.bf16.msra.mxu1 %v11738_v13  ;;  %7455 = vmatpush1.bf16.msra.mxu0 %v11740_v43  ;;  %v878_v13 = vld [vmem:[#allocation13 + $0x450] sm:$0xff]  ;;  %v879_v43 = vld [vmem:[#allocation13 + $0x458] sm:$0xff] }
 0x3d0   : > { %7425 = vmatprep.subr.bf16.mxu1 %v11744_v60  ;;  %7457 = vmatprep.subr.bf16.mxu0 %v11746_v22  ;;  %v11768_v24 = vpack.c.bf16 %v878_v13, %v871_v39  ;;  %v11770_v57 = vpack.c.bf16 %v879_v43, %v872_v51  ;;  %v885_v22 = vld [vmem:[#allocation13 + $0x488] sm:$0xff]  ;;  %v886_v60 = vld [vmem:[#allocation13 + $0x490] sm:$0xff]  ;;  %14474 = vst [vmem:[#allocation293_spill] sm:$0xff] %v11777_v33  ;;  %v884_v39 = vld [vmem:[#allocation13 + $0x480] sm:$0xff] }
 0x3d1   : > { %v891_v13 = vld [vmem:[#allocation13 + $0x4b8] sm:$0xff] }
 0x3d2   : > { %14471 = vst [vmem:[#allocation290_spill] sm:$0xff] %v11768_v24  ;;  %14472 = vst [vmem:[#allocation291_spill] sm:$0xff] %v11770_v57  ;;  %v11788_v6 = vpack.c.bf16 %v891_v13, %v884_v39 }
 0x3d3   : > { %7427 = vmatpush1.bf16.msra.mxu1 %v11750_v16  ;;  %7459 = vmatpush1.bf16.msra.mxu0 %v11752_v0  ;;  %v892_v16 = vld [vmem:[#allocation13 + $0x4c0] sm:$0xff]  ;;  %v893_v0 = vld [vmem:[#allocation13 + $0x4c8] sm:$0xff] }
 0x3d4   : > { %7461 = vmatprep.subr.bf16.mxu0 %v11756_v25  ;;  %7525 = vmatprep.subr.bf16.mxu1 %v11758_v9  ;;  %v11781_v51 = vpack.c.bf16 %v892_v16, %v885_v22  ;;  %v11783_v43 = vpack.c.bf16 %v893_v0, %v886_v60  ;;  %v900_v25 = vld [vmem:[#allocation13 + $0x500] sm:$0xff]  ;;  %14477 = vst [vmem:[#allocation296_spill] sm:$0xff] %v11788_v6  ;;  %v898_v22 = vld [vmem:[#allocation13 + $0x4f0] sm:$0xff]  ;;  %v905_v16 = vld [vmem:[#allocation13 + $0x528] sm:$0xff] }
 0x3d5   : > { %v11800_v39 = vpack.c.bf16 %v905_v16, %v898_v22 }
 0x3d6   : > { %1961 = vmatmul.mubr.f32.vlgmr.msra.gmra.mrb[8].mxu1 %v11489_v59  ;;  %14475 = vst [vmem:[#allocation294_spill] sm:$0xff] %v11781_v51  ;;  %14476 = vst [vmem:[#allocation295_spill] sm:$0xff] %v11783_v43  ;;  %v781_v59 = vld [vmem:[#allocation13 + $0x148] sm:$0xff] }
 0x3d7   : > { %7463 = vmatpush1.bf16.msra.mxu0 %v11762_v56  ;;  %7527 = vmatpush3.bf16.msra.mxu1 %v11764_v21  ;;  %v906_v56 = vld [vmem:[#allocation13 + $0x530] sm:$0xff]  ;;  %v907_v21 = vld [vmem:[#allocation13 + $0x538] sm:$0xff]  ;;  %v11790_v52 = vpack.c.bf16 %v781_v59, %v774_v45  ;;  %14481 = vst [vmem:[#allocation300_spill] sm:$0xff] %v11800_v39  ;;  %v912_v45 = vld [vmem:[#allocation13 + $0x560] sm:$0xff] }
 0x3d8   : > { %7465 = vmatprep.subr.bf16.mxu0 %v11768_v24  ;;  %7529 = vmatprep.subr.bf16.mxu1 %v11770_v57  ;;  %v11794_v60 = vpack.c.bf16 %v906_v56, %v899_v42  ;;  %v11796_v0 = vpack.c.bf16 %v907_v21, %v900_v25  ;;  %v914_v24 = vld [vmem:[#allocation13 + $0x570] sm:$0xff]  ;;  %v919_v59 = vld [vmem:[#allocation13 + $0x598] sm:$0xff]  ;;  %v809_v42 = vld [vmem:[#allocation13 + $0x228] sm:$0xff] }
 0x3d9   : > { %2173 = vmatprep.mubr.f32.mxu1 %v11627_v44  ;;  %14478 = vst [vmem:[#allocation297_spill] sm:$0xff] %v11790_v52  ;;  %v795_v44 = vld [vmem:[#allocation13 + $0x1b8] sm:$0xff]  ;;  %v802_v21 = vld [vmem:[#allocation13 + $0x1f0] sm:$0xff]  ;;  %v11812_v22 = vpack.c.bf16 %v919_v59, %v912_v45 }
 0x3da   : > { %14479 = vst [vmem:[#allocation298_spill] sm:$0xff] %v11794_v60  ;;  %14480 = vst [vmem:[#allocation299_spill] sm:$0xff] %v11796_v0  ;;  %v11802_v13 = vpack.c.bf16 %v795_v44, %v788_v23  ;;  %v11814_v16 = vpack.c.bf16 %v809_v42, %v802_v21  ;;  %v926_v23 = vld [vmem:[#allocation13 + $0x5d0] sm:$0xff]  ;;  %v933_v44 = vld [vmem:[#allocation13 + $0x608] sm:$0xff] }
 0x3db   : > { %7467 = vmatpush1.bf16.msra.mxu0 %v11775_v14  ;;  %7531 = vmatpush3.bf16.msra.mxu1 %v11777_v33  ;;  %v920_v14 = vld [vmem:[#allocation13 + $0x5a0] sm:$0xff]  ;;  %v921_v33 = vld [vmem:[#allocation13 + $0x5a8] sm:$0xff]  ;;  %14485 = vst [vmem:[#allocation304_spill] sm:$0xff] %v11812_v22  ;;  %v11824_v45 = vpack.c.bf16 %v933_v44, %v926_v23  ;;  %v947_v42 = vld [vmem:[#allocation13 + $0x678] sm:$0xff] }
 0x3dc   : > { %7469 = vmatprep.subr.bf16.mxu0 %v11781_v51  ;;  %7533 = vmatprep.subr.bf16.mxu1 %v11783_v43  ;;  %14482 = vst [vmem:[#allocation301_spill] sm:$0xff] %v11802_v13  ;;  %v11806_v25 = vpack.c.bf16 %v920_v14, %v913_v35  ;;  %v11808_v56 = vpack.c.bf16 %v921_v33, %v914_v24  ;;  %v927_v51 = vld [vmem:[#allocation13 + $0x5d8] sm:$0xff]  ;;  %v928_v43 = vld [vmem:[#allocation13 + $0x5e0] sm:$0xff]  ;;  %14486 = vst [vmem:[#allocation305_spill] sm:$0xff] %v11814_v16 }
 0x3dd   : > { %v816_v33 = vld [vmem:[#allocation13 + $0x260] sm:$0xff]  ;;  %v823_v35 = vld [vmem:[#allocation13 + $0x298] sm:$0xff]  ;;  %14489 = vst [vmem:[#allocation308_spill] sm:$0xff] %v11824_v45 }
 0x3de   : > { %14483 = vst [vmem:[#allocation302_spill] sm:$0xff] %v11806_v25  ;;  %14484 = vst [vmem:[#allocation303_spill] sm:$0xff] %v11808_v56  ;;  %v11826_v59 = vpack.c.bf16 %v823_v35, %v816_v33  ;;  %v940_v21 = vld [vmem:[#allocation13 + $0x640] sm:$0xff]  ;;  %v954_v33 = vld [vmem:[#allocation13 + $0x6b0] sm:$0xff] }
 0x3df   : > { %7471 = vmatpush1.bf16.msra.mxu0 %v11788_v6  ;;  %7535 = vmatpush3.bf16.msra.mxu1 %v11790_v52  ;;  %v934_v6 = vld [vmem:[#allocation13 + $0x610] sm:$0xff]  ;;  %v935_v52 = vld [vmem:[#allocation13 + $0x618] sm:$0xff]  ;;  %v11836_v23 = vpack.c.bf16 %v947_v42, %v940_v21 }
 0x3e0   : > { %7473 = vmatprep.subr.bf16.mxu0 %v11794_v60  ;;  %7537 = vmatprep.subr.bf16.mxu1 %v11796_v0  ;;  %v11818_v24 = vpack.c.bf16 %v934_v6, %v927_v51  ;;  %v11820_v14 = vpack.c.bf16 %v935_v52, %v928_v43  ;;  %v941_v60 = vld [vmem:[#allocation13 + $0x648] sm:$0xff]  ;;  %v942_v0 = vld [vmem:[#allocation13 + $0x650] sm:$0xff]  ;;  %v851_v35 = vld [vmem:[#allocation13 + $0x378] sm:$0xff] }
 0x3e1   : > { %v830_v6 = vld [vmem:[#allocation13 + $0x2d0] sm:$0xff]  ;;  %v837_v52 = vld [vmem:[#allocation13 + $0x308] sm:$0xff]  ;;  %14492 = vst [vmem:[#allocation311_spill] sm:$0xff] %v11836_v23 }
 0x3e2   : > { %14487 = vst [vmem:[#allocation306_spill] sm:$0xff] %v11818_v24  ;;  %14488 = vst [vmem:[#allocation307_spill] sm:$0xff] %v11820_v14  ;;  %v11838_v44 = vpack.c.bf16 %v837_v52, %v830_v6  ;;  %v968_v6 = vld [vmem:[#allocation13 + $0x720] sm:$0xff]  ;;  %v983_v52 = vld [vmem:[#allocation13 + $0x798] sm:$0xff] }
 0x3e3   : > { %7475 = vmatpush1.bf16.msra.mxu0 %v11800_v39  ;;  %7539 = vmatpush3.bf16.msra.mxu1 %v11802_v13  ;;  %v948_v39 = vld [vmem:[#allocation13 + $0x680] sm:$0xff]  ;;  %v949_v13 = vld [vmem:[#allocation13 + $0x688] sm:$0xff] }
 0x3e4   : > { %7477 = vmatprep.subr.bf16.mxu0 %v11806_v25  ;;  %7541 = vmatprep.subr.bf16.mxu1 %v11808_v56  ;;  %v11830_v51 = vpack.c.bf16 %v948_v39, %v941_v60  ;;  %v11832_v43 = vpack.c.bf16 %v949_v13, %v942_v0  ;;  %v955_v25 = vld [vmem:[#allocation13 + $0x6b8] sm:$0xff]  ;;  %v956_v56 = vld [vmem:[#allocation13 + $0x6c0] sm:$0xff]  ;;  %14493 = vst [vmem:[#allocation312_spill] sm:$0xff] %v11838_v44  ;;  %v961_v39 = vld [vmem:[#allocation13 + $0x6e8] sm:$0xff] }
 0x3e5   : > { %v844_v13 = vld [vmem:[#allocation13 + $0x340] sm:$0xff]  ;;  %v11848_v21 = vpack.c.bf16 %v961_v39, %v954_v33 }
 0x3e6   : > { %14490 = vst [vmem:[#allocation309_spill] sm:$0xff] %v11830_v51  ;;  %14491 = vst [vmem:[#allocation310_spill] sm:$0xff] %v11832_v43  ;;  %v11850_v42 = vpack.c.bf16 %v851_v35, %v844_v13  ;;  %v982_v13 = vld [vmem:[#allocation13 + $0x790] sm:$0xff]  ;;  %v14008_v35 = vmov 0.0|0.0  }
 0x3e7   : > { %7479 = vmatpush1.bf16.msra.mxu0 %v11812_v22  ;;  %7543 = vmatpush3.bf16.msra.mxu1 %v11814_v16  ;;  %v962_v22 = vld [vmem:[#allocation13 + $0x6f0] sm:$0xff]  ;;  %v963_v16 = vld [vmem:[#allocation13 + $0x6f8] sm:$0xff]  ;;  %14496 = vst [vmem:[#allocation315_spill] sm:$0xff] %v11848_v21 }
 0x3e8   : > { %7481 = vmatprep.subr.bf16.mxu0 %v11818_v24  ;;  %7545 = vmatprep.subr.bf16.mxu1 %v11820_v14  ;;  %v11842_v60 = vpack.c.bf16 %v962_v22, %v955_v25  ;;  %v11844_v0 = vpack.c.bf16 %v963_v16, %v956_v56  ;;  %v969_v24 = vld [vmem:[#allocation13 + $0x728] sm:$0xff]  ;;  %14497 = vst [vmem:[#allocation316_spill] sm:$0xff] %v11850_v42  ;;  %v975_v56 = vld [vmem:[#allocation13 + $0x758] sm:$0xff]  ;;  %v970_v22 = vld [vmem:[#allocation13 + $0x730] sm:$0xff] }
 0x3e9   : > { %v977_v16 = vld [vmem:[#allocation13 + $0x768] sm:$0xff]  ;;  %v11858_v33 = vpack.c.bf16 %v975_v56, %v968_v6 }
 0x3ea   : > { %14494 = vst [vmem:[#allocation313_spill] sm:$0xff] %v11842_v60  ;;  %14495 = vst [vmem:[#allocation314_spill] sm:$0xff] %v11844_v0  ;;  %v11860_v39 = vpack.c.bf16 %v977_v16, %v970_v22  ;;  %v996_v22 = vld [vmem:[#allocation13 + $0x800] sm:$0xff]  ;;  %v1003_v16 = vld [vmem:[#allocation13 + $0x838] sm:$0xff] }
 0x3eb   : > { %7483 = vmatpush1.bf16.msra.mxu0 %v11824_v45  ;;  %7547 = vmatpush3.bf16.msra.mxu1 %v11826_v59  ;;  %v976_v45 = vld [vmem:[#allocation13 + $0x760] sm:$0xff]  ;;  %14499 = vst [vmem:[#allocation318_spill] sm:$0xff] %v11858_v33 }
 0x3ec   : > { %7485 = vmatprep.subr.bf16.mxu0 %v11830_v51  ;;  %7549 = vmatprep.subr.bf16.mxu1 %v11832_v43  ;;  %v11854_v25 = vpack.c.bf16 %v976_v45, %v969_v24  ;;  %v990_v51 = vld [vmem:[#allocation13 + $0x7d0] sm:$0xff]  ;;  %14500 = vst [vmem:[#allocation319_spill] sm:$0xff] %v11860_v39  ;;  %v989_v45 = vld [vmem:[#allocation13 + $0x7c8] sm:$0xff] }
 0x3ed   : > { %v11864_v24 = vpack.c.bf16 %v990_v51, %v983_v52  ;;  %v11870_v6 = vpack.c.bf16 %v989_v45, %v982_v13  ;;  %v998_v52 = vld [vmem:[#allocation13 + $0x810] sm:$0xff]  ;;  %v1017_v13 = vld [vmem:[#allocation13 + $0x8a8] sm:$0xff]  ;;  %v1012_v45 = vld [vmem:[#allocation13 + $0x880] sm:$0xff] }
 0x3ee   : > { %14498 = vst [vmem:[#allocation317_spill] sm:$0xff] %v11854_v25 }
 0x3ef   : > { %7487 = vmatpush1.bf16.msra.mxu0 %v11836_v23  ;;  %7551 = vmatpush3.bf16.msra.mxu1 %v11838_v44  ;;  %14501 = vst [vmem:[#allocation320_spill] sm:$0xff] %v11864_v24  ;;  %v991_v23 = vld [vmem:[#allocation13 + $0x7d8] sm:$0xff]  ;;  %v1004_v44 = vld [vmem:[#allocation13 + $0x840] sm:$0xff]  ;;  %14502 = vst [vmem:[#allocation321_spill] sm:$0xff] %v11870_v6 }
 0x3f0   : > { %7489 = vmatprep.subr.bf16.mxu0 %v11842_v60  ;;  %7553 = vmatprep.subr.bf16.mxu1 %v11844_v0  ;;  %v984_v60 = vld [vmem:[#allocation13 + $0x7a0] sm:$0xff]  ;;  %v997_v0 = vld [vmem:[#allocation13 + $0x808] sm:$0xff] }
 0x3f1   : > { %v11872_v56 = vpack.c.bf16 %v991_v23, %v984_v60  ;;  %v11876_v51 = vpack.c.bf16 %v1004_v44, %v997_v0  ;;  %v11883_v23 = vpack.c.bf16 %v1003_v16, %v996_v22  ;;  %v1010_v44 = vld [vmem:[#allocation13 + $0x870] sm:$0xff]  ;;  %v1024_v16 = vld [vmem:[#allocation13 + $0x8e0] sm:$0xff] }
 0x3f2   : > { %v11893_v22 = vpack.c.bf16 %v1017_v13, %v1010_v44  ;;  %v1038_v13 = vld [vmem:[#allocation13 + $0x950] sm:$0xff] }
 0x3f3   : > { %7491 = vmatpush1.bf16.msra.mxu0 %v11848_v21  ;;  %7555 = vmatpush3.bf16.msra.mxu1 %v11850_v42  ;;  %14503 = vst [vmem:[#allocation322_spill] sm:$0xff] %v11872_v56  ;;  %14504 = vst [vmem:[#allocation323_spill] sm:$0xff] %v11876_v51  ;;  %v1011_v21 = vld [vmem:[#allocation13 + $0x878] sm:$0xff]  ;;  %v1018_v42 = vld [vmem:[#allocation13 + $0x8b0] sm:$0xff] }
 0x3f4   : > { %7493 = vmatprep.subr.bf16.mxu0 %v11854_v25  ;;  %7556 = vmatprep.subr.bf16.mxu1 %v14008_v35  ;;  %v1005_v25 = vld [vmem:[#allocation13 + $0x848] sm:$0xff]  ;;  %14505 = vst [vmem:[#allocation324_spill] sm:$0xff] %v11883_v23  ;;  %v11889_v0 = vpack.c.bf16 %v1018_v42, %v1011_v21  ;;  %14508 = vst [vmem:[#allocation327_spill] sm:$0xff] %v11893_v22  ;;  %v1031_v42 = vld [vmem:[#allocation13 + $0x918] sm:$0xff] }
 0x3f5   : > { %v11885_v60 = vpack.c.bf16 %v1005_v25, %v998_v52  ;;  %v1026_v52 = vld [vmem:[#allocation13 + $0x8f0] sm:$0xff]  ;;  %v11903_v44 = vpack.c.bf16 %v1031_v42, %v1024_v16  ;;  %v1052_v42 = vld [vmem:[#allocation13 + $0x9c0] sm:$0xff] }
 0x3f6   : > { %2032 = vmatmul.mubr.f32.vlgmr.msra.gmra.mrb[6].mxu0 %v11666_v26  ;;  %2174 = vmatmul.mubr.f32.vlgmr.msra.gmra.mrb[10].mxu1 %v11666_v26  ;;  %14507 = vst [vmem:[#allocation326_spill] sm:$0xff] %v11889_v0 }
 0x3f7   : > { %7495 = vmatpush1.bf16.msra.mxu0 %v11858_v33  ;;  %7558 = vmatpush3.bf16.msra.mxu1 %v11860_v39  ;;  %14506 = vst [vmem:[#allocation325_spill] sm:$0xff] %v11885_v60  ;;  %v1025_v33 = vld [vmem:[#allocation13 + $0x8e8] sm:$0xff]  ;;  %v1032_v39 = vld [vmem:[#allocation13 + $0x920] sm:$0xff]  ;;  %14511 = vst [vmem:[#allocation330_spill] sm:$0xff] %v11903_v44 }
 0x3f8   : > { %7497 = vmatprep.subr.bf16.mxu0 %v11864_v24  ;;  %7559 = vmatprep.subr.bf16.mxu1 %v14008_v35  ;;  %v1019_v24 = vld [vmem:[#allocation13 + $0x8b8] sm:$0xff]  ;;  %v11899_v21 = vpack.c.bf16 %v1032_v39, %v1025_v33  ;;  %v1045_v39 = vld [vmem:[#allocation13 + $0x988] sm:$0xff] }
 0x3f9   : > { %2102 = vmatprep.mubr.f32.mxu0 %v14353_v2  ;;  %6840 = vmatprep.mubr.msk.f32.mxu1 %vm10528_vm0, %v14353_v2  ;;  %v11895_v25 = vpack.c.bf16 %v1019_v24, %v1012_v45  ;;  %v1040_v45 = vld [vmem:[#allocation13 + $0x960] sm:$0xff]  ;;  %v11913_v16 = vpack.c.bf16 %v1045_v39, %v1038_v13  ;;  %v1066_v39 = vld [vmem:[#allocation13 + $0xa30] sm:$0xff] }
 0x3fa   : > { %14510 = vst [vmem:[#allocation329_spill] sm:$0xff] %v11899_v21 }
 0x3fb   : > { %7499 = vmatpush1.bf16.msra.mxu0 %v11870_v6  ;;  %7561 = vmatpush3.bf16.msra.mxu1 %v11872_v56  ;;  %14509 = vst [vmem:[#allocation328_spill] sm:$0xff] %v11895_v25  ;;  %v1039_v6 = vld [vmem:[#allocation13 + $0x958] sm:$0xff]  ;;  %v1046_v56 = vld [vmem:[#allocation13 + $0x990] sm:$0xff]  ;;  %14514 = vst [vmem:[#allocation333_spill] sm:$0xff] %v11913_v16 }
 0x3fc   : > { %7501 = vmatprep.subr.bf16.mxu0 %v11876_v51  ;;  %7562 = vmatprep.subr.bf16.mxu1 %v14008_v35  ;;  %v1033_v51 = vld [vmem:[#allocation13 + $0x928] sm:$0xff]  ;;  %v11909_v33 = vpack.c.bf16 %v1046_v56, %v1039_v6  ;;  %v1059_v56 = vld [vmem:[#allocation13 + $0x9f8] sm:$0xff] }
 0x3fd   : > { %v11905_v24 = vpack.c.bf16 %v1033_v51, %v1026_v52  ;;  %v1054_v52 = vld [vmem:[#allocation13 + $0x9d0] sm:$0xff]  ;;  %v11923_v13 = vpack.c.bf16 %v1059_v56, %v1052_v42 }
 0x3fe   : > { %14513 = vst [vmem:[#allocation332_spill] sm:$0xff] %v11909_v33  ;;  %v14523_v56 = vld [vmem:[#allocation97_spill] sm:$0xff] }
 0x3ff   : > { %7503 = vmatpush1.bf16.msra.mxu0 %v11883_v23  ;;  %7564 = vmatpush3.bf16.msra.mxu1 %v11885_v60  ;;  %14512 = vst [vmem:[#allocation331_spill] sm:$0xff] %v11905_v24  ;;  %v1053_v23 = vld [vmem:[#allocation13 + $0x9c8] sm:$0xff]  ;;  %v1060_v60 = vld [vmem:[#allocation13 + $0xa00] sm:$0xff]  ;;  %14516 = vst [vmem:[#allocation335_spill] sm:$0xff] %v11923_v13 }
 0x400   : > { %7505 = vmatprep.subr.bf16.mxu0 %v11889_v0  ;;  %7565 = vmatprep.subr.bf16.mxu1 %v14008_v35  ;;  %v1047_v0 = vld [vmem:[#allocation13 + $0x998] sm:$0xff]  ;;  %v11919_v6 = vpack.c.bf16 %v1060_v60, %v1053_v23  ;;  %v1073_v60 = vld [vmem:[#allocation13 + $0xa68] sm:$0xff] }
 0x401   : > { %v11915_v51 = vpack.c.bf16 %v1047_v0, %v1040_v45  ;;  %v11927_v45 = vpop.f32.mrb[6].mxu1 }
 0x402   : > { %14515 = vst [vmem:[#allocation334_spill] sm:$0xff] %v11919_v6 }
 0x403   : > { %7507 = vmatpush1.bf16.msra.mxu0 %v11893_v22  ;;  %7567 = vmatpush3.bf16.msra.mxu1 %v11895_v25  ;;  %v1067_v22 = vld [vmem:[#allocation13 + $0xa38] sm:$0xff]  ;;  %v1074_v25 = vld [vmem:[#allocation13 + $0xa70] sm:$0xff] }
 0x404   : > { %7509 = vmatprep.subr.bf16.mxu0 %v11899_v21  ;;  %7568 = vmatprep.subr.bf16.mxu1 %v14008_v35  ;;  %v1061_v21 = vld [vmem:[#allocation13 + $0xa08] sm:$0xff]  ;;  %v11931_v23 = vpack.c.bf16 %v1074_v25, %v1067_v22  ;;  %v11946_v22 = vld [vmem:[#allocation4 + $0x8] sm:$0xff] }
 0x405   : > { %v11925_v0 = vpack.c.bf16 %v1061_v21, %v1054_v52  ;;  %v11937_v21 = vpack.c.bf16 %v1073_v60, %v1066_v39  ;;  %v11950_v25 = vld [vmem:[#allocation4] sm:$0xff]  ;;  %v1112_v60 = vld [vmem:[#allocation16 + $0x118] sm:$0xff] }
 0x406   : > { %14518 = vst [vmem:[#allocation337_spill] sm:$0xff] %v11931_v23  ;;  %v14524_v52 = vld [vmem:[#allocation98_spill] sm:$0xff] }
 0x407   : > { %7511 = vmatpush1.bf16.msra.mxu0 %v11903_v44  ;;  %7570 = vmatpush3.bf16.msra.mxu1 %v11905_v24  ;;  %14517 = vst [vmem:[#allocation336_spill] sm:$0xff] %v11925_v0  ;;  %v1075_v44 = vld [vmem:[#allocation13 + $0xa78] sm:$0xff]  ;;  %v11933_v24 = vpop.f32.mrb[7].mxu1  ;;  %14519 = vst [vmem:[#allocation338_spill] sm:$0xff] %v11937_v21  ;;  %v1110_v39 = vld [vmem:[#allocation16 + $0x108] sm:$0xff] }
 0x408   : > { %7513 = vmatprep.subr.bf16.mxu0 %v11909_v33  ;;  %7571 = vmatprep.subr.bf16.mxu1 %v14008_v35  ;;  %v1068_v33 = vld [vmem:[#allocation13 + $0xa40] sm:$0xff] }
 0x409   : > { %v11939_v42 = vpack.c.bf16 %v1075_v44, %v1068_v33  ;;  %v14521_v44 = vld [vmem:[#allocation95_spill] sm:$0xff]  ;;  %v14522_v33 = vld [vmem:[#allocation96_spill] sm:$0xff] }
 0x40b   : > { %7515 = vmatpush1.bf16.msra.mxu0 %v11913_v16  ;;  %7573 = vmatpush3.bf16.msra.mxu1 %v11915_v51  ;;  %14520 = vst [vmem:[#allocation339_spill] sm:$0xff] %v11939_v42 }
 0x40c   : > { %7517 = vmatprep.subr.bf16.mxu0 %v11919_v6  ;;  %7574 = vmatprep.subr.bf16.mxu1 %v14008_v35 }
 0x40f   : > { %7519 = vmatpush1.bf16.msra.mxu0 %v11923_v13  ;;  %7576 = vmatpush3.bf16.msra.mxu1 %v11925_v0 }
 0x410   : > { %7521 = vmatprep.subr.bf16.mxu0 %v11931_v23  ;;  %7577 = vmatprep.subr.bf16.mxu1 %v14008_v35  ;;  %v14525_v35 = vld [vmem:[#allocation99_spill] sm:$0xff] }
 0x413   : > { %7523 = vmatpush1.bf16.msra.mxu0 %v11937_v21  ;;  %7579 = vmatpush3.bf16.msra.mxu1 %v11939_v42 }
 0x414   : > { %7645 = vmatprep.subr.bf16.mxu1 %v10928_v4 }
 0x416   : > { %2103 = vmatmul.mubr.f32.vlgmr.msra.gmra.mrb[6].mxu0 %v11946_v22  ;;  %6841 = vmatmul.mubr.f32.vlgmr.msra.gmra.mrb[12].mxu1 %v11946_v22 }
 0x417   : > { %7647 = vmatpush1.bf16.msra.mxu1 %v10930_v8  ;;  %2524 = vmatprep.mubr.f32.mxu1 %v11950_v25 }
 0x418   : > { %7649 = vmatprep.subr.bf16.mxu1 %v10939_v17  ;;  %2345 = vmatprep.mubr.f32.mxu0 %v14353_v2 }
 0x41b   : > { %7651 = vmatpush1.bf16.msra.mxu1 %v10941_v18 }
 0x41c   : > { %7653 = vmatprep.subr.bf16.mxu1 %v10949_v27 }
 0x41f   : > { %7655 = vmatpush1.bf16.msra.mxu1 %v10953_v34 }
 0x420   : > { %7657 = vmatprep.subr.bf16.mxu1 %v10961_v40 }
 0x423   : > { %7659 = vmatpush1.bf16.msra.mxu1 %v10967_v49 }
 0x424   : > { %7661 = vmatprep.subr.bf16.mxu1 %v10973_v53 }
 0x427   : > { %7663 = vmatpush1.bf16.msra.mxu1 %v10979_v63 }
 0x428   : > { %7665 = vmatprep.subr.bf16.mxu1 %v10985_v1 }
 0x42b   : > { %7667 = vmatpush1.bf16.msra.mxu1 %v10991_v15 }
 0x42c   : > { %7669 = vmatprep.subr.bf16.mxu1 %v10997_v19 }
 0x42f   : > { %7671 = vmatpush1.bf16.msra.mxu1 %v11003_v32 }
 0x430   : > { %7673 = vmatprep.subr.bf16.mxu1 %v11009_v36 }
 0x433   : > { %7675 = vmatpush1.bf16.msra.mxu1 %v11015_v50 }
 0x434   : > { %7677 = vmatprep.subr.bf16.mxu1 %v11021_v54 }
 0x437   : > { %7679 = vmatpush1.bf16.msra.mxu1 %v11027_v5 }
 0x438   : > { %7681 = vmatprep.subr.bf16.mxu1 %v11033_v10 }
 0x43b   : > { %7683 = vmatpush1.bf16.msra.mxu1 %v11039_v30 }
 0x43c   : > { %7685 = vmatprep.subr.bf16.mxu1 %v11045_v37 }
 0x43f   : > { %7687 = vmatpush1.bf16.msra.mxu1 %v11051_v58 }
 0x440   : > { %7689 = vmatprep.subr.bf16.mxu1 %v11057_v62  ;;  %v1078_v62 = vld [vmem:[#allocation16 + $0x8] sm:$0xff] }
 0x443   : > { %7691 = vmatpush1.bf16.msra.mxu1 %v11067_v29  ;;  %v1136_v29 = vld [vmem:[#allocation16 + $0x1d8] sm:$0xff] }
 0x444   : > { %7693 = vmatprep.subr.bf16.mxu1 %v11073_v41  ;;  %v1129_v41 = vld [vmem:[#allocation16 + $0x1a0] sm:$0xff] }
 0x447   : > { %7695 = vmatpush1.bf16.msra.mxu1 %v11079_v61 }
 0x448   : > { %7697 = vmatprep.subr.bf16.mxu1 %v11085_v11  ;;  %v1125_v11 = vld [vmem:[#allocation16 + $0x180] sm:$0xff] }
 0x44b   : > { %7699 = vmatpush1.bf16.msra.mxu1 %v11091_v38 }
 0x44c   : > { %7701 = vmatprep.subr.bf16.mxu1 %v11097_v47  ;;  %v1121_v47 = vld [vmem:[#allocation16 + $0x160] sm:$0xff] }
 0x44f   : > { %7703 = vmatpush1.bf16.msra.mxu1 %v11103_v3 }
 0x450   : > { %7705 = vmatprep.subr.bf16.mxu1 %v11109_v31  ;;  %v1117_v31 = vld [vmem:[#allocation16 + $0x140] sm:$0xff] }
 0x453   : > { %7707 = vmatpush1.bf16.msra.mxu1 %v11115_v55 }
 0x454   : > { %7773 = vmatprep.subr.bf16.mxu1 %v11121_v7 }
 0x456   : > { %2525 = vmatmul.mubr.f32.vlgmr.msra.gmra.mrb[14].mxu1 %v11666_v26 }
 0x457   : > { %7775 = vmatpush1.bf16.msra.mxu1 %v11127_v12  ;;  %2666 = vmatprep.mubr.f32.mxu1 %v11950_v25  ;;  %v11998_v12 = vpack.c.bf16 %v1112_v60, %v1110_v39  ;;  %v1120_v60 = vld [vmem:[#allocation16 + $0x158] sm:$0xff] }
 0x458   : > { %7777 = vmatprep.subr.bf16.mxu1 %v11131_v28  ;;  %v1109_v28 = vld [vmem:[#allocation16 + $0x100] sm:$0xff] }
 0x459   : > { %14526 = vst [vmem:[#allocation340_spill] sm:$0xff] %v11998_v12  ;;  %7581 = vmatprep.subr.bf16.mxu0 %v11998_v12 }
 0x45b   : > { %7779 = vmatpush1.bf16.msra.mxu1 %v11136_v46  ;;  %v1111_v46 = vld [vmem:[#allocation16 + $0x110] sm:$0xff] }
 0x45c   : > { %7781 = vmatprep.subr.bf16.mxu1 %v11139_v48  ;;  %v12000_v7 = vpack.c.bf16 %v1111_v46, %v1109_v28  ;;  %v1113_v48 = vld [vmem:[#allocation16 + $0x120] sm:$0xff]  ;;  %v14532_v46 = vld [vmem:[#allocation102_spill] sm:$0xff] }
 0x45d   : > { %v1118_v28 = vld [vmem:[#allocation16 + $0x148] sm:$0xff] }
 0x45e   : > { %14527 = vst [vmem:[#allocation341_spill] sm:$0xff] %v12000_v7  ;;  %7583 = vmatpush1.bf16.msra.mxu0 %v12000_v7  ;;  %v12014_v55 = vpack.c.bf16 %v1120_v60, %v1118_v28  ;;  %v1128_v60 = vld [vmem:[#allocation16 + $0x198] sm:$0xff] }
 0x45f   : > { %7783 = vmatpush1.bf16.msra.mxu1 %v11144_v20  ;;  %v14528_v20 = vld [vmem:[#allocation100_spill] sm:$0xff] }
 0x460   : > { %7785 = vmatprep.subr.bf16.mxu1 %v14521_v44  ;;  %v14529_v44 = vld [vmem:[#allocation101_spill] sm:$0xff]  ;;  %14534 = vst [vmem:[#allocation344_spill] sm:$0xff] %v12014_v55 }
 0x463   : > { %7787 = vmatpush1.bf16.msra.mxu1 %v14522_v33  ;;  %v1114_v33 = vld [vmem:[#allocation16 + $0x128] sm:$0xff] }
 0x464   : > { %7789 = vmatprep.subr.bf16.mxu1 %v14523_v56  ;;  %v1116_v56 = vld [vmem:[#allocation16 + $0x138] sm:$0xff] }
 0x467   : > { %7791 = vmatpush1.bf16.msra.mxu1 %v14524_v52  ;;  %v12006_v52 = vpack.c.bf16 %v1116_v56, %v1114_v33  ;;  %v1124_v56 = vld [vmem:[#allocation16 + $0x178] sm:$0xff] }
 0x468   : > { %7793 = vmatprep.subr.bf16.mxu1 %v14525_v35  ;;  %v1115_v35 = vld [vmem:[#allocation16 + $0x130] sm:$0xff] }
 0x469   : > { %14530 = vst [vmem:[#allocation342_spill] sm:$0xff] %v12006_v52  ;;  %v12008_v39 = vpack.c.bf16 %v1115_v35, %v1113_v48  ;;  %7585 = vmatprep.subr.bf16.mxu0 %v12006_v52  ;;  %v14536_v48 = vld [vmem:[#allocation104_spill] sm:$0xff]  ;;  %v1122_v35 = vld [vmem:[#allocation16 + $0x168] sm:$0xff] }
 0x46a   : > { %v12022_v3 = vpack.c.bf16 %v1124_v56, %v1122_v35  ;;  %v1132_v56 = vld [vmem:[#allocation16 + $0x1b8] sm:$0xff] }
 0x46b   : > { %7795 = vmatpush1.bf16.msra.mxu1 %v14528_v20  ;;  %14531 = vst [vmem:[#allocation343_spill] sm:$0xff] %v12008_v39  ;;  %7587 = vmatpush1.bf16.msra.mxu0 %v12008_v39  ;;  %v14533_v20 = vld [vmem:[#allocation103_spill] sm:$0xff] }
 0x46c   : > { %7797 = vmatprep.subr.bf16.mxu1 %v14529_v44  ;;  %v1119_v44 = vld [vmem:[#allocation16 + $0x150] sm:$0xff]  ;;  %7589 = vmatprep.subr.bf16.mxu0 %v12014_v55  ;;  %14538 = vst [vmem:[#allocation346_spill] sm:$0xff] %v12022_v3 }
 0x46d   : > { %v12016_v33 = vpack.c.bf16 %v1119_v44, %v1117_v31  ;;  %v14540_v31 = vld [vmem:[#allocation106_spill] sm:$0xff] }
 0x46e   : > { %v1126_v44 = vld [vmem:[#allocation16 + $0x188] sm:$0xff] }
 0x46f   : > { %7799 = vmatpush1.bf16.msra.mxu1 %v14532_v46  ;;  %14535 = vst [vmem:[#allocation345_spill] sm:$0xff] %v12016_v33  ;;  %7591 = vmatpush1.bf16.msra.mxu0 %v12016_v33  ;;  %v14537_v46 = vld [vmem:[#allocation105_spill] sm:$0xff]  ;;  %v12030_v38 = vpack.c.bf16 %v1128_v60, %v1126_v44 }
 0x470   : > { %7801 = vmatprep.subr.bf16.mxu1 %v14533_v20  ;;  %v1123_v20 = vld [vmem:[#allocation16 + $0x170] sm:$0xff]  ;;  %7593 = vmatprep.subr.bf16.mxu0 %v12022_v3  ;;  %v1134_v44 = vld [vmem:[#allocation16 + $0x1c8] sm:$0xff] }
 0x471   : > { %v12024_v28 = vpack.c.bf16 %v1123_v20, %v1121_v47  ;;  %14542 = vst [vmem:[#allocation348_spill] sm:$0xff] %v12030_v38  ;;  %v14544_v47 = vld [vmem:[#allocation108_spill] sm:$0xff]  ;;  %v1130_v20 = vld [vmem:[#allocation16 + $0x1a8] sm:$0xff] }
 0x472   : > { %v12038_v61 = vpack.c.bf16 %v1132_v56, %v1130_v20  ;;  %v14551_v56 = vld [vmem:[#allocation111_spill] sm:$0xff] }
 0x473   : > { %7803 = vmatpush1.bf16.msra.mxu1 %v14536_v48  ;;  %14539 = vst [vmem:[#allocation347_spill] sm:$0xff] %v12024_v28  ;;  %7595 = vmatpush1.bf16.msra.mxu0 %v12024_v28  ;;  %v14541_v48 = vld [vmem:[#allocation107_spill] sm:$0xff]  ;;  %v14549_v28 = vld [vmem:[#allocation110_spill] sm:$0xff] }
 0x474   : > { %7805 = vmatprep.subr.bf16.mxu1 %v14537_v46  ;;  %v1127_v46 = vld [vmem:[#allocation16 + $0x190] sm:$0xff]  ;;  %7597 = vmatprep.subr.bf16.mxu0 %v12030_v38  ;;  %14546 = vst [vmem:[#allocation350_spill] sm:$0xff] %v12038_v61  ;;  %v12043_v38 = vpack.c.bf16 %v1136_v29, %v1134_v44  ;;  %v14553_v29 = vld [vmem:[#allocation112_spill] sm:$0xff] }
 0x475   : > { %v12032_v35 = vpack.c.bf16 %v1127_v46, %v1125_v11  ;;  %v1133_v11 = vld [vmem:[#allocation16 + $0x1c0] sm:$0xff]  ;;  %v1135_v46 = vld [vmem:[#allocation16 + $0x1d0] sm:$0xff]  ;;  %v12054_v44 = vld [vmem:[#allocation14] sm:$0xff] }
 0x476   : > { %14548 = vst [vmem:[#allocation352_spill] sm:$0xff] %v12043_v38  ;;  %v12047_v20 = vpack.c.bf16 %v1135_v46, %v1133_v11  ;;  %v14555_v11 = vld [vmem:[#allocation113_spill] sm:$0xff] }
 0x477   : > { %7807 = vmatpush1.bf16.msra.mxu1 %v14540_v31  ;;  %14543 = vst [vmem:[#allocation349_spill] sm:$0xff] %v12032_v35  ;;  %7599 = vmatpush1.bf16.msra.mxu0 %v12032_v35  ;;  %v14545_v31 = vld [vmem:[#allocation109_spill] sm:$0xff]  ;;  %v1140_v35 = vld [vmem:[#allocation16 + $0x1f8] sm:$0xff] }
 0x478   : > { %7809 = vmatprep.subr.bf16.mxu1 %v14541_v48  ;;  %v1131_v48 = vld [vmem:[#allocation16 + $0x1b0] sm:$0xff]  ;;  %7601 = vmatprep.subr.bf16.mxu0 %v12038_v61  ;;  %14550 = vst [vmem:[#allocation353_spill] sm:$0xff] %v12047_v20  ;;  %v1080_v61 = vld [vmem:[#allocation16 + $0x18] sm:$0xff] }
 0x479   : > { %v12040_v60 = vpack.c.bf16 %v1131_v48, %v1129_v41  ;;  %v1137_v48 = vld [vmem:[#allocation16 + $0x1e0] sm:$0xff]  ;;  %v12061_v46 = vpack.c.bf16 %v1080_v61, %v1078_v62 }
 0x47b   : > { %7811 = vmatpush1.bf16.msra.mxu1 %v14544_v47  ;;  %14547 = vst [vmem:[#allocation351_spill] sm:$0xff] %v12040_v60  ;;  %v1138_v47 = vld [vmem:[#allocation16 + $0x1e8] sm:$0xff]  ;;  %7603 = vmatpush1.bf16.msra.mxu0 %v12040_v60  ;;  %14556 = vst [vmem:[#allocation356_spill] sm:$0xff] %v12061_v46 }
 0x47c   : > { %7813 = vmatprep.subr.bf16.mxu1 %v14545_v31  ;;  %7605 = vmatprep.subr.bf16.mxu0 %v12043_v38  ;;  %v12051_v41 = vpack.c.bf16 %v1140_v35, %v1138_v47  ;;  %v1139_v31 = vld [vmem:[#allocation16 + $0x1f0] sm:$0xff]  ;;  %v14557_v35 = vld [vmem:[#allocation252_spill] sm:$0xff] }
 0x47d   : > { %v12065_v47 = vrot.slane %v12054_v44, %v14557_v35  ;;  %v14560_v38 = vld [vmem:[#allocation254_spill] sm:$0xff] }
 0x47e   : > { %14552 = vst [vmem:[#allocation354_spill] sm:$0xff] %v12051_v41 }
 0x47f   : > { %7815 = vmatpush1.bf16.msra.mxu1 %v14549_v28  ;;  %7607 = vmatpush1.bf16.msra.mxu0 %v12047_v20  ;;  %v12057_v28 = vpack.c.bf16 %v1139_v31, %v1137_v48  ;;  %14558 = vst [vmem:[#allocation252_spill] sm:$0xff] %v12065_v47  ;;  %v14562_v31 = vld [vmem:[#allocation115_spill] sm:$0xff]  ;;  %v14564_v20 = vld [vmem:[#allocation117_spill] sm:$0xff] }
 0x480   : > { %7817 = vmatprep.subr.bf16.mxu1 %v14551_v56  ;;  %7609 = vmatprep.subr.bf16.mxu0 %v12051_v41  ;;  %v14559_v56 = vld [vmem:[#allocation114_spill] sm:$0xff]  ;;  %v14563_v41 = vld [vmem:[#allocation116_spill] sm:$0xff] }
 0x481   : > { %14554 = vst [vmem:[#allocation355_spill] sm:$0xff] %v12057_v28 }
 0x483   : > { %7819 = vmatpush1.bf16.msra.mxu1 %v14553_v29  ;;  %v12070_v29 = vrot.slane %v12054_v44, %v14560_v38  ;;  %7611 = vmatpush1.bf16.msra.mxu0 %v12057_v28  ;;  %v14565_v28 = vld [vmem:[#allocation118_spill] sm:$0xff] }
 0x484   : > { %7821 = vmatprep.subr.bf16.mxu1 %v14555_v11  ;;  %7613 = vmatprep.subr.bf16.mxu0 %v12061_v46  ;;  %v14567_v46 = vld [vmem:[#allocation120_spill] sm:$0xff] }
 0x485   : > { %14561 = vst [vmem:[#allocation254_spill] sm:$0xff] %v12070_v29 }
 0x487   : > { %7823 = vmatpush1.bf16.msra.mxu1 %v14559_v56 }
 0x488   : > { %7825 = vmatprep.subr.bf16.mxu1 %v14562_v31  ;;  %v14566_v31 = vld [vmem:[#allocation119_spill] sm:$0xff] }
 0x489   : > { %v1749_v48 = vpop.f32.mrb[4].mxu0 }
 0x48a   : > { %v1750_v61 = vadd.f32 %v1749_v48, %v12065_v47  ;;  %v1751_v62 = vpop.f32.mrb[5].mxu0  ;;  %v14568_v48 = vld [vmem:[#allocation137_spill] sm:$0xff]  ;;  %v14574_v47 = vld [vmem:[#allocation143_spill] sm:$0xff] }
 0x48b   : > { %v1752_v11 = vadd.f32 %v1751_v62, %v12070_v29  ;;  %7827 = vmatpush1.bf16.msra.mxu1 %v14563_v41  ;;  %v14569_v62 = vld [vmem:[#allocation138_spill] sm:$0xff]  ;;  %v14575_v29 = vld [vmem:[#allocation251_spill] sm:$0xff]  ;;  %v14585_v41 = vld [vmem:[#allocation152_spill] sm:$0xff] }
 0x48c   : > { %v1821_v56 = vadd.f32 %v11927_v45, %v1750_v61  ;;  %7829 = vmatprep.subr.bf16.mxu1 %v14564_v20  ;;  %v14570_v45 = vld [vmem:[#allocation139_spill] sm:$0xff] }
 0x48d   : > { %v1823_v60 = vadd.f32 %v11933_v24, %v1752_v11  ;;  %v14571_v24 = vld [vmem:[#allocation140_spill] sm:$0xff]  ;;  %v14572_v11 = vld [vmem:[#allocation141_spill] sm:$0xff] }
 0x48f   : > { %v6394_v3 = vmul.f32 -1.442695, %v1823_v60  ;;  %7831 = vmatpush1.bf16.msra.mxu1 %v14565_v28  ;;  %v14581_v28 = vld [vmem:[#allocation148_spill] sm:$0xff] }
 0x490   : > { %7833 = vmatprep.subr.bf16.mxu1 %v14566_v31 }
 0x491   : > { %9987 = vpow2.f32 %v6394_v3  ;;  %v14573_v3 = vld [vmem:[#allocation142_spill] sm:$0xff] }
 0x492   : > { %9989 = vtanh.f32 %v1821_v56 }
 0x493   : > { %7835 = vmatpush1.bf16.msra.mxu1 %v14567_v46  ;;  %v14576_v46 = vld [vmem:[#allocation144_spill] sm:$0xff] }
 0x494   : > { %7869 = vmatprep.subr.bf16.mxu1 %v14568_v48  ;;  %v1658_v48 = vsub.s32 2, %v14575_v29 }
 0x496   : > { %2667 = vmatmul.mubr.f32.vlgmr.msra.gmra.mrb[16].mxu1 %v11666_v26 }
 0x497   : > { %7871 = vmatpush1.bf16.msra.mxu1 %v14569_v62  ;;  %2846 = vmatprep.mubr.f32.mxu1 %v14353_v2  ;;  %v14577_v62 = vld [vmem:[#allocation145_spill] sm:$0xff] }
 0x498   : > { %7873 = vmatprep.subr.bf16.mxu1 %v14570_v45  ;;  %v12097_v45 = vrot.slane %v12054_v44, %v1658_v48  ;;  %v14584_v48 = vld [vmem:[#allocation151_spill] sm:$0xff] }
 0x49a   : > { %14578 = vst [vmem:[#allocation251_spill] sm:$0xff] %v12097_v45 }
 0x49b   : > { %v9988_v61 = vpop.eup %9987  ;;  %7875 = vmatpush1.bf16.msra.mxu1 %v14571_v24  ;;  %v14579_v24 = vld [vmem:[#allocation146_spill] sm:$0xff] }
 0x49c   : > { %v2253_v60 = vadd.f32 1.0, %v9988_v61  ;;  %7877 = vmatprep.subr.bf16.mxu1 %v14572_v11  ;;  %v9990_v31 = vpop.eup %9989  ;;  %v14580_v11 = vld [vmem:[#allocation147_spill] sm:$0xff] }
 0x49e   : > { %9991 = vrcp.f32 %v2253_v60 }
 0x49f   : > { %7879 = vmatpush1.bf16.msra.mxu1 %v14573_v3 }
 0x4a0   : > { %7881 = vmatprep.subr.bf16.mxu1 %v14574_v47 }
 0x4a3   : > { %7883 = vmatpush1.bf16.msra.mxu1 %v14576_v46  ;;  %v14582_v46 = vld [vmem:[#allocation149_spill] sm:$0xff] }
 0x4a4   : > { %7885 = vmatprep.subr.bf16.mxu1 %v14577_v62  ;;  %v14583_v62 = vld [vmem:[#allocation150_spill] sm:$0xff] }
 0x4a7   : > { %7887 = vmatpush1.bf16.msra.mxu1 %v14579_v24  ;;  %v14586_v24 = vld [vmem:[#allocation153_spill] sm:$0xff] }
 0x4a8   : > { %v9992_v61 = vpop.eup %9991  ;;  %7889 = vmatprep.subr.bf16.mxu1 %v14580_v11 }
 0x4a9   : > { %v1962_v56 = vpop.f32.mrb[8].mxu1  ;;  %v2263_v60 = vmul.f32 %v9992_v61, %v9990_v31  ;;  %v1644_v31 = vld [vmem:[#allocation3 + $0x8] sm:$0xff] }
 0x4aa   : > { %v9736_v3 = vadd.f32 %v1962_v56, %v12097_v45  ;;  %v1964_v47 = vpop.f32.mrb[9].mxu1 }
 0x4ab   : > { %7891 = vmatpush1.bf16.msra.mxu1 %v14581_v28 }
 0x4ac   : > { %v6395_v20 = vmul.f32 -1.442695, %v9736_v3  ;;  %7893 = vmatprep.subr.bf16.mxu1 %v14582_v46 }
 0x4ae   : > { %9993 = vpow2.f32 %v6395_v20 }
 0x4af   : > { %7895 = vmatpush1.bf16.msra.mxu1 %v14583_v62  ;;  %v1674_v62 = vsub.s32 6, %v14575_v29 }
 0x4b0   : > { %7897 = vmatprep.subr.bf16.mxu1 %v14584_v48  ;;  %v1666_v48 = vsub.s32 4, %v14575_v29 }
 0x4b3   : > { %7899 = vmatpush1.bf16.msra.mxu1 %v14585_v41  ;;  %v1670_v41 = vsub.s32 5, %v14575_v29 }
 0x4b4   : > { %7901 = vmatprep.subr.bf16.mxu1 %v14586_v24  ;;  %v12115_v24 = vrot.slane %v12054_v44, %v1674_v62 }
 0x4b6   : > { %14587 = vst [vmem:[#allocation357_spill] sm:$0xff] %v12115_v24 }
 0x4b8   : > { %v9994_v11 = vpop.eup %9993 }
 0x4b9   : > { %v2259_v58 = vadd.f32 1.0, %v9994_v11  ;;  %v12121_v11 = vrot.slane %v12054_v44, %v1670_v41 }
 0x4bb   : > { %9995 = vrcp.f32 %v2259_v58  ;;  %v12118_v58 = vrot.slane %v12054_v44, %v1666_v48  ;;  %14588 = vst [vmem:[#allocation358_spill] sm:$0xff] %v12121_v11  ;;  %v1662_v48 = vsub.s32 3, %v14575_v29 }
 0x4bd   : > { %v12130_v41 = vrot.slane %v12054_v44, %v1662_v48 }
 0x4bf   : > { %14589 = vst [vmem:[#allocation359_spill] sm:$0xff] %v12130_v41 }
 0x4c5   : > { %v9996_v61 = vpop.eup %9995 }
 0x4c6   : > { %v2262_v56 = vmul.f32 %v9996_v61, %v1644_v31 }
 0x4c8   : > { %v12108_v45 = vadd.f32 %v2263_v60, %v2262_v56 }
 0x4c9   : > { %v6527_v3 = vpop.f32.mrb[10].mxu1 }
 0x4ca   : > { %v6528_v28 = vpop.f32.mrb[11].mxu1  ;;  %2446 = vst [vmem:[#allocation3 + $0x8] sm:$0xff] %v12108_v45 }
 0x4cb   : > { %v6529_v20 = vadd.f32 %v6528_v28, %v6527_v3 }
 0x4cd   : > { %v2176_v60 = vadd.f32 %v6529_v20, %v12115_v24  ;;  %v9737_v20 = vadd.f32 %v1964_v47, %v12130_v41 }
 0x4e9   : > { %v2104_v31 = vpop.f32.mrb[6].mxu0  ;;  %v2245_v61 = vpop.f32.mrb[12].mxu1 }
 0x4ea   : > { %v9738_v28 = vadd.f32 %v2104_v31, %v12118_v58  ;;  %v12125_v56 = vadd.f32 %v2245_v61, %v2176_v60  ;;  %v2106_v3 = vpop.f32.mrb[7].mxu0  ;;  %v6842_v46 = vpop.f32.mrb[13].mxu1 }
 0x4eb   : > { %v9739_v33 = vadd.f32 %v2106_v3, %v12121_v11 }
 0x4ec   : > { %v6396_v62 = vmul.f32 -1.442695, %v9738_v28  ;;  %v1077_v28 = vld [vmem:[#allocation16] sm:$0xff] }
 0x4ed   : > { %v6397_v37 = vmul.f32 -1.442695, %v9739_v33  ;;  %v1079_v33 = vld [vmem:[#allocation16 + $0x10] sm:$0xff] }
 0x4ee   : > { %9997 = vpow2.f32 %v6396_v62  ;;  %v1082_v62 = vld [vmem:[#allocation16 + $0x28] sm:$0xff]  ;;  %v12134_v48 = vpack.c.bf16 %v1079_v33, %v1077_v28  ;;  %v1092_v33 = vld [vmem:[#allocation16 + $0x78] sm:$0xff] }
 0x4ef   : > { %9999 = vpow2.f32 %v6397_v37  ;;  %v1084_v37 = vld [vmem:[#allocation16 + $0x38] sm:$0xff]  ;;  %v1090_v28 = vld [vmem:[#allocation16 + $0x68] sm:$0xff] }
 0x4f0   : > { %10001 = vtanh.f32 %v9737_v20  ;;  %14590 = vst [vmem:[#allocation360_spill] sm:$0xff] %v12134_v48  ;;  %v12138_v41 = vpack.c.bf16 %v1084_v37, %v1082_v62  ;;  %v1086_v20 = vld [vmem:[#allocation16 + $0x48] sm:$0xff]  ;;  %v1089_v62 = vld [vmem:[#allocation16 + $0x60] sm:$0xff]  ;;  %v1091_v37 = vld [vmem:[#allocation16 + $0x70] sm:$0xff] }
 0x4f2   : > { %14591 = vst [vmem:[#allocation361_spill] sm:$0xff] %v12138_v41 }
 0x4f8   : > { %v9998_v24 = vpop.eup %9997 }
 0x4f9   : > { %v10000_v55 = vpop.eup %9999  ;;  %v2269_v31 = vadd.f32 1.0, %v9998_v24  ;;  %v1081_v24 = vld [vmem:[#allocation16 + $0x20] sm:$0xff] }
 0x4fa   : > { %v2275_v60 = vadd.f32 1.0, %v10000_v55  ;;  %v10002_v46 = vpop.eup %10001  ;;  %v1083_v55 = vld [vmem:[#allocation16 + $0x30] sm:$0xff] }
 0x4fb   : > { %10003 = vrcp.f32 %v2269_v31  ;;  %v1088_v31 = vld [vmem:[#allocation16 + $0x58] sm:$0xff] }
 0x4fc   : > { %10005 = vrcp.f32 %v2275_v60  ;;  %v12142_v60 = vpack.c.bf16 %v1083_v55, %v1081_v24  ;;  %v1096_v24 = vld [vmem:[#allocation16 + $0x98] sm:$0xff]  ;;  %v12155_v55 = vpack.c.bf16 %v1091_v37, %v1089_v62  ;;  %v1102_v62 = vld [vmem:[#allocation16 + $0xc8] sm:$0xff] }
 0x4fd   : > { %v1104_v37 = vld [vmem:[#allocation16 + $0xd8] sm:$0xff] }
 0x4fe   : > { %14592 = vst [vmem:[#allocation362_spill] sm:$0xff] %v12142_v60  ;;  %14596 = vst [vmem:[#allocation366_spill] sm:$0xff] %v12155_v55 }
 0x505   : > { %v10004_v61 = vpop.eup %10003 }
 0x506   : > { %v10006_v3 = vpop.eup %10005  ;;  %v2279_v29 = vmul.f32 %v10004_v61, %v10002_v46  ;;  %v1085_v46 = vld [vmem:[#allocation16 + $0x40] sm:$0xff]  ;;  %v1087_v61 = vld [vmem:[#allocation16 + $0x50] sm:$0xff] }
 0x507   : > { %v2278_v44 = vmul.f32 %v11946_v22, %v10006_v3  ;;  %v12146_v22 = vpack.c.bf16 %v1088_v31, %v1086_v20  ;;  %v12149_v3 = vpack.c.bf16 %v1087_v61, %v1085_v46  ;;  %v1093_v31 = vld [vmem:[#allocation16 + $0x80] sm:$0xff]  ;;  %v1098_v46 = vld [vmem:[#allocation16 + $0xa8] sm:$0xff]  ;;  %v1100_v61 = vld [vmem:[#allocation16 + $0xb8] sm:$0xff] }
 0x509   : > { %v12136_v47 = vadd.f32 %v2279_v29, %v2278_v44  ;;  %14593 = vst [vmem:[#allocation363_spill] sm:$0xff] %v12146_v22  ;;  %14594 = vst [vmem:[#allocation364_spill] sm:$0xff] %v12149_v3  ;;  %v12152_v29 = vpack.c.bf16 %v1092_v33, %v1090_v28  ;;  %v1094_v44 = vld [vmem:[#allocation16 + $0x88] sm:$0xff]  ;;  %v12164_v33 = vpack.c.bf16 %v1100_v61, %v1098_v46 }
 0x50a   : > { %v12158_v20 = vpack.c.bf16 %v1096_v24, %v1094_v44  ;;  %v12170_v24 = vpack.c.bf16 %v1104_v37, %v1102_v62  ;;  %v6400_v62 = vld [vmem:[%s10902_s19 + $0x40] sm:$0xff] }
 0x50b   : > { %2346 = vmatmul.mubr.f32.vlgmr.msra.gmra.mrb[8].mxu0 %v12136_v47  ;;  %14595 = vst [vmem:[#allocation365_spill] sm:$0xff] %v12152_v29  ;;  %14599 = vst [vmem:[#allocation369_spill] sm:$0xff] %v12164_v33 }
 0x50c   : > { %7615 = vmatpush1.bf16.msra.mxu0 %v12134_v48  ;;  %2416 = vmatprep.mubr.f32.mxu0 %v14353_v2  ;;  %14597 = vst [vmem:[#allocation367_spill] sm:$0xff] %v12158_v20  ;;  %14601 = vst [vmem:[#allocation371_spill] sm:$0xff] %v12170_v24 }
 0x50d   : > { %7617 = vmatprep.subr.bf16.mxu0 %v12138_v41 }
 0x510   : > { %7619 = vmatpush1.bf16.msra.mxu0 %v12142_v60  ;;  %v1095_v60 = vld [vmem:[#allocation16 + $0x90] sm:$0xff] }
 0x511   : > { %7621 = vmatprep.subr.bf16.mxu0 %v12146_v22  ;;  %v12161_v28 = vpack.c.bf16 %v1095_v60, %v1093_v31  ;;  %v1097_v22 = vld [vmem:[#allocation16 + $0xa0] sm:$0xff]  ;;  %v1103_v60 = vld [vmem:[#allocation16 + $0xd0] sm:$0xff]  ;;  %v1106_v31 = vld [vmem:[#allocation16 + $0xe8] sm:$0xff] }
 0x513   : > { %14598 = vst [vmem:[#allocation368_spill] sm:$0xff] %v12161_v28 }
 0x514   : > { %7623 = vmatpush1.bf16.msra.mxu0 %v12149_v3  ;;  %v1099_v3 = vld [vmem:[#allocation16 + $0xb0] sm:$0xff] }
 0x515   : > { %7625 = vmatprep.subr.bf16.mxu0 %v12152_v29  ;;  %v12167_v44 = vpack.c.bf16 %v1099_v3, %v1097_v22  ;;  %v1108_v29 = vld [vmem:[#allocation16 + $0xf8] sm:$0xff]  ;;  %v1107_v22 = vld [vmem:[#allocation16 + $0xf0] sm:$0xff] }
 0x516   : > { %v12176_v61 = vpack.c.bf16 %v1108_v29, %v1106_v31 }
 0x517   : > { %14600 = vst [vmem:[#allocation370_spill] sm:$0xff] %v12167_v44 }
 0x518   : > { %7627 = vmatpush1.bf16.msra.mxu0 %v12155_v55  ;;  %v1101_v55 = vld [vmem:[#allocation16 + $0xc0] sm:$0xff]  ;;  %14603 = vst [vmem:[#allocation373_spill] sm:$0xff] %v12176_v61 }
 0x519   : > { %7629 = vmatprep.subr.bf16.mxu0 %v12158_v20  ;;  %v12173_v46 = vpack.c.bf16 %v1103_v60, %v1101_v55  ;;  %v14606_v60 = vld [vmem:[#allocation32_spill] sm:$0xff] }
 0x51b   : > { %14602 = vst [vmem:[#allocation372_spill] sm:$0xff] %v12173_v46 }
 0x51c   : > { %7631 = vmatpush1.bf16.msra.mxu0 %v12161_v28  ;;  %v1105_v28 = vld [vmem:[#allocation16 + $0xe0] sm:$0xff] }
 0x51d   : > { %7633 = vmatprep.subr.bf16.mxu0 %v12164_v33  ;;  %v12179_v3 = vpack.c.bf16 %v1107_v22, %v1105_v28  ;;  %v14607_v28 = vld [vmem:[#allocation35_spill] sm:$0xff]  ;;  %v14608_v22 = vld [vmem:[#allocation36_spill] sm:$0xff] }
 0x51f   : > { %14604 = vst [vmem:[#allocation374_spill] sm:$0xff] %v12179_v3 }
 0x520   : > { %7635 = vmatpush1.bf16.msra.mxu0 %v12167_v44  ;;  %v14605_v44 = vld [vmem:[#allocation31_spill] sm:$0xff] }
 0x521   : > { %7637 = vmatprep.subr.bf16.mxu0 %v12170_v24 }
 0x524   : > { %7639 = vmatpush1.bf16.msra.mxu0 %v12173_v46  ;;  %v14610_v46 = vld [vmem:[#allocation39_spill] sm:$0xff] }
 0x525   : > { %7641 = vmatprep.subr.bf16.mxu0 %v12176_v61  ;;  %v14609_v61 = vld [vmem:[#allocation38_spill] sm:$0xff] }
 0x528   : > { %7643 = vmatpush1.bf16.msra.mxu0 %v12179_v3  ;;  %v6399_v3 = vld [vmem:[%s10902_s19 + $0x38] sm:$0xff] }
 0x529   : > { %v2526_v37 = vpop.f32.mrb[14].mxu1  ;;  %7709 = vmatprep.subr.bf16.mxu0 %v14605_v44  ;;  %v14611_v44 = vld [vmem:[#allocation40_spill] sm:$0xff] }
 0x52a   : > { %v2528_v55 = vpop.f32.mrb[15].mxu1  ;;  %v2743_v24 = vadd.f32 %v6399_v3, %v2526_v37  ;;  %v14619_v3 = vld [vmem:[#allocation54_spill] sm:$0xff] }
 0x52b   : > { %2417 = vmatmul.mubr.f32.vlgmr.msra.gmra.mrb[8].mxu0 %v12108_v45  ;;  %v2744_v29 = vadd.f32 %v6400_v62, %v2528_v55  ;;  %v14612_v45 = vld [vmem:[#allocation41_spill] sm:$0xff]  ;;  %v14613_v55 = vld [vmem:[#allocation42_spill] sm:$0xff] }
 0x52c   : > { %7711 = vmatpush1.bf16.msra.mxu0 %v14606_v60  ;;  %2595 = vmatprep.mubr.f32.mxu0 %v11950_v25 }
 0x52d   : > { %v6406_v31 = vmul.f32 -1.442695, %v2744_v29  ;;  %7713 = vmatprep.subr.bf16.mxu0 %v14607_v28  ;;  %v14614_v29 = vld [vmem:[#allocation44_spill] sm:$0xff]  ;;  %v14649_v28 = vld [vmem:[#allocation133_spill] sm:$0xff] }
 0x52f   : > { %10007 = vpow2.f32 %v6406_v31  ;;  %v14615_v31 = vld [vmem:[#allocation46_spill] sm:$0xff] }
 0x530   : > { %7715 = vmatpush1.bf16.msra.mxu0 %v14608_v22  ;;  %10009 = vtanh.f32 %v2743_v24  ;;  %v14616_v22 = vld [vmem:[#allocation48_spill] sm:$0xff]  ;;  %v14621_v24 = vld [vmem:[#allocation58_spill] sm:$0xff] }
 0x531   : > { %7717 = vmatprep.subr.bf16.mxu0 %v14609_v61  ;;  %v14617_v61 = vld [vmem:[#allocation50_spill] sm:$0xff] }
 0x534   : > { %7719 = vmatpush1.bf16.msra.mxu0 %v14610_v46  ;;  %v14618_v46 = vld [vmem:[#allocation52_spill] sm:$0xff] }
 0x535   : > { %7721 = vmatprep.subr.bf16.mxu0 %v14611_v44 }
 0x538   : > { %7723 = vmatpush1.bf16.msra.mxu0 %v14612_v45 }
 0x539   : > { %v10008_v62 = vpop.eup %10007  ;;  %7725 = vmatprep.subr.bf16.mxu0 %v14613_v55  ;;  %v14620_v55 = vld [vmem:[#allocation56_spill] sm:$0xff] }
 0x53a   : > { %v2754_v60 = vadd.f32 1.0, %v10008_v62  ;;  %v10010_v44 = vpop.eup %10009  ;;  %v14623_v62 = vld [vmem:[#allocation62_spill] sm:$0xff] }
 0x53c   : > { %10011 = vrcp.f32 %v2754_v60  ;;  %7727 = vmatpush1.bf16.msra.mxu0 %v14614_v29  ;;  %v14622_v60 = vld [vmem:[#allocation60_spill] sm:$0xff]  ;;  %v14647_v29 = vld [vmem:[#allocation131_spill] sm:$0xff] }
 0x53d   : > { %7729 = vmatprep.subr.bf16.mxu0 %v14615_v31  ;;  %v14624_v31 = vld [vmem:[#allocation64_spill] sm:$0xff] }
 0x540   : > { %7731 = vmatpush1.bf16.msra.mxu0 %v14616_v22  ;;  %v14625_v22 = vld [vmem:[#allocation66_spill] sm:$0xff] }
 0x541   : > { %7733 = vmatprep.subr.bf16.mxu0 %v14617_v61  ;;  %v14626_v61 = vld [vmem:[#allocation68_spill] sm:$0xff] }
 0x544   : > { %7735 = vmatpush1.bf16.msra.mxu0 %v14618_v46  ;;  %v14627_v46 = vld [vmem:[#allocation70_spill] sm:$0xff] }
 0x545   : > { %7737 = vmatprep.subr.bf16.mxu0 %v14619_v3  ;;  %v14628_v3 = vld [vmem:[#allocation72_spill] sm:$0xff] }
 0x546   : > { %v10012_v37 = vpop.eup %10011 }
 0x547   : > { %v12202_v45 = vmul.f32 %v10012_v37, %v10010_v44  ;;  %v14629_v44 = vld [vmem:[#allocation74_spill] sm:$0xff]  ;;  %v14630_v37 = vld [vmem:[#allocation76_spill] sm:$0xff] }
 0x548   : > { %7739 = vmatpush1.bf16.msra.mxu0 %v14620_v55  ;;  %v14631_v55 = vld [vmem:[#allocation78_spill] sm:$0xff] }
 0x549   : > { %7741 = vmatprep.subr.bf16.mxu0 %v14621_v24  ;;  %v14632_v24 = vld [vmem:[#allocation80_spill] sm:$0xff] }
 0x54c   : > { %7743 = vmatpush1.bf16.msra.mxu0 %v14622_v60  ;;  %v14633_v60 = vld [vmem:[#allocation82_spill] sm:$0xff] }
 0x54d   : > { %7745 = vmatprep.subr.bf16.mxu0 %v14623_v62  ;;  %v14634_v62 = vld [vmem:[#allocation84_spill] sm:$0xff] }
 0x550   : > { %7747 = vmatpush1.bf16.msra.mxu0 %v14624_v31  ;;  %v14635_v31 = vld [vmem:[#allocation86_spill] sm:$0xff] }
 0x551   : > { %7749 = vmatprep.subr.bf16.mxu0 %v14625_v22  ;;  %v14636_v22 = vld [vmem:[#allocation88_spill] sm:$0xff] }
 0x554   : > { %7751 = vmatpush1.bf16.msra.mxu0 %v14626_v61 }
 0x555   : > { %7753 = vmatprep.subr.bf16.mxu0 %v14627_v46  ;;  %v14637_v46 = vld [vmem:[#allocation121_spill] sm:$0xff] }
 0x558   : > { %7755 = vmatpush1.bf16.msra.mxu0 %v14628_v3 }
 0x559   : > { %7757 = vmatprep.subr.bf16.mxu0 %v14629_v44  ;;  %v14646_v44 = vld [vmem:[#allocation130_spill] sm:$0xff] }
 0x55c   : > { %7759 = vmatpush1.bf16.msra.mxu0 %v14630_v37  ;;  %v14638_v37 = vld [vmem:[#allocation122_spill] sm:$0xff] }
 0x55d   : > { %7761 = vmatprep.subr.bf16.mxu0 %v14631_v55  ;;  %v14644_v55 = vld [vmem:[#allocation128_spill] sm:$0xff] }
 0x560   : > { %7763 = vmatpush1.bf16.msra.mxu0 %v14632_v24  ;;  %v14639_v24 = vld [vmem:[#allocation123_spill] sm:$0xff] }
 0x561   : > { %7765 = vmatprep.subr.bf16.mxu0 %v14633_v60  ;;  %v14640_v60 = vld [vmem:[#allocation124_spill] sm:$0xff] }
 0x564   : > { %7767 = vmatpush1.bf16.msra.mxu0 %v14634_v62  ;;  %v14641_v62 = vld [vmem:[#allocation125_spill] sm:$0xff] }
 0x565   : > { %7769 = vmatprep.subr.bf16.mxu0 %v14635_v31  ;;  %v14642_v31 = vld [vmem:[#allocation126_spill] sm:$0xff] }
 0x568   : > { %7771 = vmatpush1.bf16.msra.mxu0 %v14636_v22  ;;  %v14643_v22 = vld [vmem:[#allocation127_spill] sm:$0xff] }
 0x569   : > { %v12221_v61 = vpop.f32.mrb[16].mxu1  ;;  %7837 = vmatprep.subr.bf16.mxu0 %v14637_v46  ;;  %v14645_v46 = vld [vmem:[#allocation129_spill] sm:$0xff] }
 0x56a   : > { %v12224_v3 = vpop.f32.mrb[17].mxu1 }
 0x56b   : > { %2596 = vmatmul.mubr.f32.vlgmr.msra.gmra.mrb[10].mxu0 %v11666_v26 }
 0x56c   : > { %7839 = vmatpush3.bf16.msra.mxu0 %v14638_v37  ;;  %2737 = vmatprep.mubr.f32.mxu0 %v11950_v25  ;;  %v14648_v37 = vld [vmem:[#allocation132_spill] sm:$0xff] }
 0x56d   : > { %7841 = vmatprep.subr.bf16.mxu0 %v14639_v24  ;;  %v14650_v24 = vld [vmem:[#allocation134_spill] sm:$0xff] }
 0x570   : > { %7843 = vmatpush3.bf16.msra.mxu0 %v14640_v60  ;;  %v14651_v60 = vld [vmem:[#allocation135_spill] sm:$0xff] }
 0x571   : > { %7845 = vmatprep.subr.bf16.mxu0 %v14641_v62  ;;  %v14652_v62 = vld [vmem:[#allocation136_spill] sm:$0xff] }
 0x574   : > { %7847 = vmatpush3.bf16.msra.mxu0 %v14642_v31  ;;  %v14653_v31 = vld [vmem:[#allocation154_spill] sm:$0xff] }
 0x575   : > { %7849 = vmatprep.subr.bf16.mxu0 %v14643_v22 }
 0x578   : > { %7851 = vmatpush3.bf16.msra.mxu0 %v14644_v55  ;;  %v14654_v55 = vld [vmem:[#allocation155_spill] sm:$0xff] }
 0x579   : > { %7853 = vmatprep.subr.bf16.mxu0 %v14645_v46  ;;  %v14655_v46 = vld [vmem:[#allocation156_spill] sm:$0xff] }
 0x57c   : > { %7855 = vmatpush3.bf16.msra.mxu0 %v14646_v44  ;;  %v14656_v44 = vld [vmem:[#allocation157_spill] sm:$0xff] }
 0x57d   : > { %7857 = vmatprep.subr.bf16.mxu0 %v14647_v29  ;;  %v14657_v29 = vld [vmem:[#allocation158_spill] sm:$0xff] }
 0x580   : > { %7859 = vmatpush3.bf16.msra.mxu0 %v14648_v37  ;;  %v14658_v37 = vld [vmem:[#allocation159_spill] sm:$0xff] }
 0x581   : > { %7861 = vmatprep.subr.bf16.mxu0 %v14649_v28  ;;  %v14659_v28 = vld [vmem:[#allocation160_spill] sm:$0xff] }
 0x584   : > { %7863 = vmatpush3.bf16.msra.mxu0 %v14650_v24  ;;  %v14660_v24 = vld [vmem:[#allocation161_spill] sm:$0xff] }
 0x585   : > { %7865 = vmatprep.subr.bf16.mxu0 %v14651_v60  ;;  %v14661_v60 = vld [vmem:[#allocation162_spill] sm:$0xff] }
 0x588   : > { %7867 = vmatpush3.bf16.msra.mxu0 %v14652_v62  ;;  %v14662_v62 = vld [vmem:[#allocation163_spill] sm:$0xff] }
 0x589   : > { %7933 = vmatprep.subr.bf16.mxu0 %v14653_v31  ;;  %v14663_v31 = vld [vmem:[#allocation164_spill] sm:$0xff] }
 0x58b   : > { %2738 = vmatmul.mubr.f32.vlgmr.msra.gmra.mrb[12].mxu0 %v11666_v26  ;;  %v14664_v26 = vld [vmem:[#allocation165_spill] sm:$0xff] }
 0x58c   : > { %7935 = vmatpush1.bf16.msra.mxu0 %v14654_v55  ;;  %v14665_v55 = vld [vmem:[#allocation166_spill] sm:$0xff] }
 0x58d   : > { %7937 = vmatprep.subr.bf16.mxu0 %v14655_v46  ;;  %v14666_v46 = vld [vmem:[#allocation167_spill] sm:$0xff] }
 0x590   : > { %7939 = vmatpush1.bf16.msra.mxu0 %v14656_v44  ;;  %v14667_v44 = vld [vmem:[#allocation168_spill] sm:$0xff] }
 0x591   : > { %7941 = vmatprep.subr.bf16.mxu0 %v14657_v29  ;;  %v14668_v29 = vld [vmem:[#allocation169_spill] sm:$0xff] }
 0x594   : > { %7943 = vmatpush1.bf16.msra.mxu0 %v14658_v37  ;;  %v14669_v37 = vld [vmem:[#allocation217_spill] sm:$0xff] }
 0x595   : > { %7945 = vmatprep.subr.bf16.mxu0 %v14659_v28  ;;  %v14670_v28 = vld [vmem:[#allocation219_spill] sm:$0xff] }
 0x598   : > { %7947 = vmatpush1.bf16.msra.mxu0 %v14660_v24  ;;  %v14671_v24 = vld [vmem:[#allocation221_spill] sm:$0xff] }
 0x599   : > { %7949 = vmatprep.subr.bf16.mxu0 %v14661_v60  ;;  %v14672_v60 = vld [vmem:[#allocation223_spill] sm:$0xff] }
 0x59c   : > { %7951 = vmatpush1.bf16.msra.mxu0 %v14662_v62  ;;  %v14673_v62 = vld [vmem:[#allocation225_spill] sm:$0xff] }
 0x59d   : > { %7953 = vmatprep.subr.bf16.mxu0 %v14663_v31  ;;  %v14674_v31 = vld [vmem:[#allocation227_spill] sm:$0xff] }
 0x5a0   : > { %7955 = vmatpush1.bf16.msra.mxu0 %v14664_v26  ;;  %v14675_v26 = vld [vmem:[#allocation229_spill] sm:$0xff] }
 0x5a1   : > { %7957 = vmatprep.subr.bf16.mxu0 %v14665_v55  ;;  %v14676_v55 = vld [vmem:[#allocation231_spill] sm:$0xff] }
 0x5a4   : > { %7959 = vmatpush1.bf16.msra.mxu0 %v14666_v46  ;;  %v14677_v46 = vld [vmem:[#allocation233_spill] sm:$0xff] }
 0x5a5   : > { %7961 = vmatprep.subr.bf16.mxu0 %v14667_v44  ;;  %v14678_v44 = vld [vmem:[#allocation235_spill] sm:$0xff] }
 0x5a8   : > { %7963 = vmatpush1.bf16.msra.mxu0 %v14668_v29  ;;  %v14679_v29 = vld [vmem:[#allocation237_spill] sm:$0xff] }
 0x5a9   : > { %7965 = vmatprep.subr.bf16.mxu0 %v14669_v37  ;;  %v14680_v37 = vld [vmem:[#allocation239_spill] sm:$0xff] }
 0x5ac   : > { %7967 = vmatpush1.bf16.msra.mxu0 %v14670_v28  ;;  %v14681_v28 = vld [vmem:[#allocation241_spill] sm:$0xff] }
 0x5ad   : > { %7969 = vmatprep.subr.bf16.mxu0 %v14671_v24  ;;  %v14682_v24 = vld [vmem:[#allocation243_spill] sm:$0xff] }
 0x5b0   : > { %7971 = vmatpush1.bf16.msra.mxu0 %v14672_v60  ;;  %v14683_v60 = vld [vmem:[#allocation245_spill] sm:$0xff] }
 0x5b1   : > { %7973 = vmatprep.subr.bf16.mxu0 %v14673_v62  ;;  %v14684_v62 = vld [vmem:[#allocation247_spill] sm:$0xff] }
 0x5b4   : > { %7975 = vmatpush1.bf16.msra.mxu0 %v14674_v31  ;;  %v14685_v31 = vld [vmem:[#allocation185_spill] sm:$0xff] }
 0x5b5   : > { %7977 = vmatprep.subr.bf16.mxu0 %v14675_v26  ;;  %v1141_v26 = vld [vmem:[#allocation17] sm:$0x3] }
 0x5b8   : > { %7979 = vmatpush1.bf16.msra.mxu0 %v14676_v55  ;;  %v12278_v55 = vrot.slane %v1141_v26, %v14557_v35 }
 0x5b9   : > { %7981 = vmatprep.subr.bf16.mxu0 %v14677_v46 }
 0x5ba   : > { %14686 = vst [vmem:[#allocation375_spill] sm:$0xff] %v12278_v55 }
 0x5bc   : > { %7983 = vmatpush1.bf16.msra.mxu0 %v14678_v44 }
 0x5bd   : > { %7985 = vmatprep.subr.bf16.mxu0 %v14679_v29 }
 0x5c0   : > { %7987 = vmatpush1.bf16.msra.mxu0 %v14680_v37 }
 0x5c1   : > { %7989 = vmatprep.subr.bf16.mxu0 %v14681_v28 }
 0x5c4   : > { %7991 = vmatpush1.bf16.msra.mxu0 %v14682_v24 }
 0x5c5   : > { %7993 = vmatprep.subr.bf16.mxu0 %v14683_v60  ;;  %v12283_v60 = vrot.slane %v1141_v26, %v14560_v38 }
 0x5c7   : > { %14687 = vst [vmem:[#allocation376_spill] sm:$0xff] %v12283_v60 }
 0x5c8   : > { %7995 = vmatpush1.bf16.msra.mxu0 %v14684_v62 }
 0x5c9   : > { %7997 = vmatprep.subr.bf16.mxu0 %v14685_v31 }
 0x5fe   : > { %v2418_v44 = vpop.f32.mrb[8].mxu0 }
 0x5ff   : > { %v2434_v29 = vadd.f32 %v12278_v55, %v2418_v44  ;;  %v2420_v37 = vpop.f32.mrb[9].mxu0 }
 0x600   : > { %v2435_v31 = vadd.f32 %v12283_v60, %v2420_v37 }
 0x601   : > { %v2436_v28 = vadd.f32 %v2434_v29, %v12125_v56  ;;  %v6404_v56 = vld [vmem:[%s10902_s19 + $0x60] sm:$0xff] }
 0x602   : > { %v2748_v38 = vadd.f32 %v6404_v56, %v12224_v3 }
 0x603   : > { %v6398_v24 = vmul.f32 -1.442695, %v2436_v28  ;;  %v6403_v28 = vld [vmem:[%s10902_s19 + $0x58] sm:$0xff] }
 0x604   : > { %v2747_v29 = vadd.f32 %v6403_v28, %v12221_v61 }
 0x605   : > { %10013 = vpow2.f32 %v6398_v24  ;;  %v6409_v24 = vmul.f32 -1.442695, %v2748_v38 }
 0x606   : > { %10015 = vtanh.f32 %v2435_v31 }
 0x60f   : > { %v10014_v62 = vpop.eup %10013 }
 0x610   : > { %v2440_v46 = vadd.f32 1.0, %v10014_v62  ;;  %v10016_v35 = vpop.eup %10015  ;;  %v6408_v62 = vmul.f32 -1.442695, %v2747_v29 }
 0x612   : > { %10017 = vrcp.f32 %v2440_v46 }
 0x613   : > { %10019 = vpow2.f32 %v6409_v24 }
 0x614   : > { %10021 = vpow2.f32 %v6408_v62 }
 0x61c   : > { %v10018_v22 = vpop.eup %10017 }
 0x61d   : > { %v12286_v44 = vmul.f32 %v10018_v22, %v10016_v35  ;;  %v10020_v46 = vpop.eup %10019  ;;  %v6401_v22 = vld [vmem:[%s10902_s19 + $0x48] sm:$0xff]  ;;  %v6402_v35 = vld [vmem:[%s10902_s19 + $0x50] sm:$0xff] }
 0x61e   : > { %v10022_v31 = vpop.eup %10021  ;;  %v2776_v37 = vadd.f32 1.0, %v10020_v46  ;;  %v14692_v46 = vld [vmem:[#allocation174_spill] sm:$0xff] }
 0x61f   : > { %2448 = vst [vmem:[%s10925_s4] sm:$0xff] %v12286_v44  ;;  %3005 = vmatprep.mubr.f32.mxu0 %v12286_v44  ;;  %v2770_v26 = vadd.f32 1.0, %v10022_v31  ;;  %v14693_v31 = vld [vmem:[#allocation175_spill] sm:$0xff] }
 0x620   : > { %10023 = vrcp.f32 %v2776_v37 }
 0x621   : > { %10025 = vrcp.f32 %v2770_v26  ;;  %v14695_v26 = vld [vmem:[#allocation176_spill] sm:$0xff] }
 0x62a   : > { %v10024_v61 = vpop.eup %10023 }
 0x62b   : > { %v10026_v3 = vpop.eup %10025  ;;  %v2779_v38 = vmul.f32 %v10024_v61, %v11950_v25  ;;  %v2450_v25 = vld [vmem:[#allocation3] sm:$0xff] }
 0x63e   : > { %v2597_v60 = vpop.f32.mrb[10].mxu0 }
 0x63f   : > { %v2745_v55 = vadd.f32 %v6401_v22, %v2597_v60  ;;  %v2599_v33 = vpop.f32.mrb[11].mxu0  ;;  %v14688_v60 = vld [vmem:[#allocation170_spill] sm:$0xff] }
 0x640   : > { %v2746_v20 = vadd.f32 %v6402_v35, %v2599_v33  ;;  %v14689_v33 = vld [vmem:[#allocation171_spill] sm:$0xff] }
 0x641   : > { %v6407_v41 = vmul.f32 -1.442695, %v2745_v55 }
 0x642   : > { %10027 = vtanh.f32 %v2746_v20  ;;  %v14691_v20 = vld [vmem:[#allocation173_spill] sm:$0xff] }
 0x643   : > { %10029 = vpow2.f32 %v6407_v41  ;;  %v14690_v41 = vld [vmem:[#allocation172_spill] sm:$0xff] }
 0x64c   : > { %v10028_v56 = vpop.eup %10027 }
 0x64d   : > { %v10030_v28 = vpop.eup %10029  ;;  %v2780_v29 = vmul.f32 %v10028_v56, %v10026_v3  ;;  %v14696_v3 = vld [vmem:[#allocation177_spill] sm:$0xff] }
 0x64e   : > { %v2760_v24 = vadd.f32 1.0, %v10030_v28  ;;  %v14697_v28 = vld [vmem:[#allocation178_spill] sm:$0xff] }
 0x64f   : > { %v12298_v62 = vadd.f32 %v2780_v29, %v2779_v38  ;;  %v14698_v38 = vld [vmem:[#allocation179_spill] sm:$0xff]  ;;  %v14699_v29 = vld [vmem:[#allocation180_spill] sm:$0xff] }
 0x650   : > { %10031 = vrcp.f32 %v2760_v24  ;;  %v14700_v24 = vld [vmem:[#allocation181_spill] sm:$0xff] }
 0x651   : > { %2847 = vmatmul.mubr.f32.vlgmr.msra.gmra.mrb[18].mxu1 %v12298_v62 }
 0x652   : > { %7903 = vmatpush1.bf16.msra.mxu1 %v14688_v60  ;;  %2917 = vmatprep.mubr.f32.mxu1 %v14353_v2 }
 0x653   : > { %7905 = vmatprep.subr.bf16.mxu1 %v14689_v33 }
 0x656   : > { %7907 = vmatpush1.bf16.msra.mxu1 %v14690_v41 }
 0x657   : > { %7909 = vmatprep.subr.bf16.mxu1 %v14691_v20 }
 0x65a   : > { %v10032_v55 = vpop.eup %10031  ;;  %7911 = vmatpush1.bf16.msra.mxu1 %v14692_v46 }
 0x65b   : > { %7913 = vmatprep.subr.bf16.mxu1 %v14693_v31  ;;  %v2763_v37 = vmul.f32 %v10032_v55, %v2450_v25  ;;  %v14701_v31 = vld [vmem:[#allocation182_spill] sm:$0xff]  ;;  %v14702_v55 = vld [vmem:[#allocation183_spill] sm:$0xff]  ;;  %v14704_v25 = vld [vmem:[#allocation201_spill] sm:$0xff] }
 0x65d   : > { %v12309_v22 = vadd.f32 %v12202_v45, %v2763_v37  ;;  %v14703_v45 = vld [vmem:[#allocation184_spill] sm:$0xff]  ;;  %v14705_v37 = vld [vmem:[#allocation202_spill] sm:$0xff] }
 0x65e   : > { %7915 = vmatpush1.bf16.msra.mxu1 %v14695_v26  ;;  %v6579_v35 = vpop.f32.mrb[12].mxu0 }
 0x65f   : > { %14694 = vst [vmem:[#allocation170_spill] sm:$0xff] %v12309_v22  ;;  %v6580_v61 = vpop.f32.mrb[13].mxu0  ;;  %7917 = vmatprep.subr.bf16.mxu1 %v14696_v3 }
 0x660   : > { %v6581_v56 = vadd.f32 %v6580_v61, %v6579_v35  ;;  %v14706_v35 = vld [vmem:[#allocation203_spill] sm:$0xff]  ;;  %v14707_v61 = vld [vmem:[#allocation204_spill] sm:$0xff] }
 0x662   : > { %7919 = vmatpush1.bf16.msra.mxu1 %v14697_v28  ;;  %v14715_v28 = vld [vmem:[#allocation212_spill] sm:$0xff] }
 0x663   : > { %7921 = vmatprep.subr.bf16.mxu1 %v14698_v38  ;;  %v14714_v38 = vld [vmem:[#allocation211_spill] sm:$0xff] }
 0x666   : > { %7923 = vmatpush1.bf16.msra.mxu1 %v14699_v29  ;;  %v14708_v29 = vld [vmem:[#allocation205_spill] sm:$0xff] }
 0x667   : > { %7925 = vmatprep.subr.bf16.mxu1 %v14700_v24  ;;  %v14709_v24 = vld [vmem:[#allocation206_spill] sm:$0xff] }
 0x66a   : > { %7927 = vmatpush1.bf16.msra.mxu1 %v14701_v31  ;;  %v14710_v31 = vld [vmem:[#allocation207_spill] sm:$0xff] }
 0x66b   : > { %7929 = vmatprep.subr.bf16.mxu1 %v14702_v55  ;;  %v14711_v55 = vld [vmem:[#allocation208_spill] sm:$0xff] }
 0x66e   : > { %7931 = vmatpush1.bf16.msra.mxu1 %v14703_v45  ;;  %v14712_v45 = vld [vmem:[#allocation209_spill] sm:$0xff] }
 0x66f   : > { %8029 = vmatprep.subr.bf16.mxu1 %v14704_v25  ;;  %v14713_v25 = vld [vmem:[#allocation210_spill] sm:$0xff] }
 0x671   : > { %2918 = vmatmul.mubr.f32.vlgmr.msra.gmra.mrb[18].mxu1 %v12309_v22 }
 0x672   : > { %3147 = vmatprep.mubr.f32.mxu1 %v12286_v44  ;;  %8031 = vmatpush1.bf16.msra.mxu1 %v14705_v37  ;;  %v14716_v37 = vld [vmem:[#allocation213_spill] sm:$0xff] }
 0x673   : > { %8033 = vmatprep.subr.bf16.mxu1 %v14706_v35  ;;  %v14717_v35 = vld [vmem:[#allocation214_spill] sm:$0xff] }
 0x676   : > { %8035 = vmatpush1.bf16.msra.mxu1 %v14707_v61  ;;  %v14718_v61 = vld [vmem:[#allocation215_spill] sm:$0xff] }
 0x677   : > { %8037 = vmatprep.subr.bf16.mxu1 %v14708_v29  ;;  %v14719_v29 = vld [vmem:[#allocation216_spill] sm:$0xff] }
 0x67a   : > { %8039 = vmatpush1.bf16.msra.mxu1 %v14709_v24  ;;  %v14720_v24 = vld [vmem:[#allocation218_spill] sm:$0xff] }
 0x67b   : > { %8041 = vmatprep.subr.bf16.mxu1 %v14710_v31  ;;  %v14721_v31 = vld [vmem:[#allocation220_spill] sm:$0xff] }
 0x67e   : > { %8043 = vmatpush1.bf16.msra.mxu1 %v14711_v55  ;;  %v14722_v55 = vld [vmem:[#allocation222_spill] sm:$0xff] }
 0x67f   : > { %8045 = vmatprep.subr.bf16.mxu1 %v14712_v45  ;;  %v14732_v45 = vld [vmem:[#allocation242_spill] sm:$0xff] }
 0x682   : > { %8047 = vmatpush1.bf16.msra.mxu1 %v14713_v25  ;;  %v14723_v25 = vld [vmem:[#allocation224_spill] sm:$0xff] }
 0x683   : > { %8049 = vmatprep.subr.bf16.mxu1 %v14714_v38  ;;  %v14724_v38 = vld [vmem:[#allocation226_spill] sm:$0xff] }
 0x686   : > { %8051 = vmatpush1.bf16.msra.mxu1 %v14715_v28  ;;  %v14725_v28 = vld [vmem:[#allocation228_spill] sm:$0xff] }
 0x687   : > { %8053 = vmatprep.subr.bf16.mxu1 %v14716_v37  ;;  %v14726_v37 = vld [vmem:[#allocation230_spill] sm:$0xff] }
 0x68a   : > { %8055 = vmatpush1.bf16.msra.mxu1 %v14717_v35  ;;  %v14727_v35 = vld [vmem:[#allocation232_spill] sm:$0xff] }
 0x68b   : > { %8057 = vmatprep.subr.bf16.mxu1 %v14718_v61  ;;  %v14728_v61 = vld [vmem:[#allocation234_spill] sm:$0xff] }
 0x68e   : > { %8059 = vmatpush1.bf16.msra.mxu1 %v14719_v29  ;;  %v14729_v29 = vld [vmem:[#allocation236_spill] sm:$0xff] }
 0x68f   : > { %8061 = vmatprep.subr.bf16.mxu1 %v14720_v24  ;;  %v14730_v24 = vld [vmem:[#allocation238_spill] sm:$0xff] }
 0x692   : > { %8063 = vmatpush1.bf16.msra.mxu1 %v14721_v31  ;;  %v14731_v31 = vld [vmem:[#allocation240_spill] sm:$0xff] }
 0x693   : > { %8065 = vmatprep.subr.bf16.mxu1 %v14722_v55  ;;  %v14733_v55 = vld [vmem:[#allocation244_spill] sm:$0xff] }
 0x696   : > { %8067 = vmatpush1.bf16.msra.mxu1 %v14723_v25  ;;  %v14734_v25 = vld [vmem:[#allocation246_spill] sm:$0xff] }
 0x697   : > { %8069 = vmatprep.subr.bf16.mxu1 %v14724_v38  ;;  %v14735_v38 = vld [vmem:[#allocation248_spill] sm:$0xff] }
 0x69a   : > { %8071 = vmatpush1.bf16.msra.mxu1 %v14725_v28  ;;  %v14736_v28 = vld [vmem:[#allocation249_spill] sm:$0xff] }
 0x69b   : > { %8073 = vmatprep.subr.bf16.mxu1 %v14726_v37  ;;  %v6405_v37 = vld [vmem:[%s10902_s19 + $0x68] sm:$0xff] }
 0x69c   : > { %v2749_v3 = vadd.f32 %v6581_v56, %v6405_v37  ;;  %v14739_v56 = vld [vmem:[#allocation186_spill] sm:$0xff]  ;;  %v14740_v37 = vld [vmem:[#allocation256_spill] sm:$0xff] }
 0x69e   : > { %8075 = vmatpush1.bf16.msra.mxu1 %v14727_v35 }
 0x69f   : > { %8077 = vmatprep.subr.bf16.mxu1 %v14728_v61  ;;  %v14737_v61 = vld [vmem:[#allocation253_spill] sm:$0xff] }
 0x6a2   : > { %8079 = vmatpush1.bf16.msra.mxu1 %v14729_v29 }
 0x6a3   : > { %8081 = vmatprep.subr.bf16.mxu1 %v14730_v24 }
 0x6a6   : > { %8083 = vmatpush1.bf16.msra.mxu1 %v14731_v31  ;;  %v14738_v31 = vld [vmem:[#allocation255_spill] sm:$0xff] }
 0x6a7   : > { %8085 = vmatprep.subr.bf16.mxu1 %v14732_v45 }
 0x6aa   : > { %8087 = vmatpush1.bf16.msra.mxu1 %v14733_v55 }
 0x6ab   : > { %8089 = vmatprep.subr.bf16.mxu1 %v14734_v25 }
 0x6ae   : > { %8091 = vmatpush1.bf16.msra.mxu1 %v14735_v38 }
 0x6af   : > { %8093 = vmatprep.subr.bf16.mxu1 %v14736_v28 }
 0x744   : > { %v2919_v35 = vpop.f32.mrb[18].mxu1 }
 0x745   : > { %v2924_v26 = vadd.f32 %v2919_v35, %v14737_v61  ;;  %v2921_v29 = vpop.f32.mrb[19].mxu1  ;;  %v14751_v35 = vld [vmem:[#allocation192_spill] sm:$0xff] }
 0x746   : > { %v2925_v46 = vadd.f32 %v2921_v29, %v14738_v31  ;;  %v14746_v29 = vld [vmem:[#allocation262_spill] sm:$0xff] }
 0x747   : > { %v2926_v22 = vadd.f32 %v2924_v26, %v2749_v3  ;;  %v14742_v26 = vld [vmem:[#allocation258_spill] sm:$0xff]  ;;  %v14745_v3 = vld [vmem:[#allocation189_spill] sm:$0xff] }
 0x749   : > { %v6410_v24 = vmul.f32 -1.442695, %v2926_v22  ;;  %v14741_v22 = vld [vmem:[#allocation187_spill] sm:$0xff] }
 0x74b   : > { %10033 = vpow2.f32 %v6410_v24  ;;  %v14747_v24 = vld [vmem:[#allocation190_spill] sm:$0xff] }
 0x74c   : > { %10035 = vtanh.f32 %v2925_v46  ;;  %v14744_v46 = vld [vmem:[#allocation260_spill] sm:$0xff] }
 0x755   : > { %v10034_v45 = vpop.eup %10033 }
 0x756   : > { %v2930_v20 = vadd.f32 1.0, %v10034_v45  ;;  %v10036_v25 = vpop.eup %10035  ;;  %v14749_v45 = vld [vmem:[#allocation191_spill] sm:$0xff] }
 0x758   : > { %10037 = vrcp.f32 %v2930_v20  ;;  %v14743_v20 = vld [vmem:[#allocation188_spill] sm:$0xff] }
 0x762   : > { %v10038_v55 = vpop.eup %10037 }
 0x763   : > { %v12358_v38 = vmul.f32 %v10038_v55, %v10036_v25  ;;  %v14748_v55 = vld [vmem:[#allocation264_spill] sm:$0xff]  ;;  %v14750_v25 = vld [vmem:[#allocation266_spill] sm:$0xff] }
 0x765   : > { %3006 = vmatmul.mubr.f32.vlgmr.msra.gmra.mrb[14].mxu0 %v12358_v38  ;;  %3148 = vmatmul.mubr.f32.vlgmr.msra.gmra.mrb[20].mxu1 %v12358_v38 }
 0x766   : > { %7999 = vmatpush1.bf16.msra.mxu0 %v14739_v56  ;;  %8095 = vmatpush1.bf16.msra.mxu1 %v14740_v37 }
 0x767   : > { %8001 = vmatprep.subr.bf16.mxu0 %v14741_v22  ;;  %8097 = vmatprep.subr.bf16.mxu1 %v14742_v26  ;;  %v14752_v26 = vld [vmem:[#allocation268_spill] sm:$0xff]  ;;  %v14753_v22 = vld [vmem:[#allocation193_spill] sm:$0xff] }
 0x768   : > { %3076 = vmatprep.mubr.f32.mxu0 %v14353_v2  ;;  %3218 = vmatprep.mubr.f32.mxu1 %v14353_v2 }
 0x76a   : > { %8003 = vmatpush1.bf16.msra.mxu0 %v14743_v20  ;;  %8099 = vmatpush1.bf16.msra.mxu1 %v14744_v46  ;;  %v14754_v20 = vld [vmem:[#allocation270_spill] sm:$0xff] }
 0x76b   : > { %8005 = vmatprep.subr.bf16.mxu0 %v14745_v3  ;;  %8101 = vmatprep.subr.bf16.mxu1 %v14746_v29  ;;  %v14755_v46 = vld [vmem:[#allocation194_spill] sm:$0xff]  ;;  %v14756_v3 = vld [vmem:[#allocation272_spill] sm:$0xff]  ;;  %v14757_v29 = vld [vmem:[#allocation195_spill] sm:$0xff] }
 0x76e   : > { %8007 = vmatpush1.bf16.msra.mxu0 %v14747_v24  ;;  %8103 = vmatpush1.bf16.msra.mxu1 %v14748_v55  ;;  %v14758_v24 = vld [vmem:[#allocation274_spill] sm:$0xff]  ;;  %v14759_v55 = vld [vmem:[#allocation196_spill] sm:$0xff] }
 0x76f   : > { %8009 = vmatprep.subr.bf16.mxu0 %v14749_v45  ;;  %8105 = vmatprep.subr.bf16.mxu1 %v14750_v25  ;;  %v14760_v45 = vld [vmem:[#allocation276_spill] sm:$0xff]  ;;  %v14761_v25 = vld [vmem:[#allocation197_spill] sm:$0xff] }
 0x772   : > { %8011 = vmatpush1.bf16.msra.mxu0 %v14751_v35  ;;  %8107 = vmatpush1.bf16.msra.mxu1 %v14752_v26  ;;  %v14762_v35 = vld [vmem:[#allocation278_spill] sm:$0xff] }
 0x773   : > { %8013 = vmatprep.subr.bf16.mxu0 %v14753_v22  ;;  %8109 = vmatprep.subr.bf16.mxu1 %v14754_v20  ;;  %v14763_v26 = vld [vmem:[#allocation198_spill] sm:$0xff]  ;;  %v14764_v22 = vld [vmem:[#allocation280_spill] sm:$0xff]  ;;  %v14765_v20 = vld [vmem:[#allocation199_spill] sm:$0xff] }
 0x776   : > { %8015 = vmatpush1.bf16.msra.mxu0 %v14755_v46  ;;  %8111 = vmatpush1.bf16.msra.mxu1 %v14756_v3  ;;  %v14766_v46 = vld [vmem:[#allocation282_spill] sm:$0xff]  ;;  %v14767_v3 = vld [vmem:[#allocation200_spill] sm:$0xff] }
 0x777   : > { %8017 = vmatprep.subr.bf16.mxu0 %v14757_v29  ;;  %8113 = vmatprep.subr.bf16.mxu1 %v14758_v24  ;;  %v14768_v29 = vld [vmem:[#allocation284_spill] sm:$0xff]  ;;  %v14769_v24 = vld [vmem:[#allocation250_spill] sm:$0xff] }
 0x77a   : > { %8019 = vmatpush1.bf16.msra.mxu0 %v14759_v55  ;;  %8115 = vmatpush1.bf16.msra.mxu1 %v14760_v45 }
 0x77b   : > { %8021 = vmatprep.subr.bf16.mxu0 %v14761_v25  ;;  %8117 = vmatprep.subr.bf16.mxu1 %v14762_v35  ;;  %v14770_v35 = vld [vmem:[#allocation257_spill] sm:$0xff] }
 0x77e   : > { %8023 = vmatpush1.bf16.msra.mxu0 %v14763_v26  ;;  %8119 = vmatpush1.bf16.msra.mxu1 %v14764_v22  ;;  %v14771_v22 = vld [vmem:[#allocation289_spill] sm:$0xff]  ;;  %v14779_v26 = vld [vmem:[#allocation267_spill] sm:$0xff] }
 0x77f   : > { %8025 = vmatprep.subr.bf16.mxu0 %v14765_v20  ;;  %8121 = vmatprep.subr.bf16.mxu1 %v14766_v46  ;;  %v14772_v46 = vld [vmem:[#allocation259_spill] sm:$0xff]  ;;  %v14777_v20 = vld [vmem:[#allocation265_spill] sm:$0xff] }
 0x782   : > { %8027 = vmatpush1.bf16.msra.mxu0 %v14767_v3  ;;  %8123 = vmatpush1.bf16.msra.mxu1 %v14768_v29  ;;  %v14773_v29 = vld [vmem:[#allocation261_spill] sm:$0xff]  ;;  %v14776_v3 = vld [vmem:[#allocation295_spill] sm:$0xff] }
 0x783   : > { %8125 = vmatprep.subr.bf16.mxu0 %v14769_v24  ;;  %8221 = vmatprep.subr.bf16.mxu1 %v11758_v9  ;;  %v14774_v24 = vld [vmem:[#allocation293_spill] sm:$0xff]  ;;  %v14775_v9 = vld [vmem:[#allocation263_spill] sm:$0xff] }
 0x785   : > { %3077 = vmatmul.mubr.f32.vlgmr.msra.gmra.mrb[14].mxu0 %v12136_v47  ;;  %3219 = vmatmul.mubr.f32.vlgmr.msra.gmra.mrb[20].mxu1 %v12136_v47 }
 0x786   : > { %8127 = vmatpush1.bf16.msra.mxu0 %v14770_v35  ;;  %3289 = vmatprep.mubr.f32.mxu0 %v12286_v44  ;;  %v14778_v35 = vld [vmem:[#allocation297_spill] sm:$0xff] }
 0x787   : > { %8223 = vmatpush3.bf16.msra.mxu1 %v14771_v22  ;;  %3431 = vmatprep.mubr.f32.mxu1 %v12286_v44  ;;  %v14780_v22 = vld [vmem:[#allocation299_spill] sm:$0xff]  ;;  %v14781_v44 = vld [vmem:[#allocation269_spill] sm:$0xff] }
 0x788   : > { %8129 = vmatprep.subr.bf16.mxu0 %v14772_v46  ;;  %8225 = vmatprep.subr.bf16.mxu1 %v11770_v57  ;;  %v14782_v46 = vld [vmem:[#allocation301_spill] sm:$0xff]  ;;  %v14783_v57 = vld [vmem:[#allocation271_spill] sm:$0xff] }
 0x78a   : > { %8131 = vmatpush1.bf16.msra.mxu0 %v14773_v29  ;;  %v14784_v29 = vld [vmem:[#allocation303_spill] sm:$0xff] }
 0x78b   : > { %8227 = vmatpush3.bf16.msra.mxu1 %v14774_v24  ;;  %8133 = vmatprep.subr.bf16.mxu0 %v14775_v9  ;;  %v14785_v24 = vld [vmem:[#allocation273_spill] sm:$0xff] }
 0x78c   : > { %8229 = vmatprep.subr.bf16.mxu1 %v14776_v3  ;;  %v14786_v9 = vld [vmem:[#allocation305_spill] sm:$0xff]  ;;  %v14787_v3 = vld [vmem:[#allocation275_spill] sm:$0xff] }
 0x78e   : > { %8135 = vmatpush1.bf16.msra.mxu0 %v14777_v20 }
 0x78f   : > { %8231 = vmatpush3.bf16.msra.mxu1 %v14778_v35  ;;  %8137 = vmatprep.subr.bf16.mxu0 %v14779_v26  ;;  %v14788_v35 = vld [vmem:[#allocation277_spill] sm:$0xff] }
 0x790   : > { %8233 = vmatprep.subr.bf16.mxu1 %v14780_v22  ;;  %v14789_v22 = vld [vmem:[#allocation279_spill] sm:$0xff] }
 0x792   : > { %8139 = vmatpush1.bf16.msra.mxu0 %v14781_v44 }
 0x793   : > { %8235 = vmatpush3.bf16.msra.mxu1 %v14782_v46  ;;  %8141 = vmatprep.subr.bf16.mxu0 %v14783_v57  ;;  %v14790_v46 = vld [vmem:[#allocation281_spill] sm:$0xff]  ;;  %v14791_v57 = vld [vmem:[#allocation312_spill] sm:$0xff] }
 0x794   : > { %8237 = vmatprep.subr.bf16.mxu1 %v14784_v29  ;;  %v14792_v29 = vld [vmem:[#allocation283_spill] sm:$0xff] }
 0x796   : > { %8143 = vmatpush1.bf16.msra.mxu0 %v14785_v24  ;;  %v14793_v24 = vld [vmem:[#allocation314_spill] sm:$0xff] }
 0x797   : > { %8239 = vmatpush3.bf16.msra.mxu1 %v14786_v9  ;;  %8145 = vmatprep.subr.bf16.mxu0 %v14787_v3  ;;  %v14794_v9 = vld [vmem:[#allocation285_spill] sm:$0xff]  ;;  %v14795_v3 = vld [vmem:[#allocation316_spill] sm:$0xff] }
 0x798   : > { %8241 = vmatprep.subr.bf16.mxu1 %v11820_v14  ;;  %v14796_v14 = vld [vmem:[#allocation286_spill] sm:$0xff] }
 0x79a   : > { %8147 = vmatpush1.bf16.msra.mxu0 %v14788_v35  ;;  %v14797_v35 = vmov 0.0|0.0  }
 0x79b   : > { %8243 = vmatpush3.bf16.msra.mxu1 %v11826_v59  ;;  %8149 = vmatprep.subr.bf16.mxu0 %v14789_v22  ;;  %v14798_v22 = vld [vmem:[#allocation288_spill] sm:$0xff] }
 0x79c   : > { %8245 = vmatprep.subr.bf16.mxu1 %v11832_v43  ;;  %v14799_v43 = vld [vmem:[#allocation319_spill] sm:$0xff] }
 0x79e   : > { %8151 = vmatpush1.bf16.msra.mxu0 %v14790_v46  ;;  %v14800_v46 = vld [vmem:[#allocation290_spill] sm:$0xff] }
 0x79f   : > { %8247 = vmatpush3.bf16.msra.mxu1 %v14791_v57  ;;  %8153 = vmatprep.subr.bf16.mxu0 %v14792_v29  ;;  %v14808_v29 = vld [vmem:[#allocation328_spill] sm:$0xff]  ;;  %v14809_v57 = vld [vmem:[#allocation302_spill] sm:$0xff] }
 0x7a0   : > { %8249 = vmatprep.subr.bf16.mxu1 %v14793_v24  ;;  %v14804_v24 = vld [vmem:[#allocation296_spill] sm:$0xff] }
 0x7a2   : > { %8155 = vmatpush1.bf16.msra.mxu0 %v14794_v9  ;;  %v14801_v9 = vld [vmem:[#allocation292_spill] sm:$0xff] }
 0x7a3   : > { %8251 = vmatpush3.bf16.msra.mxu1 %v14795_v3  ;;  %8157 = vmatprep.subr.bf16.mxu0 %v14796_v14  ;;  %v14802_v3 = vld [vmem:[#allocation322_spill] sm:$0xff] }
 0x7a4   : > { %8252 = vmatprep.subr.bf16.mxu1 %v14797_v35  ;;  %v14803_v14 = vld [vmem:[#allocation294_spill] sm:$0xff] }
 0x7a6   : > { %3432 = vmatmul.mubr.f32.vlgmr.msra.gmra.mrb[22].mxu1 %v12358_v38  ;;  %8159 = vmatpush1.bf16.msra.mxu0 %v14798_v22  ;;  %v14805_v22 = vld [vmem:[#allocation325_spill] sm:$0xff] }
 0x7a7   : > { %8254 = vmatpush3.bf16.msra.mxu1 %v14799_v43  ;;  %8161 = vmatprep.subr.bf16.mxu0 %v14800_v46  ;;  %v14806_v43 = vld [vmem:[#allocation298_spill] sm:$0xff]  ;;  %v14807_v46 = vld [vmem:[#allocation300_spill] sm:$0xff] }
 0x7a8   : > { %8255 = vmatprep.subr.bf16.mxu1 %v14797_v35  ;;  %6875 = vmatprep.mubr.msk.f32.mxu1 %vm10528_vm0, %v14353_v2 }
 0x7aa   : > { %8163 = vmatpush1.bf16.msra.mxu0 %v14801_v9  ;;  %v14812_v9 = vld [vmem:[#allocation306_spill] sm:$0xff] }
 0x7ab   : > { %8257 = vmatpush3.bf16.msra.mxu1 %v14802_v3  ;;  %8165 = vmatprep.subr.bf16.mxu0 %v14803_v14  ;;  %v14810_v3 = vld [vmem:[#allocation304_spill] sm:$0xff]  ;;  %v14811_v14 = vld [vmem:[#allocation331_spill] sm:$0xff] }
 0x7ac   : > { %8258 = vmatprep.subr.bf16.mxu1 %v14797_v35 }
 0x7ae   : > { %8167 = vmatpush1.bf16.msra.mxu0 %v14804_v24 }
 0x7af   : > { %8260 = vmatpush3.bf16.msra.mxu1 %v14805_v22  ;;  %8169 = vmatprep.subr.bf16.mxu0 %v14806_v43  ;;  %v14813_v22 = vld [vmem:[#allocation308_spill] sm:$0xff]  ;;  %v14814_v43 = vld [vmem:[#allocation309_spill] sm:$0xff] }
 0x7b0   : > { %8261 = vmatprep.subr.bf16.mxu1 %v14797_v35 }
 0x7b2   : > { %8171 = vmatpush1.bf16.msra.mxu0 %v14807_v46 }
 0x7b3   : > { %8263 = vmatpush3.bf16.msra.mxu1 %v14808_v29  ;;  %8173 = vmatprep.subr.bf16.mxu0 %v14809_v57  ;;  %v14815_v29 = vld [vmem:[#allocation311_spill] sm:$0xff]  ;;  %v14816_v57 = vld [vmem:[#allocation313_spill] sm:$0xff] }
 0x7b4   : > { %8264 = vmatprep.subr.bf16.mxu1 %v14797_v35 }
 0x7b6   : > { %8175 = vmatpush1.bf16.msra.mxu0 %v14810_v3 }
 0x7b7   : > { %8266 = vmatpush3.bf16.msra.mxu1 %v14811_v14  ;;  %8177 = vmatprep.subr.bf16.mxu0 %v14812_v9  ;;  %v14817_v14 = vld [vmem:[#allocation315_spill] sm:$0xff]  ;;  %v14818_v9 = vld [vmem:[#allocation317_spill] sm:$0xff] }
 0x7b8   : > { %8267 = vmatprep.subr.bf16.mxu1 %v14797_v35 }
 0x7ba   : > { %8179 = vmatpush1.bf16.msra.mxu0 %v14813_v22 }
 0x7bb   : > { %8269 = vmatpush3.bf16.msra.mxu1 %v11915_v51  ;;  %8181 = vmatprep.subr.bf16.mxu0 %v14814_v43  ;;  %v14819_v43 = vld [vmem:[#allocation318_spill] sm:$0xff] }
 0x7bc   : > { %8270 = vmatprep.subr.bf16.mxu1 %v14797_v35 }
 0x7be   : > { %8183 = vmatpush1.bf16.msra.mxu0 %v14815_v29 }
 0x7bf   : > { %8272 = vmatpush3.bf16.msra.mxu1 %v11925_v0  ;;  %8185 = vmatprep.subr.bf16.mxu0 %v14816_v57  ;;  %v14820_v57 = vld [vmem:[#allocation320_spill] sm:$0xff] }
 0x7c0   : > { %8273 = vmatprep.subr.bf16.mxu1 %v14797_v35 }
 0x7c2   : > { %8187 = vmatpush1.bf16.msra.mxu0 %v14817_v14 }
 0x7c3   : > { %8275 = vmatpush3.bf16.msra.mxu1 %v11939_v42  ;;  %8189 = vmatprep.subr.bf16.mxu0 %v14818_v9  ;;  %v14821_v42 = vld [vmem:[#allocation321_spill] sm:$0xff]  ;;  %v14823_v9 = vld [vmem:[#allocation324_spill] sm:$0xff] }
 0x7c4   : > { %8341 = vmatprep.subr.bf16.mxu1 %v10928_v4  ;;  %v14822_v4 = vld [vmem:[#allocation323_spill] sm:$0xff] }
 0x7c5   : > { %3290 = vmatmul.mubr.f32.vlgmr.msra.gmra.mrb[16].mxu0 %v12358_v38 }
 0x7c6   : > { %6876 = vmatmul.mubr.f32.vlgmr.msra.gmra.mrb[24].mxu1 %v12136_v47  ;;  %8191 = vmatpush1.bf16.msra.mxu0 %v14819_v43 }
 0x7c7   : > { %8343 = vmatpush1.bf16.msra.mxu1 %v10930_v8  ;;  %3772 = vmatprep.mubr.f32.mxu1 %v12298_v62  ;;  %v14824_v8 = vld [vmem:[#allocation326_spill] sm:$0xff] }
 0x7c8   : > { %8193 = vmatprep.subr.bf16.mxu0 %v14820_v57  ;;  %8345 = vmatprep.subr.bf16.mxu1 %v10939_v17  ;;  %v14825_v57 = vld [vmem:[#allocation327_spill] sm:$0xff]  ;;  %v14826_v17 = vld [vmem:[#allocation329_spill] sm:$0xff] }
 0x7c9   : > { %3360 = vmatprep.mubr.f32.mxu0 %v14353_v2 }
 0x7ca   : > { %8195 = vmatpush1.bf16.msra.mxu0 %v14821_v42 }
 0x7cb   : > { %8347 = vmatpush1.bf16.msra.mxu1 %v10941_v18  ;;  %8197 = vmatprep.subr.bf16.mxu0 %v14822_v4  ;;  %v14827_v18 = vld [vmem:[#allocation330_spill] sm:$0xff] }
 0x7cc   : > { %8349 = vmatprep.subr.bf16.mxu1 %v10949_v27  ;;  %v14828_v27 = vld [vmem:[#allocation332_spill] sm:$0xff] }
 0x7ce   : > { %8199 = vmatpush1.bf16.msra.mxu0 %v14823_v9 }
 0x7cf   : > { %8351 = vmatpush1.bf16.msra.mxu1 %v10953_v34  ;;  %8201 = vmatprep.subr.bf16.mxu0 %v14824_v8 }
 0x7d0   : > { %8353 = vmatprep.subr.bf16.mxu1 %v10961_v40 }
 0x7d2   : > { %8203 = vmatpush1.bf16.msra.mxu0 %v14825_v57 }
 0x7d3   : > { %8355 = vmatpush1.bf16.msra.mxu1 %v10967_v49  ;;  %8205 = vmatprep.subr.bf16.mxu0 %v14826_v17 }
 0x7d4   : > { %8357 = vmatprep.subr.bf16.mxu1 %v10973_v53 }
 0x7d6   : > { %8207 = vmatpush1.bf16.msra.mxu0 %v14827_v18 }
 0x7d7   : > { %8359 = vmatpush1.bf16.msra.mxu1 %v10979_v63  ;;  %8209 = vmatprep.subr.bf16.mxu0 %v14828_v27 }
 0x7d8   : > { %8361 = vmatprep.subr.bf16.mxu1 %v10985_v1  ;;  %v14906_v1 = vld [vmem:[#allocation357_spill] sm:$0xff] }
 0x7da   : > { %8211 = vmatpush1.bf16.msra.mxu0 %v11913_v16 }
 0x7db   : > { %8363 = vmatpush1.bf16.msra.mxu1 %v10991_v15  ;;  %8213 = vmatprep.subr.bf16.mxu0 %v11919_v6  ;;  %v14900_v6 = vld [vmem:[#allocation149_spill] sm:$0xff] }
 0x7dc   : > { %8365 = vmatprep.subr.bf16.mxu1 %v10997_v19 }
 0x7de   : > { %8215 = vmatpush1.bf16.msra.mxu0 %v11923_v13  ;;  %v14898_v13 = vld [vmem:[#allocation254_spill] sm:$0xff] }
 0x7df   : > { %8367 = vmatpush1.bf16.msra.mxu1 %v11003_v32  ;;  %8217 = vmatprep.subr.bf16.mxu0 %v11931_v23  ;;  %v14897_v23 = vld [vmem:[#allocation251_spill] sm:$0xff] }
 0x7e0   : > { %8369 = vmatprep.subr.bf16.mxu1 %v11009_v36  ;;  %v14834_v36 = vld [vmem:[#allocation69_spill] sm:$0xff] }
 0x7e2   : > { %8219 = vmatpush1.bf16.msra.mxu0 %v11937_v21  ;;  %v14832_v21 = vld [vmem:[#allocation67_spill] sm:$0xff] }
 0x7e3   : > { %8371 = vmatpush1.bf16.msra.mxu1 %v11015_v50  ;;  %8277 = vmatprep.subr.bf16.mxu0 %v11998_v12  ;;  %v14829_v50 = vld [vmem:[#allocation344_spill] sm:$0xff]  ;;  %v14830_v12 = vld [vmem:[#allocation65_spill] sm:$0xff] }
 0x7e4   : > { %8373 = vmatprep.subr.bf16.mxu1 %v11021_v54  ;;  %v14831_v54 = vld [vmem:[#allocation345_spill] sm:$0xff] }
 0x7e5   : > { %3361 = vmatmul.mubr.f32.vlgmr.msra.gmra.mrb[16].mxu0 %v12136_v47 }
 0x7e6   : > { %8279 = vmatpush1.bf16.msra.mxu0 %v12000_v7  ;;  %3603 = vmatprep.mubr.f32.mxu0 %v14353_v2  ;;  %v14833_v7 = vld [vmem:[#allocation346_spill] sm:$0xff] }
 0x7e7   : > { %8375 = vmatpush1.bf16.msra.mxu1 %v11027_v5  ;;  %8281 = vmatprep.subr.bf16.mxu0 %v12006_v52  ;;  %v14835_v5 = vld [vmem:[#allocation347_spill] sm:$0xff] }
 0x7e8   : > { %8377 = vmatprep.subr.bf16.mxu1 %v11033_v10  ;;  %v14836_v52 = vld [vmem:[#allocation71_spill] sm:$0xff]  ;;  %v14837_v10 = vld [vmem:[#allocation348_spill] sm:$0xff] }
 0x7ea   : > { %8283 = vmatpush1.bf16.msra.mxu0 %v12008_v39  ;;  %v14838_v39 = vld [vmem:[#allocation73_spill] sm:$0xff] }
 0x7eb   : > { %8379 = vmatpush1.bf16.msra.mxu1 %v11039_v30  ;;  %8285 = vmatprep.subr.bf16.mxu0 %v14829_v50  ;;  %v14839_v30 = vld [vmem:[#allocation349_spill] sm:$0xff]  ;;  %v14840_v50 = vld [vmem:[#allocation75_spill] sm:$0xff] }
 0x7ec   : > { %8381 = vmatprep.subr.bf16.mxu1 %v14830_v12  ;;  %v14841_v12 = vld [vmem:[#allocation350_spill] sm:$0xff] }
 0x7ee   : > { %8287 = vmatpush1.bf16.msra.mxu0 %v14831_v54  ;;  %v14842_v54 = vld [vmem:[#allocation77_spill] sm:$0xff] }
 0x7ef   : > { %8383 = vmatpush1.bf16.msra.mxu1 %v14832_v21  ;;  %8289 = vmatprep.subr.bf16.mxu0 %v14833_v7  ;;  %v14843_v21 = vld [vmem:[#allocation351_spill] sm:$0xff] }
 0x7f0   : > { %8385 = vmatprep.subr.bf16.mxu1 %v14834_v36  ;;  %v14844_v7 = vld [vmem:[#allocation79_spill] sm:$0xff]  ;;  %v14845_v36 = vld [vmem:[#allocation352_spill] sm:$0xff] }
 0x7f2   : > { %8291 = vmatpush1.bf16.msra.mxu0 %v14835_v5  ;;  %v14846_v5 = vld [vmem:[#allocation81_spill] sm:$0xff] }
 0x7f3   : > { %8387 = vmatpush1.bf16.msra.mxu1 %v14836_v52  ;;  %8293 = vmatprep.subr.bf16.mxu0 %v14837_v10  ;;  %v14847_v52 = vld [vmem:[#allocation353_spill] sm:$0xff]  ;;  %v14848_v10 = vld [vmem:[#allocation83_spill] sm:$0xff] }
 0x7f4   : > { %8389 = vmatprep.subr.bf16.mxu1 %v14838_v39  ;;  %v14849_v39 = vld [vmem:[#allocation354_spill] sm:$0xff] }
 0x7f6   : > { %8295 = vmatpush1.bf16.msra.mxu0 %v14839_v30  ;;  %v14850_v30 = vld [vmem:[#allocation85_spill] sm:$0xff] }
 0x7f7   : > { %8391 = vmatpush1.bf16.msra.mxu1 %v14840_v50  ;;  %8297 = vmatprep.subr.bf16.mxu0 %v14841_v12  ;;  %v14851_v50 = vld [vmem:[#allocation355_spill] sm:$0xff] }
 0x7f8   : > { %8393 = vmatprep.subr.bf16.mxu1 %v14842_v54  ;;  %v14852_v12 = vld [vmem:[#allocation87_spill] sm:$0xff]  ;;  %v14853_v54 = vld [vmem:[#allocation356_spill] sm:$0xff] }
 0x7fa   : > { %8299 = vmatpush1.bf16.msra.mxu0 %v14843_v21  ;;  %v14854_v21 = vld [vmem:[#allocation89_spill] sm:$0xff] }
 0x7fb   : > { %8395 = vmatpush1.bf16.msra.mxu1 %v14844_v7  ;;  %8301 = vmatprep.subr.bf16.mxu0 %v14845_v36  ;;  %v14855_v36 = vld [vmem:[#allocation90_spill] sm:$0xff]  ;;  %v14866_v7 = vld [vmem:[#allocation101_spill] sm:$0xff] }
 0x7fc   : > { %8397 = vmatprep.subr.bf16.mxu1 %v14846_v5  ;;  %v14864_v5 = vld [vmem:[#allocation99_spill] sm:$0xff] }
 0x7fe   : > { %8303 = vmatpush1.bf16.msra.mxu0 %v14847_v52  ;;  %v14856_v52 = vld [vmem:[#allocation91_spill] sm:$0xff] }
 0x7ff   : > { %8399 = vmatpush1.bf16.msra.mxu1 %v14848_v10  ;;  %8305 = vmatprep.subr.bf16.mxu0 %v14849_v39  ;;  %v14857_v10 = vld [vmem:[#allocation92_spill] sm:$0xff]  ;;  %v14858_v39 = vld [vmem:[#allocation93_spill] sm:$0xff] }
 0x800   : > { %8401 = vmatprep.subr.bf16.mxu1 %v14850_v30  ;;  %v14859_v30 = vld [vmem:[#allocation94_spill] sm:$0xff] }
 0x802   : > { %8307 = vmatpush1.bf16.msra.mxu0 %v14851_v50  ;;  %v14860_v50 = vld [vmem:[#allocation95_spill] sm:$0xff] }
 0x803   : > { %8403 = vmatpush1.bf16.msra.mxu1 %v14852_v12  ;;  %8309 = vmatprep.subr.bf16.mxu0 %v14853_v54  ;;  %v14861_v12 = vld [vmem:[#allocation96_spill] sm:$0xff]  ;;  %v14862_v54 = vld [vmem:[#allocation97_spill] sm:$0xff] }
 0x804   : > { %8469 = vmatprep.subr.bf16.mxu1 %v14854_v21  ;;  %v14863_v21 = vld [vmem:[#allocation98_spill] sm:$0xff] }
 0x806   : > { %3773 = vmatmul.mubr.f32.vlgmr.msra.gmra.mrb[26].mxu1 %v12358_v38 }
 0x807   : > { %8471 = vmatpush1.bf16.msra.mxu1 %v14855_v36  ;;  %3914 = vmatprep.mubr.f32.mxu1 %v12298_v62  ;;  %v14865_v36 = vld [vmem:[#allocation100_spill] sm:$0xff] }
 0x808   : > { %8473 = vmatprep.subr.bf16.mxu1 %v14856_v52  ;;  %v14867_v52 = vld [vmem:[#allocation102_spill] sm:$0xff] }
 0x80b   : > { %8475 = vmatpush1.bf16.msra.mxu1 %v14857_v10  ;;  %v14868_v10 = vld [vmem:[#allocation103_spill] sm:$0xff] }
 0x80c   : > { %8477 = vmatprep.subr.bf16.mxu1 %v14858_v39  ;;  %v14869_v39 = vld [vmem:[#allocation104_spill] sm:$0xff] }
 0x80f   : > { %8479 = vmatpush1.bf16.msra.mxu1 %v14859_v30  ;;  %v14870_v30 = vld [vmem:[#allocation105_spill] sm:$0xff] }
 0x810   : > { %8481 = vmatprep.subr.bf16.mxu1 %v14860_v50  ;;  %v14871_v50 = vld [vmem:[#allocation106_spill] sm:$0xff] }
 0x813   : > { %8483 = vmatpush1.bf16.msra.mxu1 %v14861_v12  ;;  %v14872_v12 = vld [vmem:[#allocation107_spill] sm:$0xff] }
 0x814   : > { %8485 = vmatprep.subr.bf16.mxu1 %v14862_v54  ;;  %v14873_v54 = vld [vmem:[#allocation108_spill] sm:$0xff] }
 0x817   : > { %8487 = vmatpush1.bf16.msra.mxu1 %v14863_v21  ;;  %v14874_v21 = vld [vmem:[#allocation109_spill] sm:$0xff] }
 0x818   : > { %8489 = vmatprep.subr.bf16.mxu1 %v14864_v5  ;;  %v14875_v5 = vld [vmem:[#allocation110_spill] sm:$0xff] }
 0x81b   : > { %8491 = vmatpush1.bf16.msra.mxu1 %v14865_v36  ;;  %v14876_v36 = vld [vmem:[#allocation111_spill] sm:$0xff] }
 0x81c   : > { %8493 = vmatprep.subr.bf16.mxu1 %v14866_v7  ;;  %v14877_v7 = vld [vmem:[#allocation112_spill] sm:$0xff] }
 0x81f   : > { %8495 = vmatpush1.bf16.msra.mxu1 %v14867_v52  ;;  %v14878_v52 = vld [vmem:[#allocation113_spill] sm:$0xff] }
 0x820   : > { %8497 = vmatprep.subr.bf16.mxu1 %v14868_v10  ;;  %v14879_v10 = vld [vmem:[#allocation114_spill] sm:$0xff] }
 0x823   : > { %8499 = vmatpush1.bf16.msra.mxu1 %v14869_v39  ;;  %v14880_v39 = vld [vmem:[#allocation115_spill] sm:$0xff] }
 0x824   : > { %8501 = vmatprep.subr.bf16.mxu1 %v14870_v30  ;;  %v14881_v30 = vld [vmem:[#allocation116_spill] sm:$0xff] }
 0x827   : > { %8503 = vmatpush1.bf16.msra.mxu1 %v14871_v50  ;;  %v14882_v50 = vld [vmem:[#allocation117_spill] sm:$0xff] }
 0x828   : > { %8505 = vmatprep.subr.bf16.mxu1 %v14872_v12  ;;  %v14883_v12 = vld [vmem:[#allocation118_spill] sm:$0xff] }
 0x82b   : > { %8507 = vmatpush1.bf16.msra.mxu1 %v14873_v54  ;;  %v14884_v54 = vld [vmem:[#allocation119_spill] sm:$0xff] }
 0x82c   : > { %8509 = vmatprep.subr.bf16.mxu1 %v14874_v21  ;;  %v14885_v21 = vld [vmem:[#allocation120_spill] sm:$0xff] }
 0x82f   : > { %8511 = vmatpush1.bf16.msra.mxu1 %v14875_v5  ;;  %v14886_v5 = vld [vmem:[#allocation137_spill] sm:$0xff] }
 0x830   : > { %8513 = vmatprep.subr.bf16.mxu1 %v14876_v36  ;;  %v14896_v36 = vld [vmem:[#allocation147_spill] sm:$0xff] }
 0x833   : > { %8515 = vmatpush1.bf16.msra.mxu1 %v14877_v7  ;;  %v14887_v7 = vld [vmem:[#allocation138_spill] sm:$0xff] }
 0x834   : > { %8517 = vmatprep.subr.bf16.mxu1 %v14878_v52 }
 0x837   : > { %8519 = vmatpush1.bf16.msra.mxu1 %v14879_v10  ;;  %v14888_v10 = vld [vmem:[#allocation139_spill] sm:$0xff] }
 0x838   : > { %8521 = vmatprep.subr.bf16.mxu1 %v14880_v39  ;;  %v14889_v39 = vld [vmem:[#allocation140_spill] sm:$0xff] }
 0x83b   : > { %8523 = vmatpush1.bf16.msra.mxu1 %v14881_v30  ;;  %v14890_v30 = vld [vmem:[#allocation141_spill] sm:$0xff] }
 0x83c   : > { %8525 = vmatprep.subr.bf16.mxu1 %v14882_v50  ;;  %v14891_v50 = vld [vmem:[#allocation142_spill] sm:$0xff] }
 0x83f   : > { %8527 = vmatpush1.bf16.msra.mxu1 %v14883_v12  ;;  %v14892_v12 = vld [vmem:[#allocation143_spill] sm:$0xff] }
 0x840   : > { %8529 = vmatprep.subr.bf16.mxu1 %v14884_v54  ;;  %v14893_v54 = vld [vmem:[#allocation144_spill] sm:$0xff] }
 0x843   : > { %8531 = vmatpush1.bf16.msra.mxu1 %v14885_v21  ;;  %v14894_v21 = vld [vmem:[#allocation145_spill] sm:$0xff] }
 0x844   : > { %8565 = vmatprep.subr.bf16.mxu1 %v14886_v5  ;;  %v14895_v5 = vld [vmem:[#allocation146_spill] sm:$0xff] }
 0x846   : > { %3915 = vmatmul.mubr.f32.vlgmr.msra.gmra.mrb[28].mxu1 %v12358_v38 }
 0x847   : > { %8567 = vmatpush1.bf16.msra.mxu1 %v14887_v7  ;;  %4094 = vmatprep.mubr.f32.mxu1 %v14353_v2 }
 0x848   : > { %8569 = vmatprep.subr.bf16.mxu1 %v14888_v10 }
 0x84b   : > { %8571 = vmatpush1.bf16.msra.mxu1 %v14889_v39 }
 0x84c   : > { %8573 = vmatprep.subr.bf16.mxu1 %v14890_v30 }
 0x84f   : > { %8575 = vmatpush1.bf16.msra.mxu1 %v14891_v50  ;;  %v14899_v50 = vld [vmem:[#allocation148_spill] sm:$0xff] }
 0x850   : > { %8577 = vmatprep.subr.bf16.mxu1 %v14892_v12 }
 0x853   : > { %8579 = vmatpush1.bf16.msra.mxu1 %v14893_v54  ;;  %v14903_v54 = vld [vmem:[#allocation152_spill] sm:$0xff] }
 0x854   : > { %8581 = vmatprep.subr.bf16.mxu1 %v14894_v21  ;;  %v14901_v21 = vld [vmem:[#allocation150_spill] sm:$0xff] }
 0x857   : > { %8583 = vmatpush1.bf16.msra.mxu1 %v14895_v5  ;;  %v14902_v5 = vld [vmem:[#allocation151_spill] sm:$0xff] }
 0x858   : > { %v3078_v52 = vpop.f32.mrb[14].mxu0  ;;  %v3220_v7 = vpop.f32.mrb[20].mxu1  ;;  %8585 = vmatprep.subr.bf16.mxu1 %v14896_v36  ;;  %v14904_v36 = vld [vmem:[#allocation153_spill] sm:$0xff] }
 0x859   : > { %v9742_v10 = vadd.f32 %v3220_v7, %v14897_v23  ;;  %v3080_v32 = vpop.f32.mrb[15].mxu0  ;;  %v3222_v39 = vpop.f32.mrb[21].mxu1  ;;  %v14905_v7 = vld [vmem:[#allocation252_spill] sm:$0xff] }
 0x85a   : > { %v9741_v30 = vadd.f32 %v3080_v32, %v14898_v13  ;;  %v9740_v23 = vadd.f32 %v3078_v52, %v14905_v7 }
 0x85b   : > { %v6412_v19 = vmul.f32 -1.442695, %v9742_v10  ;;  %8587 = vmatpush1.bf16.msra.mxu1 %v14899_v50 }
 0x85c   : > { %v6411_v12 = vmul.f32 -1.442695, %v9741_v30  ;;  %8589 = vmatprep.subr.bf16.mxu1 %v14900_v6 }
 0x85d   : > { %10039 = vpow2.f32 %v6412_v19 }
 0x85e   : > { %10041 = vpow2.f32 %v6411_v12  ;;  %v2939_v12 = vld [vmem:[#allocation3 + $0x8] sm:$0xff] }
 0x85f   : > { %8591 = vmatpush1.bf16.msra.mxu1 %v14901_v21  ;;  %10043 = vtanh.f32 %v9740_v23 }
 0x860   : > { %8593 = vmatprep.subr.bf16.mxu1 %v14902_v5 }
 0x863   : > { %8595 = vmatpush1.bf16.msra.mxu1 %v14903_v54 }
 0x864   : > { %8597 = vmatprep.subr.bf16.mxu1 %v14904_v36 }
 0x867   : > { %v10040_v15 = vpop.eup %10039 }
 0x868   : > { %v10042_v32 = vpop.eup %10041  ;;  %v3517_v10 = vadd.f32 1.0, %v10040_v15 }
 0x869   : > { %v3511_v50 = vadd.f32 1.0, %v10042_v32  ;;  %v10044_v30 = vpop.eup %10043 }
 0x86a   : > { %10045 = vrcp.f32 %v3517_v10 }
 0x86b   : > { %10047 = vrcp.f32 %v3511_v50 }
 0x874   : > { %v10046_v19 = vpop.eup %10045 }
 0x875   : > { %v10048_v6 = vpop.eup %10047  ;;  %v3520_v21 = vmul.f32 %v10046_v19, %v2939_v12 }
 0x876   : > { %v3521_v13 = vmul.f32 %v10048_v6, %v10044_v30  ;;  %v14907_v6 = vld [vmem:[#allocation359_spill] sm:$0xff] }
 0x878   : > { %v12592_v5 = vadd.f32 %v3521_v13, %v3520_v21  ;;  %v9743_v13 = vadd.f32 %v3222_v39, %v14907_v6 }
 0x879   : > { %v6614_v54 = vpop.f32.mrb[22].mxu1 }
 0x87a   : > { %v6615_v16 = vpop.f32.mrb[23].mxu1 }
 0x87b   : > { %v6616_v36 = vadd.f32 %v6615_v16, %v6614_v54 }
 0x87d   : > { %v3434_v52 = vadd.f32 %v6616_v36, %v14906_v1 }
 0x899   : > { %v3503_v7 = vpop.f32.mrb[24].mxu1 }
 0x89a   : > { %v12595_v27 = vadd.f32 %v3503_v7, %v3434_v52  ;;  %v6877_v15 = vpop.f32.mrb[25].mxu1 }
 0x8b8   : > { %v3362_v23 = vpop.f32.mrb[16].mxu0 }
 0x8b9   : > { %v9744_v50 = vadd.f32 %v3362_v23, %v12118_v58  ;;  %v3364_v32 = vpop.f32.mrb[17].mxu0  ;;  %v6418_v23 = vld [vmem:[%s10902_s19 + $0x78] sm:$0xff] }
 0x8ba   : > { %v9745_v10 = vadd.f32 %v3364_v32, %v12121_v11 }
 0x8bb   : > { %v6413_v63 = vmul.f32 -1.442695, %v9744_v50 }
 0x8bc   : > { %v6414_v19 = vmul.f32 -1.442695, %v9745_v10  ;;  %v14908_v10 = vld [vmem:[#allocation361_spill] sm:$0xff] }
 0x8bd   : > { %10049 = vpow2.f32 %v6413_v63 }
 0x8be   : > { %10051 = vpow2.f32 %v6414_v19 }
 0x8bf   : > { %10053 = vtanh.f32 %v9743_v13  ;;  %v14909_v13 = vld [vmem:[#allocation362_spill] sm:$0xff] }
 0x8c7   : > { %v10050_v54 = vpop.eup %10049 }
 0x8c8   : > { %v10052_v16 = vpop.eup %10051  ;;  %v3527_v36 = vadd.f32 1.0, %v10050_v54  ;;  %v14910_v54 = vld [vmem:[#allocation363_spill] sm:$0xff] }
 0x8c9   : > { %v3533_v21 = vadd.f32 1.0, %v10052_v16  ;;  %v10054_v7 = vpop.eup %10053  ;;  %v6417_v16 = vld [vmem:[%s10902_s19 + $0x70] sm:$0xff] }
 0x8ca   : > { %10055 = vrcp.f32 %v3527_v36  ;;  %v14912_v36 = vld [vmem:[#allocation365_spill] sm:$0xff] }
 0x8cb   : > { %10057 = vrcp.f32 %v3533_v21 }
 0x8d4   : > { %v10056_v30 = vpop.eup %10055 }
 0x8d5   : > { %v10058_v12 = vpop.eup %10057  ;;  %v3537_v52 = vmul.f32 %v10056_v30, %v10054_v7  ;;  %v14913_v7 = vld [vmem:[#allocation366_spill] sm:$0xff]  ;;  %v14914_v30 = vld [vmem:[#allocation367_spill] sm:$0xff] }
 0x8d6   : > { %v3536_v15 = vmul.f32 %v10058_v12, %v12136_v47  ;;  %v14911_v47 = vld [vmem:[#allocation364_spill] sm:$0xff] }
 0x8d8   : > { %v12602_v50 = vadd.f32 %v3537_v52, %v3536_v15  ;;  %v14915_v15 = vld [vmem:[#allocation368_spill] sm:$0xff] }
 0x8d9   : > { %v3774_v63 = vpop.f32.mrb[26].mxu1 }
 0x8da   : > { %v3776_v32 = vpop.f32.mrb[27].mxu1  ;;  %3604 = vmatmul.mubr.f32.vlgmr.msra.gmra.mrb[18].mxu0 %v12602_v50  ;;  %v3991_v21 = vadd.f32 %v6417_v16, %v3774_v63 }
 0x8db   : > { %v3992_v39 = vadd.f32 %v6418_v23, %v3776_v32  ;;  %8311 = vmatpush1.bf16.msra.mxu0 %v12134_v48  ;;  %3674 = vmatprep.mubr.f32.mxu0 %v14353_v2  ;;  %v14916_v23 = vld [vmem:[#allocation369_spill] sm:$0xff]  ;;  %v14917_v32 = vld [vmem:[#allocation370_spill] sm:$0xff] }
 0x8dc   : > { %8313 = vmatprep.subr.bf16.mxu0 %v14908_v10 }
 0x8dd   : > { %v6424_v19 = vmul.f32 -1.442695, %v3992_v39  ;;  %v14918_v39 = vld [vmem:[#allocation371_spill] sm:$0xff] }
 0x8df   : > { %10059 = vpow2.f32 %v6424_v19  ;;  %8315 = vmatpush1.bf16.msra.mxu0 %v14909_v13  ;;  %v14919_v19 = vld [vmem:[#allocation372_spill] sm:$0xff] }
 0x8e0   : > { %8317 = vmatprep.subr.bf16.mxu0 %v14910_v54  ;;  %10061 = vtanh.f32 %v3991_v21  ;;  %v14922_v21 = vld [vmem:[#allocation31_spill] sm:$0xff] }
 0x8e3   : > { %8319 = vmatpush1.bf16.msra.mxu0 %v14911_v47  ;;  %v14949_v47 = vld [vmem:[#allocation80_spill] sm:$0xff] }
 0x8e4   : > { %8321 = vmatprep.subr.bf16.mxu0 %v14912_v36  ;;  %v14920_v36 = vld [vmem:[#allocation373_spill] sm:$0xff] }
 0x8e7   : > { %8323 = vmatpush1.bf16.msra.mxu0 %v14913_v7  ;;  %v14921_v7 = vld [vmem:[#allocation374_spill] sm:$0xff] }
 0x8e8   : > { %8325 = vmatprep.subr.bf16.mxu0 %v14914_v30 }
 0x8e9   : > { %v10060_v12 = vpop.eup %10059 }
 0x8ea   : > { %v4002_v52 = vadd.f32 1.0, %v10060_v12  ;;  %v10062_v63 = vpop.eup %10061  ;;  %v14923_v12 = vld [vmem:[#allocation32_spill] sm:$0xff] }
 0x8eb   : > { %8327 = vmatpush1.bf16.msra.mxu0 %v14915_v15  ;;  %v14948_v15 = vld [vmem:[#allocation78_spill] sm:$0xff] }
 0x8ec   : > { %10063 = vrcp.f32 %v4002_v52  ;;  %8329 = vmatprep.subr.bf16.mxu0 %v14916_v23  ;;  %v14924_v52 = vld [vmem:[#allocation35_spill] sm:$0xff]  ;;  %v14934_v23 = vld [vmem:[#allocation50_spill] sm:$0xff] }
 0x8ef   : > { %8331 = vmatpush1.bf16.msra.mxu0 %v14917_v32  ;;  %v14928_v32 = vld [vmem:[#allocation40_spill] sm:$0xff] }
 0x8f0   : > { %8333 = vmatprep.subr.bf16.mxu0 %v14918_v39  ;;  %v14925_v39 = vld [vmem:[#allocation36_spill] sm:$0xff] }
 0x8f3   : > { %8335 = vmatpush1.bf16.msra.mxu0 %v14919_v19  ;;  %v14926_v19 = vld [vmem:[#allocation38_spill] sm:$0xff] }
 0x8f4   : > { %8337 = vmatprep.subr.bf16.mxu0 %v14920_v36  ;;  %v14927_v36 = vld [vmem:[#allocation39_spill] sm:$0xff] }
 0x8f6   : > { %v10064_v16 = vpop.eup %10063 }
 0x8f7   : > { %8339 = vmatpush1.bf16.msra.mxu0 %v14921_v7  ;;  %v12622_v30 = vmul.f32 %v10064_v16, %v10062_v63  ;;  %v14929_v63 = vld [vmem:[#allocation41_spill] sm:$0xff]  ;;  %v14930_v16 = vld [vmem:[#allocation42_spill] sm:$0xff] }
 0x8f8   : > { %8405 = vmatprep.subr.bf16.mxu0 %v14922_v21  ;;  %v14931_v21 = vld [vmem:[#allocation44_spill] sm:$0xff]  ;;  %v14932_v7 = vld [vmem:[#allocation46_spill] sm:$0xff] }
 0x8fa   : > { %3675 = vmatmul.mubr.f32.vlgmr.msra.gmra.mrb[18].mxu0 %v12592_v5 }
 0x8fb   : > { %8407 = vmatpush1.bf16.msra.mxu0 %v14923_v12  ;;  %3843 = vmatprep.mubr.f32.mxu0 %v12298_v62  ;;  %v14933_v12 = vld [vmem:[#allocation48_spill] sm:$0xff] }
 0x8fc   : > { %8409 = vmatprep.subr.bf16.mxu0 %v14924_v52  ;;  %v14935_v52 = vld [vmem:[#allocation52_spill] sm:$0xff] }
 0x8ff   : > { %8411 = vmatpush1.bf16.msra.mxu0 %v14925_v39  ;;  %v14936_v39 = vld [vmem:[#allocation54_spill] sm:$0xff] }
 0x900   : > { %8413 = vmatprep.subr.bf16.mxu0 %v14926_v19  ;;  %v14937_v19 = vld [vmem:[#allocation56_spill] sm:$0xff] }
 0x903   : > { %8415 = vmatpush1.bf16.msra.mxu0 %v14927_v36  ;;  %v14938_v36 = vld [vmem:[#allocation58_spill] sm:$0xff] }
 0x904   : > { %8417 = vmatprep.subr.bf16.mxu0 %v14928_v32 }
 0x907   : > { %8419 = vmatpush1.bf16.msra.mxu0 %v14929_v63 }
 0x908   : > { %8421 = vmatprep.subr.bf16.mxu0 %v14930_v16  ;;  %v14939_v16 = vld [vmem:[#allocation60_spill] sm:$0xff] }
 0x90b   : > { %8423 = vmatpush1.bf16.msra.mxu0 %v14931_v21  ;;  %v14940_v21 = vld [vmem:[#allocation62_spill] sm:$0xff] }
 0x90c   : > { %8425 = vmatprep.subr.bf16.mxu0 %v14932_v7  ;;  %v14941_v7 = vld [vmem:[#allocation64_spill] sm:$0xff] }
 0x90f   : > { %8427 = vmatpush1.bf16.msra.mxu0 %v14933_v12  ;;  %v14942_v12 = vld [vmem:[#allocation66_spill] sm:$0xff] }
 0x910   : > { %8429 = vmatprep.subr.bf16.mxu0 %v14934_v23  ;;  %v14943_v23 = vld [vmem:[#allocation68_spill] sm:$0xff] }
 0x913   : > { %8431 = vmatpush1.bf16.msra.mxu0 %v14935_v52  ;;  %v14944_v52 = vld [vmem:[#allocation70_spill] sm:$0xff] }
 0x914   : > { %8433 = vmatprep.subr.bf16.mxu0 %v14936_v39  ;;  %v14945_v39 = vld [vmem:[#allocation72_spill] sm:$0xff] }
 0x917   : > { %8435 = vmatpush1.bf16.msra.mxu0 %v14937_v19  ;;  %v14946_v19 = vld [vmem:[#allocation74_spill] sm:$0xff] }
 0x918   : > { %8437 = vmatprep.subr.bf16.mxu0 %v14938_v36  ;;  %v14947_v36 = vld [vmem:[#allocation76_spill] sm:$0xff] }
 0x919   : > { %v12643_v32 = vpop.f32.mrb[28].mxu1 }
 0x91a   : > { %v12645_v63 = vpop.f32.mrb[29].mxu1 }
 0x91b   : > { %8439 = vmatpush1.bf16.msra.mxu0 %v14939_v16  ;;  %v14950_v16 = vld [vmem:[#allocation82_spill] sm:$0xff] }
 0x91c   : > { %8441 = vmatprep.subr.bf16.mxu0 %v14940_v21  ;;  %v14951_v21 = vld [vmem:[#allocation84_spill] sm:$0xff] }
 0x91f   : > { %8443 = vmatpush1.bf16.msra.mxu0 %v14941_v7  ;;  %v14952_v7 = vld [vmem:[#allocation86_spill] sm:$0xff] }
 0x920   : > { %8445 = vmatprep.subr.bf16.mxu0 %v14942_v12  ;;  %v14953_v12 = vld [vmem:[#allocation88_spill] sm:$0xff] }
 0x923   : > { %8447 = vmatpush1.bf16.msra.mxu0 %v14943_v23  ;;  %v14954_v23 = vld [vmem:[#allocation121_spill] sm:$0xff] }
 0x924   : > { %8449 = vmatprep.subr.bf16.mxu0 %v14944_v52  ;;  %v14966_v52 = vld [vmem:[#allocation133_spill] sm:$0xff] }
 0x927   : > { %8451 = vmatpush1.bf16.msra.mxu0 %v14945_v39  ;;  %v14955_v39 = vld [vmem:[#allocation122_spill] sm:$0xff] }
 0x928   : > { %8453 = vmatprep.subr.bf16.mxu0 %v14946_v19  ;;  %v14964_v19 = vld [vmem:[#allocation131_spill] sm:$0xff] }
 0x92b   : > { %8455 = vmatpush1.bf16.msra.mxu0 %v14947_v36  ;;  %v14956_v36 = vld [vmem:[#allocation123_spill] sm:$0xff] }
 0x92c   : > { %8457 = vmatprep.subr.bf16.mxu0 %v14948_v15  ;;  %v14957_v15 = vld [vmem:[#allocation124_spill] sm:$0xff] }
 0x92f   : > { %8459 = vmatpush1.bf16.msra.mxu0 %v14949_v47  ;;  %v14958_v47 = vld [vmem:[#allocation125_spill] sm:$0xff] }
 0x930   : > { %8461 = vmatprep.subr.bf16.mxu0 %v14950_v16  ;;  %v14959_v16 = vld [vmem:[#allocation126_spill] sm:$0xff] }
 0x933   : > { %8463 = vmatpush1.bf16.msra.mxu0 %v14951_v21  ;;  %v14960_v21 = vld [vmem:[#allocation127_spill] sm:$0xff] }
 0x934   : > { %8465 = vmatprep.subr.bf16.mxu0 %v14952_v7  ;;  %v14961_v7 = vld [vmem:[#allocation128_spill] sm:$0xff] }
 0x937   : > { %8467 = vmatpush1.bf16.msra.mxu0 %v14953_v12  ;;  %v14962_v12 = vld [vmem:[#allocation129_spill] sm:$0xff] }
 0x938   : > { %8533 = vmatprep.subr.bf16.mxu0 %v14954_v23  ;;  %v14963_v23 = vld [vmem:[#allocation130_spill] sm:$0xff] }
 0x93a   : > { %3844 = vmatmul.mubr.f32.vlgmr.msra.gmra.mrb[20].mxu0 %v12358_v38 }
 0x93b   : > { %8535 = vmatpush3.bf16.msra.mxu0 %v14955_v39  ;;  %3985 = vmatprep.mubr.f32.mxu0 %v12298_v62  ;;  %v14965_v39 = vld [vmem:[#allocation132_spill] sm:$0xff] }
 0x93c   : > { %8537 = vmatprep.subr.bf16.mxu0 %v14956_v36  ;;  %v14967_v36 = vld [vmem:[#allocation134_spill] sm:$0xff] }
 0x93f   : > { %8539 = vmatpush3.bf16.msra.mxu0 %v14957_v15  ;;  %v14968_v15 = vld [vmem:[#allocation135_spill] sm:$0xff] }
 0x940   : > { %8541 = vmatprep.subr.bf16.mxu0 %v14958_v47  ;;  %v14969_v47 = vld [vmem:[#allocation136_spill] sm:$0xff] }
 0x943   : > { %8543 = vmatpush3.bf16.msra.mxu0 %v14959_v16  ;;  %v14970_v16 = vld [vmem:[#allocation154_spill] sm:$0xff] }
 0x944   : > { %8545 = vmatprep.subr.bf16.mxu0 %v14960_v21 }
 0x947   : > { %8547 = vmatpush3.bf16.msra.mxu0 %v14961_v7  ;;  %v14971_v7 = vld [vmem:[#allocation155_spill] sm:$0xff] }
 0x948   : > { %8549 = vmatprep.subr.bf16.mxu0 %v14962_v12  ;;  %v14972_v12 = vld [vmem:[#allocation156_spill] sm:$0xff] }
 0x94b   : > { %8551 = vmatpush3.bf16.msra.mxu0 %v14963_v23  ;;  %v14973_v23 = vld [vmem:[#allocation157_spill] sm:$0xff] }
 0x94c   : > { %8553 = vmatprep.subr.bf16.mxu0 %v14964_v19  ;;  %v14974_v19 = vld [vmem:[#allocation158_spill] sm:$0xff] }
 0x94f   : > { %8555 = vmatpush3.bf16.msra.mxu0 %v14965_v39  ;;  %v14975_v39 = vld [vmem:[#allocation159_spill] sm:$0xff] }
 0x950   : > { %8557 = vmatprep.subr.bf16.mxu0 %v14966_v52  ;;  %v14976_v52 = vld [vmem:[#allocation160_spill] sm:$0xff] }
 0x953   : > { %8559 = vmatpush3.bf16.msra.mxu0 %v14967_v36  ;;  %v14977_v36 = vld [vmem:[#allocation161_spill] sm:$0xff] }
 0x954   : > { %8561 = vmatprep.subr.bf16.mxu0 %v14968_v15  ;;  %v14978_v15 = vld [vmem:[#allocation162_spill] sm:$0xff] }
 0x957   : > { %8563 = vmatpush3.bf16.msra.mxu0 %v14969_v47  ;;  %v14979_v47 = vld [vmem:[#allocation163_spill] sm:$0xff] }
 0x958   : > { %8629 = vmatprep.subr.bf16.mxu0 %v14970_v16  ;;  %v14980_v16 = vld [vmem:[#allocation164_spill] sm:$0xff] }
 0x95a   : > { %3986 = vmatmul.mubr.f32.vlgmr.msra.gmra.mrb[22].mxu0 %v12358_v38  ;;  %v14981_v38 = vld [vmem:[#allocation165_spill] sm:$0xff] }
 0x95b   : > { %8631 = vmatpush1.bf16.msra.mxu0 %v14971_v7  ;;  %v14982_v7 = vld [vmem:[#allocation166_spill] sm:$0xff] }
 0x95c   : > { %8633 = vmatprep.subr.bf16.mxu0 %v14972_v12  ;;  %v14983_v12 = vld [vmem:[#allocation167_spill] sm:$0xff] }
 0x95f   : > { %8635 = vmatpush1.bf16.msra.mxu0 %v14973_v23  ;;  %v14984_v23 = vld [vmem:[#allocation168_spill] sm:$0xff] }
 0x960   : > { %8637 = vmatprep.subr.bf16.mxu0 %v14974_v19  ;;  %v14985_v19 = vld [vmem:[#allocation169_spill] sm:$0xff] }
 0x963   : > { %8639 = vmatpush1.bf16.msra.mxu0 %v14975_v39  ;;  %v14986_v39 = vld [vmem:[#allocation217_spill] sm:$0xff] }
 0x964   : > { %8641 = vmatprep.subr.bf16.mxu0 %v14976_v52  ;;  %v14987_v52 = vld [vmem:[#allocation219_spill] sm:$0xff] }
 0x967   : > { %8643 = vmatpush1.bf16.msra.mxu0 %v14977_v36  ;;  %v14988_v36 = vld [vmem:[#allocation221_spill] sm:$0xff] }
 0x968   : > { %8645 = vmatprep.subr.bf16.mxu0 %v14978_v15  ;;  %v14989_v15 = vld [vmem:[#allocation223_spill] sm:$0xff] }
 0x96b   : > { %8647 = vmatpush1.bf16.msra.mxu0 %v14979_v47  ;;  %v14990_v47 = vld [vmem:[#allocation225_spill] sm:$0xff] }
 0x96c   : > { %8649 = vmatprep.subr.bf16.mxu0 %v14980_v16  ;;  %v14991_v16 = vld [vmem:[#allocation227_spill] sm:$0xff] }
 0x96f   : > { %8651 = vmatpush1.bf16.msra.mxu0 %v14981_v38  ;;  %v14992_v38 = vld [vmem:[#allocation229_spill] sm:$0xff] }
 0x970   : > { %8653 = vmatprep.subr.bf16.mxu0 %v14982_v7  ;;  %v14993_v7 = vld [vmem:[#allocation231_spill] sm:$0xff] }
 0x973   : > { %8655 = vmatpush1.bf16.msra.mxu0 %v14983_v12  ;;  %v14994_v12 = vld [vmem:[#allocation233_spill] sm:$0xff] }
 0x974   : > { %8657 = vmatprep.subr.bf16.mxu0 %v14984_v23  ;;  %v14995_v23 = vld [vmem:[#allocation235_spill] sm:$0xff] }
 0x977   : > { %8659 = vmatpush1.bf16.msra.mxu0 %v14985_v19  ;;  %v14996_v19 = vld [vmem:[#allocation237_spill] sm:$0xff] }
 0x978   : > { %8661 = vmatprep.subr.bf16.mxu0 %v14986_v39  ;;  %v14997_v39 = vld [vmem:[#allocation239_spill] sm:$0xff] }
 0x97b   : > { %8663 = vmatpush1.bf16.msra.mxu0 %v14987_v52  ;;  %v14998_v52 = vld [vmem:[#allocation241_spill] sm:$0xff] }
 0x97c   : > { %8665 = vmatprep.subr.bf16.mxu0 %v14988_v36  ;;  %v14999_v36 = vld [vmem:[#allocation243_spill] sm:$0xff] }
 0x97f   : > { %8667 = vmatpush1.bf16.msra.mxu0 %v14989_v15  ;;  %v15000_v15 = vld [vmem:[#allocation245_spill] sm:$0xff] }
 0x980   : > { %8669 = vmatprep.subr.bf16.mxu0 %v14990_v47  ;;  %v15001_v47 = vld [vmem:[#allocation247_spill] sm:$0xff] }
 0x983   : > { %8671 = vmatpush1.bf16.msra.mxu0 %v14991_v16  ;;  %v15002_v16 = vld [vmem:[#allocation185_spill] sm:$0xff] }
 0x984   : > { %8673 = vmatprep.subr.bf16.mxu0 %v14992_v38  ;;  %v15003_v38 = vld [vmem:[#allocation375_spill] sm:$0xff] }
 0x987   : > { %8675 = vmatpush1.bf16.msra.mxu0 %v14993_v7 }
 0x988   : > { %8677 = vmatprep.subr.bf16.mxu0 %v14994_v12 }
 0x98b   : > { %8679 = vmatpush1.bf16.msra.mxu0 %v14995_v23 }
 0x98c   : > { %8681 = vmatprep.subr.bf16.mxu0 %v14996_v19 }
 0x98f   : > { %8683 = vmatpush1.bf16.msra.mxu0 %v14997_v39 }
 0x990   : > { %8685 = vmatprep.subr.bf16.mxu0 %v14998_v52  ;;  %v15004_v52 = vld [vmem:[#allocation376_spill] sm:$0xff] }
 0x993   : > { %8687 = vmatpush1.bf16.msra.mxu0 %v14999_v36 }
 0x994   : > { %8689 = vmatprep.subr.bf16.mxu0 %v15000_v15 }
 0x997   : > { %8691 = vmatpush1.bf16.msra.mxu0 %v15001_v47 }
 0x998   : > { %8693 = vmatprep.subr.bf16.mxu0 %v15002_v16 }
 0x9cd   : > { %v3676_v7 = vpop.f32.mrb[18].mxu0 }
 0x9ce   : > { %v3681_v12 = vadd.f32 %v3676_v7, %v15003_v38  ;;  %v3678_v23 = vpop.f32.mrb[19].mxu0  ;;  %v6422_v7 = vld [vmem:[%s10902_s19 + $0x98] sm:$0xff] }
 0x9cf   : > { %v3682_v21 = vadd.f32 %v3678_v23, %v15004_v52  ;;  %v6420_v52 = vld [vmem:[%s10902_s19 + $0x88] sm:$0xff] }
 0x9d0   : > { %v3683_v19 = vadd.f32 %v3681_v12, %v12595_v27  ;;  %v6421_v27 = vld [vmem:[%s10902_s19 + $0x90] sm:$0xff] }
 0x9d1   : > { %v3995_v23 = vadd.f32 %v6421_v27, %v12643_v32 }
 0x9d2   : > { %v6415_v39 = vmul.f32 -1.442695, %v3683_v19 }
 0x9d4   : > { %10065 = vpow2.f32 %v6415_v39  ;;  %v3996_v39 = vadd.f32 %v6422_v7, %v12645_v63 }
 0x9d5   : > { %10067 = vtanh.f32 %v3682_v21 }
 0x9d6   : > { %v6427_v19 = vmul.f32 -1.442695, %v3996_v39 }
 0x9de   : > { %v10066_v36 = vpop.eup %10065 }
 0x9df   : > { %v3687_v54 = vadd.f32 1.0, %v10066_v36  ;;  %v10068_v47 = vpop.eup %10067  ;;  %v6426_v36 = vmul.f32 -1.442695, %v3995_v23 }
 0x9e1   : > { %10069 = vrcp.f32 %v3687_v54 }
 0x9e2   : > { %10071 = vpow2.f32 %v6427_v19 }
 0x9e3   : > { %10073 = vpow2.f32 %v6426_v36 }
 0x9eb   : > { %v10070_v15 = vpop.eup %10069 }
 0x9ec   : > { %v12717_v16 = vmul.f32 %v10070_v15, %v10068_v47  ;;  %v10072_v54 = vpop.eup %10071  ;;  %v6419_v47 = vld [vmem:[%s10902_s19 + $0x80] sm:$0xff] }
 0x9ed   : > { %v10074_v21 = vpop.eup %10073  ;;  %v4024_v12 = vadd.f32 1.0, %v10072_v54  ;;  %v15009_v54 = vld [vmem:[#allocation176_spill] sm:$0xff] }
 0x9ee   : > { %6416 = vst [vmem:[%s10925_s4 + $0x8] sm:$0xff] %v12717_v16  ;;  %4253 = vmatprep.mubr.f32.mxu0 %v12717_v16  ;;  %v4018_v15 = vadd.f32 1.0, %v10074_v21 }
 0x9ef   : > { %10075 = vrcp.f32 %v4024_v12 }
 0x9f0   : > { %10077 = vrcp.f32 %v4018_v15 }
 0x9f9   : > { %v10076_v32 = vpop.eup %10075 }
 0x9fa   : > { %v10078_v63 = vpop.eup %10077  ;;  %v4027_v39 = vmul.f32 %v10076_v32, %v12298_v62  ;;  %v15007_v62 = vld [vmem:[#allocation175_spill] sm:$0xff]  ;;  %v15011_v32 = vld [vmem:[#allocation178_spill] sm:$0xff] }
 0xa0d   : > { %v3845_v38 = vpop.f32.mrb[20].mxu0 }
 0xa0e   : > { %v3993_v13 = vadd.f32 %v6419_v47, %v3845_v38  ;;  %v3847_v10 = vpop.f32.mrb[21].mxu0  ;;  %v15010_v47 = vld [vmem:[#allocation177_spill] sm:$0xff] }
 0xa0f   : > { %v3994_v48 = vadd.f32 %v6420_v52, %v3847_v10  ;;  %v15006_v10 = vld [vmem:[#allocation174_spill] sm:$0xff] }
 0xa10   : > { %v6425_v6 = vmul.f32 -1.442695, %v3993_v13  ;;  %v15008_v13 = vld [vmem:[#allocation170_spill] sm:$0xff] }
 0xa11   : > { %10079 = vtanh.f32 %v3994_v48  ;;  %v15005_v48 = vld [vmem:[#allocation173_spill] sm:$0xff] }
 0xa12   : > { %10081 = vpow2.f32 %v6425_v6 }
 0xa1b   : > { %v10080_v7 = vpop.eup %10079 }
 0xa1c   : > { %v10082_v27 = vpop.eup %10081  ;;  %v4028_v23 = vmul.f32 %v10080_v7, %v10078_v63  ;;  %v15012_v63 = vld [vmem:[#allocation179_spill] sm:$0xff]  ;;  %v15013_v7 = vld [vmem:[#allocation180_spill] sm:$0xff] }
 0xa1d   : > { %v4008_v19 = vadd.f32 1.0, %v10082_v27  ;;  %v15014_v27 = vld [vmem:[#allocation181_spill] sm:$0xff] }
 0xa1e   : > { %v12729_v36 = vadd.f32 %v4028_v23, %v4027_v39  ;;  %v15015_v39 = vld [vmem:[#allocation182_spill] sm:$0xff]  ;;  %v15016_v23 = vld [vmem:[#allocation183_spill] sm:$0xff] }
 0xa1f   : > { %10083 = vrcp.f32 %v4008_v19  ;;  %v15018_v19 = vld [vmem:[#allocation201_spill] sm:$0xff] }
 0xa20   : > { %4095 = vmatmul.mubr.f32.vlgmr.msra.gmra.mrb[30].mxu1 %v12729_v36 }
 0xa21   : > { %8599 = vmatpush1.bf16.msra.mxu1 %v14688_v60  ;;  %4165 = vmatprep.mubr.f32.mxu1 %v14353_v2 }
 0xa22   : > { %8601 = vmatprep.subr.bf16.mxu1 %v14689_v33 }
 0xa25   : > { %8603 = vmatpush1.bf16.msra.mxu1 %v14690_v41 }
 0xa26   : > { %8605 = vmatprep.subr.bf16.mxu1 %v15005_v48 }
 0xa29   : > { %v10084_v6 = vpop.eup %10083  ;;  %8607 = vmatpush1.bf16.msra.mxu1 %v15006_v10 }
 0xa2a   : > { %8609 = vmatprep.subr.bf16.mxu1 %v15007_v62  ;;  %v4011_v52 = vmul.f32 %v10084_v6, %v15008_v13  ;;  %v15019_v6 = vld [vmem:[#allocation202_spill] sm:$0xff]  ;;  %v15020_v13 = vld [vmem:[#allocation203_spill] sm:$0xff] }
 0xa2c   : > { %v12741_v38 = vadd.f32 %v12622_v30, %v4011_v52  ;;  %v15017_v30 = vld [vmem:[#allocation184_spill] sm:$0xff] }
 0xa2d   : > { %8611 = vmatpush1.bf16.msra.mxu1 %v15009_v54  ;;  %v6666_v21 = vpop.f32.mrb[22].mxu0  ;;  %v15021_v52 = vld [vmem:[#allocation204_spill] sm:$0xff] }
 0xa2e   : > { %v6667_v12 = vpop.f32.mrb[23].mxu0  ;;  %8613 = vmatprep.subr.bf16.mxu1 %v15010_v47 }
 0xa2f   : > { %v6668_v15 = vadd.f32 %v6667_v12, %v6666_v21  ;;  %v15022_v21 = vld [vmem:[#allocation205_spill] sm:$0xff]  ;;  %v15023_v12 = vld [vmem:[#allocation206_spill] sm:$0xff] }
 0xa31   : > { %8615 = vmatpush1.bf16.msra.mxu1 %v15011_v32 }
 0xa32   : > { %8617 = vmatprep.subr.bf16.mxu1 %v15012_v63 }
 0xa35   : > { %8619 = vmatpush1.bf16.msra.mxu1 %v15013_v7  ;;  %v15029_v7 = vld [vmem:[#allocation212_spill] sm:$0xff] }
 0xa36   : > { %8621 = vmatprep.subr.bf16.mxu1 %v15014_v27  ;;  %v15028_v27 = vld [vmem:[#allocation211_spill] sm:$0xff] }
 0xa39   : > { %8623 = vmatpush1.bf16.msra.mxu1 %v15015_v39  ;;  %v15024_v39 = vld [vmem:[#allocation207_spill] sm:$0xff] }
 0xa3a   : > { %8625 = vmatprep.subr.bf16.mxu1 %v15016_v23  ;;  %v15025_v23 = vld [vmem:[#allocation208_spill] sm:$0xff] }
 0xa3d   : > { %8627 = vmatpush1.bf16.msra.mxu1 %v15017_v30  ;;  %v15026_v30 = vld [vmem:[#allocation209_spill] sm:$0xff] }
 0xa3e   : > { %8725 = vmatprep.subr.bf16.mxu1 %v15018_v19  ;;  %v15027_v19 = vld [vmem:[#allocation210_spill] sm:$0xff] }
 0xa40   : > { %4166 = vmatmul.mubr.f32.vlgmr.msra.gmra.mrb[30].mxu1 %v12741_v38 }
 0xa41   : > { %4395 = vmatprep.mubr.f32.mxu1 %v12717_v16  ;;  %8727 = vmatpush1.bf16.msra.mxu1 %v15019_v6  ;;  %v15030_v6 = vld [vmem:[#allocation213_spill] sm:$0xff] }
 0xa42   : > { %8729 = vmatprep.subr.bf16.mxu1 %v15020_v13  ;;  %v15031_v13 = vld [vmem:[#allocation214_spill] sm:$0xff] }
 0xa45   : > { %8731 = vmatpush1.bf16.msra.mxu1 %v15021_v52  ;;  %v15032_v52 = vld [vmem:[#allocation215_spill] sm:$0xff] }
 0xa46   : > { %8733 = vmatprep.subr.bf16.mxu1 %v15022_v21  ;;  %v15033_v21 = vld [vmem:[#allocation216_spill] sm:$0xff] }
 0xa49   : > { %8735 = vmatpush1.bf16.msra.mxu1 %v15023_v12  ;;  %v15034_v12 = vld [vmem:[#allocation218_spill] sm:$0xff] }
 0xa4a   : > { %8737 = vmatprep.subr.bf16.mxu1 %v15024_v39  ;;  %v15035_v39 = vld [vmem:[#allocation220_spill] sm:$0xff] }
 0xa4d   : > { %8739 = vmatpush1.bf16.msra.mxu1 %v15025_v23  ;;  %v15036_v23 = vld [vmem:[#allocation222_spill] sm:$0xff] }
 0xa4e   : > { %8741 = vmatprep.subr.bf16.mxu1 %v15026_v30  ;;  %v15046_v30 = vld [vmem:[#allocation242_spill] sm:$0xff] }
 0xa51   : > { %8743 = vmatpush1.bf16.msra.mxu1 %v15027_v19  ;;  %v15037_v19 = vld [vmem:[#allocation224_spill] sm:$0xff] }
 0xa52   : > { %8745 = vmatprep.subr.bf16.mxu1 %v15028_v27  ;;  %v15038_v27 = vld [vmem:[#allocation226_spill] sm:$0xff] }
 0xa55   : > { %8747 = vmatpush1.bf16.msra.mxu1 %v15029_v7  ;;  %v15039_v7 = vld [vmem:[#allocation228_spill] sm:$0xff] }
 0xa56   : > { %8749 = vmatprep.subr.bf16.mxu1 %v15030_v6  ;;  %v15040_v6 = vld [vmem:[#allocation230_spill] sm:$0xff] }
 0xa59   : > { %8751 = vmatpush1.bf16.msra.mxu1 %v15031_v13  ;;  %v15041_v13 = vld [vmem:[#allocation232_spill] sm:$0xff] }
 0xa5a   : > { %8753 = vmatprep.subr.bf16.mxu1 %v15032_v52  ;;  %v15042_v52 = vld [vmem:[#allocation234_spill] sm:$0xff] }
 0xa5d   : > { %8755 = vmatpush1.bf16.msra.mxu1 %v15033_v21  ;;  %v15043_v21 = vld [vmem:[#allocation236_spill] sm:$0xff] }
 0xa5e   : > { %8757 = vmatprep.subr.bf16.mxu1 %v15034_v12  ;;  %v15044_v12 = vld [vmem:[#allocation238_spill] sm:$0xff] }
 0xa61   : > { %8759 = vmatpush1.bf16.msra.mxu1 %v15035_v39  ;;  %v15045_v39 = vld [vmem:[#allocation240_spill] sm:$0xff] }
 0xa62   : > { %8761 = vmatprep.subr.bf16.mxu1 %v15036_v23  ;;  %v15047_v23 = vld [vmem:[#allocation244_spill] sm:$0xff] }
 0xa65   : > { %8763 = vmatpush1.bf16.msra.mxu1 %v15037_v19  ;;  %v15048_v19 = vld [vmem:[#allocation246_spill] sm:$0xff] }
 0xa66   : > { %8765 = vmatprep.subr.bf16.mxu1 %v15038_v27  ;;  %v15049_v27 = vld [vmem:[#allocation248_spill] sm:$0xff] }
 0xa69   : > { %8767 = vmatpush1.bf16.msra.mxu1 %v15039_v7 }
 0xa6a   : > { %8769 = vmatprep.subr.bf16.mxu1 %v15040_v6  ;;  %v6423_v6 = vld [vmem:[%s10902_s19 + $0xa0] sm:$0xff] }
 0xa6b   : > { %v3997_v7 = vadd.f32 %v6668_v15, %v6423_v6  ;;  %v15050_v15 = vld [vmem:[#allocation187_spill] sm:$0xff] }
 0xa6c   : > { %v15058_v6 = vld [vmem:[#allocation191_spill] sm:$0xff] }
 0xa6d   : > { %8771 = vmatpush1.bf16.msra.mxu1 %v15041_v13 }
 0xa6e   : > { %8773 = vmatprep.subr.bf16.mxu1 %v15042_v52 }
 0xa71   : > { %8775 = vmatpush1.bf16.msra.mxu1 %v15043_v21 }
 0xa72   : > { %8777 = vmatprep.subr.bf16.mxu1 %v15044_v12 }
 0xa75   : > { %8779 = vmatpush1.bf16.msra.mxu1 %v15045_v39 }
 0xa76   : > { %8781 = vmatprep.subr.bf16.mxu1 %v15046_v30 }
 0xa79   : > { %8783 = vmatpush1.bf16.msra.mxu1 %v15047_v23 }
 0xa7a   : > { %8785 = vmatprep.subr.bf16.mxu1 %v15048_v19 }
 0xa7d   : > { %8787 = vmatpush1.bf16.msra.mxu1 %v15049_v27 }
 0xa7e   : > { %8789 = vmatprep.subr.bf16.mxu1 %v14736_v28 }
 0xb13   : > { %v4167_v13 = vpop.f32.mrb[30].mxu1 }
 0xb14   : > { %v4172_v52 = vadd.f32 %v4167_v13, %v14737_v61  ;;  %v4169_v21 = vpop.f32.mrb[31].mxu1  ;;  %v15059_v13 = vld [vmem:[#allocation266_spill] sm:$0xff] }
 0xb15   : > { %v4173_v39 = vadd.f32 %v4169_v21, %v14738_v31  ;;  %v15061_v21 = vld [vmem:[#allocation268_spill] sm:$0xff] }
 0xb16   : > { %v4174_v63 = vadd.f32 %v4172_v52, %v3997_v7  ;;  %v15053_v7 = vld [vmem:[#allocation260_spill] sm:$0xff] }
 0xb17   : > { %v15060_v52 = vld [vmem:[#allocation192_spill] sm:$0xff] }
 0xb18   : > { %v6428_v12 = vmul.f32 -1.442695, %v4174_v63  ;;  %v15051_v63 = vld [vmem:[#allocation258_spill] sm:$0xff] }
 0xb1a   : > { %10085 = vpow2.f32 %v6428_v12  ;;  %v15062_v12 = vld [vmem:[#allocation193_spill] sm:$0xff] }
 0xb1b   : > { %10087 = vtanh.f32 %v4173_v39  ;;  %v15054_v39 = vld [vmem:[#allocation189_spill] sm:$0xff] }
 0xb24   : > { %v10086_v30 = vpop.eup %10085 }
 0xb25   : > { %v4178_v32 = vadd.f32 1.0, %v10086_v30  ;;  %v10088_v19 = vpop.eup %10087  ;;  %v15056_v30 = vld [vmem:[#allocation190_spill] sm:$0xff] }
 0xb27   : > { %10089 = vrcp.f32 %v4178_v32  ;;  %v15052_v32 = vld [vmem:[#allocation188_spill] sm:$0xff] }
 0xb31   : > { %v10090_v23 = vpop.eup %10089 }
 0xb32   : > { %v12790_v27 = vmul.f32 %v10090_v23, %v10088_v19  ;;  %v15055_v23 = vld [vmem:[#allocation262_spill] sm:$0xff]  ;;  %v15057_v19 = vld [vmem:[#allocation264_spill] sm:$0xff] }
 0xb34   : > { %4254 = vmatmul.mubr.f32.vlgmr.msra.gmra.mrb[24].mxu0 %v12790_v27  ;;  %4396 = vmatmul.mubr.f32.vlgmr.msra.gmra.mrb[32].mxu1 %v12790_v27 }
 0xb35   : > { %8695 = vmatpush1.bf16.msra.mxu0 %v14739_v56  ;;  %8791 = vmatpush1.bf16.msra.mxu1 %v14740_v37 }
 0xb36   : > { %8697 = vmatprep.subr.bf16.mxu0 %v15050_v15  ;;  %8793 = vmatprep.subr.bf16.mxu1 %v15051_v63 }
 0xb37   : > { %4324 = vmatprep.mubr.f32.mxu0 %v14353_v2  ;;  %4466 = vmatprep.mubr.f32.mxu1 %v14353_v2 }
 0xb39   : > { %8699 = vmatpush1.bf16.msra.mxu0 %v15052_v32  ;;  %8795 = vmatpush1.bf16.msra.mxu1 %v15053_v7  ;;  %v15063_v32 = vld [vmem:[#allocation270_spill] sm:$0xff] }
 0xb3a   : > { %8701 = vmatprep.subr.bf16.mxu0 %v15054_v39  ;;  %8797 = vmatprep.subr.bf16.mxu1 %v15055_v23  ;;  %v15064_v7 = vld [vmem:[#allocation194_spill] sm:$0xff]  ;;  %v15065_v39 = vld [vmem:[#allocation272_spill] sm:$0xff]  ;;  %v15066_v23 = vld [vmem:[#allocation195_spill] sm:$0xff] }
 0xb3d   : > { %8703 = vmatpush1.bf16.msra.mxu0 %v15056_v30  ;;  %8799 = vmatpush1.bf16.msra.mxu1 %v15057_v19  ;;  %v15067_v30 = vld [vmem:[#allocation274_spill] sm:$0xff] }
 0xb3e   : > { %8705 = vmatprep.subr.bf16.mxu0 %v15058_v6  ;;  %8801 = vmatprep.subr.bf16.mxu1 %v15059_v13 }
 0xb41   : > { %8707 = vmatpush1.bf16.msra.mxu0 %v15060_v52  ;;  %8803 = vmatpush1.bf16.msra.mxu1 %v15061_v21  ;;  %v15068_v52 = vld [vmem:[#allocation278_spill] sm:$0xff] }
 0xb42   : > { %8709 = vmatprep.subr.bf16.mxu0 %v15062_v12  ;;  %8805 = vmatprep.subr.bf16.mxu1 %v15063_v32  ;;  %v15069_v21 = vld [vmem:[#allocation198_spill] sm:$0xff]  ;;  %v15070_v12 = vld [vmem:[#allocation280_spill] sm:$0xff]  ;;  %v15071_v32 = vld [vmem:[#allocation199_spill] sm:$0xff] }
 0xb45   : > { %8711 = vmatpush1.bf16.msra.mxu0 %v15064_v7  ;;  %8807 = vmatpush1.bf16.msra.mxu1 %v15065_v39  ;;  %v15072_v7 = vld [vmem:[#allocation282_spill] sm:$0xff]  ;;  %v15073_v39 = vld [vmem:[#allocation200_spill] sm:$0xff] }
 0xb46   : > { %8713 = vmatprep.subr.bf16.mxu0 %v15066_v23  ;;  %8809 = vmatprep.subr.bf16.mxu1 %v15067_v30  ;;  %v15074_v23 = vld [vmem:[#allocation284_spill] sm:$0xff]  ;;  %v15075_v30 = vld [vmem:[#allocation250_spill] sm:$0xff] }
 0xb49   : > { %8715 = vmatpush1.bf16.msra.mxu0 %v14759_v55  ;;  %8811 = vmatpush1.bf16.msra.mxu1 %v14760_v45  ;;  %v15076_v55 = vld [vmem:[#allocation287_spill] sm:$0xff] }
 0xb4a   : > { %8717 = vmatprep.subr.bf16.mxu0 %v14761_v25  ;;  %8813 = vmatprep.subr.bf16.mxu1 %v15068_v52  ;;  %v15077_v52 = vld [vmem:[#allocation257_spill] sm:$0xff] }
 0xb4d   : > { %8719 = vmatpush1.bf16.msra.mxu0 %v15069_v21  ;;  %8815 = vmatpush1.bf16.msra.mxu1 %v15070_v12  ;;  %v15078_v12 = vld [vmem:[#allocation289_spill] sm:$0xff] }
 0xb4e   : > { %8721 = vmatprep.subr.bf16.mxu0 %v15071_v32  ;;  %8817 = vmatprep.subr.bf16.mxu1 %v15072_v7  ;;  %v15079_v7 = vld [vmem:[#allocation259_spill] sm:$0xff] }
 0xb4f   : > { %v15084_v32 = vld [vmem:[#allocation295_spill] sm:$0xff] }
 0xb51   : > { %8723 = vmatpush1.bf16.msra.mxu0 %v15073_v39  ;;  %8819 = vmatpush1.bf16.msra.mxu1 %v15074_v23  ;;  %v15080_v39 = vld [vmem:[#allocation291_spill] sm:$0xff]  ;;  %v15081_v23 = vld [vmem:[#allocation261_spill] sm:$0xff] }
 0xb52   : > { %8821 = vmatprep.subr.bf16.mxu0 %v15075_v30  ;;  %8917 = vmatprep.subr.bf16.mxu1 %v15076_v55  ;;  %v15082_v30 = vld [vmem:[#allocation293_spill] sm:$0xff]  ;;  %v15083_v55 = vld [vmem:[#allocation263_spill] sm:$0xff] }
 0xb54   : > { %4325 = vmatmul.mubr.f32.vlgmr.msra.gmra.mrb[24].mxu0 %v12602_v50  ;;  %4467 = vmatmul.mubr.f32.vlgmr.msra.gmra.mrb[32].mxu1 %v12602_v50 }
 0xb55   : > { %8823 = vmatpush1.bf16.msra.mxu0 %v15077_v52  ;;  %4537 = vmatprep.mubr.f32.mxu0 %v12717_v16  ;;  %v15085_v52 = vld [vmem:[#allocation297_spill] sm:$0xff] }
 0xb56   : > { %8919 = vmatpush3.bf16.msra.mxu1 %v15078_v12  ;;  %4679 = vmatprep.mubr.f32.mxu1 %v12717_v16  ;;  %v15086_v12 = vld [vmem:[#allocation299_spill] sm:$0xff]  ;;  %v15087_v16 = vld [vmem:[#allocation301_spill] sm:$0xff] }
 0xb57   : > { %8825 = vmatprep.subr.bf16.mxu0 %v15079_v7  ;;  %8921 = vmatprep.subr.bf16.mxu1 %v15080_v39  ;;  %v15088_v39 = vld [vmem:[#allocation271_spill] sm:$0xff] }
 0xb59   : > { %8827 = vmatpush1.bf16.msra.mxu0 %v15081_v23  ;;  %v15089_v23 = vld [vmem:[#allocation303_spill] sm:$0xff] }
 0xb5a   : > { %8923 = vmatpush3.bf16.msra.mxu1 %v15082_v30  ;;  %8829 = vmatprep.subr.bf16.mxu0 %v15083_v55  ;;  %v15090_v30 = vld [vmem:[#allocation273_spill] sm:$0xff] }
 0xb5b   : > { %8925 = vmatprep.subr.bf16.mxu1 %v15084_v32  ;;  %v15091_v55 = vld [vmem:[#allocation305_spill] sm:$0xff]  ;;  %v15092_v32 = vld [vmem:[#allocation275_spill] sm:$0xff] }
 0xb5d   : > { %8831 = vmatpush1.bf16.msra.mxu0 %v14777_v20  ;;  %v15093_v20 = vld [vmem:[#allocation307_spill] sm:$0xff] }
 0xb5e   : > { %8927 = vmatpush3.bf16.msra.mxu1 %v15085_v52  ;;  %8833 = vmatprep.subr.bf16.mxu0 %v14779_v26  ;;  %v15094_v52 = vld [vmem:[#allocation277_spill] sm:$0xff] }
 0xb5f   : > { %8929 = vmatprep.subr.bf16.mxu1 %v15086_v12  ;;  %v15095_v12 = vld [vmem:[#allocation279_spill] sm:$0xff] }
 0xb61   : > { %8835 = vmatpush1.bf16.msra.mxu0 %v14781_v44  ;;  %v15096_v44 = vld [vmem:[#allocation310_spill] sm:$0xff] }
 0xb62   : > { %8931 = vmatpush3.bf16.msra.mxu1 %v15087_v16  ;;  %8837 = vmatprep.subr.bf16.mxu0 %v15088_v39  ;;  %v15097_v16 = vld [vmem:[#allocation281_spill] sm:$0xff]  ;;  %v15098_v39 = vld [vmem:[#allocation312_spill] sm:$0xff] }
 0xb63   : > { %8933 = vmatprep.subr.bf16.mxu1 %v15089_v23  ;;  %v15099_v23 = vld [vmem:[#allocation283_spill] sm:$0xff] }
 0xb65   : > { %8839 = vmatpush1.bf16.msra.mxu0 %v15090_v30  ;;  %v15100_v30 = vld [vmem:[#allocation314_spill] sm:$0xff] }
 0xb66   : > { %8935 = vmatpush3.bf16.msra.mxu1 %v15091_v55  ;;  %8841 = vmatprep.subr.bf16.mxu0 %v15092_v32  ;;  %v15101_v55 = vld [vmem:[#allocation285_spill] sm:$0xff]  ;;  %v15102_v32 = vld [vmem:[#allocation316_spill] sm:$0xff] }
 0xb67   : > { %8937 = vmatprep.subr.bf16.mxu1 %v15093_v20  ;;  %v15103_v20 = vld [vmem:[#allocation286_spill] sm:$0xff] }
 0xb69   : > { %8843 = vmatpush1.bf16.msra.mxu0 %v15094_v52 }
 0xb6a   : > { %8939 = vmatpush3.bf16.msra.mxu1 %v11826_v59  ;;  %8845 = vmatprep.subr.bf16.mxu0 %v15095_v12  ;;  %v15104_v12 = vld [vmem:[#allocation288_spill] sm:$0xff] }
 0xb6b   : > { %8941 = vmatprep.subr.bf16.mxu1 %v15096_v44  ;;  %v15105_v44 = vld [vmem:[#allocation319_spill] sm:$0xff] }
 0xb6d   : > { %8847 = vmatpush1.bf16.msra.mxu0 %v15097_v16  ;;  %v15106_v16 = vld [vmem:[#allocation290_spill] sm:$0xff] }
 0xb6e   : > { %8943 = vmatpush3.bf16.msra.mxu1 %v15098_v39  ;;  %8849 = vmatprep.subr.bf16.mxu0 %v15099_v23 }
 0xb6f   : > { %8945 = vmatprep.subr.bf16.mxu1 %v15100_v30  ;;  %v15113_v30 = vld [vmem:[#allocation302_spill] sm:$0xff] }
 0xb71   : > { %8851 = vmatpush1.bf16.msra.mxu0 %v15101_v55  ;;  %v15107_v55 = vld [vmem:[#allocation292_spill] sm:$0xff] }
 0xb72   : > { %8947 = vmatpush3.bf16.msra.mxu1 %v15102_v32  ;;  %8853 = vmatprep.subr.bf16.mxu0 %v15103_v20  ;;  %v15108_v32 = vld [vmem:[#allocation322_spill] sm:$0xff] }
 0xb73   : > { %8948 = vmatprep.subr.bf16.mxu1 %v14797_v35  ;;  %v15109_v20 = vld [vmem:[#allocation294_spill] sm:$0xff] }
 0xb75   : > { %4680 = vmatmul.mubr.f32.vlgmr.msra.gmra.mrb[34].mxu1 %v12790_v27  ;;  %8855 = vmatpush1.bf16.msra.mxu0 %v15104_v12  ;;  %v15110_v12 = vld [vmem:[#allocation325_spill] sm:$0xff] }
 0xb76   : > { %8950 = vmatpush3.bf16.msra.mxu1 %v15105_v44  ;;  %8857 = vmatprep.subr.bf16.mxu0 %v15106_v16  ;;  %v15111_v44 = vld [vmem:[#allocation298_spill] sm:$0xff]  ;;  %v15112_v16 = vld [vmem:[#allocation328_spill] sm:$0xff] }
 0xb77   : > { %8951 = vmatprep.subr.bf16.mxu1 %v14797_v35  ;;  %6910 = vmatprep.mubr.msk.f32.mxu1 %vm10528_vm0, %v14353_v2 }
 0xb79   : > { %8859 = vmatpush1.bf16.msra.mxu0 %v15107_v55 }
 0xb7a   : > { %8953 = vmatpush3.bf16.msra.mxu1 %v15108_v32  ;;  %8861 = vmatprep.subr.bf16.mxu0 %v15109_v20  ;;  %v15114_v20 = vld [vmem:[#allocation331_spill] sm:$0xff]  ;;  %v15115_v32 = vld [vmem:[#allocation306_spill] sm:$0xff] }
 0xb7b   : > { %8954 = vmatprep.subr.bf16.mxu1 %v14797_v35 }
 0xb7d   : > { %8863 = vmatpush1.bf16.msra.mxu0 %v14804_v24 }
 0xb7e   : > { %8956 = vmatpush3.bf16.msra.mxu1 %v15110_v12  ;;  %8865 = vmatprep.subr.bf16.mxu0 %v15111_v44  ;;  %v15116_v44 = vld [vmem:[#allocation309_spill] sm:$0xff] }
 0xb7f   : > { %8957 = vmatprep.subr.bf16.mxu1 %v14797_v35 }
 0xb81   : > { %8867 = vmatpush1.bf16.msra.mxu0 %v14807_v46 }
 0xb82   : > { %8959 = vmatpush3.bf16.msra.mxu1 %v15112_v16  ;;  %8869 = vmatprep.subr.bf16.mxu0 %v15113_v30  ;;  %v15117_v30 = vld [vmem:[#allocation313_spill] sm:$0xff] }
 0xb83   : > { %8960 = vmatprep.subr.bf16.mxu1 %v14797_v35 }
 0xb85   : > { %8871 = vmatpush1.bf16.msra.mxu0 %v14810_v3 }
 0xb86   : > { %8962 = vmatpush3.bf16.msra.mxu1 %v15114_v20  ;;  %8873 = vmatprep.subr.bf16.mxu0 %v15115_v32  ;;  %v15118_v32 = vld [vmem:[#allocation339_spill] sm:$0xff]  ;;  %v15119_v20 = vld [vmem:[#allocation317_spill] sm:$0xff] }
 0xb87   : > { %8963 = vmatprep.subr.bf16.mxu1 %v14797_v35 }
 0xb89   : > { %8875 = vmatpush1.bf16.msra.mxu0 %v14813_v22  ;;  %v15120_v22 = vld [vmem:[#allocation29_spill] sm:$0xff] }
 0xb8a   : > { %8965 = vmatpush3.bf16.msra.mxu1 %v11915_v51  ;;  %8877 = vmatprep.subr.bf16.mxu0 %v15116_v44 }
 0xb8b   : > { %8966 = vmatprep.subr.bf16.mxu1 %v14797_v35 }
 0xb8d   : > { %8879 = vmatpush1.bf16.msra.mxu0 %v14815_v29  ;;  %v15121_v29 = vld [vmem:[#allocation30_spill] sm:$0xff] }
 0xb8e   : > { %8968 = vmatpush3.bf16.msra.mxu1 %v11925_v0  ;;  %8881 = vmatprep.subr.bf16.mxu0 %v15117_v30  ;;  %v15122_v30 = vld [vmem:[#allocation320_spill] sm:$0xff]  ;;  %v15123_v0 = vld [vmem:[#allocation33_spill] sm:$0xff] }
 0xb8f   : > { %8969 = vmatprep.subr.bf16.mxu1 %v14797_v35 }
 0xb91   : > { %8883 = vmatpush1.bf16.msra.mxu0 %v14817_v14 }
 0xb92   : > { %8971 = vmatpush3.bf16.msra.mxu1 %v15118_v32  ;;  %8885 = vmatprep.subr.bf16.mxu0 %v15119_v20  ;;  %v15124_v20 = vld [vmem:[#allocation34_spill] sm:$0xff] }
 0xb93   : > { %9037 = vmatprep.subr.bf16.mxu1 %v15120_v22  ;;  %v15125_v22 = vld [vmem:[#allocation37_spill] sm:$0xff] }
 0xb94   : > { %4538 = vmatmul.mubr.f32.vlgmr.msra.gmra.mrb[26].mxu0 %v12790_v27 }
 0xb95   : > { %6911 = vmatmul.mubr.f32.vlgmr.msra.gmra.mrb[36].mxu1 %v12602_v50  ;;  %8887 = vmatpush1.bf16.msra.mxu0 %v14819_v43 }
 0xb96   : > { %9039 = vmatpush1.bf16.msra.mxu1 %v15121_v29  ;;  %5020 = vmatprep.mubr.f32.mxu1 %v12729_v36  ;;  %v15128_v29 = vld [vmem:[#allocation45_spill] sm:$0xff] }
 0xb97   : > { %8889 = vmatprep.subr.bf16.mxu0 %v15122_v30  ;;  %9041 = vmatprep.subr.bf16.mxu1 %v15123_v0  ;;  %v15126_v0 = vld [vmem:[#allocation43_spill] sm:$0xff]  ;;  %v15218_v30 = vld [vmem:[#allocation149_spill] sm:$0xff] }
 0xb98   : > { %4608 = vmatprep.mubr.f32.mxu0 %v14353_v2 }
 0xb99   : > { %8891 = vmatpush1.bf16.msra.mxu0 %v14821_v42 }
 0xb9a   : > { %9043 = vmatpush1.bf16.msra.mxu1 %v15124_v20  ;;  %8893 = vmatprep.subr.bf16.mxu0 %v14822_v4  ;;  %v15127_v20 = vld [vmem:[#allocation332_spill] sm:$0xff]  ;;  %v15216_v4 = vld [vmem:[#allocation254_spill] sm:$0xff] }
 0xb9b   : > { %9045 = vmatprep.subr.bf16.mxu1 %v15125_v22  ;;  %v15130_v22 = vld [vmem:[#allocation47_spill] sm:$0xff] }
 0xb9d   : > { %8895 = vmatpush1.bf16.msra.mxu0 %v14823_v9 }
 0xb9e   : > { %9047 = vmatpush1.bf16.msra.mxu1 %v10953_v34  ;;  %8897 = vmatprep.subr.bf16.mxu0 %v14824_v8  ;;  %v15129_v34 = vld [vmem:[#allocation333_spill] sm:$0xff]  ;;  %v15215_v8 = vld [vmem:[#allocation251_spill] sm:$0xff] }
 0xb9f   : > { %9049 = vmatprep.subr.bf16.mxu1 %v10961_v40  ;;  %v15131_v40 = vld [vmem:[#allocation334_spill] sm:$0xff] }
 0xba1   : > { %8899 = vmatpush1.bf16.msra.mxu0 %v14825_v57  ;;  %v15132_v57 = vld [vmem:[#allocation49_spill] sm:$0xff] }
 0xba2   : > { %9051 = vmatpush1.bf16.msra.mxu1 %v10967_v49  ;;  %8901 = vmatprep.subr.bf16.mxu0 %v14826_v17  ;;  %v15133_v49 = vld [vmem:[#allocation335_spill] sm:$0xff] }
 0xba3   : > { %9053 = vmatprep.subr.bf16.mxu1 %v10973_v53  ;;  %v15134_v17 = vld [vmem:[#allocation51_spill] sm:$0xff]  ;;  %v15135_v53 = vld [vmem:[#allocation337_spill] sm:$0xff] }
 0xba5   : > { %8903 = vmatpush1.bf16.msra.mxu0 %v14827_v18  ;;  %v15136_v18 = vld [vmem:[#allocation53_spill] sm:$0xff] }
 0xba6   : > { %9055 = vmatpush1.bf16.msra.mxu1 %v15126_v0  ;;  %8905 = vmatprep.subr.bf16.mxu0 %v15127_v20  ;;  %v15137_v0 = vld [vmem:[#allocation338_spill] sm:$0xff]  ;;  %v15138_v20 = vld [vmem:[#allocation55_spill] sm:$0xff] }
 0xba7   : > { %9057 = vmatprep.subr.bf16.mxu1 %v15128_v29  ;;  %v15139_v29 = vld [vmem:[#allocation340_spill] sm:$0xff] }
 0xba9   : > { %8907 = vmatpush1.bf16.msra.mxu0 %v15129_v34  ;;  %v15140_v34 = vld [vmem:[#allocation57_spill] sm:$0xff] }
 0xbaa   : > { %9059 = vmatpush1.bf16.msra.mxu1 %v15130_v22  ;;  %8909 = vmatprep.subr.bf16.mxu0 %v15131_v40  ;;  %v15141_v22 = vld [vmem:[#allocation341_spill] sm:$0xff] }
 0xbab   : > { %9061 = vmatprep.subr.bf16.mxu1 %v15132_v57  ;;  %v15142_v57 = vld [vmem:[#allocation59_spill] sm:$0xff]  ;;  %v15152_v40 = vld [vmem:[#allocation69_spill] sm:$0xff] }
 0xbad   : > { %8911 = vmatpush1.bf16.msra.mxu0 %v15133_v49  ;;  %v15150_v49 = vld [vmem:[#allocation67_spill] sm:$0xff] }
 0xbae   : > { %9063 = vmatpush1.bf16.msra.mxu1 %v15134_v17  ;;  %8913 = vmatprep.subr.bf16.mxu0 %v15135_v53  ;;  %v15143_v17 = vld [vmem:[#allocation342_spill] sm:$0xff]  ;;  %v15144_v53 = vld [vmem:[#allocation61_spill] sm:$0xff] }
 0xbaf   : > { %9065 = vmatprep.subr.bf16.mxu1 %v15136_v18  ;;  %v15145_v18 = vld [vmem:[#allocation343_spill] sm:$0xff] }
 0xbb1   : > { %8915 = vmatpush1.bf16.msra.mxu0 %v15137_v0  ;;  %v15146_v0 = vld [vmem:[#allocation63_spill] sm:$0xff] }
 0xbb2   : > { %9067 = vmatpush1.bf16.msra.mxu1 %v15138_v20  ;;  %8973 = vmatprep.subr.bf16.mxu0 %v15139_v29  ;;  %v15147_v20 = vld [vmem:[#allocation344_spill] sm:$0xff]  ;;  %v15148_v29 = vld [vmem:[#allocation65_spill] sm:$0xff] }
 0xbb3   : > { %9069 = vmatprep.subr.bf16.mxu1 %v15140_v34  ;;  %v15149_v34 = vld [vmem:[#allocation345_spill] sm:$0xff] }
 0xbb4   : > { %4609 = vmatmul.mubr.f32.vlgmr.msra.gmra.mrb[26].mxu0 %v12602_v50 }
 0xbb5   : > { %8975 = vmatpush1.bf16.msra.mxu0 %v15141_v22  ;;  %4851 = vmatprep.mubr.f32.mxu0 %v14353_v2  ;;  %v15151_v22 = vld [vmem:[#allocation346_spill] sm:$0xff] }
 0xbb6   : > { %9071 = vmatpush1.bf16.msra.mxu1 %v15142_v57  ;;  %8977 = vmatprep.subr.bf16.mxu0 %v15143_v17  ;;  %v15153_v57 = vld [vmem:[#allocation347_spill] sm:$0xff] }
 0xbb7   : > { %9073 = vmatprep.subr.bf16.mxu1 %v15144_v53  ;;  %v15154_v17 = vld [vmem:[#allocation71_spill] sm:$0xff]  ;;  %v15155_v53 = vld [vmem:[#allocation348_spill] sm:$0xff] }
 0xbb9   : > { %8979 = vmatpush1.bf16.msra.mxu0 %v15145_v18  ;;  %v15156_v18 = vld [vmem:[#allocation73_spill] sm:$0xff] }
 0xbba   : > { %9075 = vmatpush1.bf16.msra.mxu1 %v15146_v0  ;;  %8981 = vmatprep.subr.bf16.mxu0 %v15147_v20  ;;  %v15157_v0 = vld [vmem:[#allocation349_spill] sm:$0xff]  ;;  %v15158_v20 = vld [vmem:[#allocation75_spill] sm:$0xff] }
 0xbbb   : > { %9077 = vmatprep.subr.bf16.mxu1 %v15148_v29  ;;  %v15159_v29 = vld [vmem:[#allocation350_spill] sm:$0xff] }
 0xbbd   : > { %8983 = vmatpush1.bf16.msra.mxu0 %v15149_v34  ;;  %v15160_v34 = vld [vmem:[#allocation77_spill] sm:$0xff] }
 0xbbe   : > { %9079 = vmatpush1.bf16.msra.mxu1 %v15150_v49  ;;  %8985 = vmatprep.subr.bf16.mxu0 %v15151_v22  ;;  %v15161_v49 = vld [vmem:[#allocation351_spill] sm:$0xff] }
 0xbbf   : > { %9081 = vmatprep.subr.bf16.mxu1 %v15152_v40  ;;  %v15162_v22 = vld [vmem:[#allocation79_spill] sm:$0xff]  ;;  %v15163_v40 = vld [vmem:[#allocation352_spill] sm:$0xff] }
 0xbc1   : > { %8987 = vmatpush1.bf16.msra.mxu0 %v15153_v57  ;;  %v15164_v57 = vld [vmem:[#allocation81_spill] sm:$0xff] }
 0xbc2   : > { %9083 = vmatpush1.bf16.msra.mxu1 %v15154_v17  ;;  %8989 = vmatprep.subr.bf16.mxu0 %v15155_v53  ;;  %v15165_v17 = vld [vmem:[#allocation353_spill] sm:$0xff]  ;;  %v15166_v53 = vld [vmem:[#allocation83_spill] sm:$0xff] }
 0xbc3   : > { %9085 = vmatprep.subr.bf16.mxu1 %v15156_v18  ;;  %v15167_v18 = vld [vmem:[#allocation354_spill] sm:$0xff] }
 0xbc5   : > { %8991 = vmatpush1.bf16.msra.mxu0 %v15157_v0  ;;  %v15168_v0 = vld [vmem:[#allocation85_spill] sm:$0xff] }
 0xbc6   : > { %9087 = vmatpush1.bf16.msra.mxu1 %v15158_v20  ;;  %8993 = vmatprep.subr.bf16.mxu0 %v15159_v29  ;;  %v15169_v20 = vld [vmem:[#allocation355_spill] sm:$0xff] }
 0xbc7   : > { %9089 = vmatprep.subr.bf16.mxu1 %v15160_v34  ;;  %v15170_v29 = vld [vmem:[#allocation87_spill] sm:$0xff]  ;;  %v15171_v34 = vld [vmem:[#allocation356_spill] sm:$0xff] }
 0xbc9   : > { %8995 = vmatpush1.bf16.msra.mxu0 %v15161_v49  ;;  %v15172_v49 = vld [vmem:[#allocation89_spill] sm:$0xff] }
 0xbca   : > { %9091 = vmatpush1.bf16.msra.mxu1 %v15162_v22  ;;  %8997 = vmatprep.subr.bf16.mxu0 %v15163_v40  ;;  %v15173_v22 = vld [vmem:[#allocation90_spill] sm:$0xff]  ;;  %v15184_v40 = vld [vmem:[#allocation101_spill] sm:$0xff] }
 0xbcb   : > { %9093 = vmatprep.subr.bf16.mxu1 %v15164_v57  ;;  %v15174_v57 = vld [vmem:[#allocation91_spill] sm:$0xff] }
 0xbcd   : > { %8999 = vmatpush1.bf16.msra.mxu0 %v15165_v17  ;;  %v15182_v17 = vld [vmem:[#allocation99_spill] sm:$0xff] }
 0xbce   : > { %9095 = vmatpush1.bf16.msra.mxu1 %v15166_v53  ;;  %9001 = vmatprep.subr.bf16.mxu0 %v15167_v18  ;;  %v15175_v53 = vld [vmem:[#allocation92_spill] sm:$0xff]  ;;  %v15176_v18 = vld [vmem:[#allocation93_spill] sm:$0xff] }
 0xbcf   : > { %9097 = vmatprep.subr.bf16.mxu1 %v15168_v0  ;;  %v15177_v0 = vld [vmem:[#allocation94_spill] sm:$0xff] }
 0xbd1   : > { %9003 = vmatpush1.bf16.msra.mxu0 %v15169_v20  ;;  %v15178_v20 = vld [vmem:[#allocation95_spill] sm:$0xff] }
 0xbd2   : > { %9099 = vmatpush1.bf16.msra.mxu1 %v15170_v29  ;;  %9005 = vmatprep.subr.bf16.mxu0 %v15171_v34  ;;  %v15179_v29 = vld [vmem:[#allocation96_spill] sm:$0xff]  ;;  %v15180_v34 = vld [vmem:[#allocation97_spill] sm:$0xff] }
 0xbd3   : > { %9165 = vmatprep.subr.bf16.mxu1 %v15172_v49  ;;  %v15181_v49 = vld [vmem:[#allocation98_spill] sm:$0xff] }
 0xbd5   : > { %5021 = vmatmul.mubr.f32.vlgmr.msra.gmra.mrb[38].mxu1 %v12790_v27 }
 0xbd6   : > { %9167 = vmatpush1.bf16.msra.mxu1 %v15173_v22  ;;  %5162 = vmatprep.mubr.f32.mxu1 %v12729_v36  ;;  %v15183_v22 = vld [vmem:[#allocation100_spill] sm:$0xff] }
 0xbd7   : > { %9169 = vmatprep.subr.bf16.mxu1 %v15174_v57  ;;  %v15185_v57 = vld [vmem:[#allocation102_spill] sm:$0xff] }
 0xbda   : > { %9171 = vmatpush1.bf16.msra.mxu1 %v15175_v53  ;;  %v15186_v53 = vld [vmem:[#allocation103_spill] sm:$0xff] }
 0xbdb   : > { %9173 = vmatprep.subr.bf16.mxu1 %v15176_v18  ;;  %v15187_v18 = vld [vmem:[#allocation104_spill] sm:$0xff] }
 0xbde   : > { %9175 = vmatpush1.bf16.msra.mxu1 %v15177_v0  ;;  %v15188_v0 = vld [vmem:[#allocation105_spill] sm:$0xff] }
 0xbdf   : > { %9177 = vmatprep.subr.bf16.mxu1 %v15178_v20  ;;  %v15189_v20 = vld [vmem:[#allocation106_spill] sm:$0xff] }
 0xbe2   : > { %9179 = vmatpush1.bf16.msra.mxu1 %v15179_v29  ;;  %v15190_v29 = vld [vmem:[#allocation107_spill] sm:$0xff] }
 0xbe3   : > { %9181 = vmatprep.subr.bf16.mxu1 %v15180_v34  ;;  %v15191_v34 = vld [vmem:[#allocation108_spill] sm:$0xff] }
 0xbe6   : > { %9183 = vmatpush1.bf16.msra.mxu1 %v15181_v49  ;;  %v15192_v49 = vld [vmem:[#allocation109_spill] sm:$0xff] }
 0xbe7   : > { %9185 = vmatprep.subr.bf16.mxu1 %v15182_v17  ;;  %v15193_v17 = vld [vmem:[#allocation110_spill] sm:$0xff] }
 0xbea   : > { %9187 = vmatpush1.bf16.msra.mxu1 %v15183_v22  ;;  %v15194_v22 = vld [vmem:[#allocation111_spill] sm:$0xff] }
 0xbeb   : > { %9189 = vmatprep.subr.bf16.mxu1 %v15184_v40  ;;  %v15195_v40 = vld [vmem:[#allocation112_spill] sm:$0xff] }
 0xbee   : > { %9191 = vmatpush1.bf16.msra.mxu1 %v15185_v57  ;;  %v15196_v57 = vld [vmem:[#allocation113_spill] sm:$0xff] }
 0xbef   : > { %9193 = vmatprep.subr.bf16.mxu1 %v15186_v53  ;;  %v15197_v53 = vld [vmem:[#allocation114_spill] sm:$0xff] }
 0xbf2   : > { %9195 = vmatpush1.bf16.msra.mxu1 %v15187_v18  ;;  %v15198_v18 = vld [vmem:[#allocation115_spill] sm:$0xff] }
 0xbf3   : > { %9197 = vmatprep.subr.bf16.mxu1 %v15188_v0  ;;  %v15199_v0 = vld [vmem:[#allocation116_spill] sm:$0xff] }
 0xbf6   : > { %9199 = vmatpush1.bf16.msra.mxu1 %v15189_v20  ;;  %v15200_v20 = vld [vmem:[#allocation117_spill] sm:$0xff] }
 0xbf7   : > { %9201 = vmatprep.subr.bf16.mxu1 %v15190_v29  ;;  %v15201_v29 = vld [vmem:[#allocation118_spill] sm:$0xff] }
 0xbfa   : > { %9203 = vmatpush1.bf16.msra.mxu1 %v15191_v34  ;;  %v15202_v34 = vld [vmem:[#allocation119_spill] sm:$0xff] }
 0xbfb   : > { %9205 = vmatprep.subr.bf16.mxu1 %v15192_v49  ;;  %v15203_v49 = vld [vmem:[#allocation120_spill] sm:$0xff] }
 0xbfe   : > { %9207 = vmatpush1.bf16.msra.mxu1 %v15193_v17  ;;  %v15204_v17 = vld [vmem:[#allocation137_spill] sm:$0xff] }
 0xbff   : > { %9209 = vmatprep.subr.bf16.mxu1 %v15194_v22  ;;  %v15205_v22 = vld [vmem:[#allocation138_spill] sm:$0xff] }
 0xc02   : > { %9211 = vmatpush1.bf16.msra.mxu1 %v15195_v40  ;;  %v15206_v40 = vld [vmem:[#allocation139_spill] sm:$0xff] }
 0xc03   : > { %9213 = vmatprep.subr.bf16.mxu1 %v15196_v57  ;;  %v15207_v57 = vld [vmem:[#allocation140_spill] sm:$0xff] }
 0xc06   : > { %9215 = vmatpush1.bf16.msra.mxu1 %v15197_v53  ;;  %v15208_v53 = vld [vmem:[#allocation141_spill] sm:$0xff] }
 0xc07   : > { %9217 = vmatprep.subr.bf16.mxu1 %v15198_v18  ;;  %v15209_v18 = vld [vmem:[#allocation142_spill] sm:$0xff] }
 0xc0a   : > { %9219 = vmatpush1.bf16.msra.mxu1 %v15199_v0  ;;  %v15210_v0 = vld [vmem:[#allocation143_spill] sm:$0xff] }
 0xc0b   : > { %9221 = vmatprep.subr.bf16.mxu1 %v15200_v20  ;;  %v15211_v20 = vld [vmem:[#allocation144_spill] sm:$0xff] }
 0xc0e   : > { %9223 = vmatpush1.bf16.msra.mxu1 %v15201_v29  ;;  %v15212_v29 = vld [vmem:[#allocation145_spill] sm:$0xff] }
 0xc0f   : > { %9225 = vmatprep.subr.bf16.mxu1 %v15202_v34  ;;  %v15213_v34 = vld [vmem:[#allocation146_spill] sm:$0xff] }
 0xc12   : > { %9227 = vmatpush1.bf16.msra.mxu1 %v15203_v49 }
 0xc13   : > { %9261 = vmatprep.subr.bf16.mxu1 %v15204_v17 }
 0xc15   : > { %5163 = vmatmul.mubr.f32.vlgmr.msra.gmra.mrb[40].mxu1 %v12790_v27 }
 0xc16   : > { %9263 = vmatpush1.bf16.msra.mxu1 %v15205_v22  ;;  %5342 = vmatprep.mubr.f32.mxu1 %v14353_v2  ;;  %v15214_v22 = vld [vmem:[#allocation147_spill] sm:$0xff] }
 0xc17   : > { %9265 = vmatprep.subr.bf16.mxu1 %v15206_v40 }
 0xc1a   : > { %9267 = vmatpush1.bf16.msra.mxu1 %v15207_v57 }
 0xc1b   : > { %9269 = vmatprep.subr.bf16.mxu1 %v15208_v53 }
 0xc1e   : > { %9271 = vmatpush1.bf16.msra.mxu1 %v15209_v18  ;;  %v15217_v18 = vld [vmem:[#allocation148_spill] sm:$0xff] }
 0xc1f   : > { %9273 = vmatprep.subr.bf16.mxu1 %v15210_v0 }
 0xc22   : > { %9275 = vmatpush1.bf16.msra.mxu1 %v15211_v20  ;;  %v15219_v20 = vld [vmem:[#allocation150_spill] sm:$0xff] }
 0xc23   : > { %9277 = vmatprep.subr.bf16.mxu1 %v15212_v29  ;;  %v15220_v29 = vld [vmem:[#allocation151_spill] sm:$0xff] }
 0xc26   : > { %9279 = vmatpush1.bf16.msra.mxu1 %v15213_v34  ;;  %v15221_v34 = vld [vmem:[#allocation152_spill] sm:$0xff] }
 0xc27   : > { %v4326_v49 = vpop.f32.mrb[24].mxu0  ;;  %v4468_v17 = vpop.f32.mrb[32].mxu1  ;;  %9281 = vmatprep.subr.bf16.mxu1 %v15214_v22  ;;  %v15222_v22 = vld [vmem:[#allocation153_spill] sm:$0xff] }
 0xc28   : > { %v9748_v40 = vadd.f32 %v4468_v17, %v15215_v8  ;;  %v4328_v9 = vpop.f32.mrb[25].mxu0  ;;  %v4470_v57 = vpop.f32.mrb[33].mxu1  ;;  %v15223_v17 = vld [vmem:[#allocation252_spill] sm:$0xff] }
 0xc29   : > { %v9747_v53 = vadd.f32 %v4328_v9, %v15216_v4  ;;  %v9746_v8 = vadd.f32 %v4326_v49, %v15223_v17 }
 0xc2a   : > { %v6430_v42 = vmul.f32 -1.442695, %v9748_v40  ;;  %9283 = vmatpush1.bf16.msra.mxu1 %v15217_v18 }
 0xc2b   : > { %v6429_v0 = vmul.f32 -1.442695, %v9747_v53  ;;  %9285 = vmatprep.subr.bf16.mxu1 %v15218_v30 }
 0xc2c   : > { %10091 = vpow2.f32 %v6430_v42 }
 0xc2d   : > { %10093 = vpow2.f32 %v6429_v0 }
 0xc2e   : > { %9287 = vmatpush1.bf16.msra.mxu1 %v15219_v20  ;;  %10095 = vtanh.f32 %v9746_v8 }
 0xc2f   : > { %9289 = vmatprep.subr.bf16.mxu1 %v15220_v29 }
 0xc32   : > { %9291 = vmatpush1.bf16.msra.mxu1 %v15221_v34 }
 0xc33   : > { %9293 = vmatprep.subr.bf16.mxu1 %v15222_v22 }
 0xc36   : > { %v10092_v43 = vpop.eup %10091 }
 0xc37   : > { %v10094_v9 = vpop.eup %10093  ;;  %v4765_v40 = vadd.f32 1.0, %v10092_v43 }
 0xc38   : > { %v4759_v18 = vadd.f32 1.0, %v10094_v9  ;;  %v10096_v30 = vpop.eup %10095 }
 0xc39   : > { %10097 = vrcp.f32 %v4765_v40 }
 0xc3a   : > { %10099 = vrcp.f32 %v4759_v18 }
 0xc43   : > { %v10098_v42 = vpop.eup %10097 }
 0xc44   : > { %v10100_v53 = vpop.eup %10099  ;;  %v4768_v0 = vmul.f32 %v10098_v42, %v12592_v5 }
 0xc45   : > { %v4769_v20 = vmul.f32 %v10100_v53, %v10096_v30  ;;  %v15224_v30 = vld [vmem:[#allocation359_spill] sm:$0xff] }
 0xc46   : > { %v9749_v42 = vadd.f32 %v4470_v57, %v15224_v30 }
 0xc47   : > { %v13025_v29 = vadd.f32 %v4769_v20, %v4768_v0 }
 0xc48   : > { %v6701_v34 = vpop.f32.mrb[34].mxu1 }
 0xc49   : > { %v6702_v4 = vpop.f32.mrb[35].mxu1 }
 0xc4a   : > { %v6703_v22 = vadd.f32 %v6702_v4, %v6701_v34 }
 0xc4c   : > { %v4682_v49 = vadd.f32 %v6703_v22, %v14906_v1 }
 0xc68   : > { %v4751_v17 = vpop.f32.mrb[36].mxu1 }
 0xc69   : > { %v13028_v32 = vadd.f32 %v4751_v17, %v4682_v49  ;;  %v6912_v8 = vpop.f32.mrb[37].mxu1 }
 0xc87   : > { %v4610_v43 = vpop.f32.mrb[26].mxu0 }
 0xc88   : > { %v9750_v9 = vadd.f32 %v4610_v43, %v12118_v58  ;;  %v4612_v40 = vpop.f32.mrb[27].mxu0  ;;  %v6436_v43 = vld [vmem:[%s10902_s19 + $0xb0] sm:$0xff] }
 0xc89   : > { %v9751_v18 = vadd.f32 %v4612_v40, %v12121_v11 }
 0xc8a   : > { %v6431_v14 = vmul.f32 -1.442695, %v9750_v9 }
 0xc8b   : > { %v6432_v5 = vmul.f32 -1.442695, %v9751_v18  ;;  %v15225_v18 = vld [vmem:[#allocation360_spill] sm:$0xff] }
 0xc8c   : > { %10101 = vpow2.f32 %v6431_v14 }
 0xc8d   : > { %10103 = vpow2.f32 %v6432_v5  ;;  %v15226_v5 = vld [vmem:[#allocation361_spill] sm:$0xff] }
 0xc8e   : > { %10105 = vtanh.f32 %v9749_v42 }
 0xc96   : > { %v10102_v4 = vpop.eup %10101 }
 0xc97   : > { %v10104_v53 = vpop.eup %10103  ;;  %v4775_v0 = vadd.f32 1.0, %v10102_v4  ;;  %v15227_v4 = vld [vmem:[#allocation362_spill] sm:$0xff] }
 0xc98   : > { %v4781_v17 = vadd.f32 1.0, %v10104_v53  ;;  %v10106_v20 = vpop.eup %10105  ;;  %v15228_v53 = vld [vmem:[#allocation363_spill] sm:$0xff] }
 0xc99   : > { %10107 = vrcp.f32 %v4775_v0  ;;  %v6435_v0 = vld [vmem:[%s10902_s19 + $0xa8] sm:$0xff] }
 0xc9a   : > { %10109 = vrcp.f32 %v4781_v17  ;;  %v15230_v17 = vld [vmem:[#allocation365_spill] sm:$0xff] }
 0xca3   : > { %v10108_v34 = vpop.eup %10107 }
 0xca4   : > { %v10110_v22 = vpop.eup %10109  ;;  %v4785_v49 = vmul.f32 %v10108_v34, %v10106_v20  ;;  %v15231_v34 = vld [vmem:[#allocation366_spill] sm:$0xff] }
 0xca5   : > { %v4784_v8 = vmul.f32 %v10110_v22, %v12602_v50  ;;  %v15229_v50 = vld [vmem:[#allocation364_spill] sm:$0xff]  ;;  %v15232_v22 = vld [vmem:[#allocation367_spill] sm:$0xff] }
 0xca7   : > { %v13035_v9 = vadd.f32 %v4785_v49, %v4784_v8 }
 0xca8   : > { %v5022_v14 = vpop.f32.mrb[38].mxu1 }
 0xca9   : > { %v5024_v40 = vpop.f32.mrb[39].mxu1  ;;  %4852 = vmatmul.mubr.f32.vlgmr.msra.gmra.mrb[28].mxu0 %v13035_v9  ;;  %v5239_v20 = vadd.f32 %v6435_v0, %v5022_v14 }
 0xcaa   : > { %v5240_v57 = vadd.f32 %v6436_v43, %v5024_v40  ;;  %9007 = vmatpush1.bf16.msra.mxu0 %v15225_v18  ;;  %4922 = vmatprep.mubr.f32.mxu0 %v14353_v2  ;;  %v15233_v43 = vld [vmem:[#allocation368_spill] sm:$0xff]  ;;  %v15234_v40 = vld [vmem:[#allocation369_spill] sm:$0xff] }
 0xcab   : > { %9009 = vmatprep.subr.bf16.mxu0 %v15226_v5 }
 0xcac   : > { %v6442_v42 = vmul.f32 -1.442695, %v5240_v57  ;;  %v15235_v57 = vld [vmem:[#allocation370_spill] sm:$0xff] }
 0xcae   : > { %10111 = vpow2.f32 %v6442_v42  ;;  %9011 = vmatpush1.bf16.msra.mxu0 %v15227_v4  ;;  %v15236_v42 = vld [vmem:[#allocation371_spill] sm:$0xff] }
 0xcaf   : > { %9013 = vmatprep.subr.bf16.mxu0 %v15228_v53  ;;  %10113 = vtanh.f32 %v5239_v20  ;;  %v15240_v20 = vld [vmem:[#allocation31_spill] sm:$0xff]  ;;  %v15267_v53 = vld [vmem:[#allocation80_spill] sm:$0xff] }
 0xcb2   : > { %9015 = vmatpush1.bf16.msra.mxu0 %v15229_v50  ;;  %v15237_v50 = vld [vmem:[#allocation372_spill] sm:$0xff] }
 0xcb3   : > { %9017 = vmatprep.subr.bf16.mxu0 %v15230_v17  ;;  %v15238_v17 = vld [vmem:[#allocation373_spill] sm:$0xff] }
 0xcb6   : > { %9019 = vmatpush1.bf16.msra.mxu0 %v15231_v34  ;;  %v15239_v34 = vld [vmem:[#allocation374_spill] sm:$0xff] }
 0xcb7   : > { %9021 = vmatprep.subr.bf16.mxu0 %v15232_v22 }
 0xcb8   : > { %v10112_v49 = vpop.eup %10111 }
 0xcb9   : > { %v5250_v8 = vadd.f32 1.0, %v10112_v49  ;;  %v10114_v14 = vpop.eup %10113  ;;  %v15241_v49 = vld [vmem:[#allocation32_spill] sm:$0xff] }
 0xcba   : > { %9023 = vmatpush1.bf16.msra.mxu0 %v15233_v43  ;;  %v15266_v43 = vld [vmem:[#allocation78_spill] sm:$0xff] }
 0xcbb   : > { %10115 = vrcp.f32 %v5250_v8  ;;  %9025 = vmatprep.subr.bf16.mxu0 %v15234_v40  ;;  %v15242_v8 = vld [vmem:[#allocation35_spill] sm:$0xff]  ;;  %v15252_v40 = vld [vmem:[#allocation50_spill] sm:$0xff] }
 0xcbe   : > { %9027 = vmatpush1.bf16.msra.mxu0 %v15235_v57  ;;  %v15246_v57 = vld [vmem:[#allocation40_spill] sm:$0xff] }
 0xcbf   : > { %9029 = vmatprep.subr.bf16.mxu0 %v15236_v42  ;;  %v15243_v42 = vld [vmem:[#allocation36_spill] sm:$0xff] }
 0xcc2   : > { %9031 = vmatpush1.bf16.msra.mxu0 %v15237_v50  ;;  %v15244_v50 = vld [vmem:[#allocation38_spill] sm:$0xff] }
 0xcc3   : > { %9033 = vmatprep.subr.bf16.mxu0 %v15238_v17  ;;  %v15245_v17 = vld [vmem:[#allocation39_spill] sm:$0xff] }
 0xcc5   : > { %v10116_v0 = vpop.eup %10115 }
 0xcc6   : > { %9035 = vmatpush1.bf16.msra.mxu0 %v15239_v34  ;;  %v13055_v22 = vmul.f32 %v10116_v0, %v10114_v14  ;;  %v15247_v14 = vld [vmem:[#allocation41_spill] sm:$0xff]  ;;  %v15248_v0 = vld [vmem:[#allocation42_spill] sm:$0xff] }
 0xcc7   : > { %9101 = vmatprep.subr.bf16.mxu0 %v15240_v20  ;;  %v15249_v20 = vld [vmem:[#allocation44_spill] sm:$0xff]  ;;  %v15250_v34 = vld [vmem:[#allocation46_spill] sm:$0xff] }
 0xcc9   : > { %4923 = vmatmul.mubr.f32.vlgmr.msra.gmra.mrb[28].mxu0 %v13025_v29 }
 0xcca   : > { %9103 = vmatpush1.bf16.msra.mxu0 %v15241_v49  ;;  %5091 = vmatprep.mubr.f32.mxu0 %v12729_v36  ;;  %v15251_v49 = vld [vmem:[#allocation48_spill] sm:$0xff] }
 0xccb   : > { %9105 = vmatprep.subr.bf16.mxu0 %v15242_v8  ;;  %v15253_v8 = vld [vmem:[#allocation52_spill] sm:$0xff] }
 0xcce   : > { %9107 = vmatpush1.bf16.msra.mxu0 %v15243_v42  ;;  %v15254_v42 = vld [vmem:[#allocation54_spill] sm:$0xff] }
 0xccf   : > { %9109 = vmatprep.subr.bf16.mxu0 %v15244_v50  ;;  %v15255_v50 = vld [vmem:[#allocation56_spill] sm:$0xff] }
 0xcd2   : > { %9111 = vmatpush1.bf16.msra.mxu0 %v15245_v17  ;;  %v15256_v17 = vld [vmem:[#allocation58_spill] sm:$0xff] }
 0xcd3   : > { %9113 = vmatprep.subr.bf16.mxu0 %v15246_v57 }
 0xcd6   : > { %9115 = vmatpush1.bf16.msra.mxu0 %v15247_v14 }
 0xcd7   : > { %9117 = vmatprep.subr.bf16.mxu0 %v15248_v0  ;;  %v15257_v0 = vld [vmem:[#allocation60_spill] sm:$0xff] }
 0xcda   : > { %9119 = vmatpush1.bf16.msra.mxu0 %v15249_v20  ;;  %v15258_v20 = vld [vmem:[#allocation62_spill] sm:$0xff] }
 0xcdb   : > { %9121 = vmatprep.subr.bf16.mxu0 %v15250_v34  ;;  %v15259_v34 = vld [vmem:[#allocation64_spill] sm:$0xff] }
 0xcde   : > { %9123 = vmatpush1.bf16.msra.mxu0 %v15251_v49  ;;  %v15260_v49 = vld [vmem:[#allocation66_spill] sm:$0xff] }
 0xcdf   : > { %9125 = vmatprep.subr.bf16.mxu0 %v15252_v40  ;;  %v15261_v40 = vld [vmem:[#allocation68_spill] sm:$0xff] }
 0xce2   : > { %9127 = vmatpush1.bf16.msra.mxu0 %v15253_v8  ;;  %v15262_v8 = vld [vmem:[#allocation70_spill] sm:$0xff] }
 0xce3   : > { %9129 = vmatprep.subr.bf16.mxu0 %v15254_v42  ;;  %v15263_v42 = vld [vmem:[#allocation72_spill] sm:$0xff] }
 0xce6   : > { %9131 = vmatpush1.bf16.msra.mxu0 %v15255_v50  ;;  %v15264_v50 = vld [vmem:[#allocation74_spill] sm:$0xff] }
 0xce7   : > { %9133 = vmatprep.subr.bf16.mxu0 %v15256_v17  ;;  %v15265_v17 = vld [vmem:[#allocation76_spill] sm:$0xff] }
 0xce8   : > { %v13076_v57 = vpop.f32.mrb[40].mxu1 }
 0xce9   : > { %v13078_v14 = vpop.f32.mrb[41].mxu1 }
 0xcea   : > { %9135 = vmatpush1.bf16.msra.mxu0 %v15257_v0  ;;  %v15268_v0 = vld [vmem:[#allocation82_spill] sm:$0xff] }
 0xceb   : > { %9137 = vmatprep.subr.bf16.mxu0 %v15258_v20  ;;  %v15269_v20 = vld [vmem:[#allocation84_spill] sm:$0xff] }
 0xcee   : > { %9139 = vmatpush1.bf16.msra.mxu0 %v15259_v34  ;;  %v15270_v34 = vld [vmem:[#allocation86_spill] sm:$0xff] }
 0xcef   : > { %9141 = vmatprep.subr.bf16.mxu0 %v15260_v49  ;;  %v15271_v49 = vld [vmem:[#allocation88_spill] sm:$0xff] }
 0xcf2   : > { %9143 = vmatpush1.bf16.msra.mxu0 %v15261_v40  ;;  %v15272_v40 = vld [vmem:[#allocation121_spill] sm:$0xff] }
 0xcf3   : > { %9145 = vmatprep.subr.bf16.mxu0 %v15262_v8  ;;  %v15273_v8 = vld [vmem:[#allocation122_spill] sm:$0xff] }
 0xcf6   : > { %9147 = vmatpush1.bf16.msra.mxu0 %v15263_v42  ;;  %v15274_v42 = vld [vmem:[#allocation123_spill] sm:$0xff] }
 0xcf7   : > { %9149 = vmatprep.subr.bf16.mxu0 %v15264_v50  ;;  %v15277_v50 = vld [vmem:[#allocation126_spill] sm:$0xff] }
 0xcfa   : > { %9151 = vmatpush1.bf16.msra.mxu0 %v15265_v17  ;;  %v15278_v17 = vld [vmem:[#allocation127_spill] sm:$0xff] }
 0xcfb   : > { %9153 = vmatprep.subr.bf16.mxu0 %v15266_v43  ;;  %v15275_v43 = vld [vmem:[#allocation124_spill] sm:$0xff] }
 0xcfe   : > { %9155 = vmatpush1.bf16.msra.mxu0 %v15267_v53  ;;  %v15276_v53 = vld [vmem:[#allocation125_spill] sm:$0xff] }
 0xcff   : > { %9157 = vmatprep.subr.bf16.mxu0 %v15268_v0  ;;  %v15279_v0 = vld [vmem:[#allocation128_spill] sm:$0xff] }
 0xd02   : > { %9159 = vmatpush1.bf16.msra.mxu0 %v15269_v20  ;;  %v15280_v20 = vld [vmem:[#allocation129_spill] sm:$0xff] }
 0xd03   : > { %9161 = vmatprep.subr.bf16.mxu0 %v15270_v34  ;;  %v15281_v34 = vld [vmem:[#allocation130_spill] sm:$0xff] }
 0xd06   : > { %9163 = vmatpush1.bf16.msra.mxu0 %v15271_v49  ;;  %v15282_v49 = vld [vmem:[#allocation131_spill] sm:$0xff] }
 0xd07   : > { %9229 = vmatprep.subr.bf16.mxu0 %v15272_v40  ;;  %v15283_v40 = vld [vmem:[#allocation132_spill] sm:$0xff] }
 0xd09   : > { %5092 = vmatmul.mubr.f32.vlgmr.msra.gmra.mrb[30].mxu0 %v12790_v27 }
 0xd0a   : > { %9231 = vmatpush3.bf16.msra.mxu0 %v15273_v8  ;;  %5233 = vmatprep.mubr.f32.mxu0 %v12729_v36  ;;  %v15284_v8 = vld [vmem:[#allocation133_spill] sm:$0xff] }
 0xd0b   : > { %9233 = vmatprep.subr.bf16.mxu0 %v15274_v42  ;;  %v15285_v42 = vld [vmem:[#allocation134_spill] sm:$0xff] }
 0xd0e   : > { %9235 = vmatpush3.bf16.msra.mxu0 %v15275_v43  ;;  %v15286_v43 = vld [vmem:[#allocation135_spill] sm:$0xff] }
 0xd0f   : > { %9237 = vmatprep.subr.bf16.mxu0 %v15276_v53  ;;  %v15287_v53 = vld [vmem:[#allocation136_spill] sm:$0xff] }
 0xd12   : > { %9239 = vmatpush3.bf16.msra.mxu0 %v15277_v50  ;;  %v15288_v50 = vld [vmem:[#allocation154_spill] sm:$0xff] }
 0xd13   : > { %9241 = vmatprep.subr.bf16.mxu0 %v15278_v17  ;;  %v15289_v17 = vld [vmem:[#allocation155_spill] sm:$0xff] }
 0xd16   : > { %9243 = vmatpush3.bf16.msra.mxu0 %v15279_v0  ;;  %v15290_v0 = vld [vmem:[#allocation156_spill] sm:$0xff] }
 0xd17   : > { %9245 = vmatprep.subr.bf16.mxu0 %v15280_v20  ;;  %v15291_v20 = vld [vmem:[#allocation157_spill] sm:$0xff] }
 0xd1a   : > { %9247 = vmatpush3.bf16.msra.mxu0 %v15281_v34  ;;  %v15292_v34 = vld [vmem:[#allocation158_spill] sm:$0xff] }
 0xd1b   : > { %9249 = vmatprep.subr.bf16.mxu0 %v15282_v49  ;;  %v15293_v49 = vld [vmem:[#allocation159_spill] sm:$0xff] }
 0xd1e   : > { %9251 = vmatpush3.bf16.msra.mxu0 %v15283_v40  ;;  %v15294_v40 = vld [vmem:[#allocation160_spill] sm:$0xff] }
 0xd1f   : > { %9253 = vmatprep.subr.bf16.mxu0 %v15284_v8  ;;  %v15295_v8 = vld [vmem:[#allocation161_spill] sm:$0xff] }
 0xd22   : > { %9255 = vmatpush3.bf16.msra.mxu0 %v15285_v42  ;;  %v15296_v42 = vld [vmem:[#allocation162_spill] sm:$0xff] }
 0xd23   : > { %9257 = vmatprep.subr.bf16.mxu0 %v15286_v43  ;;  %v15297_v43 = vld [vmem:[#allocation163_spill] sm:$0xff] }
 0xd26   : > { %9259 = vmatpush3.bf16.msra.mxu0 %v15287_v53  ;;  %v15298_v53 = vld [vmem:[#allocation164_spill] sm:$0xff] }
 0xd27   : > { %9325 = vmatprep.subr.bf16.mxu0 %v15288_v50  ;;  %v15300_v50 = vld [vmem:[#allocation166_spill] sm:$0xff] }
 0xd29   : > { %5234 = vmatmul.mubr.f32.vlgmr.msra.gmra.mrb[32].mxu0 %v12790_v27  ;;  %v15299_v27 = vld [vmem:[#allocation165_spill] sm:$0xff] }
 0xd2a   : > { %9327 = vmatpush1.bf16.msra.mxu0 %v15289_v17  ;;  %v15301_v17 = vld [vmem:[#allocation167_spill] sm:$0xff] }
 0xd2b   : > { %9329 = vmatprep.subr.bf16.mxu0 %v15290_v0  ;;  %v15302_v0 = vld [vmem:[#allocation168_spill] sm:$0xff] }
 0xd2e   : > { %9331 = vmatpush1.bf16.msra.mxu0 %v15291_v20  ;;  %v15303_v20 = vld [vmem:[#allocation169_spill] sm:$0xff] }
 0xd2f   : > { %9333 = vmatprep.subr.bf16.mxu0 %v15292_v34  ;;  %v15304_v34 = vld [vmem:[#allocation217_spill] sm:$0xff] }
 0xd32   : > { %9335 = vmatpush1.bf16.msra.mxu0 %v15293_v49  ;;  %v15305_v49 = vld [vmem:[#allocation219_spill] sm:$0xff] }
 0xd33   : > { %9337 = vmatprep.subr.bf16.mxu0 %v15294_v40  ;;  %v15306_v40 = vld [vmem:[#allocation221_spill] sm:$0xff] }
 0xd36   : > { %9339 = vmatpush1.bf16.msra.mxu0 %v15295_v8  ;;  %v15307_v8 = vld [vmem:[#allocation223_spill] sm:$0xff] }
 0xd37   : > { %9341 = vmatprep.subr.bf16.mxu0 %v15296_v42  ;;  %v15308_v42 = vld [vmem:[#allocation225_spill] sm:$0xff] }
 0xd3a   : > { %9343 = vmatpush1.bf16.msra.mxu0 %v15297_v43  ;;  %v15309_v43 = vld [vmem:[#allocation227_spill] sm:$0xff] }
 0xd3b   : > { %9345 = vmatprep.subr.bf16.mxu0 %v15298_v53  ;;  %v15310_v53 = vld [vmem:[#allocation229_spill] sm:$0xff] }
 0xd3e   : > { %9347 = vmatpush1.bf16.msra.mxu0 %v15299_v27  ;;  %v15311_v27 = vld [vmem:[#allocation231_spill] sm:$0xff] }
 0xd3f   : > { %9349 = vmatprep.subr.bf16.mxu0 %v15300_v50  ;;  %v15312_v50 = vld [vmem:[#allocation233_spill] sm:$0xff] }
 0xd42   : > { %9351 = vmatpush1.bf16.msra.mxu0 %v15301_v17  ;;  %v15313_v17 = vld [vmem:[#allocation235_spill] sm:$0xff] }
 0xd43   : > { %9353 = vmatprep.subr.bf16.mxu0 %v15302_v0  ;;  %v15314_v0 = vld [vmem:[#allocation237_spill] sm:$0xff] }
 0xd46   : > { %9355 = vmatpush1.bf16.msra.mxu0 %v15303_v20  ;;  %v15315_v20 = vld [vmem:[#allocation239_spill] sm:$0xff] }
 0xd47   : > { %9357 = vmatprep.subr.bf16.mxu0 %v15304_v34  ;;  %v15316_v34 = vld [vmem:[#allocation241_spill] sm:$0xff] }
 0xd4a   : > { %9359 = vmatpush1.bf16.msra.mxu0 %v15305_v49  ;;  %v15317_v49 = vld [vmem:[#allocation243_spill] sm:$0xff] }
 0xd4b   : > { %9361 = vmatprep.subr.bf16.mxu0 %v15306_v40  ;;  %v15318_v40 = vld [vmem:[#allocation245_spill] sm:$0xff] }
 0xd4e   : > { %9363 = vmatpush1.bf16.msra.mxu0 %v15307_v8  ;;  %v15319_v8 = vld [vmem:[#allocation247_spill] sm:$0xff] }
 0xd4f   : > { %9365 = vmatprep.subr.bf16.mxu0 %v15308_v42  ;;  %v15320_v42 = vld [vmem:[#allocation185_spill] sm:$0xff] }
 0xd52   : > { %9367 = vmatpush1.bf16.msra.mxu0 %v15309_v43 }
 0xd53   : > { %9369 = vmatprep.subr.bf16.mxu0 %v15310_v53  ;;  %v15321_v53 = vld [vmem:[#allocation375_spill] sm:$0xff] }
 0xd56   : > { %9371 = vmatpush1.bf16.msra.mxu0 %v15311_v27 }
 0xd57   : > { %9373 = vmatprep.subr.bf16.mxu0 %v15312_v50 }
 0xd5a   : > { %9375 = vmatpush1.bf16.msra.mxu0 %v15313_v17 }
 0xd5b   : > { %9377 = vmatprep.subr.bf16.mxu0 %v15314_v0 }
 0xd5e   : > { %9379 = vmatpush1.bf16.msra.mxu0 %v15315_v20  ;;  %v15322_v20 = vld [vmem:[#allocation376_spill] sm:$0xff] }
 0xd5f   : > { %9381 = vmatprep.subr.bf16.mxu0 %v15316_v34 }
 0xd62   : > { %9383 = vmatpush1.bf16.msra.mxu0 %v15317_v49 }
 0xd63   : > { %9385 = vmatprep.subr.bf16.mxu0 %v15318_v40 }
 0xd66   : > { %9387 = vmatpush1.bf16.msra.mxu0 %v15319_v8 }
 0xd67   : > { %9389 = vmatprep.subr.bf16.mxu0 %v15320_v42 }
 0xd9c   : > { %v4924_v43 = vpop.f32.mrb[28].mxu0 }
 0xd9d   : > { %v4929_v27 = vadd.f32 %v4924_v43, %v15321_v53  ;;  %v4926_v50 = vpop.f32.mrb[29].mxu0  ;;  %v6440_v43 = vld [vmem:[%s10902_s19 + $0xd0] sm:$0xff] }
 0xd9e   : > { %v4930_v34 = vadd.f32 %v4926_v50, %v15322_v20  ;;  %v6438_v20 = vld [vmem:[%s10902_s19 + $0xc0] sm:$0xff] }
 0xd9f   : > { %v4931_v17 = vadd.f32 %v4929_v27, %v13028_v32  ;;  %v6439_v32 = vld [vmem:[%s10902_s19 + $0xc8] sm:$0xff]  ;;  %v5244_v27 = vadd.f32 %v6440_v43, %v13078_v14 }
 0xda0   : > { %v5243_v50 = vadd.f32 %v6439_v32, %v13076_v57 }
 0xda1   : > { %v6433_v0 = vmul.f32 -1.442695, %v4931_v17  ;;  %v6445_v17 = vmul.f32 -1.442695, %v5244_v27 }
 0xda3   : > { %10117 = vpow2.f32 %v6433_v0  ;;  %v6444_v0 = vmul.f32 -1.442695, %v5243_v50 }
 0xda4   : > { %10119 = vtanh.f32 %v4930_v34 }
 0xdad   : > { %v10118_v49 = vpop.eup %10117 }
 0xdae   : > { %v4935_v4 = vadd.f32 1.0, %v10118_v49  ;;  %v10120_v40 = vpop.eup %10119 }
 0xdb0   : > { %10121 = vrcp.f32 %v4935_v4 }
 0xdb1   : > { %10123 = vpow2.f32 %v6445_v17 }
 0xdb2   : > { %10125 = vpow2.f32 %v6444_v0 }
 0xdba   : > { %v10122_v8 = vpop.eup %10121 }
 0xdbb   : > { %v13150_v42 = vmul.f32 %v10122_v8, %v10120_v40  ;;  %v10124_v4 = vpop.eup %10123  ;;  %v6437_v40 = vld [vmem:[%s10902_s19 + $0xb8] sm:$0xff] }
 0xdbc   : > { %v10126_v34 = vpop.eup %10125  ;;  %v5272_v49 = vadd.f32 1.0, %v10124_v4  ;;  %v15334_v4 = vld [vmem:[#allocation205_spill] sm:$0xff] }
 0xdbd   : > { %6434 = vst [vmem:[%s10925_s4 + $0x10] sm:$0xff] %v13150_v42  ;;  %5501 = vmatprep.mubr.f32.mxu0 %v13150_v42  ;;  %v5266_v8 = vadd.f32 1.0, %v10126_v34  ;;  %v15335_v34 = vld [vmem:[#allocation206_spill] sm:$0xff] }
 0xdbe   : > { %10127 = vrcp.f32 %v5272_v49  ;;  %v15336_v49 = vld [vmem:[#allocation207_spill] sm:$0xff] }
 0xdbf   : > { %10129 = vrcp.f32 %v5266_v8  ;;  %v15338_v8 = vld [vmem:[#allocation209_spill] sm:$0xff] }
 0xdc8   : > { %v10128_v57 = vpop.eup %10127 }
 0xdc9   : > { %v10130_v14 = vpop.eup %10129  ;;  %v5275_v27 = vmul.f32 %v10128_v57, %v12729_v36  ;;  %v15339_v57 = vld [vmem:[#allocation210_spill] sm:$0xff] }
 0xddc   : > { %v5093_v53 = vpop.f32.mrb[30].mxu0 }
 0xddd   : > { %v5241_v5 = vadd.f32 %v6437_v40, %v5093_v53  ;;  %v5095_v18 = vpop.f32.mrb[31].mxu0  ;;  %v15332_v53 = vld [vmem:[#allocation203_spill] sm:$0xff]  ;;  %v15337_v40 = vld [vmem:[#allocation208_spill] sm:$0xff] }
 0xdde   : > { %v5242_v30 = vadd.f32 %v6438_v20, %v5095_v18  ;;  %v15333_v20 = vld [vmem:[#allocation204_spill] sm:$0xff] }
 0xddf   : > { %v6443_v11 = vmul.f32 -1.442695, %v5241_v5  ;;  %v15325_v5 = vld [vmem:[#allocation180_spill] sm:$0xff] }
 0xde0   : > { %10131 = vtanh.f32 %v5242_v30 }
 0xde1   : > { %10133 = vpow2.f32 %v6443_v11 }
 0xdea   : > { %v10132_v43 = vpop.eup %10131 }
 0xdeb   : > { %v10134_v32 = vpop.eup %10133  ;;  %v5276_v50 = vmul.f32 %v10132_v43, %v10130_v14  ;;  %v15340_v14 = vld [vmem:[#allocation211_spill] sm:$0xff]  ;;  %v15341_v43 = vld [vmem:[#allocation212_spill] sm:$0xff] }
 0xdec   : > { %v5256_v17 = vadd.f32 1.0, %v10134_v32  ;;  %v15342_v32 = vld [vmem:[#allocation213_spill] sm:$0xff] }
 0xded   : > { %v5277_v0 = vadd.f32 %v5276_v50, %v5275_v27  ;;  %v15343_v27 = vld [vmem:[#allocation214_spill] sm:$0xff]  ;;  %v15344_v50 = vld [vmem:[#allocation215_spill] sm:$0xff] }
 0xdee   : > { %10135 = vrcp.f32 %v5256_v17  ;;  %v15345_v17 = vld [vmem:[#allocation216_spill] sm:$0xff] }
 0xdef   : > { %5343 = vmatmul.mubr.f32.vlgmr.msra.gmra.mrb[42].mxu1 %v5277_v0  ;;  %5433 = vst [vmem:[#allocation4] sm:$0xff] %v5277_v0  ;;  %v15346_v0 = vld [vmem:[#allocation218_spill] sm:$0xff] }
 0xdf0   : > { %9295 = vmatpush1.bf16.msra.mxu1 %v14688_v60  ;;  %5413 = vmatprep.mubr.f32.mxu1 %v14353_v2 }
 0xdf1   : > { %9297 = vmatprep.subr.bf16.mxu1 %v14689_v33 }
 0xdf4   : > { %9299 = vmatpush1.bf16.msra.mxu1 %v14690_v41  ;;  %v15323_v41 = vld [vmem:[#allocation178_spill] sm:$0xff] }
 0xdf5   : > { %9301 = vmatprep.subr.bf16.mxu1 %v15005_v48  ;;  %v15324_v48 = vld [vmem:[#allocation179_spill] sm:$0xff] }
 0xdf8   : > { %v10136_v11 = vpop.eup %10135  ;;  %9303 = vmatpush1.bf16.msra.mxu1 %v15006_v10  ;;  %v15326_v10 = vld [vmem:[#allocation181_spill] sm:$0xff] }
 0xdf9   : > { %9305 = vmatprep.subr.bf16.mxu1 %v15007_v62  ;;  %v5259_v36 = vmul.f32 %v10136_v11, %v12741_v38  ;;  %v15327_v62 = vld [vmem:[#allocation182_spill] sm:$0xff]  ;;  %v15328_v38 = vld [vmem:[#allocation183_spill] sm:$0xff]  ;;  %v15347_v11 = vld [vmem:[#allocation220_spill] sm:$0xff] }
 0xdfb   : > { %v5261_v30 = vadd.f32 %v13055_v22, %v5259_v36  ;;  %v15329_v22 = vld [vmem:[#allocation184_spill] sm:$0xff]  ;;  %v15348_v36 = vld [vmem:[#allocation222_spill] sm:$0xff] }
 0xdfc   : > { %9307 = vmatpush1.bf16.msra.mxu1 %v15009_v54  ;;  %v6753_v60 = vpop.f32.mrb[32].mxu0  ;;  %v15330_v54 = vld [vmem:[#allocation201_spill] sm:$0xff] }
 0xdfd   : > { %v6754_v18 = vpop.f32.mrb[33].mxu0  ;;  %9309 = vmatprep.subr.bf16.mxu1 %v15010_v47  ;;  %5432 = vst [vmem:[#allocation3] sm:$0xff] %v5261_v30  ;;  %v15331_v47 = vld [vmem:[#allocation202_spill] sm:$0xff] }
 0xdfe   : > { %v6755_v33 = vadd.f32 %v6754_v18, %v6753_v60  ;;  %v15350_v60 = vld [vmem:[#allocation226_spill] sm:$0xff]  ;;  %v15351_v18 = vld [vmem:[#allocation228_spill] sm:$0xff] }
 0xe00   : > { %9311 = vmatpush1.bf16.msra.mxu1 %v15323_v41  ;;  %v15352_v41 = vld [vmem:[#allocation230_spill] sm:$0xff] }
 0xe01   : > { %9313 = vmatprep.subr.bf16.mxu1 %v15324_v48  ;;  %v15353_v48 = vld [vmem:[#allocation232_spill] sm:$0xff] }
 0xe04   : > { %9315 = vmatpush1.bf16.msra.mxu1 %v15325_v5  ;;  %v15354_v5 = vld [vmem:[#allocation234_spill] sm:$0xff] }
 0xe05   : > { %9317 = vmatprep.subr.bf16.mxu1 %v15326_v10  ;;  %v15355_v10 = vld [vmem:[#allocation236_spill] sm:$0xff] }
 0xe08   : > { %9319 = vmatpush1.bf16.msra.mxu1 %v15327_v62  ;;  %v15356_v62 = vld [vmem:[#allocation238_spill] sm:$0xff] }
 0xe09   : > { %9321 = vmatprep.subr.bf16.mxu1 %v15328_v38  ;;  %v15357_v38 = vld [vmem:[#allocation240_spill] sm:$0xff] }
 0xe0c   : > { %9323 = vmatpush1.bf16.msra.mxu1 %v15329_v22  ;;  %v15358_v22 = vld [vmem:[#allocation242_spill] sm:$0xff] }
 0xe0d   : > { %9421 = vmatprep.subr.bf16.mxu1 %v15330_v54  ;;  %v15359_v54 = vld [vmem:[#allocation244_spill] sm:$0xff] }
 0xe0f   : > { %5414 = vmatmul.mubr.f32.vlgmr.msra.gmra.mrb[42].mxu1 %v5261_v30  ;;  %v15349_v30 = vld [vmem:[#allocation224_spill] sm:$0xff] }
 0xe10   : > { %5643 = vmatprep.mubr.f32.mxu1 %v13150_v42  ;;  %9423 = vmatpush1.bf16.msra.mxu1 %v15331_v47  ;;  %v15360_v47 = vld [vmem:[#allocation246_spill] sm:$0xff] }
 0xe11   : > { %9425 = vmatprep.subr.bf16.mxu1 %v15332_v53  ;;  %v15361_v53 = vld [vmem:[#allocation248_spill] sm:$0xff] }
 0xe14   : > { %9427 = vmatpush1.bf16.msra.mxu1 %v15333_v20  ;;  %v6441_v20 = vld [vmem:[%s10902_s19 + $0xd8] sm:$0xff]  ;;  %s10529_s19 = smov [#allocation19]  }
 0xe15   : > { %9429 = vmatprep.subr.bf16.mxu1 %v15334_v4  ;;  %s10400_s3 = sshll.u32 %s10529_s19, 4  ;;  %s10401_s3 = int_to_ptr.vmem [resolvable:$false] %s10400_s3 }
 0xe16   : > { %s10402_s24 = scalar_lea.vmem %s10401_s3, 1024  ;;  %p10403_p9 = scmp.lt.s32.totalorder %s13398_s9, %s10401_s3 }
 0xe17   : > { %p10404_p10 = scmp.lt.s32.totalorder %s10402_s24, %s10396_s16 }
 0xe18   : > { %9431 = vmatpush1.bf16.msra.mxu1 %v15335_v34  ;;  %v5245_v34 = vadd.f32 %v6755_v33, %v6441_v20  ;;  %v15365_v33 = vld [vmem:[#allocation262_spill] sm:$0xff]  ;;  %v15392_v20 = vld [vmem:[#allocation297_spill] sm:$0xff] }
 0xe19   : > { %9433 = vmatprep.subr.bf16.mxu1 %v15336_v49  ;;  %p10405_p11 = por %p10404_p10, %p10403_p9 }
 0xe1b   : > { %p10406_p3 = pnand %p10405_p11, %p10399_p2 }
 0xe1c   : > { %9435 = vmatpush1.bf16.msra.mxu1 %v15337_v40 }
 0xe1d   : > { %9437 = vmatprep.subr.bf16.mxu1 %v15338_v8 }
 0xe20   : > { %9439 = vmatpush1.bf16.msra.mxu1 %v15339_v57 }
 0xe21   : > { %9441 = vmatprep.subr.bf16.mxu1 %v15340_v14 }
 0xe24   : > { %9443 = vmatpush1.bf16.msra.mxu1 %v15341_v43 }
 0xe25   : > { %9445 = vmatprep.subr.bf16.mxu1 %v15342_v32 }
 0xe28   : > { %9447 = vmatpush1.bf16.msra.mxu1 %v15343_v27 }
 0xe29   : > { %9449 = vmatprep.subr.bf16.mxu1 %v15344_v50 }
 0xe2c   : > { %9451 = vmatpush1.bf16.msra.mxu1 %v15345_v17 }
 0xe2d   : > { %9453 = vmatprep.subr.bf16.mxu1 %v15346_v0  ;;  %v15366_v0 = vld [vmem:[#allocation190_spill] sm:$0xff] }
 0xe30   : > { %9455 = vmatpush1.bf16.msra.mxu1 %v15347_v11  ;;  %v15371_v11 = vld [vmem:[#allocation194_spill] sm:$0xff] }
 0xe31   : > { %9457 = vmatprep.subr.bf16.mxu1 %v15348_v36  ;;  %v15372_v36 = vld [vmem:[#allocation272_spill] sm:$0xff] }
 0xe34   : > { %9459 = vmatpush1.bf16.msra.mxu1 %v15349_v30  ;;  %v15373_v30 = vld [vmem:[#allocation195_spill] sm:$0xff] }
 0xe35   : > { %9461 = vmatprep.subr.bf16.mxu1 %v15350_v60  ;;  %v15374_v60 = vld [vmem:[#allocation274_spill] sm:$0xff] }
 0xe38   : > { %9463 = vmatpush1.bf16.msra.mxu1 %v15351_v18  ;;  %v15378_v18 = vld [vmem:[#allocation199_spill] sm:$0xff] }
 0xe39   : > { %9465 = vmatprep.subr.bf16.mxu1 %v15352_v41  ;;  %v15379_v41 = vld [vmem:[#allocation282_spill] sm:$0xff] }
 0xe3c   : > { %9467 = vmatpush1.bf16.msra.mxu1 %v15353_v48  ;;  %v15380_v48 = vld [vmem:[#allocation200_spill] sm:$0xff] }
 0xe3d   : > { %9469 = vmatprep.subr.bf16.mxu1 %v15354_v5  ;;  %v15381_v5 = vld [vmem:[#allocation284_spill] sm:$0xff] }
 0xe40   : > { %9471 = vmatpush1.bf16.msra.mxu1 %v15355_v10  ;;  %v15382_v10 = vld [vmem:[#allocation250_spill] sm:$0xff] }
 0xe41   : > { %9473 = vmatprep.subr.bf16.mxu1 %v15356_v62  ;;  %v15383_v62 = vld [vmem:[#allocation287_spill] sm:$0xff] }
 0xe44   : > { %9475 = vmatpush1.bf16.msra.mxu1 %v15357_v38  ;;  %v15387_v38 = vld [vmem:[#allocation261_spill] sm:$0xff] }
 0xe45   : > { %9477 = vmatprep.subr.bf16.mxu1 %v15358_v22  ;;  %v15388_v22 = vld [vmem:[#allocation293_spill] sm:$0xff] }
 0xe48   : > { %9479 = vmatpush1.bf16.msra.mxu1 %v15359_v54  ;;  %v15389_v54 = vld [vmem:[#allocation263_spill] sm:$0xff] }
 0xe49   : > { %9481 = vmatprep.subr.bf16.mxu1 %v15360_v47  ;;  %v15390_v47 = vld [vmem:[#allocation295_spill] sm:$0xff] }
 0xe4c   : > { %9483 = vmatpush1.bf16.msra.mxu1 %v15361_v53  ;;  %v15391_v53 = vld [vmem:[#allocation265_spill] sm:$0xff] }
 0xe4d   : > { %9485 = vmatprep.subr.bf16.mxu1 %v14736_v28  ;;  %v15363_v28 = vld [vmem:[#allocation260_spill] sm:$0xff] }
 0xee2   : > { %v5415_v4 = vpop.f32.mrb[42].mxu1 }
 0xee3   : > { %v5420_v49 = vadd.f32 %v5415_v4, %v14737_v61  ;;  %v5417_v40 = vpop.f32.mrb[43].mxu1  ;;  %v15364_v61 = vld [vmem:[#allocation189_spill] sm:$0xff]  ;;  %v15393_v4 = vld [vmem:[#allocation299_spill] sm:$0xff] }
 0xee4   : > { %v5421_v14 = vadd.f32 %v5417_v40, %v14738_v31  ;;  %v15362_v31 = vld [vmem:[#allocation188_spill] sm:$0xff]  ;;  %v15398_v40 = vld [vmem:[#allocation273_spill] sm:$0xff] }
 0xee5   : > { %v5422_v8 = vadd.f32 %v5420_v49, %v5245_v34  ;;  %v15396_v34 = vld [vmem:[#allocation271_spill] sm:$0xff] }
 0xee6   : > { %v15397_v49 = vld [vmem:[#allocation303_spill] sm:$0xff] }
 0xee7   : > { %v6446_v57 = vmul.f32 -1.442695, %v5422_v8  ;;  %v15399_v8 = vld [vmem:[#allocation305_spill] sm:$0xff] }
 0xee9   : > { %10137 = vpow2.f32 %v6446_v57  ;;  %v15400_v57 = vld [vmem:[#allocation275_spill] sm:$0xff] }
 0xeea   : > { %10139 = vtanh.f32 %v5421_v14  ;;  %v15401_v14 = vld [vmem:[#allocation307_spill] sm:$0xff] }
 0xef3   : > { %v10138_v43 = vpop.eup %10137 }
 0xef4   : > { %v5426_v32 = vadd.f32 1.0, %v10138_v43  ;;  %v10140_v27 = vpop.eup %10139  ;;  %v15403_v43 = vld [vmem:[#allocation310_spill] sm:$0xff] }
 0xef6   : > { %10141 = vrcp.f32 %v5426_v32  ;;  %v15404_v32 = vld [vmem:[#allocation281_spill] sm:$0xff] }
 0xf00   : > { %v10142_v50 = vpop.eup %10141 }
 0xf01   : > { %v13217_v17 = vmul.f32 %v10142_v50, %v10140_v27  ;;  %v15405_v27 = vld [vmem:[#allocation314_spill] sm:$0xff]  ;;  %v15406_v50 = vld [vmem:[#allocation285_spill] sm:$0xff] }
 0xf03   : > { %5431 = vst [vmem:[#allocation2] sm:$0xff] %v13217_v17  ;;  %5502 = vmatmul.mubr.f32.vlgmr.msra.gmra.mrb[34].mxu0 %v13217_v17  ;;  %5644 = vmatmul.mubr.f32.vlgmr.msra.gmra.mrb[44].mxu1 %v13217_v17 }
 0xf04   : > { %9391 = vmatpush1.bf16.msra.mxu0 %v14739_v56  ;;  %9487 = vmatpush1.bf16.msra.mxu1 %v14740_v37  ;;  %v15367_v56 = vld [vmem:[#allocation192_spill] sm:$0xff] }
 0xf05   : > { %9393 = vmatprep.subr.bf16.mxu0 %v15050_v15  ;;  %9489 = vmatprep.subr.bf16.mxu1 %v15051_v63  ;;  %v15368_v37 = vld [vmem:[#allocation268_spill] sm:$0xff]  ;;  %v15369_v15 = vld [vmem:[#allocation193_spill] sm:$0xff]  ;;  %v15370_v63 = vld [vmem:[#allocation270_spill] sm:$0xff] }
 0xf06   : > { %5572 = vmatprep.mubr.f32.mxu0 %v14353_v2  ;;  %5714 = vmatprep.mubr.f32.mxu1 %v14353_v2 }
 0xf08   : > { %9395 = vmatpush1.bf16.msra.mxu0 %v15362_v31  ;;  %9491 = vmatpush1.bf16.msra.mxu1 %v15363_v28  ;;  %v15407_v31 = vld [vmem:[#allocation316_spill] sm:$0xff]  ;;  %v15408_v28 = vld [vmem:[#allocation286_spill] sm:$0xff] }
 0xf09   : > { %9397 = vmatprep.subr.bf16.mxu0 %v15364_v61  ;;  %9493 = vmatprep.subr.bf16.mxu1 %v15365_v33  ;;  %v15411_v61 = vld [vmem:[#allocation290_spill] sm:$0xff] }
 0xf0a   : > { %v15414_v33 = vld [vmem:[#allocation298_spill] sm:$0xff] }
 0xf0c   : > { %9399 = vmatpush1.bf16.msra.mxu0 %v15366_v0  ;;  %9495 = vmatpush1.bf16.msra.mxu1 %v15057_v19  ;;  %v15375_v19 = vld [vmem:[#allocation196_spill] sm:$0xff]  ;;  %v15415_v0 = vld [vmem:[#allocation302_spill] sm:$0xff] }
 0xf0d   : > { %9401 = vmatprep.subr.bf16.mxu0 %v15058_v6  ;;  %9497 = vmatprep.subr.bf16.mxu1 %v15059_v13  ;;  %v15376_v6 = vld [vmem:[#allocation278_spill] sm:$0xff]  ;;  %v15377_v13 = vld [vmem:[#allocation280_spill] sm:$0xff] }
 0xf10   : > { %9403 = vmatpush1.bf16.msra.mxu0 %v15367_v56  ;;  %9499 = vmatpush1.bf16.msra.mxu1 %v15368_v37  ;;  %v15417_v56 = vld [vmem:[#allocation306_spill] sm:$0xff]  ;;  %v15423_v37 = vld [vmem:[#allocation339_spill] sm:$0xff] }
 0xf11   : > { %9405 = vmatprep.subr.bf16.mxu0 %v15369_v15  ;;  %9501 = vmatprep.subr.bf16.mxu1 %v15370_v63  ;;  %v15424_v15 = vld [vmem:[#allocation317_spill] sm:$0xff] }
 0xf12   : > { %v15427_v63 = vld [vmem:[#allocation321_spill] sm:$0xff] }
 0xf14   : > { %9407 = vmatpush1.bf16.msra.mxu0 %v15371_v11  ;;  %9503 = vmatpush1.bf16.msra.mxu1 %v15372_v36  ;;  %v15428_v11 = vld [vmem:[#allocation323_spill] sm:$0xff]  ;;  %v15430_v36 = vld [vmem:[#allocation326_spill] sm:$0xff] }
 0xf15   : > { %9409 = vmatprep.subr.bf16.mxu0 %v15373_v30  ;;  %9505 = vmatprep.subr.bf16.mxu1 %v15374_v60  ;;  %v15431_v30 = vld [vmem:[#allocation327_spill] sm:$0xff]  ;;  %v15432_v60 = vld [vmem:[#allocation329_spill] sm:$0xff] }
 0xf18   : > { %9411 = vmatpush1.bf16.msra.mxu0 %v15375_v19  ;;  %9507 = vmatpush1.bf16.msra.mxu1 %v14760_v45  ;;  %v15384_v45 = vld [vmem:[#allocation257_spill] sm:$0xff]  ;;  %v15434_v19 = vld [vmem:[#allocation332_spill] sm:$0xff] }
 0xf19   : > { %9413 = vmatprep.subr.bf16.mxu0 %v14761_v25  ;;  %9509 = vmatprep.subr.bf16.mxu1 %v15376_v6  ;;  %v15385_v25 = vld [vmem:[#allocation289_spill] sm:$0xff] }
 0xf1a   : > { %v15435_v6 = vld [vmem:[#allocation333_spill] sm:$0xff] }
 0xf1c   : > { %9415 = vmatpush1.bf16.msra.mxu0 %v15069_v21  ;;  %9511 = vmatpush1.bf16.msra.mxu1 %v15377_v13  ;;  %v15386_v21 = vld [vmem:[#allocation291_spill] sm:$0xff]  ;;  %v15436_v13 = vld [vmem:[#allocation334_spill] sm:$0xff] }
 0xf1d   : > { %9417 = vmatprep.subr.bf16.mxu0 %v15378_v18  ;;  %9513 = vmatprep.subr.bf16.mxu1 %v15379_v41  ;;  %v15437_v18 = vld [vmem:[#allocation335_spill] sm:$0xff]  ;;  %v15438_v41 = vld [vmem:[#allocation337_spill] sm:$0xff] }
 0xf20   : > { %9419 = vmatpush1.bf16.msra.mxu0 %v15380_v48  ;;  %9515 = vmatpush1.bf16.msra.mxu1 %v15381_v5  ;;  %v15439_v48 = vld [vmem:[#allocation338_spill] sm:$0xff]  ;;  %v15440_v5 = vld [vmem:[#allocation340_spill] sm:$0xff] }
 0xf21   : > { %9517 = vmatprep.subr.bf16.mxu0 %v15382_v10  ;;  %9613 = vmatprep.subr.bf16.mxu1 %v15383_v62  ;;  %v15441_v10 = vld [vmem:[#allocation341_spill] sm:$0xff]  ;;  %v15442_v62 = vld [vmem:[#allocation342_spill] sm:$0xff] }
 0xf23   : > { %5573 = vmatmul.mubr.f32.vlgmr.msra.gmra.mrb[34].mxu0 %v13035_v9  ;;  %5715 = vmatmul.mubr.f32.vlgmr.msra.gmra.mrb[44].mxu1 %v13035_v9 }
 0xf24   : > { %9519 = vmatpush1.bf16.msra.mxu0 %v15384_v45  ;;  %5785 = vmatprep.mubr.f32.mxu0 %v13150_v42  ;;  %v15443_v45 = vld [vmem:[#allocation343_spill] sm:$0xff] }
 0xf25   : > { %9615 = vmatpush3.bf16.msra.mxu1 %v15385_v25  ;;  %5927 = vmatprep.mubr.f32.mxu1 %v13150_v42  ;;  %v15394_v42 = vld [vmem:[#allocation269_spill] sm:$0xff]  ;;  %v15444_v25 = vld [vmem:[#allocation344_spill] sm:$0xff] }
 0xf26   : > { %9521 = vmatprep.subr.bf16.mxu0 %v15079_v7  ;;  %9617 = vmatprep.subr.bf16.mxu1 %v15386_v21  ;;  %v15395_v7 = vld [vmem:[#allocation301_spill] sm:$0xff] }
 0xf27   : > { %v15445_v21 = vld [vmem:[#allocation345_spill] sm:$0xff] }
 0xf28   : > { %9523 = vmatpush1.bf16.msra.mxu0 %v15387_v38  ;;  %v15446_v38 = vld [vmem:[#allocation346_spill] sm:$0xff] }
 0xf29   : > { %9619 = vmatpush3.bf16.msra.mxu1 %v15388_v22  ;;  %9525 = vmatprep.subr.bf16.mxu0 %v15389_v54  ;;  %v15447_v22 = vld [vmem:[#allocation347_spill] sm:$0xff]  ;;  %v15448_v54 = vld [vmem:[#allocation348_spill] sm:$0xff] }
 0xf2a   : > { %9621 = vmatprep.subr.bf16.mxu1 %v15390_v47  ;;  %v15449_v47 = vld [vmem:[#allocation349_spill] sm:$0xff] }
 0xf2c   : > { %9527 = vmatpush1.bf16.msra.mxu0 %v15391_v53  ;;  %v15450_v53 = vld [vmem:[#allocation350_spill] sm:$0xff] }
 0xf2d   : > { %9623 = vmatpush3.bf16.msra.mxu1 %v15392_v20  ;;  %9529 = vmatprep.subr.bf16.mxu0 %v14779_v26  ;;  %v15402_v26 = vld [vmem:[#allocation279_spill] sm:$0xff] }
 0xf2e   : > { %9625 = vmatprep.subr.bf16.mxu1 %v15393_v4  ;;  %v15451_v20 = vld [vmem:[#allocation351_spill] sm:$0xff]  ;;  %v15452_v4 = vld [vmem:[#allocation352_spill] sm:$0xff] }
 0xf30   : > { %9531 = vmatpush1.bf16.msra.mxu0 %v15394_v42  ;;  %v15453_v42 = vld [vmem:[#allocation353_spill] sm:$0xff] }
 0xf31   : > { %9627 = vmatpush3.bf16.msra.mxu1 %v15395_v7  ;;  %9533 = vmatprep.subr.bf16.mxu0 %v15396_v34  ;;  %v15454_v7 = vld [vmem:[#allocation354_spill] sm:$0xff]  ;;  %v15455_v34 = vld [vmem:[#allocation355_spill] sm:$0xff] }
 0xf32   : > { %9629 = vmatprep.subr.bf16.mxu1 %v15397_v49  ;;  %v15456_v49 = vld [vmem:[#allocation356_spill] sm:$0xff] }
 0xf34   : > { %9535 = vmatpush1.bf16.msra.mxu0 %v15398_v40 }
 0xf35   : > { %9631 = vmatpush3.bf16.msra.mxu1 %v15399_v8  ;;  %9537 = vmatprep.subr.bf16.mxu0 %v15400_v57  ;;  %v15457_v57 = vld [vmem:[#allocation251_spill] sm:$0xff] }
 0xf36   : > { %9633 = vmatprep.subr.bf16.mxu1 %v15401_v14 }
 0xf38   : > { %9539 = vmatpush1.bf16.msra.mxu0 %v15094_v52  ;;  %v15410_v52 = vld [vmem:[#allocation319_spill] sm:$0xff] }
 0xf39   : > { %9635 = vmatpush3.bf16.msra.mxu1 %v11826_v59  ;;  %9541 = vmatprep.subr.bf16.mxu0 %v15402_v26  ;;  %v15409_v59 = vld [vmem:[#allocation288_spill] sm:$0xff] }
 0xf3a   : > { %9637 = vmatprep.subr.bf16.mxu1 %v15403_v43 }
 0xf3c   : > { %9543 = vmatpush1.bf16.msra.mxu0 %v15404_v32  ;;  %v15458_v32 = vld [vmem:[#allocation254_spill] sm:$0xff] }
 0xf3d   : > { %9639 = vmatpush3.bf16.msra.mxu1 %v15098_v39  ;;  %9545 = vmatprep.subr.bf16.mxu0 %v15099_v23  ;;  %v15412_v39 = vld [vmem:[#allocation322_spill] sm:$0xff] }
 0xf3e   : > { %9641 = vmatprep.subr.bf16.mxu1 %v15405_v27  ;;  %v15413_v23 = vld [vmem:[#allocation294_spill] sm:$0xff] }
 0xf40   : > { %9547 = vmatpush1.bf16.msra.mxu0 %v15406_v50 }
 0xf41   : > { %9643 = vmatpush3.bf16.msra.mxu1 %v15407_v31  ;;  %9549 = vmatprep.subr.bf16.mxu0 %v15408_v28  ;;  %v15459_v28 = vld [vmem:[#allocation252_spill] sm:$0xff] }
 0xf42   : > { %9644 = vmatprep.subr.bf16.mxu1 %v14797_v35 }
 0xf44   : > { %5928 = vmatmul.mubr.f32.vlgmr.msra.gmra.mrb[46].mxu1 %v13217_v17  ;;  %9551 = vmatpush1.bf16.msra.mxu0 %v15409_v59 }
 0xf45   : > { %9646 = vmatpush3.bf16.msra.mxu1 %v15410_v52  ;;  %9553 = vmatprep.subr.bf16.mxu0 %v15411_v61 }
 0xf46   : > { %9647 = vmatprep.subr.bf16.mxu1 %v14797_v35  ;;  %6945 = vmatprep.mubr.msk.f32.mxu1 %vm10528_vm0, %v14353_v2 }
 0xf48   : > { %9555 = vmatpush1.bf16.msra.mxu0 %v15107_v55  ;;  %v15416_v55 = vld [vmem:[#allocation331_spill] sm:$0xff] }
 0xf49   : > { %9649 = vmatpush3.bf16.msra.mxu1 %v15412_v39  ;;  %9557 = vmatprep.subr.bf16.mxu0 %v15413_v23 }
 0xf4a   : > { %9650 = vmatprep.subr.bf16.mxu1 %v14797_v35 }
 0xf4c   : > { %9559 = vmatpush1.bf16.msra.mxu0 %v14804_v24  ;;  %v15418_v24 = vld [vmem:[#allocation308_spill] sm:$0xff] }
 0xf4d   : > { %9652 = vmatpush3.bf16.msra.mxu1 %v15110_v12  ;;  %9561 = vmatprep.subr.bf16.mxu0 %v15414_v33  ;;  %v15420_v12 = vld [vmem:[#allocation336_spill] sm:$0xff] }
 0xf4e   : > { %9653 = vmatprep.subr.bf16.mxu1 %v14797_v35 }
 0xf50   : > { %9563 = vmatpush1.bf16.msra.mxu0 %v14807_v46  ;;  %v15419_v46 = vld [vmem:[#allocation311_spill] sm:$0xff] }
 0xf51   : > { %9655 = vmatpush3.bf16.msra.mxu1 %v15112_v16  ;;  %9565 = vmatprep.subr.bf16.mxu0 %v15415_v0  ;;  %v15421_v16 = vld [vmem:[#allocation313_spill] sm:$0xff] }
 0xf52   : > { %9656 = vmatprep.subr.bf16.mxu1 %v14797_v35 }
 0xf54   : > { %9567 = vmatpush1.bf16.msra.mxu0 %v14810_v3  ;;  %v15422_v3 = vld [vmem:[#allocation315_spill] sm:$0xff] }
 0xf55   : > { %9658 = vmatpush3.bf16.msra.mxu1 %v15416_v55  ;;  %9569 = vmatprep.subr.bf16.mxu0 %v15417_v56 }
 0xf56   : > { %9659 = vmatprep.subr.bf16.mxu1 %v14797_v35 }
 0xf58   : > { %9571 = vmatpush1.bf16.msra.mxu0 %v15418_v24 }
 0xf59   : > { %9661 = vmatpush3.bf16.msra.mxu1 %v11915_v51  ;;  %9573 = vmatprep.subr.bf16.mxu0 %v15116_v44  ;;  %v15425_v51 = vld [vmem:[#allocation318_spill] sm:$0xff]  ;;  %v15426_v44 = vld [vmem:[#allocation320_spill] sm:$0xff] }
 0xf5a   : > { %9662 = vmatprep.subr.bf16.mxu1 %v14797_v35 }
 0xf5c   : > { %9575 = vmatpush1.bf16.msra.mxu0 %v15419_v46 }
 0xf5d   : > { %9664 = vmatpush3.bf16.msra.mxu1 %v15420_v12  ;;  %9577 = vmatprep.subr.bf16.mxu0 %v15421_v16 }
 0xf5e   : > { %9665 = vmatprep.subr.bf16.mxu1 %v14797_v35  ;;  %v15429_v35 = vld [vmem:[#allocation324_spill] sm:$0xff] }
 0xf60   : > { %9579 = vmatpush1.bf16.msra.mxu0 %v15422_v3 }
 0xf61   : > { %9667 = vmatpush3.bf16.msra.mxu1 %v15423_v37  ;;  %9581 = vmatprep.subr.bf16.mxu0 %v15424_v15 }
 0xf63   : > { %5786 = vmatmul.mubr.f32.vlgmr.msra.gmra.mrb[36].mxu0 %v13217_v17  ;;  %v15433_v17 = vld [vmem:[#allocation330_spill] sm:$0xff] }
 0xf64   : > { %6946 = vmatmul.mubr.f32.vlgmr.msra.gmra.mrb[48].mxu1 %v13035_v9  ;;  %9583 = vmatpush1.bf16.msra.mxu0 %v15425_v51 }
 0xf65   : > { %9585 = vmatprep.subr.bf16.mxu0 %v15426_v44  ;;  %5856 = vmatprep.mubr.f32.mxu0 %v14353_v2 }
 0xf68   : > { %9587 = vmatpush1.bf16.msra.mxu0 %v15427_v63 }
 0xf69   : > { %9589 = vmatprep.subr.bf16.mxu0 %v15428_v11 }
 0xf6c   : > { %9591 = vmatpush1.bf16.msra.mxu0 %v15429_v35 }
 0xf6d   : > { %9593 = vmatprep.subr.bf16.mxu0 %v15430_v36  ;;  %v15460_v36 = vld [vmem:[#allocation358_spill] sm:$0xff] }
 0xf70   : > { %9595 = vmatpush1.bf16.msra.mxu0 %v15431_v30 }
 0xf71   : > { %9597 = vmatprep.subr.bf16.mxu0 %v15432_v60 }
 0xf74   : > { %9599 = vmatpush1.bf16.msra.mxu0 %v15433_v17 }
 0xf75   : > { %9601 = vmatprep.subr.bf16.mxu0 %v15434_v19 }
 0xf78   : > { %9603 = vmatpush1.bf16.msra.mxu0 %v15435_v6 }
 0xf79   : > { %9605 = vmatprep.subr.bf16.mxu0 %v15436_v13 }
 0xf7c   : > { %9607 = vmatpush1.bf16.msra.mxu0 %v15437_v18 }
 0xf7d   : > { %9609 = vmatprep.subr.bf16.mxu0 %v15438_v41 }
 0xf80   : > { %9611 = vmatpush1.bf16.msra.mxu0 %v15439_v48 }
 0xf81   : > { %9669 = vmatprep.subr.bf16.mxu0 %v15440_v5 }
 0xf83   : > { %5857 = vmatmul.mubr.f32.vlgmr.msra.gmra.mrb[36].mxu0 %v13035_v9 }
 0xf84   : > { %9671 = vmatpush1.bf16.msra.mxu0 %v15441_v10  ;;  %6099 = vmatprep.mubr.f32.mxu0 %v14353_v2 }
 0xf85   : > { %9673 = vmatprep.subr.bf16.mxu0 %v15442_v62 }
 0xf88   : > { %9675 = vmatpush1.bf16.msra.mxu0 %v15443_v45  ;;  %v15462_v45 = vld [vmem:[#allocation360_spill] sm:$0xff] }
 0xf89   : > { %9677 = vmatprep.subr.bf16.mxu0 %v15444_v25  ;;  %v15463_v25 = vld [vmem:[#allocation361_spill] sm:$0xff] }
 0xf8c   : > { %9679 = vmatpush1.bf16.msra.mxu0 %v15445_v21  ;;  %v15464_v21 = vld [vmem:[#allocation362_spill] sm:$0xff] }
 0xf8d   : > { %9681 = vmatprep.subr.bf16.mxu0 %v15446_v38  ;;  %v15465_v38 = vld [vmem:[#allocation363_spill] sm:$0xff] }
 0xf90   : > { %9683 = vmatpush1.bf16.msra.mxu0 %v15447_v22  ;;  %v15466_v22 = vld [vmem:[#allocation364_spill] sm:$0xff] }
 0xf91   : > { %9685 = vmatprep.subr.bf16.mxu0 %v15448_v54  ;;  %v15467_v54 = vld [vmem:[#allocation365_spill] sm:$0xff] }
 0xf94   : > { %9687 = vmatpush1.bf16.msra.mxu0 %v15449_v47  ;;  %v15468_v47 = vld [vmem:[#allocation366_spill] sm:$0xff] }
 0xf95   : > { %9689 = vmatprep.subr.bf16.mxu0 %v15450_v53  ;;  %v15470_v53 = vld [vmem:[#allocation368_spill] sm:$0xff] }
 0xf98   : > { %9691 = vmatpush1.bf16.msra.mxu0 %v15451_v20  ;;  %v15471_v20 = vld [vmem:[#allocation369_spill] sm:$0xff] }
 0xf99   : > { %9693 = vmatprep.subr.bf16.mxu0 %v15452_v4  ;;  %v15472_v4 = vld [vmem:[#allocation370_spill] sm:$0xff] }
 0xf9c   : > { %9695 = vmatpush1.bf16.msra.mxu0 %v15453_v42  ;;  %v15474_v42 = vld [vmem:[#allocation372_spill] sm:$0xff] }
 0xf9d   : > { %9697 = vmatprep.subr.bf16.mxu0 %v15454_v7  ;;  %v15476_v7 = vld [vmem:[#allocation373_spill] sm:$0xff] }
 0xfa0   : > { %9699 = vmatpush1.bf16.msra.mxu0 %v15455_v34  ;;  %v15478_v34 = vld [vmem:[#allocation374_spill] sm:$0xff] }
 0xfa1   : > { %9701 = vmatprep.subr.bf16.mxu0 %v15456_v49 }
 0xff6   : > { %v5574_v40 = vpop.f32.mrb[34].mxu0  ;;  %v5716_v8 = vpop.f32.mrb[44].mxu1 }
 0xff7   : > { %v9754_v14 = vadd.f32 %v5716_v8, %v15457_v57  ;;  %v5576_v26 = vpop.f32.mrb[35].mxu0  ;;  %v5718_v43 = vpop.f32.mrb[45].mxu1  ;;  %v9752_v59 = vadd.f32 %v5574_v40, %v15459_v28  ;;  %v15479_v40 = vld [vmem:[#allocation375_spill] sm:$0xff] }
 0xff8   : > { %v9753_v27 = vadd.f32 %v5576_v26, %v15458_v32 }
 0xff9   : > { %v6448_v50 = vmul.f32 -1.442695, %v9754_v14 }
 0xffa   : > { %v6447_v31 = vmul.f32 -1.442695, %v9753_v27 }
 0xffb   : > { %10143 = vpow2.f32 %v6448_v50 }
 0xffc   : > { %10145 = vpow2.f32 %v6447_v31 }
 0xffd   : > { %10147 = vtanh.f32 %v9752_v59 }
0x1005   : > { %v10144_v52 = vpop.eup %10143 }
0x1006   : > { %v10146_v61 = vpop.eup %10145  ;;  %v6013_v39 = vadd.f32 1.0, %v10144_v52 }
0x1007   : > { %v6007_v23 = vadd.f32 1.0, %v10146_v61  ;;  %v10148_v33 = vpop.eup %10147 }
0x1008   : > { %10149 = vrcp.f32 %v6013_v39 }
0x1009   : > { %10151 = vrcp.f32 %v6007_v23 }
0x1012   : > { %v10150_v0 = vpop.eup %10149 }
0x1013   : > { %v10152_v55 = vpop.eup %10151  ;;  %v6016_v56 = vmul.f32 %v10150_v0, %v13025_v29  ;;  %v15461_v29 = vld [vmem:[#allocation359_spill] sm:$0xff] }
0x1014   : > { %v6017_v24 = vmul.f32 %v10152_v55, %v10148_v33  ;;  %v9755_v19 = vadd.f32 %v5718_v43, %v15461_v29  ;;  %v15480_v43 = vld [vmem:[#allocation376_spill] sm:$0xff] }
0x1016   : > { %v6018_v46 = vadd.f32 %v6017_v24, %v6016_v56 }
0x1017   : > { %v6788_v12 = vpop.f32.mrb[46].mxu1 }
0x1018   : > { %v6789_v16 = vpop.f32.mrb[47].mxu1  ;;  %6189 = vst [vmem:[#allocation3 + $0x8] sm:$0xff] %v6018_v46 }
0x1019   : > { %v6790_v3 = vadd.f32 %v6789_v16, %v6788_v12 }
0x101b   : > { %v5930_v37 = vadd.f32 %v6790_v3, %v14906_v1 }
0x1037   : > { %v5999_v15 = vpop.f32.mrb[48].mxu1 }
0x1038   : > { %v6000_v51 = vadd.f32 %v5999_v15, %v5930_v37  ;;  %v6947_v44 = vpop.f32.mrb[49].mxu1 }
0x1056   : > { %v5858_v63 = vpop.f32.mrb[36].mxu0 }
0x1057   : > { %v9756_v11 = vadd.f32 %v5858_v63, %v12118_v58  ;;  %v5860_v35 = vpop.f32.mrb[37].mxu0 }
0x1058   : > { %v9757_v30 = vadd.f32 %v5860_v35, %v15460_v36 }
0x1059   : > { %v6449_v60 = vmul.f32 -1.442695, %v9756_v11 }
0x105a   : > { %v6450_v17 = vmul.f32 -1.442695, %v9757_v30 }
0x105b   : > { %10153 = vpow2.f32 %v6449_v60 }
0x105c   : > { %10155 = vpow2.f32 %v6450_v17 }
0x105d   : > { %10157 = vtanh.f32 %v9755_v19 }
0x1065   : > { %v10154_v6 = vpop.eup %10153 }
0x1066   : > { %v10156_v13 = vpop.eup %10155  ;;  %v6023_v18 = vadd.f32 1.0, %v10154_v6 }
0x1067   : > { %v6029_v1 = vadd.f32 1.0, %v10156_v13  ;;  %v10158_v41 = vpop.eup %10157 }
0x1068   : > { %10159 = vrcp.f32 %v6023_v18 }
0x1069   : > { %10161 = vrcp.f32 %v6029_v1 }
0x1072   : > { %v10160_v48 = vpop.eup %10159 }
0x1073   : > { %v10162_v5 = vpop.eup %10161  ;;  %v6033_v58 = vmul.f32 %v10160_v48, %v10158_v41 }
0x1074   : > { %v6032_v10 = vmul.f32 %v10162_v5, %v13035_v9  ;;  %v15469_v9 = vld [vmem:[#allocation367_spill] sm:$0xff] }
0x1076   : > { %v6034_v62 = vadd.f32 %v6033_v58, %v6032_v10 }
0x1078   : > { %6100 = vmatmul.mubr.f32.vlgmr.msra.gmra.mrb[38].mxu0 %v6034_v62  ;;  %6190 = vst [vmem:[#allocation4 + $0x8] sm:$0xff] %v6034_v62 }
0x1079   : > { %9703 = vmatpush1.bf16.msra.mxu0 %v15462_v45  ;;  %6170 = vmatprep.mubr.f32.mxu0 %v14353_v2  ;;  %v15473_v2 = vld [vmem:[#allocation371_spill] sm:$0xff] }
0x107a   : > { %9705 = vmatprep.subr.bf16.mxu0 %v15463_v25 }
0x107d   : > { %9707 = vmatpush1.bf16.msra.mxu0 %v15464_v21 }
0x107e   : > { %9709 = vmatprep.subr.bf16.mxu0 %v15465_v38 }
0x1081   : > { %9711 = vmatpush1.bf16.msra.mxu0 %v15466_v22 }
0x1082   : > { %9713 = vmatprep.subr.bf16.mxu0 %v15467_v54 }
0x1085   : > { %9715 = vmatpush1.bf16.msra.mxu0 %v15468_v47 }
0x1086   : > { %9717 = vmatprep.subr.bf16.mxu0 %v15469_v9 }
0x1089   : > { %9719 = vmatpush1.bf16.msra.mxu0 %v15470_v53 }
0x108a   : > { %9721 = vmatprep.subr.bf16.mxu0 %v15471_v20 }
0x108d   : > { %9723 = vmatpush1.bf16.msra.mxu0 %v15472_v4 }
0x108e   : > { %9725 = vmatprep.subr.bf16.mxu0 %v15473_v2 }
0x1091   : > { %9727 = vmatpush1.bf16.msra.mxu0 %v15474_v42 }
0x1092   : > { %9729 = vmatprep.subr.bf16.mxu0 %v15476_v7 }
0x1095   : > { %9731 = vmatpush1.bf16.msra.mxu0 %v15478_v34 }
0x1098   : > { %6171 = vmatmul.mubr.f32.vlgmr.msra.gmra.mrb[38].mxu0 %v6018_v46 }
0x116b   : > { %v6172_v49 = vpop.f32.mrb[38].mxu0 }
0x116c   : > { %v6177_v8 = vadd.f32 %v6172_v49, %v15479_v40  ;;  %v6174_v57 = vpop.f32.mrb[39].mxu0 }
0x116d   : > { %v6178_v32 = vadd.f32 %v6174_v57, %v15480_v43 }
0x116e   : > { %v6179_v14 = vadd.f32 %v6177_v8, %v6000_v51 }
0x1170   : > { %v6451_v26 = vmul.f32 -1.442695, %v6179_v14 }
0x1172   : > { %10163 = vpow2.f32 %v6451_v26 }
0x1173   : > { %10165 = vtanh.f32 %v6178_v32 }
0x117c   : > { %v10164_v27 = vpop.eup %10163 }
0x117d   : > { %v6183_v50 = vadd.f32 1.0, %v10164_v27  ;;  %v10166_v31 = vpop.eup %10165 }
0x117f   : > { %10167 = vrcp.f32 %v6183_v50 }
0x1189   : > { %v10168_v28 = vpop.eup %10167 }
0x118a   : > { %v6187_v59 = vmul.f32 %v10168_v28, %v10166_v31 }
0x118c   : > { %6188 = vst [vmem:[#allocation2 + $0x8] sm:$0xff] %v6187_v59  ;;  %6452 = vst [vmem:[%s10925_s4 + $0x18] sm:$0xff] %v6187_v59 }
0x118d   : > { %10409 = shalt.err (!%p10406_p3)
}
0x118e   : > { %s10410_s4 = scalar_lea.hbm %s13396_s1, 512  ;;  %s10414_s20 = scalar_lea.hbm %s15481_s21, 2048 }
0x118f   : > { %p10411_p12 = scmp.ne.s32.totalorder %s13396_s1, %s10410_s4  ;;  %p10415_p1 = scmp.lt.u32.totalorder %s13396_s1, %s15481_s21 }
0x1190   : > { %p10416_p6 = scmp.lt.u32.totalorder %s10414_s20, %s10410_s4  ;;  %p10418_p8 = scmp.lt.u32.totalorder %s10410_s4, %s13396_s1 }
0x1191   : > { %p10412_p13 = pnand %p10411_p12, %p15482_p7 }
0x1192   : > { %p10417_p4 = por %p10416_p6, %p10415_p1 }
0x1193   : > { %p10413_p0 = pneg %p10412_p13 }
0x1194   : > { %p10419_p5 = por %p10418_p8, %p10417_p4 }
0x1196   : > { %p10420_p2 = pnand %p10419_p5, %p10413_p0 }
0x1198   : > { %10423 = shalt.err (!%p10420_p2)
}
0x1199   : > { %s10530_s26 = smov 128   ;;  %s10531_s8 = smov 256  }
0x119a   : > { %s10532_s16 = smov 8  }
0x119b   : > { %9830 = dma.vmem_to_hbm [thread:$0]  (%p15482_p7), %s13398_s9, 512, %s13396_s1, %s6194_s17, %s10530_s26, %s10531_s8, %s10532_s16  }
0x119c PF: > { %p9877_p9 = scmp.ge.s32.totalorder %s10510_s12, 2  ;;  %s6224_s19 = sand.u32 1, %s10482_s27  }
0x119d   : > { %p15483_p10 = scmp.ne.s32.totalorder %s14203_s15, 0  ;;  %s6225_s3 = scalar_lea.sflag [#allocation7], %s6224_s19 }
0x119f   : > { %p9859_p11 = pnand %p9877_p9, %p15483_p10 }
0x11a1   : > { %10477 = dma.done.wait (!%p9859_p11), %s6225_s3, 512  }
0x11a2   : > { %10479 = vsyncadd (!%p9859_p11), %s6225_s3, 4294966784  ;;  %s28_s12 = sadd.s32 1, %s10510_s12   ;;  %s15484_s27 = smov %s10486_s28 }
0x11a3   : > { %p25_p3 = scmp.ge.s32.totalorder %s28_s12, 6   ;;  %s15485_s28 = smov %s10490_s29 }
0x11a4   : > { %s15486_s29 = smov %s10848_s23  ;;  %s15487_s30 = smov %s10502_s10 }
0x11a5   : > { %s15488_s9 = smov %s10506_s11  ;;  %s15489_s10 = smov %s15492_s2 }
0x11a6   : > { %s15490_s11 = smov %s15496_s13  ;;  %27 = sbr.rel (!%p25_p3) target bundleno = 18 (0x12), region = 138 }
0x11ad   :  { %6230 = vsyncpa [#allocation6], 1 }
0x11ae   :  { %6232 = vsyncpa [#allocation6 + $0x1], 1 }
0x11af   :  { %6233 = vsyncpa [#allocation9], 1 }
0x11b0   :  { %6234 = vsyncpa [#allocation12], 1 }
0x11b1   :  { %6235 = vsyncpa [#allocation15], 1 }
0x11b2   :  { %6236 = vsyncpa [#allocation18], 1 }
0x11b3   :  { %6237 = vsyncpa [#allocation7], 1 }
0x11b4   :  { %6239 = vsyncpa [#allocation7 + $0x1], 1 }

</bundles_post_ra>
